<compile_context>
chip_gen: v6e
topology: v6e:2x2x1
jax: 0.10.0
libtpu: 0.0.40
codegen_flags: <defaults>
</compile_context>

<pallas_src>
import functools

import jax
import jax.numpy as jnp
from jax.experimental import pallas as pl
from jax.experimental.pallas import tpu as pltpu


def gat_fused_kernel(x_full_ref, x_rows_ref, adj_ref, w_ref, al_ref, ar_ref, o_ref,
                     *, n_heads, d_head):
    """All-heads GAT forward for one row tile of the graph.

    x_full_ref : [N, F_in]           all node features (grid-invariant)
    x_rows_ref : [TM, F_in]          this row tile's node features
    adj_ref    : [TM, N]             row tile of the dense adjacency (nonzero == edge value)
    w_ref      : [F_in, H*d_head]    all head projections, head-major columns
    al_ref     : [1, H*d_head]       left half of every head's attention vector a
    ar_ref     : [1, H*d_head]       right half of every head's attention vector a
    o_ref      : [TM, H*d_head]      lane-dense output slab (== torch.cat(out, dim=1) rows)
    """
    bf16 = jnp.bfloat16
    f32 = jnp.float32

    w = w_ref[...].astype(bf16)                                        # [F_in, H*d]

    # One fused projection for ALL heads (bf16 MXU inputs, f32 accumulation).
    h_all = jnp.dot(x_full_ref[...].astype(bf16), w,
                    preferred_element_type=f32)                        # [N,  H*d]
    h_rows = jnp.dot(x_rows_ref[...].astype(bf16), w,
                     preferred_element_type=f32)                       # [TM, H*d]

    adj = adj_ref[...]                                                 # [TM, N] f32
    mask = adj != 0.0
    al = al_ref[...]                                                   # [1, H*d] f32
    ar = ar_ref[...]                                                   # [1, H*d] f32

    # Static (unrolled) loop over heads; per-head work shares h_all / adj already in VMEM.
    for head in range(n_heads):
        cols = slice(head * d_head, (head + 1) * d_head)
        h_h = h_all[:, cols]                                           # [N, d]

        # a @ cat(h[src], h[dst]) == (h[src] . a_left) + (h[dst] . a_right)
        f_src = jnp.sum(h_rows[:, cols] * al[:, cols],
                        axis=1, keepdims=True)                         # [TM, 1]
        f_dst = jnp.sum(h_h * ar[:, cols],
                        axis=1, keepdims=True)                         # [N, 1]
        # NOTE: the [N,1]->[1,N] transpose is evaluated once per row tile (XLU);
        # if column tiling is ever added it must stay hoisted out of that loop.
        logits = adj * (f_src + f_dst.T)                               # [TM, N]
        # LeakyReLU(0.2), f32 on the VPU.
        logits = jnp.where(logits > 0, logits, 0.2 * logits)

        # exp only contributes on existing edges. Exact per-row max shift over edges
        # (clamped at 0 so empty rows stay finite); the shift cancels in hp / rowsum.
        m = jnp.max(jnp.where(mask, logits, 0.0), axis=1, keepdims=True)   # [TM, 1]
        e = jnp.where(mask, jnp.exp(logits - m), 0.0)                  # [TM, N]  f32

        # Row-wise softmax denominator (sparse.sum over dim=1), f32.
        rowsum = jnp.sum(e, axis=1, keepdims=True)                     # [TM, 1]

        # h_prime = (edge_e_sp @ h) / rowsum  — bf16 MXU inputs, f32 accumulation.
        hp = jnp.dot(e.astype(bf16), h_h.astype(bf16),
                     preferred_element_type=f32)                       # [TM, d]

        inv = pl.reciprocal(jnp.maximum(rowsum, 1e-20), approx=True)   # EUP, zero-row guard
        o_ref[:, cols] = (hp * inv).astype(o_ref.dtype)


def structural_attention_forward(x, adj, W_stack, a_stack, *, block_rows=128):
    """Pallas forward for StructuralAttentionLayer (inference mode).

    x       : [N, F_in] float32
    adj     : [N, N]    float32 dense adjacency (nonzero entry (i, j) == edge value,
                        equivalent to the coalesced sparse adj in PyTorch)
    W_stack : [H, F_in, d_head]   (W_list stacked)
    a_stack : [H, 1, 2*d_head]    (a_list stacked)
    returns : [N, H * d_head]     == torch.cat(out, dim=1)
    """
    N, F_in = x.shape
    H, _, d_head = W_stack.shape
    HD = H * d_head

    block_rows = min(block_rows, N)
    assert N % block_rows == 0, "N must be a multiple of block_rows"
    num_tiles = N // block_rows

    # Head-fused parameter layouts (head-major feature blocks, matching torch.cat(out, dim=1)).
    W_flat = jnp.transpose(W_stack, (1, 0, 2)).reshape(F_in, HD)       # [F_in, H*d_head]
    al_flat = a_stack[:, 0, :d_head].reshape(1, HD)                    # [1, H*d_head]
    ar_flat = a_stack[:, 0, d_head:].reshape(1, HD)                    # [1, H*d_head]

    kernel = functools.partial(gat_fused_kernel, n_heads=H, d_head=d_head)

    out = pl.pallas_call(
        kernel,
        out_shape=jax.ShapeDtypeStruct((N, HD), jnp.float32),
        grid=(num_tiles,),
        in_specs=[
            pl.BlockSpec((N, F_in), lambda i: (0, 0)),                 # x, full (grid-invariant)
            pl.BlockSpec((block_rows, F_in), lambda i: (i, 0)),        # x, this tile's rows
            pl.BlockSpec((block_rows, N), lambda i: (i, 0)),           # adj row tile (streamed)
            pl.BlockSpec((F_in, HD), lambda i: (0, 0)),                # W (all heads)
            pl.BlockSpec((1, HD), lambda i: (0, 0)),                   # a_left  (all heads)
            pl.BlockSpec((1, HD), lambda i: (0, 0)),                   # a_right (all heads)
        ],
        out_specs=pl.BlockSpec((block_rows, HD), lambda i: (i, 0)),    # lane-dense output slab
        compiler_params=pltpu.CompilerParams(
            dimension_semantics=("parallel",)),                        # row tiles -> 2 TCs on v7x
    )(x, x, adj, W_flat, al_flat, ar_flat)

    return out


def reference_forward(x, adj, W_stack, a_stack, *, matmul_dtype=jnp.float32,
                      stabilize=False):
    """Pure-JAX reference (dense re-statement of the sparse PyTorch math).

    matmul_dtype=bf16 + stabilize=True mirrors the kernel's mixed-precision policy
    (bf16 MXU inputs, f32 accumulation, per-row max shift); the defaults give the
    module-faithful f32 forward.
    """
    H, _, d = W_stack.shape
    outs = []
    mask = adj != 0.0
    for hi in range(H):
        w = W_stack[hi].astype(matmul_dtype)
        a = a_stack[hi]                                                # [1, 2*d]
        h = jnp.dot(x.astype(matmul_dtype), w,
                    preferred_element_type=jnp.float32)                # [N, d]
        f_src = jnp.sum(h * a[0, :d][None, :], axis=1, keepdims=True)  # [N, 1]
        f_dst = jnp.sum(h * a[0, d:][None, :], axis=1, keepdims=True)  # [N, 1]
        score = adj * (f_src + f_dst.T)
        score = jnp.where(score > 0, score, 0.2 * score)
        if stabilize:
            score = score - jnp.max(jnp.where(mask, score, 0.0), axis=1, keepdims=True)
        e = jnp.where(mask, jnp.exp(score), 0.0)
        rowsum = e.sum(axis=1, keepdims=True)
        hp = jnp.dot(e.astype(matmul_dtype), h.astype(matmul_dtype),
                     preferred_element_type=jnp.float32)
        outs.append(hp / rowsum)
    return jnp.concatenate(outs, axis=1)


def glorot_uniform(key, shape):
    fan_in, fan_out = shape[-2], shape[-1]
    limit = jnp.sqrt(6.0 / (fan_in + fan_out))
    return jax.random.uniform(key, shape, jnp.float32, -limit, limit)


if __name__ == "__main__":
    # Small deterministic problem: N=256 nodes, F_in=32, output_dim=64, 4 heads.
    # block_rows=128 -> grid=(2,) exercises the row tiling + parallel axis.
    N, F_IN, F_OUT, H = 256, 32, 64, 4
    D_HEAD = F_OUT // H
    BLOCK_ROWS = 128

    key = jax.random.PRNGKey(0)
    kx, kmask, kval, kw, ka = jax.random.split(key, 5)

    x = jax.random.normal(kx, (N, F_IN), jnp.float32)

    # Sparse-ish adjacency with guaranteed self-loops (no empty softmax rows).
    edge_mask = (jax.random.uniform(kmask, (N, N)) < 0.15) | jnp.eye(N, dtype=bool)
    edge_vals = jax.random.uniform(kval, (N, N), jnp.float32, 0.5, 1.5)
    adj = jnp.where(edge_mask, edge_vals, 0.0)

    # Deterministic glorot init of parameters (shapes from the module __init__).
    W_stack = glorot_uniform(kw, (H, F_IN, D_HEAD))            # W_list stacked
    a_stack = glorot_uniform(ka, (H, 1, 2 * D_HEAD))           # a_list stacked

    out = structural_attention_forward(x, adj, W_stack, a_stack, block_rows=BLOCK_ROWS)
    out = jax.block_until_ready(out)
    assert out.shape == (N, F_OUT)

    # Tight check: kernel vs a plain-JAX restatement of its own mixed-precision math.
    ref_mp = reference_forward(x, adj, W_stack, a_stack,
                               matmul_dtype=jnp.bfloat16, stabilize=True)
    assert jnp.allclose(out, ref_mp, rtol=1e-2, atol=1e-2), \
        "mismatch vs kernel-numerics reference"

    # Sanity check: kernel vs the module-faithful full-f32 forward (bf16 MXU tolerance).
    ref_f32 = reference_forward(x, adj, W_stack, a_stack)
    assert jnp.allclose(out, ref_f32, rtol=1e-1, atol=1e-1), \
        "mismatch vs f32 module reference"

    print("KERNEL_OK")
</pallas_src>

<mosaic_0001>
module attributes {stable_mosaic.version = 11 : i64} {
  func.func @gat_fused_kernel(%arg0: i32, %arg1: memref<256x32xf32, #tpu.memory_space<vmem>>, %arg2: memref<128x32xf32, #tpu.memory_space<vmem>>, %arg3: memref<128x256xf32, #tpu.memory_space<vmem>>, %arg4: memref<32x64xf32, #tpu.memory_space<vmem>>, %arg5: memref<1x64xf32, #tpu.memory_space<vmem>>, %arg6: memref<1x64xf32, #tpu.memory_space<vmem>>, %arg7: memref<128x64xf32, #tpu.memory_space<vmem>>) attributes {dimension_semantics = [#tpu.dimension_semantics<parallel>], iteration_bounds = array<i64: 2>, scalar_prefetch = 0 : i64, scratch_operands = 0 : i64, tpu.core_type = #tpu.core_type<tc>, window_params = [{pipeline_mode = #tpu.pipeline_mode<synchronous>, transform_indices = @transform_0, window_bounds = array<i64: 256, 32>}, {transform_indices = @transform_1, window_bounds = array<i64: 128, 32>}, {transform_indices = @transform_2, window_bounds = array<i64: 128, 256>}, {pipeline_mode = #tpu.pipeline_mode<synchronous>, transform_indices = @transform_3, window_bounds = array<i64: 32, 64>}, {pipeline_mode = #tpu.pipeline_mode<synchronous>, transform_indices = @transform_4, window_bounds = array<i64: 1, 64>}, {pipeline_mode = #tpu.pipeline_mode<synchronous>, transform_indices = @transform_5, window_bounds = array<i64: 1, 64>}, {transform_indices = @transform_6, window_bounds = array<i64: 128, 64>}]} {
    %c0 = arith.constant 0 : index
    %c0_0 = arith.constant 0 : index
    %0 = vector.load %arg4[%c0, %c0_0] : memref<32x64xf32, #tpu.memory_space<vmem>>, vector<32x64xf32>
    %1 = arith.truncf %0 : vector<32x64xf32> to vector<32x64xbf16>
    %c0_1 = arith.constant 0 : index
    %c0_2 = arith.constant 0 : index
    %2 = vector.load %arg1[%c0_1, %c0_2] : memref<256x32xf32, #tpu.memory_space<vmem>>, vector<256x32xf32>
    %3 = arith.truncf %2 : vector<256x32xf32> to vector<256x32xbf16>
    %cst = arith.constant dense<0.000000e+00> : vector<256x64xf32>
    %4 = tpu.matmul %3, %1, %cst {dimension_numbers = #tpu.dot_dimension_numbers<[1], [0], [0], [1], [0, 0, 1, 1], [], []>} : vector<256x32xbf16>, vector<32x64xbf16>, vector<256x64xf32> -> vector<256x64xf32>
    %c0_3 = arith.constant 0 : index
    %c0_4 = arith.constant 0 : index
    %5 = vector.load %arg2[%c0_3, %c0_4] : memref<128x32xf32, #tpu.memory_space<vmem>>, vector<128x32xf32>
    %6 = arith.truncf %5 : vector<128x32xf32> to vector<128x32xbf16>
    %cst_5 = arith.constant dense<0.000000e+00> : vector<128x64xf32>
    %7 = tpu.matmul %6, %1, %cst_5 {dimension_numbers = #tpu.dot_dimension_numbers<[1], [0], [0], [1], [0, 0, 1, 1], [], []>} : vector<128x32xbf16>, vector<32x64xbf16>, vector<128x64xf32> -> vector<128x64xf32>
    %c0_6 = arith.constant 0 : index
    %c0_7 = arith.constant 0 : index
    %8 = vector.load %arg3[%c0_6, %c0_7] : memref<128x256xf32, #tpu.memory_space<vmem>>, vector<128x256xf32>
    %cst_8 = arith.constant 0.000000e+00 : f32
    %9 = vector.broadcast %cst_8 : f32 to vector<128x256xf32>
    %10 = arith.cmpf one, %8, %9 : vector<128x256xf32>
    %c0_9 = arith.constant 0 : index
    %c0_10 = arith.constant 0 : index
    %11 = vector.load %arg5[%c0_9, %c0_10] : memref<1x64xf32, #tpu.memory_space<vmem>>, vector<1x64xf32>
    %c0_11 = arith.constant 0 : index
    %c0_12 = arith.constant 0 : index
    %12 = vector.load %arg6[%c0_11, %c0_12] : memref<1x64xf32, #tpu.memory_space<vmem>>, vector<1x64xf32>
    %13 = vector.extract_strided_slice %4 {offsets = [0, 0], sizes = [256, 16], strides = [1, 1]} : vector<256x64xf32> to vector<256x16xf32>
    %14 = vector.extract_strided_slice %7 {offsets = [0, 0], sizes = [128, 16], strides = [1, 1]} : vector<128x64xf32> to vector<128x16xf32>
    %15 = vector.extract_strided_slice %11 {offsets = [0, 0], sizes = [1, 16], strides = [1, 1]} : vector<1x64xf32> to vector<1x16xf32>
    %16 = vector.broadcast %15 : vector<1x16xf32> to vector<128x16xf32>
    %17 = arith.mulf %14, %16 : vector<128x16xf32>
    %cst_13 = arith.constant dense<0.000000e+00> : vector<128xf32>
    %18 = vector.multi_reduction <add>, %17, %cst_13 [1] : vector<128x16xf32> to vector<128xf32>
    %19 = vector.shape_cast %18 : vector<128xf32> to vector<128x1xf32>
    %20 = vector.extract_strided_slice %12 {offsets = [0, 0], sizes = [1, 16], strides = [1, 1]} : vector<1x64xf32> to vector<1x16xf32>
    %21 = vector.broadcast %20 : vector<1x16xf32> to vector<256x16xf32>
    %22 = arith.mulf %13, %21 : vector<256x16xf32>
    %cst_14 = arith.constant dense<0.000000e+00> : vector<256xf32>
    %23 = vector.multi_reduction <add>, %22, %cst_14 [1] : vector<256x16xf32> to vector<256xf32>
    %24 = vector.shape_cast %23 : vector<256xf32> to vector<256x1xf32>
    %25 = tpu.transpose %24, [1, 0] : vector<256x1xf32> -> vector<1x256xf32>
    %26 = vector.broadcast %19 : vector<128x1xf32> to vector<128x256xf32>
    %27 = vector.broadcast %25 : vector<1x256xf32> to vector<128x256xf32>
    %28 = arith.addf %26, %27 : vector<128x256xf32>
    %29 = arith.mulf %8, %28 : vector<128x256xf32>
    %cst_15 = arith.constant 0.000000e+00 : f32
    %30 = vector.broadcast %cst_15 : f32 to vector<128x256xf32>
    %31 = arith.cmpf ogt, %29, %30 : vector<128x256xf32>
    %cst_16 = arith.constant 2.000000e-01 : f32
    %32 = vector.broadcast %cst_16 : f32 to vector<128x256xf32>
    %33 = arith.mulf %32, %29 : vector<128x256xf32>
    %34 = arith.select %31, %29, %33 : vector<128x256xi1>, vector<128x256xf32>
    %cst_17 = arith.constant 0.000000e+00 : f32
    %35 = vector.broadcast %cst_17 : f32 to vector<128x256xf32>
    %36 = arith.select %10, %34, %35 : vector<128x256xi1>, vector<128x256xf32>
    %cst_18 = arith.constant dense<0xFF800000> : vector<128xf32>
    %37 = vector.multi_reduction <maximumf>, %36, %cst_18 [1] : vector<128x256xf32> to vector<128xf32>
    %38 = vector.shape_cast %37 : vector<128xf32> to vector<128x1xf32>
    %39 = vector.broadcast %38 : vector<128x1xf32> to vector<128x256xf32>
    %40 = arith.subf %34, %39 : vector<128x256xf32>
    %41 = math.exp %40 : vector<128x256xf32>
    %cst_19 = arith.constant 0.000000e+00 : f32
    %42 = vector.broadcast %cst_19 : f32 to vector<128x256xf32>
    %43 = arith.select %10, %41, %42 : vector<128x256xi1>, vector<128x256xf32>
    %cst_20 = arith.constant dense<0.000000e+00> : vector<128xf32>
    %44 = vector.multi_reduction <add>, %43, %cst_20 [1] : vector<128x256xf32> to vector<128xf32>
    %45 = vector.shape_cast %44 : vector<128xf32> to vector<128x1xf32>
    %46 = arith.truncf %43 : vector<128x256xf32> to vector<128x256xbf16>
    %47 = arith.truncf %13 : vector<256x16xf32> to vector<256x16xbf16>
    %cst_21 = arith.constant dense<0.000000e+00> : vector<128x16xf32>
    %48 = tpu.matmul %46, %47, %cst_21 {dimension_numbers = #tpu.dot_dimension_numbers<[1], [0], [0], [1], [0, 0, 1, 1], [], []>} : vector<128x256xbf16>, vector<256x16xbf16>, vector<128x16xf32> -> vector<128x16xf32>
    %cst_22 = arith.constant 9.99999968E-21 : f32
    %49 = vector.broadcast %cst_22 : f32 to vector<128x1xf32>
    %50 = arith.maximumf %45, %49 : vector<128x1xf32>
    %51 = tpu.reciprocal %50 {approx = true} : vector<128x1xf32> -> vector<128x1xf32>
    %52 = vector.broadcast %51 : vector<128x1xf32> to vector<128x16xf32>
    %53 = arith.mulf %48, %52 : vector<128x16xf32>
    %c0_23 = arith.constant 0 : index
    %c0_24 = arith.constant 0 : index
    %54 = vector.load %arg7[%c0_23, %c0_24] : memref<128x64xf32, #tpu.memory_space<vmem>>, vector<128x16xf32>
    tpu.vector_store %arg7[%c0_23, %c0_24], %53 {strides = array<i32>} : memref<128x64xf32, #tpu.memory_space<vmem>>, vector<128x16xf32>,
    %55 = vector.extract_strided_slice %4 {offsets = [0, 16], sizes = [256, 16], strides = [1, 1]} : vector<256x64xf32> to vector<256x16xf32>
    %56 = vector.extract_strided_slice %7 {offsets = [0, 16], sizes = [128, 16], strides = [1, 1]} : vector<128x64xf32> to vector<128x16xf32>
    %57 = vector.extract_strided_slice %11 {offsets = [0, 16], sizes = [1, 16], strides = [1, 1]} : vector<1x64xf32> to vector<1x16xf32>
    %58 = vector.broadcast %57 : vector<1x16xf32> to vector<128x16xf32>
    %59 = arith.mulf %56, %58 : vector<128x16xf32>
    %cst_25 = arith.constant dense<0.000000e+00> : vector<128xf32>
    %60 = vector.multi_reduction <add>, %59, %cst_25 [1] : vector<128x16xf32> to vector<128xf32>
    %61 = vector.shape_cast %60 : vector<128xf32> to vector<128x1xf32>
    %62 = vector.extract_strided_slice %12 {offsets = [0, 16], sizes = [1, 16], strides = [1, 1]} : vector<1x64xf32> to vector<1x16xf32>
    %63 = vector.broadcast %62 : vector<1x16xf32> to vector<256x16xf32>
    %64 = arith.mulf %55, %63 : vector<256x16xf32>
    %cst_26 = arith.constant dense<0.000000e+00> : vector<256xf32>
    %65 = vector.multi_reduction <add>, %64, %cst_26 [1] : vector<256x16xf32> to vector<256xf32>
    %66 = vector.shape_cast %65 : vector<256xf32> to vector<256x1xf32>
    %67 = tpu.transpose %66, [1, 0] : vector<256x1xf32> -> vector<1x256xf32>
    %68 = vector.broadcast %61 : vector<128x1xf32> to vector<128x256xf32>
    %69 = vector.broadcast %67 : vector<1x256xf32> to vector<128x256xf32>
    %70 = arith.addf %68, %69 : vector<128x256xf32>
    %71 = arith.mulf %8, %70 : vector<128x256xf32>
    %cst_27 = arith.constant 0.000000e+00 : f32
    %72 = vector.broadcast %cst_27 : f32 to vector<128x256xf32>
    %73 = arith.cmpf ogt, %71, %72 : vector<128x256xf32>
    %cst_28 = arith.constant 2.000000e-01 : f32
    %74 = vector.broadcast %cst_28 : f32 to vector<128x256xf32>
    %75 = arith.mulf %74, %71 : vector<128x256xf32>
    %76 = arith.select %73, %71, %75 : vector<128x256xi1>, vector<128x256xf32>
    %cst_29 = arith.constant 0.000000e+00 : f32
    %77 = vector.broadcast %cst_29 : f32 to vector<128x256xf32>
    %78 = arith.select %10, %76, %77 : vector<128x256xi1>, vector<128x256xf32>
    %cst_30 = arith.constant dense<0xFF800000> : vector<128xf32>
    %79 = vector.multi_reduction <maximumf>, %78, %cst_30 [1] : vector<128x256xf32> to vector<128xf32>
    %80 = vector.shape_cast %79 : vector<128xf32> to vector<128x1xf32>
    %81 = vector.broadcast %80 : vector<128x1xf32> to vector<128x256xf32>
    %82 = arith.subf %76, %81 : vector<128x256xf32>
    %83 = math.exp %82 : vector<128x256xf32>
    %cst_31 = arith.constant 0.000000e+00 : f32
    %84 = vector.broadcast %cst_31 : f32 to vector<128x256xf32>
    %85 = arith.select %10, %83, %84 : vector<128x256xi1>, vector<128x256xf32>
    %cst_32 = arith.constant dense<0.000000e+00> : vector<128xf32>
    %86 = vector.multi_reduction <add>, %85, %cst_32 [1] : vector<128x256xf32> to vector<128xf32>
    %87 = vector.shape_cast %86 : vector<128xf32> to vector<128x1xf32>
    %88 = arith.truncf %85 : vector<128x256xf32> to vector<128x256xbf16>
    %89 = arith.truncf %55 : vector<256x16xf32> to vector<256x16xbf16>
    %cst_33 = arith.constant dense<0.000000e+00> : vector<128x16xf32>
    %90 = tpu.matmul %88, %89, %cst_33 {dimension_numbers = #tpu.dot_dimension_numbers<[1], [0], [0], [1], [0, 0, 1, 1], [], []>} : vector<128x256xbf16>, vector<256x16xbf16>, vector<128x16xf32> -> vector<128x16xf32>
    %cst_34 = arith.constant 9.99999968E-21 : f32
    %91 = vector.broadcast %cst_34 : f32 to vector<128x1xf32>
    %92 = arith.maximumf %87, %91 : vector<128x1xf32>
    %93 = tpu.reciprocal %92 {approx = true} : vector<128x1xf32> -> vector<128x1xf32>
    %94 = vector.broadcast %93 : vector<128x1xf32> to vector<128x16xf32>
    %95 = arith.mulf %90, %94 : vector<128x16xf32>
    %c0_35 = arith.constant 0 : index
    %c16 = arith.constant 16 : index
    %96 = vector.load %arg7[%c0_35, %c16] : memref<128x64xf32, #tpu.memory_space<vmem>>, vector<128x16xf32>
    tpu.vector_store %arg7[%c0_35, %c16], %95 {strides = array<i32>} : memref<128x64xf32, #tpu.memory_space<vmem>>, vector<128x16xf32>,
    %97 = vector.extract_strided_slice %4 {offsets = [0, 32], sizes = [256, 16], strides = [1, 1]} : vector<256x64xf32> to vector<256x16xf32>
    %98 = vector.extract_strided_slice %7 {offsets = [0, 32], sizes = [128, 16], strides = [1, 1]} : vector<128x64xf32> to vector<128x16xf32>
    %99 = vector.extract_strided_slice %11 {offsets = [0, 32], sizes = [1, 16], strides = [1, 1]} : vector<1x64xf32> to vector<1x16xf32>
    %100 = vector.broadcast %99 : vector<1x16xf32> to vector<128x16xf32>
    %101 = arith.mulf %98, %100 : vector<128x16xf32>
    %cst_36 = arith.constant dense<0.000000e+00> : vector<128xf32>
    %102 = vector.multi_reduction <add>, %101, %cst_36 [1] : vector<128x16xf32> to vector<128xf32>
    %103 = vector.shape_cast %102 : vector<128xf32> to vector<128x1xf32>
    %104 = vector.extract_strided_slice %12 {offsets = [0, 32], sizes = [1, 16], strides = [1, 1]} : vector<1x64xf32> to vector<1x16xf32>
    %105 = vector.broadcast %104 : vector<1x16xf32> to vector<256x16xf32>
    %106 = arith.mulf %97, %105 : vector<256x16xf32>
    %cst_37 = arith.constant dense<0.000000e+00> : vector<256xf32>
    %107 = vector.multi_reduction <add>, %106, %cst_37 [1] : vector<256x16xf32> to vector<256xf32>
    %108 = vector.shape_cast %107 : vector<256xf32> to vector<256x1xf32>
    %109 = tpu.transpose %108, [1, 0] : vector<256x1xf32> -> vector<1x256xf32>
    %110 = vector.broadcast %103 : vector<128x1xf32> to vector<128x256xf32>
    %111 = vector.broadcast %109 : vector<1x256xf32> to vector<128x256xf32>
    %112 = arith.addf %110, %111 : vector<128x256xf32>
    %113 = arith.mulf %8, %112 : vector<128x256xf32>
    %cst_38 = arith.constant 0.000000e+00 : f32
    %114 = vector.broadcast %cst_38 : f32 to vector<128x256xf32>
    %115 = arith.cmpf ogt, %113, %114 : vector<128x256xf32>
    %cst_39 = arith.constant 2.000000e-01 : f32
    %116 = vector.broadcast %cst_39 : f32 to vector<128x256xf32>
    %117 = arith.mulf %116, %113 : vector<128x256xf32>
    %118 = arith.select %115, %113, %117 : vector<128x256xi1>, vector<128x256xf32>
    %cst_40 = arith.constant 0.000000e+00 : f32
    %119 = vector.broadcast %cst_40 : f32 to vector<128x256xf32>
    %120 = arith.select %10, %118, %119 : vector<128x256xi1>, vector<128x256xf32>
    %cst_41 = arith.constant dense<0xFF800000> : vector<128xf32>
    %121 = vector.multi_reduction <maximumf>, %120, %cst_41 [1] : vector<128x256xf32> to vector<128xf32>
    %122 = vector.shape_cast %121 : vector<128xf32> to vector<128x1xf32>
    %123 = vector.broadcast %122 : vector<128x1xf32> to vector<128x256xf32>
    %124 = arith.subf %118, %123 : vector<128x256xf32>
    %125 = math.exp %124 : vector<128x256xf32>
    %cst_42 = arith.constant 0.000000e+00 : f32
    %126 = vector.broadcast %cst_42 : f32 to vector<128x256xf32>
    %127 = arith.select %10, %125, %126 : vector<128x256xi1>, vector<128x256xf32>
    %cst_43 = arith.constant dense<0.000000e+00> : vector<128xf32>
    %128 = vector.multi_reduction <add>, %127, %cst_43 [1] : vector<128x256xf32> to vector<128xf32>
    %129 = vector.shape_cast %128 : vector<128xf32> to vector<128x1xf32>
    %130 = arith.truncf %127 : vector<128x256xf32> to vector<128x256xbf16>
    %131 = arith.truncf %97 : vector<256x16xf32> to vector<256x16xbf16>
    %cst_44 = arith.constant dense<0.000000e+00> : vector<128x16xf32>
    %132 = tpu.matmul %130, %131, %cst_44 {dimension_numbers = #tpu.dot_dimension_numbers<[1], [0], [0], [1], [0, 0, 1, 1], [], []>} : vector<128x256xbf16>, vector<256x16xbf16>, vector<128x16xf32> -> vector<128x16xf32>
    %cst_45 = arith.constant 9.99999968E-21 : f32
    %133 = vector.broadcast %cst_45 : f32 to vector<128x1xf32>
    %134 = arith.maximumf %129, %133 : vector<128x1xf32>
    %135 = tpu.reciprocal %134 {approx = true} : vector<128x1xf32> -> vector<128x1xf32>
    %136 = vector.broadcast %135 : vector<128x1xf32> to vector<128x16xf32>
    %137 = arith.mulf %132, %136 : vector<128x16xf32>
    %c0_46 = arith.constant 0 : index
    %c32 = arith.constant 32 : index
    %138 = vector.load %arg7[%c0_46, %c32] : memref<128x64xf32, #tpu.memory_space<vmem>>, vector<128x16xf32>
    tpu.vector_store %arg7[%c0_46, %c32], %137 {strides = array<i32>} : memref<128x64xf32, #tpu.memory_space<vmem>>, vector<128x16xf32>,
    %139 = vector.extract_strided_slice %4 {offsets = [0, 48], sizes = [256, 16], strides = [1, 1]} : vector<256x64xf32> to vector<256x16xf32>
    %140 = vector.extract_strided_slice %7 {offsets = [0, 48], sizes = [128, 16], strides = [1, 1]} : vector<128x64xf32> to vector<128x16xf32>
    %141 = vector.extract_strided_slice %11 {offsets = [0, 48], sizes = [1, 16], strides = [1, 1]} : vector<1x64xf32> to vector<1x16xf32>
    %142 = vector.broadcast %141 : vector<1x16xf32> to vector<128x16xf32>
    %143 = arith.mulf %140, %142 : vector<128x16xf32>
    %cst_47 = arith.constant dense<0.000000e+00> : vector<128xf32>
    %144 = vector.multi_reduction <add>, %143, %cst_47 [1] : vector<128x16xf32> to vector<128xf32>
    %145 = vector.shape_cast %144 : vector<128xf32> to vector<128x1xf32>
    %146 = vector.extract_strided_slice %12 {offsets = [0, 48], sizes = [1, 16], strides = [1, 1]} : vector<1x64xf32> to vector<1x16xf32>
    %147 = vector.broadcast %146 : vector<1x16xf32> to vector<256x16xf32>
    %148 = arith.mulf %139, %147 : vector<256x16xf32>
    %cst_48 = arith.constant dense<0.000000e+00> : vector<256xf32>
    %149 = vector.multi_reduction <add>, %148, %cst_48 [1] : vector<256x16xf32> to vector<256xf32>
    %150 = vector.shape_cast %149 : vector<256xf32> to vector<256x1xf32>
    %151 = tpu.transpose %150, [1, 0] : vector<256x1xf32> -> vector<1x256xf32>
    %152 = vector.broadcast %145 : vector<128x1xf32> to vector<128x256xf32>
    %153 = vector.broadcast %151 : vector<1x256xf32> to vector<128x256xf32>
    %154 = arith.addf %152, %153 : vector<128x256xf32>
    %155 = arith.mulf %8, %154 : vector<128x256xf32>
    %cst_49 = arith.constant 0.000000e+00 : f32
    %156 = vector.broadcast %cst_49 : f32 to vector<128x256xf32>
    %157 = arith.cmpf ogt, %155, %156 : vector<128x256xf32>
    %cst_50 = arith.constant 2.000000e-01 : f32
    %158 = vector.broadcast %cst_50 : f32 to vector<128x256xf32>
    %159 = arith.mulf %158, %155 : vector<128x256xf32>
    %160 = arith.select %157, %155, %159 : vector<128x256xi1>, vector<128x256xf32>
    %cst_51 = arith.constant 0.000000e+00 : f32
    %161 = vector.broadcast %cst_51 : f32 to vector<128x256xf32>
    %162 = arith.select %10, %160, %161 : vector<128x256xi1>, vector<128x256xf32>
    %cst_52 = arith.constant dense<0xFF800000> : vector<128xf32>
    %163 = vector.multi_reduction <maximumf>, %162, %cst_52 [1] : vector<128x256xf32> to vector<128xf32>
    %164 = vector.shape_cast %163 : vector<128xf32> to vector<128x1xf32>
    %165 = vector.broadcast %164 : vector<128x1xf32> to vector<128x256xf32>
    %166 = arith.subf %160, %165 : vector<128x256xf32>
    %167 = math.exp %166 : vector<128x256xf32>
    %cst_53 = arith.constant 0.000000e+00 : f32
    %168 = vector.broadcast %cst_53 : f32 to vector<128x256xf32>
    %169 = arith.select %10, %167, %168 : vector<128x256xi1>, vector<128x256xf32>
    %cst_54 = arith.constant dense<0.000000e+00> : vector<128xf32>
    %170 = vector.multi_reduction <add>, %169, %cst_54 [1] : vector<128x256xf32> to vector<128xf32>
    %171 = vector.shape_cast %170 : vector<128xf32> to vector<128x1xf32>
    %172 = arith.truncf %169 : vector<128x256xf32> to vector<128x256xbf16>
    %173 = arith.truncf %139 : vector<256x16xf32> to vector<256x16xbf16>
    %cst_55 = arith.constant dense<0.000000e+00> : vector<128x16xf32>
    %174 = tpu.matmul %172, %173, %cst_55 {dimension_numbers = #tpu.dot_dimension_numbers<[1], [0], [0], [1], [0, 0, 1, 1], [], []>} : vector<128x256xbf16>, vector<256x16xbf16>, vector<128x16xf32> -> vector<128x16xf32>
    %cst_56 = arith.constant 9.99999968E-21 : f32
    %175 = vector.broadcast %cst_56 : f32 to vector<128x1xf32>
    %176 = arith.maximumf %171, %175 : vector<128x1xf32>
    %177 = tpu.reciprocal %176 {approx = true} : vector<128x1xf32> -> vector<128x1xf32>
    %178 = vector.broadcast %177 : vector<128x1xf32> to vector<128x16xf32>
    %179 = arith.mulf %174, %178 : vector<128x16xf32>
    %c0_57 = arith.constant 0 : index
    %c48 = arith.constant 48 : index
    %180 = vector.load %arg7[%c0_57, %c48] : memref<128x64xf32, #tpu.memory_space<vmem>>, vector<128x16xf32>
    tpu.vector_store %arg7[%c0_57, %c48], %179 {strides = array<i32>} : memref<128x64xf32, #tpu.memory_space<vmem>>, vector<128x16xf32>,
    return
  }
  func.func @transform_0(%arg0: i32) -> (i32, i32) {
    %c0_i32 = arith.constant 0 : i32
    %c0_i32_0 = arith.constant 0 : i32
    %c0_i32_1 = arith.constant 0 : i32
    return %c0_i32, %c0_i32_0 : i32, i32
  }
  func.func @transform_1(%arg0: i32) -> (i32, i32) {
    %c0_i32 = arith.constant 0 : i32
    %c0_i32_0 = arith.constant 0 : i32
    return %arg0, %c0_i32 : i32, i32
  }
  func.func @transform_2(%arg0: i32) -> (i32, i32) {
    %c0_i32 = arith.constant 0 : i32
    %c0_i32_0 = arith.constant 0 : i32
    return %arg0, %c0_i32 : i32, i32
  }
  func.func @transform_3(%arg0: i32) -> (i32, i32) {
    %c0_i32 = arith.constant 0 : i32
    %c0_i32_0 = arith.constant 0 : i32
    %c0_i32_1 = arith.constant 0 : i32
    return %c0_i32, %c0_i32_0 : i32, i32
  }
  func.func @transform_4(%arg0: i32) -> (i32, i32) {
    %c0_i32 = arith.constant 0 : i32
    %c0_i32_0 = arith.constant 0 : i32
    %c0_i32_1 = arith.constant 0 : i32
    return %c0_i32, %c0_i32_0 : i32, i32
  }
  func.func @transform_5(%arg0: i32) -> (i32, i32) {
    %c0_i32 = arith.constant 0 : i32
    %c0_i32_0 = arith.constant 0 : i32
    %c0_i32_1 = arith.constant 0 : i32
    return %c0_i32, %c0_i32_0 : i32, i32
  }
  func.func @transform_6(%arg0: i32) -> (i32, i32) {
    %c0_i32 = arith.constant 0 : i32
    %c0_i32_0 = arith.constant 0 : i32
    return %arg0, %c0_i32 : i32, i32
  }
}

</mosaic_0001>

<bundles_post_ra>
// kernel: tpu_custom_call.1
= control target key start
LH: loop header
LB: loop body
LE: loop exit
PB: predicated region body
PF: predicated region fallthrough
CT: control target
= control target key end

     0   :  { %s6060_s21 = smov 0   ;;  %s10281_s0 = inlined_call_operand.vmem [shape: f32[256,32], index: 0, kind: input, shape index: {}]   ;;  %s10282_s1 = inlined_call_operand.vmem [shape: f32[256,32], index: 1, kind: input, shape index: {}]   ;;  %s10283_s2 = inlined_call_operand.vmem [shape: f32[256,256], index: 2, kind: input, shape index: {}]   ;;  %s10284_s3 = inlined_call_operand.vmem [shape: f32[32,64], index: 3, kind: input, shape index: {}]   ;;  %s10285_s4 = inlined_call_operand.vmem [shape: f32[1,64], index: 4, kind: input, shape index: {}]   ;;  %s10286_s5 = inlined_call_operand.vmem [shape: f32[1,64], index: 5, kind: input, shape index: {}]   ;;  %s10287_s6 = inlined_call_operand.vmem [shape: f32[256,64], index: 6, kind: output, shape index: {}]  }
   0x1 LB: > { %s4972_s22 = sadd.s32 4294967295, %s6017_s21   ;;  %p4976_p0 = scmp.ge.s32.totalorder %s6017_s21, 1  ;;  %s6017_s21 = sphi %s6060_s21, %s16_s21  }
   0x2   : > { %p225_p1 = scmp.lt.s32.totalorder %s6017_s21, 3 }
   0x4   : > { %p226_p2 = pnand %p4976_p0, %p225_p1 }
   0x6   : > { %229 = sbr.rel (%p226_p2) target bundleno = 4551 (0x11c7), region = 44 }
   0xb   : > { %v283_v0 = vld [vmem:[%s10284_s3 + $0x10] sm:$0xff]  ;;  %v284_v1 = vld [vmem:[%s10284_s3 + $0x18] sm:$0xff]  ;;  %v281_v2 = vld [vmem:[%s10284_s3] sm:$0xff]  ;;  %vm335_vm0 = vcmask 261120   ;;  %s4977_s29 = sshll.u32 %s4972_s22, 4  ;;  %s6019_s11 = smov 112  }
   0xc   : > { %v286_v3 = vpack.c.bf16 %v284_v1, %v283_v0  ;;  %v282_v4 = vld [vmem:[%s10284_s3 + $0x8] sm:$0xff]  ;;  %v287_v5 = vld [vmem:[%s10281_s0] sm:$0xff]  ;;  %v289_v12 = vld [vmem:[%s10281_s0 + $0x10] sm:$0xff]  ;;  %p262_p3 = scmp.lt.s32.totalorder %s4977_s29, 31  ;;  %vm10426_vm1 = vcmask 130048   ;;  %s6020_s23 = smov 96  }
   0xd   : > { %v288_v6 = vld [vmem:[%s10281_s0 + $0x8] sm:$0xff]  ;;  %v285_v7 = vpack.c.bf16 %v282_v4, %v281_v2  ;;  %v311_v9 = vld [vmem:[%s10281_s0 + $0xc0] sm:$0xff]  ;;  %v290_v13 = vld [vmem:[%s10281_s0 + $0x18] sm:$0xff]  ;;  %s6021_s24 = smov 16   ;;  %s6022_s25 = smov 80  }
   0xe   : > { %v319_v8 = vpack.c.bf16 %v288_v6, %v287_v5  ;;  %v312_v10 = vld [vmem:[%s10281_s0 + $0xc8] sm:$0xff]  ;;  %5489 = vmatprep.subr.bf16.mxu0 %v286_v3  ;;  %5545 = vmatprep.subr.bf16.mxu1 %v286_v3  ;;  %v313_v14 = vld [vmem:[%s10281_s0 + $0xd0] sm:$0xff]  ;;  %v314_v15 = vld [vmem:[%s10281_s0 + $0xd8] sm:$0xff]  ;;  %v320_v19 = vpack.c.bf16 %v290_v13, %v289_v12  ;;  %s11650_s29 = smov (!%p262_p3, %s4977_s29), 31  ;;  %s6023_s26 = smov 32  }
   0xf   : > { %v331_v11 = vpack.c.bf16 %v312_v10, %v311_v9  ;;  %5490 = vmatpush3.bf16.msra.mxu0 %v286_v3  ;;  %5547 = vmatpush3.bf16.msra.mxu1 %v286_v3  ;;  %v291_v16 = vld [vmem:[%s10281_s0 + $0x20] sm:$0xff]  ;;  %v292_v17 = vld [vmem:[%s10281_s0 + $0x28] sm:$0xff]  ;;  %v332_v20 = vpack.c.bf16 %v314_v15, %v313_v14  ;;  %v293_v24 = vld [vmem:[%s10281_s0 + $0x30] sm:$0xff]  ;;  %s4978_s30 = sshll.u32 %s11650_s29, 3  ;;  %s5204_s14 = sshll.u32 %s11650_s29, 4 }
  0x10   : > { %5491 = vmatprep.subr.bf16.mxu0 %v285_v7  ;;  %5546 = vmatprep.subr.bf16.mxu1 %v285_v7  ;;  %v315_v18 = vld [vmem:[%s10281_s0 + $0xe0] sm:$0xff]  ;;  %v316_v21 = vld [vmem:[%s10281_s0 + $0xe8] sm:$0xff]  ;;  %v321_v22 = vpack.c.bf16 %v292_v17, %v291_v16  ;;  %v294_v25 = vld [vmem:[%s10281_s0 + $0x38] sm:$0xff]  ;;  %s6202_s9 = scalar_lea.vmem %s10282_s1, %s4978_s30  ;;  %s6924_s17 = scalar_lea.vmem %s10283_s2, %s5204_s14 }
  0x11   : > { %5493 = vmatprep.mubr.msk.bf16.mxu0 %vm335_vm0, %v319_v8  ;;  %5517 = vmatprep.mubr.msk.bf16.mxu1 %vm335_vm0, %v331_v11  ;;  %v333_v23 = vpack.c.bf16 %v316_v21, %v315_v18  ;;  %v317_v26 = vld [vmem:[%s10281_s0 + $0xf0] sm:$0xff]  ;;  %v318_v27 = vld [vmem:[%s10281_s0 + $0xf8] sm:$0xff]  ;;  %v295_v28 = vld [vmem:[%s10281_s0 + $0x40] sm:$0xff]  ;;  %v322_v30 = vpack.c.bf16 %v294_v25, %v293_v24  ;;  %s7790_s20 = scalar_lea.vmem %s10287_s6, %s4978_s30  ;;  %s6024_s27 = smov 48  }
  0x12   : > { %v296_v29 = vld [vmem:[%s10281_s0 + $0x48] sm:$0xff]  ;;  %v334_v31 = vpack.c.bf16 %v318_v27, %v317_v26  ;;  %v297_v33 = vld [vmem:[%s10281_s0 + $0x50] sm:$0xff]  ;;  %v298_v34 = vld [vmem:[%s10281_s0 + $0x58] sm:$0xff] }
  0x13   : > { %5492 = vmatpush3.bf16.msra.mxu0 %v285_v7  ;;  %5548 = vmatpush3.bf16.msra.mxu1 %v285_v7  ;;  %v323_v32 = vpack.c.bf16 %v296_v29, %v295_v28  ;;  %v299_v35 = vld [vmem:[%s10281_s0 + $0x60] sm:$0xff]  ;;  %v300_v36 = vld [vmem:[%s10281_s0 + $0x68] sm:$0xff]  ;;  %v324_v37 = vpack.c.bf16 %v298_v34, %v297_v33  ;;  %v301_v39 = vld [vmem:[%s10281_s0 + $0x70] sm:$0xff] }
  0x14   : > { %5525 = vmatprep.subr.bf16.mxu1 %v286_v3  ;;  %v325_v38 = vpack.c.bf16 %v300_v36, %v299_v35  ;;  %v302_v40 = vld [vmem:[%s10281_s0 + $0x78] sm:$0xff]  ;;  %v303_v41 = vld [vmem:[%s10281_s0 + $0x80] sm:$0xff]  ;;  %v304_v42 = vld [vmem:[%s10281_s0 + $0x88] sm:$0xff] }
  0x15   : > { %v326_v43 = vpack.c.bf16 %v302_v40, %v301_v39  ;;  %v327_v44 = vpack.c.bf16 %v304_v42, %v303_v41  ;;  %v305_v45 = vld [vmem:[%s10281_s0 + $0x90] sm:$0xff]  ;;  %v306_v46 = vld [vmem:[%s10281_s0 + $0x98] sm:$0xff]  ;;  %v307_v47 = vld [vmem:[%s10281_s0 + $0xa0] sm:$0xff] }
  0x16   : > { %5494 = vmatmul.mubr.msk.bf16.vlgmr.msra.gmra.mxu0 %vm335_vm0, %v320_v19  ;;  %5518 = vmatmul.mubr.msk.bf16.vlgmr.msra.gmra.mxu1 %vm335_vm0, %v332_v20  ;;  %v308_v48 = vld [vmem:[%s10281_s0 + $0xa8] sm:$0xff]  ;;  %v328_v49 = vpack.c.bf16 %v306_v46, %v305_v45  ;;  %v309_v51 = vld [vmem:[%s10281_s0 + $0xb0] sm:$0xff]  ;;  %v310_v52 = vld [vmem:[%s10281_s0 + $0xb8] sm:$0xff] }
  0x17   : > { %5497 = vmatprep.mubr.msk.bf16.mxu0 %vm335_vm0, %v321_v22  ;;  %5521 = vmatprep.mubr.msk.bf16.mxu1 %vm335_vm0, %v333_v23  ;;  %v329_v50 = vpack.c.bf16 %v308_v48, %v307_v47  ;;  %v330_v53 = vpack.c.bf16 %v310_v52, %v309_v51  ;;  %v545_v54 = vld [vmem:[%s6202_s9] sm:$0xff]  ;;  %v546_v55 = vld [vmem:[%s6202_s9 + $0x8] sm:$0xff]  ;;  %v547_v57 = vld [vmem:[%s6202_s9 + $0x10] sm:$0xff] }
  0x18   : > { %5526 = vmatpush3.bf16.msra.mxu1 %v286_v3  ;;  %v561_v56 = vpack.c.bf16 %v546_v55, %v545_v54  ;;  %v548_v58 = vld [vmem:[%s6202_s9 + $0x18] sm:$0xff]  ;;  %v6213_v60 = vld [vmem:[%s10286_s5] ss:$0 sm:$0xff]  ;;  %v550_v46 = vld [vmem:[%s6202_s9 + $0x28] sm:$0xff] }
  0x19   : > { %5527 = vmatprep.subr.bf16.mxu1 %v285_v7  ;;  %v562_v59 = vpack.c.bf16 %v548_v58, %v547_v57  ;;  %v549_v45 = vld [vmem:[%s6202_s9 + $0x20] sm:$0xff]  ;;  %v551_v47 = vld [vmem:[%s6202_s9 + $0x30] sm:$0xff]  ;;  %v552_v51 = vld [vmem:[%s6202_s9 + $0x38] sm:$0xff] }
  0x1a   : > { %v564_v54 = vpack.c.bf16 %v552_v51, %v551_v47  ;;  %v553_v51 = vld [vmem:[%s6202_s9 + $0x40] sm:$0xff] }
  0x1c   : > { %5528 = vmatpush3.bf16.msra.mxu1 %v285_v7 }
  0x1e   : > { %5498 = vmatmul.mubr.msk.bf16.gmra.mxu0 %vm335_vm0, %v322_v30  ;;  %5522 = vmatmul.mubr.msk.bf16.gmra.mxu1 %vm335_vm0, %v334_v31 }
  0x1f   : > { %5501 = vmatprep.mubr.msk.bf16.mxu0 %vm335_vm0, %v323_v32  ;;  %5529 = vmatprep.mubr.msk.bf16.mxu1 %vm335_vm0, %v561_v56 }
  0x26   : > { %5502 = vmatmul.mubr.msk.bf16.gmra.mxu0 %vm335_vm0, %v324_v37  ;;  %5530 = vmatmul.mubr.msk.bf16.vlgmr.msra.gmra.mxu1 %vm335_vm0, %v562_v59 }
  0x27   : > { %5505 = vmatprep.mubr.msk.bf16.mxu0 %vm335_vm0, %v325_v38 }
  0x2e   : > { %5506 = vmatmul.mubr.msk.bf16.gmra.mxu0 %vm335_vm0, %v326_v43 }
  0x2f   : > { %5509 = vmatprep.mubr.msk.bf16.mxu0 %vm335_vm0, %v327_v44 }
  0x36   : > { %5510 = vmatmul.mubr.msk.bf16.gmra.mxu0 %vm335_vm0, %v328_v49 }
  0x37   : > { %5513 = vmatprep.mubr.msk.bf16.mxu0 %vm335_vm0, %v329_v50  ;;  %v563_v50 = vpack.c.bf16 %v550_v46, %v549_v45 }
  0x39   : > { %5533 = vmatprep.mubr.msk.bf16.mxu1 %vm335_vm0, %v563_v50 }
  0x3a   : > { %5534 = vmatmul.mubr.msk.bf16.gmra.mxu1 %vm335_vm0, %v564_v54 }
  0x3e   : > { %5514 = vmatmul.mubr.msk.bf16.gmra.mxu0 %vm335_vm0, %v330_v53 }
  0xd6   : > { %v6215_v61 = vpop.f32.mrf.mxu0  ;;  %v6217_v62 = vpop.f32.mrf.mxu1 }
  0xd7   : > { %v6221_v63 = vmul.f32 %v6215_v61, %v6213_v60  ;;  %v6225_v0 = vmul.f32 %v6217_v62, %v6213_v60 }
  0xd8   : > { %v6227_v1 = vpop.f32.mrf.mxu0  ;;  %v6229_v2 = vpop.f32.mrf.mxu1 }
  0xd9   : > { %10683 = vst [vmem:[#allocation2_spill] sm:$0xff] %v6221_v63  ;;  %10684 = vst [vmem:[#allocation3_spill] sm:$0xff] %v6225_v0  ;;  %1838 = vrot.lane.b32.xlu0 %v6225_v0, %s6019_s11  ;;  %1790 = vrot.lane.b32.xlu1 %v6221_v63, %s6019_s11  ;;  %v871_v49 = vsel %vm10426_vm1, %v6221_v63, 0.0  ;;  %v943_v59 = vsel %vm10426_vm1, %v6225_v0, 0.0 }
  0xda   : > { %v6235_v3 = vpop.f32.mrf.mxu0  ;;  %v5520_v4 = vpop.f32.mrf.mxu1 }
  0xdb   : > { %v6239_v5 = vmul.f32 %v6235_v3, %v6213_v60  ;;  %v6250_v10 = vmul.f32 %v5520_v4, %v6213_v60  ;;  %v6333_v52 = vpack.c.bf16 %v5520_v4, %v6217_v62 }
  0xdc   : > { %v6241_v6 = vpop.f32.mrf.mxu0  ;;  %v6243_v7 = vpop.f32.mrf.mxu1 }
  0xdd   : > { %10685 = vst [vmem:[#allocation4_spill] sm:$0xff] %v6239_v5  ;;  %1792 = vrot.lane.b32.xlu1 %v6239_v5, %s6019_s11  ;;  %10686 = vst [vmem:[#allocation5_spill] sm:$0xff] %v6250_v10  ;;  %v6351_v62 = vpack.c.bf16 %v6243_v7, %v6229_v2  ;;  %v946_v47 = vsel %vm10426_vm1, %v6250_v10, 0.0 }
  0xde   : > { %v6247_v8 = vpop.f32.mrf.mxu0  ;;  %v5523_v9 = vpop.f32.mrf.mxu1  ;;  %10707 = vst [vmem:[#allocation26_spill] sm:$0xff] %v6333_v52 }
  0xdf   : > { %v6254_v11 = vmul.f32 %v6247_v8, %v6213_v60  ;;  %v6257_v12 = vmul.f32 %v5523_v9, %v6213_v60  ;;  %10711 = vst [vmem:[#allocation30_spill] sm:$0xff] %v6351_v62 }
  0xe0   : > { %v6259_v13 = vpop.f32.mrf.mxu0  ;;  %v530_v14 = vpop.f32.mrf.mxu1 }
  0xe1   : > { %10687 = vst [vmem:[#allocation6_spill] sm:$0xff] %v6254_v11  ;;  %10688 = vst [vmem:[#allocation7_spill] sm:$0xff] %v6257_v12  ;;  %v6263_v15 = vmul.f32 %v6213_v60, %v6259_v13  ;;  %1840 = vrot.lane.b32.xlu1 %v6250_v10, %s6019_s11  ;;  %v6268_v16 = vmul.f32 %v6213_v60, %v530_v14 }
  0xe2   : > { %v6270_v17 = vpop.f32.mrf.mxu0  ;;  %v5524_v18 = vpop.f32.mrf.mxu1 }
  0xe3   : > { %10689 = vst [vmem:[#allocation8_spill] sm:$0xff] %v6263_v15  ;;  %10690 = vst [vmem:[#allocation9_spill] sm:$0xff] %v6268_v16  ;;  %v6274_v19 = vmul.f32 %v6270_v17, %v6213_v60  ;;  %v6277_v20 = vmul.f32 %v5524_v18, %v6213_v60  ;;  %v6279_v21 = vpack.c.bf16 %v5524_v18, %v5523_v9 }
  0xe4   : > { %v6281_v22 = vpop.f32.mrf.mxu0  ;;  %v6303_v34 = vpop.f32.mrf.mxu1 }
  0xe5   : > { %10691 = vst [vmem:[#allocation10_spill] sm:$0xff] %v6274_v19  ;;  %10692 = vst [vmem:[#allocation11_spill] sm:$0xff] %v6277_v20  ;;  %v6285_v23 = vmul.f32 %v6213_v60, %v6281_v22  ;;  %5233 = vmatprep.subr.bf16.mxu1 %v6279_v21  ;;  %v6309_v38 = vpack.c.bf16 %v6303_v34, %v530_v14 }
  0xe6   : > { %10693 = vst [vmem:[#allocation12_spill] sm:$0xff] %v6279_v21  ;;  %v5503_v24 = vpop.f32.mrf.mxu0 }
  0xe7   : > { %10694 = vst [vmem:[#allocation13_spill] sm:$0xff] %v6285_v23  ;;  %v6289_v25 = vmul.f32 %v5503_v24, %v6213_v60  ;;  %10701 = vst [vmem:[#allocation20_spill] sm:$0xff] %v6309_v38 }
  0xe8   : > { %v450_v26 = vpop.f32.mrf.mxu0 }
  0xe9   : > { %10695 = vst [vmem:[#allocation14_spill] sm:$0xff] %v6289_v25  ;;  %v6292_v27 = vmul.f32 %v6213_v60, %v450_v26 }
  0xea   : > { %v5504_v28 = vpop.f32.mrf.mxu0 }
  0xeb   : > { %10696 = vst [vmem:[#allocation15_spill] sm:$0xff] %v6292_v27  ;;  %v6295_v29 = vmul.f32 %v5504_v28, %v6213_v60  ;;  %v6335_v55 = vpack.c.bf16 %v5504_v28, %v5503_v24 }
  0xec   : > { %v453_v30 = vpop.f32.mrf.mxu0 }
  0xed   : > { %10697 = vst [vmem:[#allocation16_spill] sm:$0xff] %v6295_v29  ;;  %v6298_v31 = vmul.f32 %v6213_v60, %v453_v30  ;;  %10708 = vst [vmem:[#allocation27_spill] sm:$0xff] %v6335_v55  ;;  %v6353_v9 = vpack.c.bf16 %v453_v30, %v450_v26  ;;  %v6369_v26 = vpack.c.bf16 %v6270_v17, %v6247_v8 }
  0xee   : > { %v5507_v32 = vpop.f32.mrf.mxu0  ;;  %v6386_v8 = vpack.c.bf16 %v6281_v22, %v6259_v13  ;;  %v6400_v13 = vpack.c.bf16 %v6235_v3, %v6215_v61  ;;  %v6406_v22 = vmul.f32 %v6213_v60, %v6227_v1  ;;  %v6417_v61 = vmul.f32 %v6213_v60, %v6229_v2 }
  0xef   : > { %10698 = vst [vmem:[#allocation17_spill] sm:$0xff] %v6298_v31  ;;  %v6301_v33 = vmul.f32 %v5507_v32, %v6213_v60  ;;  %10712 = vst [vmem:[#allocation31_spill] sm:$0xff] %v6353_v9  ;;  %v6423_v3 = vmul.f32 %v6213_v60, %v6241_v6 }
  0xf0   : > { %v466_v35 = vpop.f32.mrf.mxu0  ;;  %10716 = vst [vmem:[#allocation35_spill] sm:$0xff] %v6369_v26  ;;  %10720 = vst [vmem:[#allocation39_spill] sm:$0xff] %v6386_v8  ;;  %v865_v2 = vsel %vm10426_vm1, %v6406_v22, 0.0 }
  0xf1   : > { %10699 = vst [vmem:[#allocation18_spill] sm:$0xff] %v6301_v33  ;;  %v6306_v36 = vmul.f32 %v6213_v60, %v466_v35  ;;  %10723 = vst [vmem:[#allocation42_spill] sm:$0xff] %v6400_v13  ;;  %v868_v50 = vsel %vm10426_vm1, %v6423_v3, 0.0 }
  0xf2   : > { %v5508_v37 = vpop.f32.mrf.mxu0  ;;  %10724 = vst [vmem:[#allocation43_spill] sm:$0xff] %v6406_v22  ;;  %10726 = vst [vmem:[#allocation45_spill] sm:$0xff] %v6417_v61 }
  0xf3   : > { %10700 = vst [vmem:[#allocation19_spill] sm:$0xff] %v6306_v36  ;;  %v6312_v39 = vmul.f32 %v5508_v37, %v6213_v60  ;;  %v6314_v40 = vpack.c.bf16 %v5508_v37, %v5507_v32  ;;  %10727 = vst [vmem:[#allocation46_spill] sm:$0xff] %v6423_v3 }
  0xf4   : > { %v469_v41 = vpop.f32.mrf.mxu0 }
  0xf5   : > { %10702 = vst [vmem:[#allocation21_spill] sm:$0xff] %v6312_v39  ;;  %10703 = vst [vmem:[#allocation22_spill] sm:$0xff] %v6314_v40  ;;  %v6317_v42 = vmul.f32 %v6213_v60, %v469_v41  ;;  %v6319_v43 = vpack.c.bf16 %v469_v41, %v466_v35  ;;  %5234 = vmatpush3.bf16.msra.mxu1 %v6314_v40  ;;  %v874_v41 = vsel %vm10426_vm1, %v6239_v5, 0.0 }
  0xf6   : > { %v5511_v44 = vpop.f32.mrf.mxu0  ;;  %5235 = vmatprep.subr.bf16.mxu1 %v6309_v38 }
  0xf7   : > { %10704 = vst [vmem:[#allocation23_spill] sm:$0xff] %v6317_v42  ;;  %10705 = vst [vmem:[#allocation24_spill] sm:$0xff] %v6319_v43  ;;  %v6327_v48 = vmul.f32 %v5511_v44, %v6213_v60 }
  0xf8   : > { %872 = vadd.xlane.f32.xlu0 %v871_v49  ;;  %v482_v53 = vpop.f32.mrf.mxu0 }
  0xf9   : > { %10706 = vst [vmem:[#allocation25_spill] sm:$0xff] %v6327_v48  ;;  %v6338_v56 = vmul.f32 %v6213_v60, %v482_v53  ;;  %5236 = vmatpush3.bf16.msra.mxu1 %v6319_v43 }
  0xfa   : > { %v5512_v57 = vpop.f32.mrf.mxu0  ;;  %5237 = vmatprep.subr.bf16.mxu1 %v6333_v52 }
  0xfb   : > { %10709 = vst [vmem:[#allocation28_spill] sm:$0xff] %v6338_v56  ;;  %v6345_v58 = vmul.f32 %v5512_v57, %v6213_v60  ;;  %v6389_v17 = vpack.c.bf16 %v5512_v57, %v5511_v44  ;;  %v6410_v44 = vpack.c.bf16 %v6241_v6, %v6227_v1  ;;  %v6429_v1 = vmul.f32 %v6213_v60, %v6243_v7 }
  0xfc   : > { %944 = vadd.xlane.f32.xlu0 %v943_v59  ;;  %v485_v4 = vpop.f32.mrf.mxu0  ;;  %v937_v6 = vsel %vm10426_vm1, %v6417_v61, 0.0  ;;  %v883_v57 = vsel %vm10426_vm1, %v6254_v11, 0.0  ;;  %v555_v59 = vld [vmem:[%s6202_s9 + $0x50] sm:$0xff] }
  0xfd   : > { %10710 = vst [vmem:[#allocation29_spill] sm:$0xff] %v6345_v58  ;;  %v6356_v14 = vmul.f32 %v6213_v60, %v485_v4  ;;  %5238 = vmatpush3.bf16.msra.mxu1 %v6335_v55  ;;  %10721 = vst [vmem:[#allocation40_spill] sm:$0xff] %v6389_v17  ;;  %v6395_v49 = vpack.c.bf16 %v485_v4, %v482_v53  ;;  %v940_v7 = vsel %vm10426_vm1, %v6429_v1, 0.0  ;;  %v554_v53 = vld [vmem:[%s6202_s9 + $0x48] sm:$0xff]  ;;  %v556_v4 = vld [vmem:[%s6202_s9 + $0x58] sm:$0xff] }
  0xfe   : > { %v5515_v18 = vpop.f32.mrf.mxu0  ;;  %5239 = vmatprep.subr.bf16.mxu1 %v6351_v62  ;;  %10725 = vst [vmem:[#allocation44_spill] sm:$0xff] %v6410_v44  ;;  %10728 = vst [vmem:[#allocation47_spill] sm:$0xff] %v6429_v1  ;;  %v565_v54 = vpack.c.bf16 %v554_v53, %v553_v51  ;;  %v5531_v51 = vpop.f32.mrf.mxu1 }
  0xff   : > { %10713 = vst [vmem:[#allocation32_spill] sm:$0xff] %v6356_v14  ;;  %v6361_v24 = vmul.f32 %v5515_v18, %v6213_v60  ;;  %10722 = vst [vmem:[#allocation41_spill] sm:$0xff] %v6395_v49  ;;  %v916_v62 = vsel %vm10426_vm1, %v6356_v14, 0.0 }
 0x100   : > { %v498_v28 = vpop.f32.mrf.mxu0  ;;  %5537 = vmatprep.mubr.msk.bf16.mxu1 %vm335_vm0, %v565_v54  ;;  %v895_v54 = vsel %vm10426_vm1, %v6289_v25, 0.0 }
 0x101   : > { %10714 = vst [vmem:[#allocation33_spill] sm:$0xff] %v6361_v24  ;;  %v6364_v32 = vmul.f32 %v6213_v60, %v498_v28  ;;  %5240 = vmatpush3.bf16.msra.mxu1 %v6353_v9 }
 0x102   : > { %v5516_v30 = vpop.f32.mrf.mxu0 }
 0x103   : > { %10715 = vst [vmem:[#allocation34_spill] sm:$0xff] %v6364_v32  ;;  %v6372_v35 = vmul.f32 %v5516_v30, %v6213_v60  ;;  %v6374_v37 = vpack.c.bf16 %v5516_v30, %v5515_v18  ;;  %v955_v18 = vsel %vm10426_vm1, %v6257_v12, 0.0  ;;  %v886_v30 = vsel %vm10426_vm1, %v6274_v19, 0.0 }
 0x104   : > { %v6378_v45 = vpop.f32.mrf.mxu0 }
 0x105   : > { %10717 = vst [vmem:[#allocation36_spill] sm:$0xff] %v6372_v35  ;;  %10718 = vst [vmem:[#allocation37_spill] sm:$0xff] %v6374_v37  ;;  %875 = vadd.xlane.f32.xlu1 %v874_v41  ;;  %5241 = vmatprep.subr.bf16.mxu1 %v6374_v37  ;;  %v6382_v46 = vpack.c.bf16 %v6378_v45, %v498_v28  ;;  %v566_v28 = vpack.c.bf16 %v556_v4, %v555_v59  ;;  %v958_v41 = vsel %vm10426_vm1, %v6277_v20, 0.0  ;;  %v558_v59 = vld [vmem:[%s6202_s9 + $0x68] sm:$0xff]  ;;  %v559_v4 = vld [vmem:[%s6202_s9 + $0x70] sm:$0xff] }
 0x106   : > { %5242 = vmatpush3.bf16.msra.mxu1 %v6369_v26 }
 0x107   : > { %10719 = vst [vmem:[#allocation38_spill] sm:$0xff] %v6382_v46  ;;  %5243 = vmatprep.subr.bf16.mxu1 %v6382_v46  ;;  %5538 = vmatmul.mubr.msk.bf16.gmra.mxu1 %vm335_vm0, %v566_v28  ;;  %v560_v28 = vld [vmem:[%s6202_s9 + $0x78] sm:$0xff] }
 0x109   : > { %947 = vadd.xlane.f32.xlu1 %v946_v47  ;;  %v6471_v47 = vmul.f32 %v6213_v60, %v6303_v34 }
 0x10a   : > { %5244 = vmatpush3.bf16.msra.mxu1 %v6386_v8 }
 0x10b   : > { %5245 = vmatprep.subr.bf16.mxu1 %v6389_v17  ;;  %10729 = vst [vmem:[#allocation48_spill] sm:$0xff] %v6471_v47  ;;  %v952_v34 = vsel %vm10426_vm1, %v6471_v47, 0.0 }
 0x10e   : > { %5246 = vmatpush3.bf16.msra.mxu1 %v6400_v13 }
 0x10f   : > { %5247 = vmatprep.subr.bf16.mxu1 %v6395_v49 }
 0x112   : > { %1786 = vrot.lane.b32.xlu0 %v6406_v22, %s6019_s11  ;;  %5248 = vmatpush3.bf16.msra.mxu1 %v6410_v44 }
 0x116   : > { %1834 = vrot.lane.b32.xlu0 %v6417_v61, %s6019_s11 }
 0x11a   : > { %1788 = vrot.lane.b32.xlu1 %v6423_v3, %s6019_s11 }
 0x11e   : > { %1836 = vrot.lane.b32.xlu1 %v6429_v1, %s6019_s11 }
 0x135   : > { %866 = vadd.xlane.f32.xlu0 %v865_v2  ;;  %v877_v2 = vsel %vm10426_vm1, %v6263_v15, 0.0 }
 0x139   : > { %938 = vadd.xlane.f32.xlu0 %v937_v6  ;;  %v949_v6 = vsel %vm10426_vm1, %v6268_v16, 0.0 }
 0x142   : > { %869 = vadd.xlane.f32.xlu1 %v868_v50  ;;  %v880_v50 = vsel %vm10426_vm1, %v6285_v23, 0.0 }
 0x146   : > { %941 = vadd.xlane.f32.xlu1 %v940_v7  ;;  %v6488_v7 = vld [vmem:[%s10285_s4] ss:$0 sm:$0xff] }
 0x147   : > { %v6491_v53 = vmul.f32 %v5531_v51, %v6488_v7 }
 0x149   : > { %10730 = vst [vmem:[#allocation49_spill] sm:$0xff] %v6491_v53 }
 0x14f   : > { %1798 = vrot.lane.b32.xlu0 %v6254_v11, %s6019_s11 }
 0x153   : > { %1846 = vrot.lane.b32.xlu0 %v6257_v12, %s6019_s11 }
 0x157   : > { %1800 = vrot.lane.b32.xlu1 %v6274_v19, %s6019_s11  ;;  %v922_v19 = vsel %vm10426_vm1, %v6345_v58, 0.0 }
 0x15b   : > { %1848 = vrot.lane.b32.xlu1 %v6277_v20, %s6019_s11 }
 0x172   : > { %884 = vadd.xlane.f32.xlu0 %v883_v57  ;;  %v557_v57 = vld [vmem:[%s6202_s9 + $0x60] sm:$0xff] }
 0x176   : > { %956 = vadd.xlane.f32.xlu0 %v955_v18  ;;  %v567_v18 = vpack.c.bf16 %v558_v59, %v557_v57  ;;  %v889_v59 = vsel %vm10426_vm1, %v6292_v27, 0.0 }
 0x178   : > { %5541 = vmatprep.mubr.msk.bf16.mxu1 %vm335_vm0, %v567_v18 }
 0x17f   : > { %887 = vadd.xlane.f32.xlu1 %v886_v30  ;;  %v568_v30 = vpack.c.bf16 %v560_v28, %v559_v4  ;;  %v898_v28 = vsel %vm10426_vm1, %v6295_v29, 0.0 }
 0x181   : > { %5542 = vmatmul.mubr.msk.bf16.gmra.mxu1 %vm335_vm0, %v568_v30 }
 0x183   : > { %959 = vadd.xlane.f32.xlu1 %v958_v41  ;;  %v785_v41 = vsel %vm10426_vm1, %v6491_v53, 0.0 }
 0x18c   : > { %1794 = vrot.lane.b32.xlu0 %v6263_v15, %s6019_s11 }
 0x190   : > { %1842 = vrot.lane.b32.xlu0 %v6268_v16, %s6019_s11 }
 0x194   : > { %1796 = vrot.lane.b32.xlu1 %v6285_v23, %s6019_s11 }
 0x198   : > { %1844 = vrot.lane.b32.xlu1 %v6471_v47, %s6019_s11 }
 0x1af   : > { %878 = vadd.xlane.f32.xlu0 %v877_v2  ;;  %v627_v2 = vpop.f32.mrf.mxu1 }
 0x1b3   : > { %950 = vadd.xlane.f32.xlu0 %v949_v6  ;;  %v6506_v6 = vmul.f32 %v6488_v7, %v627_v2 }
 0x1b5   : > { %10731 = vst [vmem:[#allocation50_spill] sm:$0xff] %v6506_v6  ;;  %v779_v51 = vsel %vm10426_vm1, %v6506_v6, 0.0 }
 0x1bc   : > { %881 = vadd.xlane.f32.xlu1 %v880_v50  ;;  %v5532_v50 = vpop.f32.mrf.mxu1 }
 0x1c0   : > { %953 = vadd.xlane.f32.xlu1 %v952_v34  ;;  %v6513_v34 = vmul.f32 %v5532_v50, %v6488_v7  ;;  %v907_v50 = vsel %vm10426_vm1, %v6301_v33, 0.0 }
 0x1c2   : > { %10732 = vst [vmem:[#allocation51_spill] sm:$0xff] %v6513_v34  ;;  %v788_v18 = vsel %vm10426_vm1, %v6513_v34, 0.0 }
 0x1c9   : > { %1806 = vrot.lane.b32.xlu0 %v6289_v25, %s6019_s11 }
 0x1d1   : > { %1662 = vrot.lane.b32.xlu1 %v6491_v53, %s6019_s11 }
 0x1e8   : > { %896 = vadd.xlane.f32.xlu0 %v895_v54  ;;  %v630_v54 = vpop.f32.mrf.mxu1 }
 0x1e9   : > { %v6522_v57 = vmul.f32 %v6488_v7, %v630_v54 }
 0x1ea   : > { %v5535_v30 = vpop.f32.mrf.mxu1 }
 0x1eb   : > { %10733 = vst [vmem:[#allocation52_spill] sm:$0xff] %v6522_v57  ;;  %v782_v4 = vsel %vm10426_vm1, %v6522_v57, 0.0 }
 0x1ec   : > { %v643_v54 = vpop.f32.mrf.mxu1 }
 0x1f5   : > { %786 = vadd.xlane.f32.xlu1 %v785_v41  ;;  %v6533_v41 = vmul.f32 %v5535_v30, %v6488_v7  ;;  %v901_v30 = vsel %vm10426_vm1, %v6306_v36, 0.0 }
 0x1f7   : > { %10734 = vst [vmem:[#allocation53_spill] sm:$0xff] %v6533_v41  ;;  %v797_v2 = vsel %vm10426_vm1, %v6533_v41, 0.0 }
 0x1fe   : > { %1658 = vrot.lane.b32.xlu0 %v6506_v6, %s6019_s11 }
 0x202   : > { %1802 = vrot.lane.b32.xlu0 %v6292_v27, %s6019_s11 }
 0x206   : > { %1664 = vrot.lane.b32.xlu1 %v6513_v34, %s6019_s11 }
 0x20a   : > { %1808 = vrot.lane.b32.xlu1 %v6295_v29, %s6019_s11  ;;  %v913_v29 = vsel %vm10426_vm1, %v6338_v56, 0.0 }
 0x221   : > { %780 = vadd.xlane.f32.xlu0 %v779_v51  ;;  %v892_v51 = vsel %vm10426_vm1, %v6298_v31, 0.0 }
 0x225   : > { %890 = vadd.xlane.f32.xlu0 %v889_v59  ;;  %v5536_v59 = vpop.f32.mrf.mxu1 }
 0x229   : > { %783 = vadd.xlane.f32.xlu0 %v782_v4  ;;  %v6550_v4 = vmul.f32 %v6488_v7, %v643_v54 }
 0x22b   : > { %10735 = vst [vmem:[#allocation54_spill] sm:$0xff] %v6550_v4 }
 0x22e   : > { %789 = vadd.xlane.f32.xlu1 %v788_v18  ;;  %v6553_v18 = vmul.f32 %v5536_v59, %v6488_v7 }
 0x230   : > { %10736 = vst [vmem:[#allocation55_spill] sm:$0xff] %v6553_v18 }
 0x232   : > { %899 = vadd.xlane.f32.xlu1 %v898_v28  ;;  %v791_v28 = vsel %vm10426_vm1, %v6550_v4, 0.0 }
 0x23f   : > { %1670 = vrot.lane.b32.xlu0 %v6533_v41, %s6019_s11 }
 0x243   : > { %1660 = vrot.lane.b32.xlu1 %v6522_v57, %s6019_s11  ;;  %1814 = vrot.lane.b32.xlu0 %v6301_v33, %s6019_s11  ;;  %v931_v57 = vsel %vm10426_vm1, %v6361_v24, 0.0 }
 0x247   : > { %1804 = vrot.lane.b32.xlu1 %v6298_v31, %s6019_s11 }
 0x262   : > { %798 = vadd.xlane.f32.xlu0 %v797_v2  ;;  %v800_v2 = vsel %vm10426_vm1, %v6553_v18, 0.0 }
 0x266   : > { %908 = vadd.xlane.f32.xlu0 %v907_v50  ;;  %v910_v50 = vsel %vm10426_vm1, %v6312_v39, 0.0 }
 0x26b   : > { %893 = vadd.xlane.f32.xlu1 %v892_v51  ;;  %v646_v51 = vpop.f32.mrf.mxu1 }
 0x26c   : > { %v6575_v20 = vmul.f32 %v6488_v7, %v646_v51  ;;  %v6593_v51 = vpop.permute.xlu0 %1838 }
 0x26d   : > { %v5539_v54 = vpop.f32.mrf.mxu1  ;;  %10739 = vst [vmem:[#allocation58_spill] sm:$0xff] %v6593_v51 }
 0x26e   : > { %v6572_v59 = vmul.f32 %v5539_v54, %v6488_v7  ;;  %10738 = vst [vmem:[#allocation57_spill] sm:$0xff] %v6575_v20 }
 0x26f   : > { %v659_v47 = vpop.f32.mrf.mxu1 }
 0x270   : > { %10737 = vst [vmem:[#allocation56_spill] sm:$0xff] %v6572_v59  ;;  %v6595_v54 = vpop.xlane.xlu0 %872  ;;  %v6600_v16 = vmul.f32 %v6488_v7, %v659_v47 }
 0x272   : > { %10740 = vst [vmem:[#allocation59_spill] sm:$0xff] %v6600_v16  ;;  %v803_v33 = vsel %vm10426_vm1, %v6600_v16, 0.0 }
 0x274   : > { %v6597_v12 = vpop.xlane.xlu0 %944 }
 0x278   : > { %v6605_v10 = vpop.permute.xlu0 %1786 }
 0x27c   : > { %1666 = vrot.lane.b32.xlu0 %v6550_v4, %s6019_s11  ;;  %1672 = vrot.lane.b32.xlu1 %v6553_v18, %s6019_s11 }
 0x280   : > { %1810 = vrot.lane.b32.xlu0 %v6306_v36, %s6019_s11  ;;  %1816 = vrot.lane.b32.xlu1 %v6312_v39, %s6019_s11 }
 0x29f   : > { %792 = vadd.xlane.f32.xlu0 %v791_v28  ;;  %v809_v28 = vsel %vm10426_vm1, %v6572_v59, 0.0 }
 0x2a3   : > { %902 = vadd.xlane.f32.xlu0 %v901_v30  ;;  %v919_v30 = vsel %vm10426_vm1, %v6327_v48, 0.0 }
 0x2a4   : > { %801 = vadd.xlane.f32.xlu1 %v800_v2  ;;  %v794_v2 = vsel %vm10426_vm1, %v6575_v20, 0.0 }
 0x2a8   : > { %911 = vadd.xlane.f32.xlu1 %v910_v50  ;;  %v904_v50 = vsel %vm10426_vm1, %v6317_v42, 0.0 }
 0x2b9   : > { %1668 = vrot.lane.b32.xlu1 %v6575_v20, %s6019_s11  ;;  %1678 = vrot.lane.b32.xlu0 %v6572_v59, %s6019_s11 }
 0x2bd   : > { %1812 = vrot.lane.b32.xlu1 %v6317_v42, %s6019_s11  ;;  %1822 = vrot.lane.b32.xlu0 %v6327_v48, %s6019_s11 }
 0x2dc   : > { %810 = vadd.xlane.f32.xlu0 %v809_v28  ;;  %v5540_v28 = vpop.f32.mrf.mxu1 }
 0x2de   : > { %v662_v23 = vpop.f32.mrf.mxu1 }
 0x2e0   : > { %920 = vadd.xlane.f32.xlu0 %v919_v30  ;;  %v6603_v30 = vmul.f32 %v5540_v28, %v6488_v7  ;;  %v6621_v28 = vpop.permute.xlu1 %1790 }
 0x2e1   : > { %795 = vadd.xlane.f32.xlu1 %v794_v2  ;;  %v6615_v2 = vpop.permute.xlu0 %1834 }
 0x2e2   : > { %10741 = vst [vmem:[#allocation60_spill] sm:$0xff] %v6603_v30  ;;  %10742 = vst [vmem:[#allocation61_spill] sm:$0xff] %v6615_v2  ;;  %v812_v25 = vsel %vm10426_vm1, %v6603_v30, 0.0  ;;  %v925_v2 = vsel %vm10426_vm1, %v6364_v32, 0.0 }
 0x2e4   : > { %v6625_v1 = vpop.permute.xlu1 %1792 }
 0x2e5   : > { %905 = vadd.xlane.f32.xlu1 %v904_v50  ;;  %v6617_v47 = vpop.xlane.xlu0 %866 }
 0x2e8   : > { %v6631_v39 = vpop.permute.xlu1 %1840 }
 0x2e9   : > { %v6619_v50 = vpop.xlane.xlu0 %938  ;;  %10744 = vst [vmem:[#allocation63_spill] sm:$0xff] %v6631_v39 }
 0x2ec   : > { %v6635_v42 = vpop.xlane.xlu1 %875 }
 0x2ed   : > { %v6623_v0 = vpop.permute.xlu0 %1798 }
 0x2f0   : > { %v6643_v31 = vpop.xlane.xlu1 %947 }
 0x2f1   : > { %v6627_v61 = vpop.permute.xlu0 %1846 }
 0x2f2   : > { %10743 = vst [vmem:[#allocation62_spill] sm:$0xff] %v6627_v61 }
 0x2f5   : > { %v6629_v48 = vpop.xlane.xlu0 %884 }
 0x2f6   : > { %1674 = vrot.lane.b32.xlu0 %v6600_v16, %s6019_s11  ;;  %1680 = vrot.lane.b32.xlu1 %v6603_v30, %s6019_s11 }
 0x2f9   : > { %v6637_v36 = vpop.xlane.xlu0 %956 }
 0x2fa   : > { %1818 = vrot.lane.b32.xlu0 %v6338_v56, %s6019_s11  ;;  %1824 = vrot.lane.b32.xlu1 %v6345_v58, %s6019_s11  ;;  %v5543_v56 = vpop.f32.mrf.mxu1  ;;  %v6665_v58 = vmul.f32 %v6488_v7, %v662_v23 }
 0x2fc   : > { %10748 = vst [vmem:[#allocation67_spill] sm:$0xff] %v6665_v58  ;;  %v806_v21 = vsel %vm10426_vm1, %v6665_v58, 0.0  ;;  %v675_v46 = vpop.f32.mrf.mxu1 }
 0x2fd   : > { %v6645_v27 = vpop.permute.xlu0 %1794 }
 0x301   : > { %v6651_v11 = vpop.permute.xlu0 %1842 }
 0x302   : > { %10745 = vst [vmem:[#allocation64_spill] sm:$0xff] %v6651_v11 }
 0x305   : > { %v6653_v15 = vpop.xlane.xlu0 %878 }
 0x309   : > { %v6662_v22 = vpop.xlane.xlu0 %950 }
 0x319   : > { %804 = vadd.xlane.f32.xlu0 %v803_v33  ;;  %v6649_v33 = vpop.permute.xlu1 %1788 }
 0x31d   : > { %914 = vadd.xlane.f32.xlu0 %v913_v29  ;;  %v6655_v29 = vpop.permute.xlu1 %1836 }
 0x31e   : > { %813 = vadd.xlane.f32.xlu1 %v812_v25  ;;  %10746 = vst [vmem:[#allocation65_spill] sm:$0xff] %v6655_v29  ;;  %v6658_v25 = vmul.f32 %v5543_v56, %v6488_v7 }
 0x320   : > { %10747 = vst [vmem:[#allocation66_spill] sm:$0xff] %v6658_v25  ;;  %v821_v34 = vsel %vm10426_vm1, %v6658_v25, 0.0 }
 0x321   : > { %v6660_v5 = vpop.xlane.xlu1 %869 }
 0x322   : > { %923 = vadd.xlane.f32.xlu1 %v922_v19  ;;  %v6671_v19 = vpop.permute.xlu0 %1806 }
 0x325   : > { %v6673_v63 = vpop.xlane.xlu1 %941 }
 0x326   : > { %v6679_v56 = vpop.xlane.xlu0 %896 }
 0x329   : > { %v6681_v23 = vpop.permute.xlu1 %1800 }
 0x32a   : > { %v1659_v3 = vpop.permute.xlu0 %1658 }
 0x32d   : > { %v6683_v30 = vpop.permute.xlu1 %1848 }
 0x32e   : > { %10749 = vst [vmem:[#allocation68_spill] sm:$0xff] %v6683_v30  ;;  %v6687_v16 = vpop.permute.xlu0 %1802 }
 0x331   : > { %v6685_v59 = vpop.xlane.xlu1 %887 }
 0x332   : > { %v6689_v18 = vpop.xlane.xlu0 %780 }
 0x333   : > { %1676 = vrot.lane.b32.xlu1 %v6665_v58, %s6019_s11  ;;  %1686 = vrot.lane.b32.xlu0 %v6658_v25, %s6019_s11  ;;  %v5544_v58 = vpop.f32.mrf.mxu1 }
 0x334   : > { %v6725_v49 = vmul.f32 %v5544_v58, %v6488_v7 }
 0x335   : > { %v6691_v41 = vpop.xlane.xlu1 %959 }
 0x336   : > { %v6693_v20 = vpop.xlane.xlu0 %890  ;;  %10753 = vst [vmem:[#allocation72_spill] sm:$0xff] %v6725_v49  ;;  %v824_v30 = vsel %vm10426_vm1, %v6725_v49, 0.0 }
 0x337   : > { %1820 = vrot.lane.b32.xlu1 %v6356_v14, %s6019_s11  ;;  %1830 = vrot.lane.b32.xlu0 %v6361_v24, %s6019_s11 }
 0x339   : > { %v6695_v4 = vpop.permute.xlu1 %1796 }
 0x33a   : > { %v6699_v53 = vpop.xlane.xlu0 %783 }
 0x33d   : > { %v6703_v6 = vpop.permute.xlu1 %1844 }
 0x33e   : > { %10750 = vst [vmem:[#allocation69_spill] sm:$0xff] %v6703_v6  ;;  %v1671_v38 = vpop.permute.xlu0 %1670 }
 0x341   : > { %v6707_v52 = vpop.xlane.xlu1 %881 }
 0x345   : > { %v6713_v25 = vpop.xlane.xlu1 %953 }
 0x349   : > { %v1663_v24 = vpop.permute.xlu1 %1662 }
 0x34a   : > { %v1712_v39 = vsel %vm10426_vm1, %v1663_v24, 0.0  ;;  %v1724_v24 = vsel %vm10426_vm1, %v1671_v38, 0.0  ;;  %v6788_v38 = vmul.f32 %v6213_v60, %v6378_v45 }
 0x34c   : > { %10760 = vst [vmem:[#allocation79_spill] sm:$0xff] %v6788_v38 }
 0x356   : > { %822 = vadd.xlane.f32.xlu0 %v821_v34  ;;  %v6711_v34 = vpop.permute.xlu0 %1814 }
 0x357   : > { %10751 = vst [vmem:[#allocation70_spill] sm:$0xff] %v6711_v34 }
 0x35a   : > { %932 = vadd.xlane.f32.xlu0 %v931_v57  ;;  %v6715_v37 = vpop.xlane.xlu0 %798  ;;  %v6717_v57 = vpop.xlane.xlu1 %786 }
 0x35b   : > { %807 = vadd.xlane.f32.xlu1 %v806_v21  ;;  %v6722_v21 = vmul.f32 %v6488_v7, %v675_v46 }
 0x35d   : > { %10752 = vst [vmem:[#allocation71_spill] sm:$0xff] %v6722_v21  ;;  %v815_v11 = vsel %vm10426_vm1, %v6722_v21, 0.0 }
 0x35e   : > { %v6719_v17 = vpop.xlane.xlu0 %908 }
 0x35f   : > { %917 = vadd.xlane.f32.xlu1 %v916_v62  ;;  %v1665_v62 = vpop.permute.xlu1 %1664 }
 0x362   : > { %v1667_v14 = vpop.permute.xlu0 %1666 }
 0x363   : > { %v6735_v40 = vpop.permute.xlu1 %1808  ;;  %v1718_v34 = vsel %vm10426_vm1, %v1667_v14, 0.0 }
 0x366   : > { %v6737_v46 = vpop.permute.xlu0 %1810 }
 0x367   : > { %v6739_v58 = vpop.xlane.xlu1 %789 }
 0x36a   : > { %v6741_v43 = vpop.xlane.xlu0 %792 }
 0x36b   : > { %v6743_v55 = vpop.xlane.xlu1 %899 }
 0x36e   : > { %v6745_v9 = vpop.xlane.xlu0 %902 }
 0x36f   : > { %v1661_v44 = vpop.permute.xlu1 %1660 }
 0x370   : > { %1682 = vrot.lane.b32.xlu0 %v6722_v21, %s6019_s11  ;;  %1688 = vrot.lane.b32.xlu1 %v6725_v49, %s6019_s11  ;;  %v934_v21 = vsel %vm10426_vm1, %v6372_v35, 0.0  ;;  %v1715_v49 = vsel %vm10426_vm1, %v1665_v62, 0.0 }
 0x372   : > { %v1679_v26 = vpop.permute.xlu0 %1678 }
 0x373   : > { %v6749_v13 = vpop.permute.xlu1 %1804  ;;  %v1736_v62 = vsel %vm10426_vm1, %v1679_v26, 0.0 }
 0x374   : > { %1826 = vrot.lane.b32.xlu0 %v6364_v32, %s6019_s11  ;;  %1832 = vrot.lane.b32.xlu1 %v6372_v35, %s6019_s11  ;;  %v678_v35 = vpop.f32.mrf.mxu1 }
 0x376   : > { %v6747_v8 = vpop.permute.xlu0 %1822 }
 0x377   : > { %10754 = vst [vmem:[#allocation73_spill] sm:$0xff] %v6747_v8  ;;  %v6751_v61 = vpop.xlane.xlu1 %893 }
 0x37a   : > { %v6755_v51 = vpop.xlane.xlu0 %810 }
 0x37b   : > { %10755 = vst [vmem:[#allocation74_spill] sm:$0xff] %v6755_v51  ;;  %v1673_v6 = vpop.permute.xlu1 %1672 }
 0x37e   : > { %v6761_v8 = vpop.xlane.xlu0 %920 }
 0x37f   : > { %v6766_v29 = vpop.permute.xlu1 %1816 }
 0x380   : > { %10756 = vst [vmem:[#allocation75_spill] sm:$0xff] %v6766_v29 }
 0x382   : > { %v1675_v32 = vpop.permute.xlu0 %1674 }
 0x383   : > { %v1730_v14 = vsel %vm10426_vm1, %v1675_v32, 0.0  ;;  %v928_v32 = vsel %vm10426_vm1, %v6788_v38, 0.0 }
 0x393   : > { %816 = vadd.xlane.f32.xlu0 %v815_v11  ;;  %v1706_v11 = vsel %vm10426_vm1, %v1659_v3, 0.0  ;;  %v6781_v3 = vmul.f32 %v6488_v7, %v678_v35 }
 0x395   : > { %10759 = vst [vmem:[#allocation78_spill] sm:$0xff] %v6781_v3  ;;  %v818_v29 = vsel %vm10426_vm1, %v6781_v3, 0.0 }
 0x397   : > { %926 = vadd.xlane.f32.xlu0 %v925_v2  ;;  %v6769_v2 = vpop.xlane.xlu1 %801 }
 0x398   : > { %825 = vadd.xlane.f32.xlu1 %v824_v30  ;;  %v6772_v30 = vpop.permute.xlu0 %1818 }
 0x399   : > { %10757 = vst [vmem:[#allocation76_spill] sm:$0xff] %v6772_v30 }
 0x39b   : > { %1713 = vadd.xlane.f32.xlu0 %v1712_v39  ;;  %v6775_v39 = vpop.xlane.xlu1 %911 }
 0x39c   : > { %935 = vadd.xlane.f32.xlu1 %v934_v21 }
 0x39f   : > { %1707 = vadd.xlane.f32.xlu0 %v1706_v11 }
 0x3a2   : > { %v6777_v21 = vpop.xlane.xlu0 %804 }
 0x3a3   : > { %1716 = vadd.xlane.f32.xlu0 %v1715_v49  ;;  %10758 = vst [vmem:[#allocation77_spill] sm:$0xff] %v6777_v21  ;;  %v1669_v49 = vpop.permute.xlu1 %1668 }
 0x3a6   : > { %v6790_v11 = vpop.xlane.xlu0 %914 }
 0x3a7   : > { %1725 = vadd.xlane.f32.xlu0 %v1724_v24  ;;  %v6795_v7 = vpop.permute.xlu1 %1812 }
 0x3aa   : > { %v1687_v35 = vpop.permute.xlu0 %1686 }
 0x3ab   : > { %1719 = vadd.xlane.f32.xlu0 %v1718_v34  ;;  %v1748_v34 = vsel %vm10426_vm1, %v1687_v35, 0.0  ;;  %v6798_v26 = vpop.xlane.xlu1 %795 }
 0x3ad   : > { %1684 = vrot.lane.b32.xlu1 %v6781_v3, %s6019_s11 }
 0x3af   : > { %1737 = vadd.xlane.f32.xlu0 %v1736_v62  ;;  %v906_v24 = vpop.xlane.xlu1 %905 }
 0x3b1   : > { %1828 = vrot.lane.b32.xlu1 %v6788_v38, %s6019_s11 }
 0x3b3   : > { %1731 = vadd.xlane.f32.xlu0 %v1730_v14  ;;  %v1681_v60 = vpop.permute.xlu1 %1680  ;;  %v6808_v14 = vpop.permute.xlu0 %1830 }
 0x3b4   : > { %10763 = vst [vmem:[#allocation82_spill] sm:$0xff] %v6808_v14 }
 0x3b7   : > { %1749 = vadd.xlane.f32.xlu0 %v1748_v34  ;;  %v6800_v45 = vpop.permute.xlu1 %1824  ;;  %v1709_v34 = vsel %vm10426_vm1, %v1661_v44, 0.0  ;;  %v1739_v44 = vsel %vm10426_vm1, %v1681_v60, 0.0 }
 0x3b8   : > { %10761 = vst [vmem:[#allocation80_spill] sm:$0xff] %v6800_v45 }
 0x3bb   : > { %v6802_v30 = vpop.xlane.xlu1 %813 }
 0x3bc   : > { %10762 = vst [vmem:[#allocation81_spill] sm:$0xff] %v6802_v30  ;;  %v1727_v30 = vsel %vm10426_vm1, %v1673_v6, 0.0 }
 0x3bf   : > { %v924_v62 = vpop.xlane.xlu1 %923 }
 0x3c3   : > { %v1677_v35 = vpop.permute.xlu1 %1676 }
 0x3c7   : > { %v6813_v45 = vpop.permute.xlu1 %1820 }
 0x3c8   : > { %10764 = vst [vmem:[#allocation83_spill] sm:$0xff] %v6813_v45 }
 0x3d5   : > { %819 = vadd.xlane.f32.xlu1 %v818_v29  ;;  %v1721_v29 = vsel %vm10426_vm1, %v1669_v49, 0.0 }
 0x3d9   : > { %929 = vadd.xlane.f32.xlu1 %v928_v32 }
 0x3dd   : > { %1710 = vadd.xlane.f32.xlu1 %v1709_v34  ;;  %v1733_v34 = vsel %vm10426_vm1, %v1677_v35, 0.0 }
 0x3df   : > { %v6811_v51 = vpop.xlane.xlu0 %822 }
 0x3e1   : > { %1728 = vadd.xlane.f32.xlu1 %v1727_v30 }
 0x3e3   : > { %v933_v21 = vpop.xlane.xlu0 %932 }
 0x3e4   : > { %v6816_v3 = vpop.xlane.xlu1 %807 }
 0x3e5   : > { %1722 = vadd.xlane.f32.xlu1 %v1721_v29 }
 0x3e7   : > { %v1683_v32 = vpop.permute.xlu0 %1682 }
 0x3e8   : > { %v918_v38 = vpop.xlane.xlu1 %917  ;;  %v1742_v14 = vsel %vm10426_vm1, %v1683_v32, 0.0  ;;  %v6938_v32 = vld [vmem:[%s6924_s17] sm:$0xff] }
 0x3e9   : > { %1743 = vadd.xlane.f32.xlu0 %v1742_v14  ;;  %1740 = vadd.xlane.f32.xlu1 %v1739_v44  ;;  %10784 = vst [vmem:[#allocation103_spill] sm:$0xff] %v6938_v32  ;;  %v1921_v44 = vsel %vm10426_vm1, %v6795_v7, 0.0  ;;  %vm10499_vm4 = vcmp.ne.f32.partialorder %v6938_v32, 0.0 }
 0x3ec   : > { %v1689_v45 = vpop.permute.xlu1 %1688 }
 0x3ed   : > { %1734 = vadd.xlane.f32.xlu1 %v1733_v34  ;;  %v1751_v6 = vsel %vm10426_vm1, %v1689_v45, 0.0 }
 0x3f0   : > { %v6825_v30 = vpop.permute.xlu1 %1832 }
 0x3f1   : > { %1752 = vadd.xlane.f32.xlu1 %v1751_v6  ;;  %v6946_v6 = vld [vmem:[%s6924_s17 + $0x30] sm:$0xff] }
 0x3f2   : > { %10785 = vst [vmem:[#allocation104_spill] sm:$0xff] %v6946_v6  ;;  %vm10470_vm5 = vcmp.ne.f32.partialorder %v6946_v6, 0.0 }
 0x416   : > { %961 = vxpose.xlu0.b32.start [1/16] (narrow) %v6617_v47, 8 }
 0x41a   : > { %962 = vxpose.xlu0.b32.cont [2/16] (narrow) %v6660_v5, 8  ;;  %v1885_v5 = vsel %vm10426_vm1, %v6649_v33, 0.0 }
 0x41e   : > { %963 = vxpose.xlu0.b32.cont [3/16] (narrow) %v6595_v54, 8  ;;  %v1906_v54 = vsel %vm10426_vm1, %v6687_v16, 0.0 }
 0x421   : > { %v6828_v49 = vpop.xlane.xlu1 %825 }
 0x422   : > { %964 = vxpose.xlu0.b32.cont [4/16] (narrow) %v6635_v42, 8  ;;  %v1897_v42 = vsel %vm10426_vm1, %v6695_v4, 0.0  ;;  %v1888_v4 = vsel %vm10426_vm1, %v6621_v28, 0.0 }
 0x425   : > { %v936_v60 = vpop.xlane.xlu1 %935 }
 0x426   : > { %965 = vxpose.xlu0.b32.cont [5/16] (narrow) %v6653_v15, 8  ;;  %v1903_v15 = vsel %vm10426_vm1, %v6681_v23, 0.0 }
 0x429   : > { %v1685_v14 = vpop.permute.xlu1 %1684 }
 0x42a   : > { %966 = vxpose.xlu0.b32.cont [6/16] (narrow) %v6707_v52, 8  ;;  %v1745_v45 = vsel %vm10426_vm1, %v1685_v14, 0.0 }
 0x42b   : > { %1746 = vadd.xlane.f32.xlu1 %v1745_v45 }
 0x42d   : > { %v6855_v52 = vpop.permute.xlu1 %1828 }
 0x42e   : > { %967 = vxpose.xlu0.b32.cont [7/16] (narrow) %v6629_v48, 8 }
 0x42f   : > { %1886 = vadd.xlane.f32.xlu1 %v1885_v5  ;;  %v6954_v5 = vld [vmem:[%s6924_s17 + $0x20] sm:$0xff] }
 0x430   : > { %10786 = vst [vmem:[#allocation105_spill] sm:$0xff] %v6954_v5  ;;  %vm10469_vm7 = vcmp.ne.f32.partialorder %v6954_v5, 0.0 }
 0x432   : > { %968 = vxpose.xlu0.b32.cont [8/16] (narrow) %v6685_v59, 8  ;;  %v1894_v59 = vsel %vm10426_vm1, %v6645_v27, 0.0 }
 0x433   : > { %1898 = vadd.xlane.f32.xlu1 %v1897_v42  ;;  %v6959_v42 = vld [vmem:[%s6924_s17 + $0x50] sm:$0xff] }
 0x434   : > { %10787 = vst [vmem:[#allocation106_spill] sm:$0xff] %v6959_v42  ;;  %vm10467_vm8 = vcmp.ne.f32.partialorder %v6959_v42, 0.0 }
 0x436   : > { %969 = vxpose.xlu0.b32.cont [9/16] (narrow) %v6693_v20, 8  ;;  %v6850_v20 = vpop.permute.xlu0 %1826 }
 0x437   : > { %1904 = vadd.xlane.f32.xlu1 %v1903_v15  ;;  %10765 = vst [vmem:[#allocation84_spill] sm:$0xff] %v6850_v20 }
 0x43a   : > { %970 = vxpose.xlu0.b32.cont [10/16] (narrow) %v6751_v61, 8  ;;  %v6853_v48 = vpop.xlane.xlu0 %816 }
 0x43e   : > { %971 = vxpose.xlu0.b32.cont [11/16] (narrow) %v6679_v56, 8 }
 0x442   : > { %972 = vxpose.xlu0.b32.cont [12/16] (narrow) %v6743_v55, 8 }
 0x446   : > { %973 = vxpose.xlu0.b32.cont [13/16] (narrow) %v6745_v9, 8  ;;  %v927_v9 = vpop.xlane.xlu0 %926 }
 0x44a   : > { %974 = vxpose.xlu0.b32.cont [14/16] (narrow) %v906_v24, 8  ;;  %v6877_v27 = vpop.xlane.xlu0 %1713 }
 0x44b   : > { %10766 = vst [vmem:[#allocation85_spill] sm:$0xff] %v6877_v27 }
 0x44e   : > { %975 = vxpose.xlu0.b32.cont [15/16] (narrow) %v6719_v17, 8  ;;  %v1882_v17 = vsel %vm10426_vm1, %v6605_v10, 0.0  ;;  %v1900_v10 = vsel %vm10426_vm1, %v6623_v0, 0.0  ;;  %v6883_v0 = vpop.xlane.xlu0 %1707 }
 0x44f   : > { %10767 = vst [vmem:[#allocation86_spill] sm:$0xff] %v6883_v0  ;;  %v7077_v0 = vld [vmem:[%s6924_s17 + $0x28] sm:$0xff] }
 0x450   : > { %10807 = vst [vmem:[#allocation120_spill] sm:$0xff] %v7077_v0 }
 0x452   : > { %976 = vxpose.xlu0.b32.end [16/16] (narrow) %v6775_v39, 8 }
 0x45e   : > { %v6857_v55 = vpop.xlane.xlu1 %819 }
 0x462   : > { %v930_v61 = vpop.xlane.xlu1 %929 }
 0x46a   : > { %993 = vxpose.xlu1.b32.start [1/16] (narrow) %v6790_v11, 8  ;;  %v1909_v11 = vsel %vm10426_vm1, %v6749_v13, 0.0  ;;  %v6933_v13 = vld [vmem:[%s6924_s17 + $0x10] sm:$0xff] }
 0x46b   : > { %10783 = vst [vmem:[#allocation102_spill] sm:$0xff] %v6933_v13  ;;  %vm10433_vm2 = vcmp.ne.f32.partialorder %v6933_v13, 0.0 }
 0x46e   : > { %994 = vxpose.xlu1.b32.cont [2/16] (narrow) %v918_v38, 8 }
 0x472   : > { %995 = vxpose.xlu1.b32.cont [3/16] (narrow) %v6761_v8, 8  ;;  %v1891_v8 = vsel %vm10426_vm1, %v6625_v1, 0.0  ;;  %v1912_v1 = vsel %vm10426_vm1, %v6671_v19, 0.0 }
 0x476   : > { %996 = vxpose.xlu1.b32.cont [4/16] (narrow) %v924_v62, 8  ;;  %v1915_v62 = vsel %vm10426_vm1, %v6735_v40, 0.0 }
 0x47a   : > { %997 = vxpose.xlu1.b32.cont [5/16] (narrow) %v927_v9, 8 }
 0x47e   : > { %998 = vxpose.xlu1.b32.cont [6/16] (narrow) %v930_v61, 8 }
 0x47f   : > { %1883 = vadd.xlane.f32.xlu0 %v1882_v17 }
 0x482   : > { %999 = vxpose.xlu1.b32.cont [7/16] (narrow) %v933_v21, 8 }
 0x483   : > { %1889 = vadd.xlane.f32.xlu0 %v1888_v4  ;;  %v6968_v4 = vld [vmem:[%s6924_s17 + $0x40] sm:$0xff] }
 0x484   : > { %10788 = vst [vmem:[#allocation107_spill] sm:$0xff] %v6968_v4  ;;  %vm10465_vm9 = vcmp.ne.f32.partialorder %v6968_v4, 0.0 }
 0x486   : > { %1000 = vxpose.xlu1.b32.cont [8/16] (narrow) %v936_v60, 8 }
 0x487   : > { %1892 = vadd.xlane.f32.xlu0 %v1891_v8  ;;  %v6971_v8 = vld [vmem:[%s6924_s17 + $0x70] sm:$0xff] }
 0x488   : > { %10789 = vst [vmem:[#allocation108_spill] sm:$0xff] %v6971_v8  ;;  %vm10466_vm10 = vcmp.ne.f32.partialorder %v6971_v8, 0.0 }
 0x48a   : > { %1001 = vxpose.xlu1.b32.cont [9/16] (narrow) %v6619_v50, 8 }
 0x48b   : > { %1895 = vadd.xlane.f32.xlu0 %v1894_v59 }
 0x48e   : > { %1002 = vxpose.xlu1.b32.cont [10/16] (narrow) %v6673_v63, 8  ;;  %v1918_v63 = vsel %vm10426_vm1, %v6737_v46, 0.0 }
 0x48f   : > { %1901 = vadd.xlane.f32.xlu0 %v1900_v10 }
 0x492   : > { %1003 = vxpose.xlu1.b32.cont [11/16] (narrow) %v6597_v12, 8  ;;  %v6886_v12 = vpop.xlane.xlu0 %1716 }
 0x493   : > { %1907 = vadd.xlane.f32.xlu0 %v1906_v54  ;;  %10768 = vst [vmem:[#allocation87_spill] sm:$0xff] %v6886_v12  ;;  %v6977_v54 = vld [vmem:[%s6924_s17 + $0x60] sm:$0xff] }
 0x494   : > { %10790 = vst [vmem:[#allocation109_spill] sm:$0xff] %v6977_v54  ;;  %vm10463_vm12 = vcmp.ne.f32.partialorder %v6977_v54, 0.0 }
 0x496   : > { %1004 = vxpose.xlu1.b32.cont [12/16] (narrow) %v6643_v31, 8  ;;  %v6889_v16 = vpop.xlane.xlu0 %1725  ;;  %v6891_v31 = vpop.xlane.xlu1 %1710 }
 0x497   : > { %1913 = vadd.xlane.f32.xlu0 %v1912_v1  ;;  %10769 = vst [vmem:[#allocation88_spill] sm:$0xff] %v6889_v16  ;;  %10770 = vst [vmem:[#allocation89_spill] sm:$0xff] %v6891_v31  ;;  %v7086_v31 = vld [vmem:[%s6924_s17 + $0xc0] sm:$0xff] }
 0x498   : > { %10810 = vst [vmem:[#allocation123_spill] sm:$0xff] %v7086_v31 }
 0x49a   : > { %1005 = vxpose.xlu1.b32.cont [13/16] (narrow) %v6662_v22, 8  ;;  %v6893_v22 = vpop.xlane.xlu0 %1719  ;;  %v6895_v47 = vpop.xlane.xlu1 %1728 }
 0x49b   : > { %1919 = vadd.xlane.f32.xlu0 %v1918_v63  ;;  %10771 = vst [vmem:[#allocation90_spill] sm:$0xff] %v6893_v22  ;;  %10772 = vst [vmem:[#allocation91_spill] sm:$0xff] %v6895_v47  ;;  %v10791_v63 = vld [vmem:[#allocation77_spill] sm:$0xff] }
 0x49e   : > { %1006 = vxpose.xlu1.b32.cont [14/16] (narrow) %v6713_v25, 8  ;;  %v6897_v50 = vpop.xlane.xlu0 %1737  ;;  %v6899_v28 = vpop.xlane.xlu1 %1722  ;;  %v1025_v25 = vlaneseq }
 0x49f   : > { %10773 = vst [vmem:[#allocation92_spill] sm:$0xff] %v6897_v50  ;;  %10774 = vst [vmem:[#allocation93_spill] sm:$0xff] %v6899_v28 }
 0x4a2   : > { %1007 = vxpose.xlu1.b32.cont [15/16] (narrow) %v6637_v36, 8  ;;  %v6901_v33 = vpop.xlane.xlu0 %1731  ;;  %v6903_v36 = vpop.xlane.xlu1 %1740 }
 0x4a3   : > { %10775 = vst [vmem:[#allocation94_spill] sm:$0xff] %v6901_v33  ;;  %10776 = vst [vmem:[#allocation95_spill] sm:$0xff] %v6903_v36  ;;  %v10796_v36 = vld [vmem:[#allocation74_spill] sm:$0xff] }
 0x4a6   : > { %1008 = vxpose.xlu1.b32.end [16/16] (narrow) %v6691_v41, 8  ;;  %v6905_v19 = vpop.xlane.xlu0 %1749  ;;  %v1026_v41 = vshrl.u32 %v1025_v25, 7  ;;  %v6909_v23 = vpop.xlane.xlu1 %1734 }
 0x4a7   : > { %10777 = vst [vmem:[#allocation96_spill] sm:$0xff] %v6905_v19  ;;  %10779 = vst [vmem:[#allocation98_spill] sm:$0xff] %v6909_v23 }
 0x4a8   : > { %v6911_v46 = vsub.s32 0, %v1026_v41 }
 0x4aa   : > { %v6907_v56 = vpop.xlane.xlu0 %1743  ;;  %10780 = vst [vmem:[#allocation99_spill] sm:$0xff] %v6911_v46  ;;  %v6914_v21 = vpop.xlane.xlu1 %1752 }
 0x4ab   : > { %10778 = vst [vmem:[#allocation97_spill] sm:$0xff] %v6907_v56  ;;  %10781 = vst [vmem:[#allocation100_spill] sm:$0xff] %v6914_v21 }
 0x4ae   : > { %v977_v39 = vpop.trf.xlu0 }
 0x4af   : > { %v6917_v38 = vrot.slane %v977_v39, %v6911_v46 }
 0x4b1   : > { %v1035_v35 = vadd.f32 %v6917_v38, %v6699_v53  ;;  %v1033_v29 = vadd.f32 %v6917_v38, %v6689_v18  ;;  %v1039_v40 = vadd.f32 %v6917_v38, %v6739_v58  ;;  %v1037_v60 = vadd.f32 %v6917_v38, %v6717_v57 }
 0x4b2   : > { %v1043_v7 = vadd.f32 %v6917_v38, %v6798_v26  ;;  %v1041_v15 = vadd.f32 %v6917_v38, %v6741_v43  ;;  %v1047_v9 = vadd.f32 %v6917_v38, %v6769_v2  ;;  %v1045_v59 = vadd.f32 %v6917_v38, %v6715_v37 }
 0x4b3   : > { %v1067_v34 = vmul.f32 %v1035_v35, %v6933_v13  ;;  %v1065_v45 = vmul.f32 %v1033_v29, %v6938_v32  ;;  %v1071_v17 = vmul.f32 %v1039_v40, %v6946_v6  ;;  %v1069_v10 = vmul.f32 %v1037_v60, %v6954_v5  ;;  %v7126_v5 = vld [vmem:[%s6924_s17 + $0x58] sm:$0xff] }
 0x4b4   : > { %v6926_v24 = vpop.xlane.xlu1 %1746  ;;  %v1051_v1 = vadd.f32 %v6917_v38, %v6816_v3  ;;  %v1049_v25 = vadd.f32 %v6917_v38, %v10791_v63  ;;  %v1075_v39 = vmul.f32 %v1043_v7, %v6959_v42  ;;  %v1073_v35 = vmul.f32 %v1041_v15, %v6968_v4  ;;  %v10794_v7 = vld [vmem:[#allocation81_spill] sm:$0xff]  ;;  %10811 = vst [vmem:[#allocation124_spill] sm:$0xff] %v7126_v5 }
 0x4b5   : > { %10782 = vst [vmem:[#allocation101_spill] sm:$0xff] %v6926_v24  ;;  %v1131_v61 = vmul.f32 0.2, %v1067_v34  ;;  %vm1099_vm3 = vcmp.gt.f32.partialorder %v1067_v34, 0.0  ;;  %v1129_v41 = vmul.f32 0.2, %v1065_v45  ;;  %v1079_v29 = vmul.f32 %v1047_v9, %v6971_v8 }
 0x4b6   : > { %vm1097_vm6 = vcmp.gt.f32.partialorder %v1065_v45, 0.0  ;;  %vm1103_vm11 = vcmp.gt.f32.partialorder %v1071_v17, 0.0  ;;  %v1077_v60 = vmul.f32 %v1045_v59, %v6977_v54  ;;  %v1055_v19 = vadd.f32 %v6917_v38, %v10794_v7  ;;  %v7012_v9 = vld [vmem:[%s6924_s17 + $0xb0] sm:$0xff] }
 0x4b7   : > { %v7001_v40 = vsel %vm1099_vm3, %v1067_v34, %v1131_v61  ;;  %v1135_v21 = vmul.f32 0.2, %v1071_v17  ;;  %vm1101_vm13 = vcmp.gt.f32.partialorder %v1069_v10, 0.0  ;;  %10795 = vst [vmem:[#allocation81_spill] sm:$0xff] %v7012_v9  ;;  %v7015_v61 = vsel %vm1097_vm6, %v1065_v45, %v1129_v41  ;;  %v7026_v41 = vld [vmem:[%s6924_s17 + $0xa0] sm:$0xff] }
 0x4b8   : > { %v6950_v14 = vpop.xlane.xlu1 %1886  ;;  %v1133_v59 = vmul.f32 0.2, %v1069_v10  ;;  %vm1107_vm0 = vcmp.gt.f32.partialorder %v1075_v39, 0.0  ;;  %v1139_v56 = vmul.f32 0.2, %v1075_v39  ;;  %v7020_v24 = vsel %vm10433_vm2, %v7001_v40, 0.0 }
 0x4b9   : > { %v1137_v50 = vmul.f32 0.2, %v1073_v35  ;;  %v1053_v33 = vadd.f32 %v6917_v38, %v10796_v36  ;;  %vm1105_vm3 = vcmp.gt.f32.partialorder %v1073_v35, 0.0  ;;  %vm1111_vm1 = vcmp.gt.f32.partialorder %v1079_v29, 0.0  ;;  %10797 = vst [vmem:[#allocation74_spill] sm:$0xff] %v7026_v41 }
 0x4ba   : > { %v1087_v45 = vmul.f32 %v1055_v19, %v7012_v9  ;;  %v7029_v23 = vsel %vm1103_vm11, %v1071_v17, %v1135_v21  ;;  %vm1109_vm6 = vcmp.gt.f32.partialorder %v1077_v60, 0.0  ;;  %v7034_v28 = vsel %vm1101_vm13, %v1069_v10, %v1133_v59  ;;  %v7049_v10 = vld [vmem:[%s6924_s17 + $0x18] sm:$0xff]  ;;  %v7052_v59 = vld [vmem:[%s6924_s17 + $0x8] sm:$0xff] }
 0x4bb   : > { %10798 = vst [vmem:[#allocation111_spill] sm:$0xff] %v7029_v23  ;;  %v7037_v27 = vsel %vm1107_vm0, %v1075_v39, %v1139_v56  ;;  %v7039_v19 = vsel %vm1105_vm3, %v1073_v35, %v1137_v50  ;;  %v7044_v17 = vmul.f32 %v1053_v33, %v7026_v41  ;;  %v1059_v12 = vadd.f32 %v6917_v38, %v6857_v55  ;;  %v7062_v35 = vld [vmem:[%s6924_s17 + $0xd0] sm:$0xff] }
 0x4bc   : > { %10799 = vst [vmem:[#allocation112_spill] sm:$0xff] %v7037_v27  ;;  %10800 = vst [vmem:[#allocation113_spill] sm:$0xff] %v7039_v19  ;;  %v7057_v56 = vsel %vm10499_vm4, %v7015_v61, 0.0  ;;  %v1151_v39 = vmul.f32 0.2, %v1087_v45  ;;  %v1057_v33 = vadd.f32 %v6917_v38, %v6853_v48  ;;  %vm10501_vm11 = vcmp.ne.f32.partialorder %v7052_v59, 0.0 }
 0x4bd   : > { %10802 = vst [vmem:[#allocation115_spill] sm:$0xff] %v7049_v10  ;;  %10803 = vst [vmem:[#allocation116_spill] sm:$0xff] %v7052_v59  ;;  %vm1119_vm13 = vcmp.gt.f32.partialorder %v1087_v45, 0.0  ;;  %vm10483_vm3 = vcmp.ne.f32.partialorder %v7077_v0, 0.0  ;;  %v7093_v6 = vsel %vm10469_vm7, %v7034_v28, 0.0  ;;  %v7123_v8 = vmul.f32 %v1059_v12, %v7062_v35 }
 0x4be   : > { %10805 = vst [vmem:[#allocation118_spill] sm:$0xff] %v7062_v35  ;;  %v7120_v4 = vmul.f32 0.2, %v7044_v17  ;;  %v7139_v54 = vsel %vm1119_vm13, %v1087_v45, %v1151_v39  ;;  %v7142_v13 = vmul.f32 %v1057_v33, %v7086_v31  ;;  %v7157_v45 = vld [vmem:[%s6924_s17 + $0x78] sm:$0xff]  ;;  %v7160_v39 = vld [vmem:[%s6924_s17 + $0x68] sm:$0xff] }
 0x4bf   : > { %10814 = vst [vmem:[#allocation126_spill] sm:$0xff] %v7157_v45  ;;  %10815 = vst [vmem:[#allocation127_spill] sm:$0xff] %v7160_v39 }
 0x4cd   : > { %1910 = vadd.xlane.f32.xlu1 %v1909_v11  ;;  %v6987_v11 = vld [vmem:[%s6924_s17 + $0x90] sm:$0xff] }
 0x4ce   : > { %10792 = vst [vmem:[#allocation77_spill] sm:$0xff] %v6987_v11  ;;  %vm10464_vm14 = vcmp.ne.f32.partialorder %v6987_v11, 0.0  ;;  %v1083_v15 = vmul.f32 %v1051_v1, %v6987_v11  ;;  %v1143_v1 = vmul.f32 0.2, %v1079_v29 }
 0x4d0   : > { %v1147_v16 = vmul.f32 0.2, %v1083_v15  ;;  %vm1115_vm2 = vcmp.gt.f32.partialorder %v1083_v15, 0.0  ;;  %v7041_v21 = vsel %vm1111_vm1, %v1079_v29, %v1143_v1  ;;  %vm10498_vm1 = vcmp.ne.f32.partialorder %v7049_v10, 0.0  ;;  %v7069_v29 = vld [vmem:[%s6924_s17 + $0x38] sm:$0xff] }
 0x4d1   : > { %1916 = vadd.xlane.f32.xlu1 %v1915_v62  ;;  %v6990_v62 = vld [vmem:[%s6924_s17 + $0x80] sm:$0xff]  ;;  %10801 = vst [vmem:[#allocation114_spill] sm:$0xff] %v7041_v21  ;;  %10806 = vst [vmem:[#allocation119_spill] sm:$0xff] %v7069_v29  ;;  %v7074_v1 = vsel %vm10470_vm5, %v7029_v23, 0.0  ;;  %vm10482_vm0 = vcmp.ne.f32.partialorder %v7069_v29, 0.0  ;;  %vm10481_vm5 = vcmp.ne.f32.partialorder %v7160_v39, 0.0 }
 0x4d2   : > { %10793 = vst [vmem:[#allocation110_spill] sm:$0xff] %v6990_v62  ;;  %v1081_v34 = vmul.f32 %v1049_v25, %v6990_v62  ;;  %v1141_v25 = vmul.f32 0.2, %v1077_v60 }
 0x4d4   : > { %v1145_v47 = vmul.f32 0.2, %v1081_v34  ;;  %vm1113_vm15 = vcmp.gt.f32.partialorder %v1081_v34, 0.0  ;;  %v7059_v50 = vsel %vm1109_vm6, %v1077_v60, %v1141_v25  ;;  %v7080_v60 = vsel %vm1115_vm2, %v1083_v15, %v1147_v16 }
 0x4d5   : > { %1922 = vadd.xlane.f32.xlu1 %v1921_v44  ;;  %v6998_v44 = vpop.xlane.xlu1 %1898  ;;  %10804 = vst [vmem:[#allocation117_spill] sm:$0xff] %v7059_v50  ;;  %10808 = vst [vmem:[#allocation121_spill] sm:$0xff] %v7080_v60  ;;  %v7098_v16 = vsel %vm10467_vm8, %v7037_v27, 0.0  ;;  %v7108_v15 = vsel %vm10466_vm10, %v7041_v21, 0.0  ;;  %v7116_v42 = vsel %vm10463_vm12, %v7059_v50, 0.0  ;;  %vm10477_vm2 = vcmp.ne.f32.partialorder %v7012_v9, 0.0 }
 0x4d6   : > { %v7083_v25 = vsel %vm1113_vm15, %v1081_v34, %v1145_v47  ;;  %v7103_v47 = vsel %vm10465_vm9, %v7039_v19, 0.0  ;;  %vm10812_vm15 = vcmp.ne.f32.partialorder %v6990_v62, 0.0  ;;  %vm10480_vm6 = vcmp.ne.f32.partialorder %v7126_v5, 0.0 }
 0x4d7   : > { %10809 = vst [vmem:[#allocation122_spill] sm:$0xff] %v7083_v25  ;;  %vm10478_vm12 = vcmp.ne.f32.partialorder %v7157_v45, 0.0 }
 0x4d9   : > { %v7031_v22 = vpop.xlane.xlu1 %1904 }
 0x4e6   : > { %v1009_v20 = vpop.trf.xlu1 }
 0x4e7   : > { %v7111_v34 = vrot.slane %v1009_v20, %v6911_v46  ;;  %v7131_v20 = vsel %vm10464_vm14, %v7080_v60, 0.0  ;;  %v7136_v46 = vsel %vm10812_vm15, %v7083_v25, 0.0  ;;  %v7154_v60 = vld [vmem:[%s6924_s17 + $0x48] sm:$0xff]  ;;  %vm1117_vm15 = vcmp.gt.f32.partialorder %v7044_v17, 0.0 }
 0x4e8   : > { %10813 = vst [vmem:[#allocation125_spill] sm:$0xff] %v7154_v60  ;;  %vm10479_vm13 = vcmp.ne.f32.partialorder %v7154_v60, 0.0 }
 0x4e9   : > { %v1036_v12 = vadd.f32 %v7111_v34, %v6699_v53  ;;  %v1034_v32 = vadd.f32 %v7111_v34, %v6689_v18  ;;  %v1040_v11 = vadd.f32 %v7111_v34, %v6739_v58  ;;  %v1038_v62 = vadd.f32 %v7111_v34, %v6717_v57 }
 0x4ea   : > { %v1044_v53 = vadd.f32 %v7111_v34, %v6798_v26  ;;  %v1042_v18 = vadd.f32 %v7111_v34, %v6741_v43  ;;  %v1048_v58 = vadd.f32 %v7111_v34, %v6769_v2  ;;  %v1046_v57 = vadd.f32 %v7111_v34, %v6715_v37 }
 0x4eb   : > { %v1068_v33 = vmul.f32 %v1036_v12, %v7049_v10  ;;  %v1066_v25 = vmul.f32 %v1034_v32, %v7052_v59  ;;  %v1072_v21 = vmul.f32 %v1040_v11, %v7069_v29  ;;  %v1070_v50 = vmul.f32 %v1038_v62, %v7077_v0 }
 0x4ec   : > { %v1076_v43 = vmul.f32 %v1044_v53, %v7126_v5  ;;  %v1074_v26 = vmul.f32 %v1042_v18, %v7154_v60  ;;  %v1080_v37 = vmul.f32 %v1048_v58, %v7157_v45  ;;  %v1078_v2 = vmul.f32 %v1046_v57, %v7160_v39  ;;  %v7324_v39 = vld [vmem:[%s6924_s17 + $0xe8] sm:$0xff] }
 0x4ed   : > { %vm1100_vm14 = vcmp.gt.f32.partialorder %v1068_v33, 0.0  ;;  %v1132_v32 = vmul.f32 0.2, %v1068_v33  ;;  %vm1098_vm9 = vcmp.gt.f32.partialorder %v1066_v25, 0.0  ;;  %v1130_v11 = vmul.f32 0.2, %v1066_v25 }
 0x4ee   : > { %vm1104_vm10 = vcmp.gt.f32.partialorder %v1072_v21, 0.0  ;;  %v1136_v62 = vmul.f32 0.2, %v1072_v21  ;;  %vm1102_vm8 = vcmp.gt.f32.partialorder %v1070_v50, 0.0  ;;  %v1134_v12 = vmul.f32 0.2, %v1070_v50 }
 0x4ef   : > { %v7181_v27 = vsel %vm1100_vm14, %v1068_v33, %v1132_v32  ;;  %v7183_v53 = vsel %vm1098_vm9, %v1066_v25, %v1130_v11  ;;  %vm1108_vm7 = vcmp.gt.f32.partialorder %v1076_v43, 0.0  ;;  %v1140_v18 = vmul.f32 0.2, %v1076_v43  ;;  %10825 = vst [vmem:[#allocation137_spill] sm:$0xff] %v7324_v39 }
 0x4f0   : > { %v1196_v58 = vsel %vm10498_vm1, %v7181_v27, 0.0  ;;  %v1194_v57 = vsel %vm10501_vm11, %v7183_v53, 0.0  ;;  %v7192_v19 = vsel %vm1104_vm10, %v1072_v21, %v1136_v62  ;;  %v7194_v33 = vsel %vm1102_vm8, %v1070_v50, %v1134_v12  ;;  %v7208_v21 = vld [vmem:[%s6924_s17 + $0x98] sm:$0xff]  ;;  %v7211_v50 = vld [vmem:[%s6924_s17 + $0x88] sm:$0xff] }
 0x4f1   : > { %v1228_v25 = vmax.f32 %v7020_v24, %v1196_v58  ;;  %v1225_v32 = vmax.f32 %v7057_v56, %v1194_v57  ;;  %v1200_v11 = vsel %vm10482_vm0, %v7192_v19, 0.0  ;;  %v1198_v10 = vsel %vm10483_vm3, %v7194_v33, 0.0  ;;  %10816 = vst [vmem:[#allocation128_spill] sm:$0xff] %v7208_v21  ;;  %10817 = vst [vmem:[#allocation129_spill] sm:$0xff] %v7211_v50  ;;  %v7234_v57 = vld [vmem:[%s6924_s17 + $0xb8] sm:$0xff] }
 0x4f2   : > { %v1234_v23 = vmax.f32 %v7074_v1, %v1200_v11  ;;  %v7205_v59 = vsel %vm1108_vm7, %v1076_v43, %v1140_v18  ;;  %vm1106_vm9 = vcmp.gt.f32.partialorder %v1074_v26, 0.0  ;;  %v7216_v24 = vsel %vm10477_vm2, %v7139_v54, 0.0  ;;  %10818 = vst [vmem:[#allocation130_spill] sm:$0xff] %v7234_v57 }
 0x4f3   : > { %1229 = vmax.xlane.f32.xlu1 %v1228_v25  ;;  %1226 = vmax.xlane.f32.xlu0 %v1225_v32  ;;  %v1231_v56 = vmax.f32 %v7093_v6, %v1198_v10  ;;  %v1138_v62 = vmul.f32 0.2, %v1074_v26  ;;  %vm1112_vm8 = vcmp.gt.f32.partialorder %v1080_v37, 0.0  ;;  %v1144_v1 = vmul.f32 0.2, %v1080_v37 }
 0x4f4   : > { %vm10522_vm7 = vcmp.ne.f32.partialorder %v7208_v21, 0.0  ;;  %vm10490_vm10 = vcmp.ne.f32.partialorder %v7211_v50, 0.0  ;;  %v1204_v43 = vsel %vm10480_vm6, %v7205_v59, 0.0  ;;  %vm1110_vm14 = vcmp.gt.f32.partialorder %v1078_v2, 0.0 }
 0x4f5   : > { %v1142_v12 = vmul.f32 0.2, %v1078_v2  ;;  %v1052_v18 = vadd.f32 %v7111_v34, %v6816_v3  ;;  %v7227_v58 = vsel %vm1106_vm9, %v1074_v26, %v1138_v62  ;;  %v7229_v6 = vsel %vm1112_vm8, %v1080_v37, %v1144_v1  ;;  %v7243_v3 = vld [vmem:[%s6924_s17 + $0xa8] sm:$0xff] }
 0x4f6   : > { %v1050_v10 = vadd.f32 %v7111_v34, %v10791_v63  ;;  %v1056_v25 = vadd.f32 %v7111_v34, %v10794_v7  ;;  %v1202_v32 = vsel %vm10479_vm13, %v7227_v58, 0.0  ;;  %10819 = vst [vmem:[#allocation131_spill] sm:$0xff] %v7243_v3  ;;  %v7249_v26 = vsel %vm1117_vm15, %v7044_v17, %v7120_v4 }
 0x4f7   : > { %v1084_v11 = vmul.f32 %v1052_v18, %v7208_v21  ;;  %v7252_v63 = vmul.f32 0.2, %v7123_v8  ;;  %1235 = vmax.xlane.f32.xlu1 %v1234_v23  ;;  %1232 = vmax.xlane.f32.xlu0 %v1231_v56  ;;  %v1240_v7 = vmax.f32 %v7098_v16, %v1204_v43  ;;  %v1208_v37 = vsel %vm10478_vm12, %v7229_v6, 0.0  ;;  %v7268_v16 = vld [vmem:[%s6924_s17 + $0xd8] sm:$0xff] }
 0x4f8   : > { %v7259_v62 = vsel %vm1110_vm14, %v1078_v2, %v1142_v12  ;;  %v1082_v1 = vmul.f32 %v1050_v10, %v7211_v50  ;;  %vm10491_vm15 = vcmp.ne.f32.partialorder %v7234_v57, 0.0  ;;  %vm10526_vm9 = vcmp.ne.f32.partialorder %v7026_v41, 0.0  ;;  %10820 = vst [vmem:[#allocation132_spill] sm:$0xff] %v7268_v16  ;;  %v7276_v12 = vld [vmem:[%s6924_s17 + $0xc8] sm:$0xff] }
 0x4f9   : > { %vm10523_vm8 = vcmp.ne.f32.partialorder %v7243_v3, 0.0  ;;  %v1237_v23 = vmax.f32 %v7103_v47, %v1202_v32  ;;  %vm1116_vm2 = vcmp.gt.f32.partialorder %v1084_v11, 0.0  ;;  %v1148_v4 = vmul.f32 0.2, %v1084_v11  ;;  %10821 = vst [vmem:[#allocation133_spill] sm:$0xff] %v7276_v12 }
 0x4fa   : > { %v1088_v17 = vmul.f32 %v1056_v25, %v7234_v57  ;;  %vm1123_vm12 = vcmp.gt.f32.partialorder %v7123_v8, 0.0  ;;  %vm1114_vm14 = vcmp.gt.f32.partialorder %v1082_v1, 0.0  ;;  %v1146_v2 = vmul.f32 0.2, %v1082_v1 }
 0x4fb   : > { %v1054_v56 = vadd.f32 %v7111_v34, %v10796_v36  ;;  %v1060_v43 = vadd.f32 %v7111_v34, %v6857_v55  ;;  %v1206_v47 = vsel %vm10481_vm5, %v7259_v62, 0.0  ;;  %v7281_v18 = vsel %vm1116_vm2, %v1084_v11, %v1148_v4  ;;  %1241 = vmax.xlane.f32.xlu1 %v1240_v7  ;;  %1238 = vmax.xlane.f32.xlu0 %v1237_v23 }
 0x4fc   : > { %v1152_v10 = vmul.f32 0.2, %v1088_v17  ;;  %v1058_v25 = vadd.f32 %v7111_v34, %v6853_v48  ;;  %v7285_v32 = vsel %vm1114_vm14, %v1082_v1, %v1146_v2  ;;  %vm1120_vm13 = vcmp.gt.f32.partialorder %v1088_v17, 0.0  ;;  %v7302_v2 = vld [vmem:[%s6924_s17 + $0xf0] sm:$0xff] }
 0x4fd   : > { %v1086_v55 = vmul.f32 %v1054_v56, %v7243_v3  ;;  %vm10495_vm6 = vcmp.ne.f32.partialorder %v7268_v16, 0.0  ;;  %v1092_v36 = vmul.f32 %v1060_v43, %v7268_v16  ;;  %vm10494_vm5 = vcmp.ne.f32.partialorder %v7276_v12, 0.0  ;;  %10822 = vst [vmem:[#allocation134_spill] sm:$0xff] %v7302_v2  ;;  %v7317_v43 = vld [vmem:[%s6924_s17 + $0xe0] sm:$0xff] }
 0x4fe   : > { %v1090_v11 = vmul.f32 %v1058_v25, %v7276_v12  ;;  %vm1121_vm2 = vcmp.gt.f32.partialorder %v7142_v13, 0.0  ;;  %v1063_v48 = vadd.f32 %v6917_v38, %v6828_v49  ;;  %v1061_v7 = vadd.f32 %v6917_v38, %v6811_v51  ;;  %10824 = vst [vmem:[#allocation136_spill] sm:$0xff] %v7317_v43 }
 0x4ff   : > { %v1246_v1 = vmax.f32 %v7108_v15, %v1208_v37  ;;  %v1243_v23 = vmax.f32 %v7116_v42, %v1206_v47  ;;  %vm1118_vm14 = vcmp.gt.f32.partialorder %v1086_v55, 0.0  ;;  %v1150_v4 = vmul.f32 0.2, %v1086_v55  ;;  %v7314_v37 = vld [vmem:[%s6924_s17 + $0xf8] sm:$0xff] }
 0x500   : > { %vm10521_vm0 = vcmp.ne.f32.partialorder %v7062_v35, 0.0  ;;  %vm10500_vm3 = vcmp.ne.f32.partialorder %v7086_v31, 0.0  ;;  %v1212_v56 = vsel %vm10522_vm7, %v7281_v18, 0.0  ;;  %v1210_v38 = vsel %vm10490_vm10, %v7285_v32, 0.0  ;;  %10823 = vst [vmem:[#allocation135_spill] sm:$0xff] %v7314_v37 }
 0x501   : > { %v7311_v15 = vsel %vm1120_vm13, %v1088_v17, %v1152_v10  ;;  %v1156_v42 = vmul.f32 0.2, %v1092_v36  ;;  %1247 = vmax.xlane.f32.xlu1 %v1246_v1  ;;  %1244 = vmax.xlane.f32.xlu0 %v1243_v23  ;;  %v7319_v47 = vsel %vm1118_vm14, %v1086_v55, %v1150_v4  ;;  %v1154_v25 = vmul.f32 0.2, %v1090_v11 }
 0x502   : > { %v1064_v9 = vadd.f32 %v7111_v34, %v6828_v49  ;;  %v1062_v50 = vadd.f32 %v7111_v34, %v6811_v51  ;;  %vm1124_vm13 = vcmp.gt.f32.partialorder %v1092_v36, 0.0  ;;  %vm1122_vm10 = vcmp.gt.f32.partialorder %v1090_v11, 0.0 }
 0x503   : > { %v1153_v17 = vmul.f32 0.2, %v7142_v13  ;;  %v1095_v10 = vmul.f32 %v1063_v48, %v7302_v2  ;;  %v1252_v1 = vmax.f32 %v7131_v20, %v1212_v56  ;;  %v1249_v55 = vmax.f32 %v7136_v46, %v1210_v38 }
 0x504   : > { %v1096_v23 = vmul.f32 %v1064_v9, %v7314_v37  ;;  %v1093_v4 = vmul.f32 %v1061_v7, %v7317_v43  ;;  %v1216_v49 = vsel %vm10491_vm15, %v7311_v15, 0.0  ;;  %v1213_v51 = vsel %vm10526_vm9, %v7249_v26, 0.0 }
 0x505   : > { %v1214_v34 = vsel %vm10523_vm8, %v7319_v47, 0.0  ;;  %v1094_v20 = vmul.f32 %v1062_v50, %v7324_v39  ;;  %1253 = vmax.xlane.f32.xlu1 %v1252_v1  ;;  %1250 = vmax.xlane.f32.xlu0 %v1249_v55  ;;  %v7348_v46 = vsel %vm1123_vm12, %v7123_v8, %v7252_v63  ;;  %v7350_v9 = vsel %vm1124_vm13, %v1092_v36, %v1156_v42 }
 0x506   : > { %v7352_v48 = vsel %vm1122_vm10, %v1090_v11, %v1154_v25  ;;  %v1160_v7 = vmul.f32 0.2, %v1096_v23  ;;  %v7357_v56 = vsel %vm1121_vm2, %v7142_v13, %v1153_v17  ;;  %vm1128_vm14 = vcmp.gt.f32.partialorder %v1096_v23, 0.0 }
 0x507   : > { %vm1126_vm15 = vcmp.gt.f32.partialorder %v1094_v20, 0.0  ;;  %v1158_v50 = vmul.f32 0.2, %v1094_v20  ;;  %v1258_v38 = vmax.f32 %v7216_v24, %v1216_v49  ;;  %v1255_v1 = vmax.f32 %v1213_v51, %v1214_v34 }
 0x508   : > { %v1159_v55 = vmul.f32 0.2, %v1095_v10  ;;  %v1157_v57 = vmul.f32 0.2, %v1093_v4  ;;  %v1220_v8 = vsel %vm10495_vm6, %v7350_v9, 0.0  ;;  %v1218_v63 = vsel %vm10494_vm5, %v7352_v48, 0.0 }
 0x509   : > { %vm1127_vm12 = vcmp.gt.f32.partialorder %v1095_v10, 0.0  ;;  %vm1125_vm10 = vcmp.gt.f32.partialorder %v1093_v4, 0.0  ;;  %1259 = vmax.xlane.f32.xlu1 %v1258_v38  ;;  %1256 = vmax.xlane.f32.xlu0 %v1255_v1  ;;  %vm10502_vm2 = vcmp.ne.f32.partialorder %v7314_v37, 0.0  ;;  %v7367_v13 = vsel %vm1128_vm14, %v1096_v23, %v1160_v7  ;;  %v10830_v1 = vld [vmem:[#allocation83_spill] sm:$0xff] }
 0x50a   : > { %vm10497_vm13 = vcmp.ne.f32.partialorder %v7324_v39, 0.0  ;;  %v7370_v24 = vsel %vm1126_vm15, %v1094_v20, %v1158_v50  ;;  %v1219_v36 = vsel %vm10521_vm0, %v7348_v46, 0.0  ;;  %v1217_v11 = vsel %vm10500_vm3, %v7357_v56, 0.0  ;;  %v10826_v20 = vld [vmem:[#allocation75_spill] sm:$0xff]  ;;  %v10828_v50 = vld [vmem:[#allocation70_spill] sm:$0xff] }
 0x50b   : > { %vm10503_vm5 = vcmp.ne.f32.partialorder %v7302_v2, 0.0  ;;  %vm10496_vm6 = vcmp.ne.f32.partialorder %v7317_v43, 0.0  ;;  %v1264_v42 = vmax.f32 %v1219_v36, %v1220_v8  ;;  %v1261_v25 = vmax.f32 %v1217_v11, %v1218_v63  ;;  %v10832_v8 = vld [vmem:[#allocation80_spill] sm:$0xff] }
 0x50c   : > { %v7380_v17 = vsel %vm1127_vm12, %v1095_v10, %v1159_v55  ;;  %v7382_v23 = vsel %vm1125_vm10, %v1093_v4, %v1157_v57  ;;  %v1224_v49 = vsel %vm10502_vm2, %v7367_v13, 0.0  ;;  %v1222_v51 = vsel %vm10497_vm13, %v7370_v24, 0.0 }
 0x50d   : > { %1265 = vmax.xlane.f32.xlu1 %v1264_v42  ;;  %1262 = vmax.xlane.f32.xlu0 %v1261_v25  ;;  %v1223_v34 = vsel %vm10503_vm5, %v7380_v17, 0.0  ;;  %v1221_v10 = vsel %vm10496_vm6, %v7382_v23, 0.0  ;;  %vm10827_vm15 = vcmask 130048   ;;  %v10836_v42 = vld [vmem:[#allocation65_spill] sm:$0xff] }
 0x50e   : > { %v1270_v57 = vmax.f32 %v1223_v34, %v1224_v49  ;;  %v1267_v4 = vmax.f32 %v1221_v10, %v1222_v51  ;;  %v1927_v7 = vsel %vm10827_vm15, %v10826_v20, 0.0  ;;  %vm10829_vm14 = vmmov %vm10827_vm15  ;;  %v10838_v49 = vld [vmem:[#allocation63_spill] sm:$0xff]  ;;  %v10840_v34 = vld [vmem:[#allocation69_spill] sm:$0xff] }
 0x50f   : > { %v1924_v38 = vsel %vm10829_vm14, %v10828_v50, 0.0  ;;  %vm10831_vm12 = vmmov %vm10829_vm14 }
 0x510   : > { %v1933_v55 = vsel %vm10831_vm12, %v10830_v1, 0.0  ;;  %vm10833_vm10 = vmmov %vm10831_vm12 }
 0x511   : > { %1271 = vmax.xlane.f32.xlu1 %v1270_v57  ;;  %1268 = vmax.xlane.f32.xlu0 %v1267_v4  ;;  %v1939_v63 = vsel %vm10833_vm10, %v10832_v8, 0.0  ;;  %vm10834_vm6 = vmmov %vm10833_vm10  ;;  %v10842_v57 = vld [vmem:[#allocation68_spill] sm:$0xff]  ;;  %v1884_v4 = vpop.xlane.xlu0 %1883 }
 0x512   : > { %v1945_v36 = vsel %vm10834_vm6, %v6855_v52, 0.0  ;;  %vm10835_vm13 = vmmov %vm10834_vm6 }
 0x513   : > { %v1951_v11 = vsel %vm10835_vm13, %v6825_v30, 0.0  ;;  %vm10837_vm15 = vmmov %vm10834_vm6 }
 0x514   : > { %v1957_v25 = vsel %vm10837_vm15, %v10836_v42, 0.0  ;;  %vm10839_vm14 = vmmov %vm10834_vm6 }
 0x515   : > { %1928 = vadd.xlane.f32.xlu1 %v1927_v7  ;;  %1925 = vadd.xlane.f32.xlu0 %v1924_v38  ;;  %v1963_v51 = vsel %vm10839_vm14, %v10838_v49, 0.0  ;;  %vm10841_vm12 = vmmov %vm10834_vm6  ;;  %v1890_v30 = vpop.xlane.xlu0 %1889 }
 0x516   : > { %v1969_v10 = vsel %vm10841_vm12, %v10840_v34, 0.0  ;;  %vm10843_vm10 = vmmov %vm10834_vm6  ;;  %vm10863_vm12 = vcmp.ne.f32.partialorder %v7077_v0, 0.0 }
 0x517   : > { %v1975_v52 = vsel %vm10843_vm10, %v10842_v57, 0.0  ;;  %vm7450_vm6 = vmpackc.low %vm10498_vm1, %vm10501_vm11  ;;  %vm10864_vm10 = vcmp.ne.f32.partialorder %v7069_v29, 0.0 }
 0x519   : > { %1934 = vadd.xlane.f32.xlu1 %v1933_v55  ;;  %v1893_v20 = vpop.xlane.xlu0 %1892 }
 0x51d   : > { %1940 = vadd.xlane.f32.xlu1 %v1939_v63  ;;  %v1896_v7 = vpop.xlane.xlu0 %1895 }
 0x521   : > { %1946 = vadd.xlane.f32.xlu1 %v1945_v36  ;;  %v1902_v50 = vpop.xlane.xlu0 %1901 }
 0x525   : > { %1952 = vadd.xlane.f32.xlu1 %v1951_v11  ;;  %v1908_v38 = vpop.xlane.xlu0 %1907 }
 0x529   : > { %1958 = vadd.xlane.f32.xlu1 %v1957_v25  ;;  %v1914_v55 = vpop.xlane.xlu0 %1913 }
 0x52d   : > { %1964 = vadd.xlane.f32.xlu1 %v1963_v51 }
 0x531   : > { %1970 = vadd.xlane.f32.xlu1 %v1969_v10 }
 0x535   : > { %1976 = vadd.xlane.f32.xlu1 %v1975_v52 }
 0x542   : > { %1978 = vxpose.xlu0.b32.start [1/16] (narrow) %v1884_v4, 8 }
 0x546   : > { %1979 = vxpose.xlu0.b32.cont [2/16] (narrow) %v6950_v14, 8  ;;  %v1920_v14 = vpop.xlane.xlu0 %1919 }
 0x54a   : > { %1980 = vxpose.xlu0.b32.cont [3/16] (narrow) %v1890_v30, 8 }
 0x54e   : > { %1981 = vxpose.xlu0.b32.cont [4/16] (narrow) %v1893_v20, 8  ;;  %v10844_v20 = vld [vmem:[#allocation111_spill] sm:$0xff] }
 0x552   : > { %1982 = vxpose.xlu0.b32.cont [5/16] (narrow) %v1896_v7, 8 }
 0x556   : > { %1983 = vxpose.xlu0.b32.cont [6/16] (narrow) %v6998_v44, 8  ;;  %v1911_v1 = vpop.xlane.xlu1 %1910 }
 0x55a   : > { %1984 = vxpose.xlu0.b32.cont [7/16] (narrow) %v1902_v50, 8  ;;  %v1917_v8 = vpop.xlane.xlu1 %1916 }
 0x55e   : > { %1985 = vxpose.xlu0.b32.cont [8/16] (narrow) %v7031_v22, 8  ;;  %v1923_v63 = vpop.xlane.xlu1 %1922 }
 0x562   : > { %1986 = vxpose.xlu0.b32.cont [9/16] (narrow) %v1908_v38, 8 }
 0x566   : > { %1987 = vxpose.xlu0.b32.cont [10/16] (narrow) %v1911_v1, 8 }
 0x56a   : > { %1988 = vxpose.xlu0.b32.cont [11/16] (narrow) %v1914_v55, 8  ;;  %v10845_v55 = vld [vmem:[#allocation113_spill] sm:$0xff] }
 0x56e   : > { %1989 = vxpose.xlu0.b32.cont [12/16] (narrow) %v1917_v8, 8 }
 0x572   : > { %1990 = vxpose.xlu0.b32.cont [13/16] (narrow) %v1920_v14, 8  ;;  %v10846_v14 = vld [vmem:[#allocation112_spill] sm:$0xff] }
 0x576   : > { %1991 = vxpose.xlu0.b32.cont [14/16] (narrow) %v1923_v63, 8 }
 0x57c   : > { %v1227_v36 = vpop.xlane.xlu0 %1226  ;;  %v1230_v11 = vpop.xlane.xlu1 %1229 }
 0x57d   : > { %v1273_v44 = vsub.f32 %v7015_v61, %v1227_v36  ;;  %v1274_v42 = vsub.f32 %v7183_v53, %v1227_v36  ;;  %v1275_v22 = vsub.f32 %v7001_v40, %v1230_v11  ;;  %v1276_v25 = vsub.f32 %v7181_v27, %v1230_v11 }
 0x57f   : > { %v1305_v49 = vmul.f32 1.442695, %v1273_v44  ;;  %v1307_v51 = vmul.f32 1.442695, %v1274_v42  ;;  %v1309_v34 = vmul.f32 1.442695, %v1275_v22 }
 0x580   : > { %v1311_v10 = vmul.f32 1.442695, %v1276_v25  ;;  %v1233_v57 = vpop.xlane.xlu0 %1232  ;;  %v1236_v52 = vpop.xlane.xlu1 %1235  ;;  %v10847_v25 = vld [vmem:[#allocation117_spill] sm:$0xff] }
 0x581   : > { %5563 = vpow2.f32 %v1305_v49  ;;  %v1277_v4 = vsub.f32 %v7034_v28, %v1233_v57  ;;  %v1278_v30 = vsub.f32 %v7194_v33, %v1233_v57  ;;  %v1279_v7 = vsub.f32 %v10844_v20, %v1236_v52 }
 0x582   : > { %5565 = vpow2.f32 %v1307_v51  ;;  %v1280_v61 = vsub.f32 %v7192_v19, %v1236_v52 }
 0x583   : > { %5567 = vpow2.f32 %v1309_v34  ;;  %v1313_v40 = vmul.f32 1.442695, %v1277_v4  ;;  %v1315_v53 = vmul.f32 1.442695, %v1278_v30  ;;  %v1317_v27 = vmul.f32 1.442695, %v1279_v7 }
 0x584   : > { %5569 = vpow2.f32 %v1311_v10  ;;  %v1319_v50 = vmul.f32 1.442695, %v1280_v61  ;;  %v1239_v38 = vpop.xlane.xlu0 %1238  ;;  %v1242_v1 = vpop.xlane.xlu1 %1241  ;;  %v10848_v34 = vld [vmem:[#allocation114_spill] sm:$0xff] }
 0x585   : > { %5571 = vpow2.f32 %v1313_v40  ;;  %v1281_v8 = vsub.f32 %v10845_v55, %v1239_v38  ;;  %v1282_v28 = vsub.f32 %v7227_v58, %v1239_v38  ;;  %v1283_v33 = vsub.f32 %v10846_v14, %v1242_v1  ;;  %v10849_v7 = vld [vmem:[#allocation122_spill] sm:$0xff] }
 0x586   : > { %5573 = vpow2.f32 %v1315_v53  ;;  %v1284_v63 = vsub.f32 %v7205_v59, %v1242_v1  ;;  %v10850_v53 = vld [vmem:[#allocation121_spill] sm:$0xff] }
 0x587   : > { %5575 = vpow2.f32 %v1317_v27  ;;  %v1321_v19 = vmul.f32 1.442695, %v1281_v8  ;;  %v1323_v36 = vmul.f32 1.442695, %v1282_v28  ;;  %v1325_v11 = vmul.f32 1.442695, %v1283_v33 }
 0x588   : > { %5577 = vpow2.f32 %v1319_v50  ;;  %v1327_v44 = vmul.f32 1.442695, %v1284_v63 }
 0x589   : > { %5579 = vpow2.f32 %v1321_v19 }
 0x58a   : > { %v1245_v42 = vpop.xlane.xlu0 %1244  ;;  %v1248_v22 = vpop.xlane.xlu1 %1247  ;;  %5581 = vpow2.f32 %v1323_v36 }
 0x58b   : > { %v1285_v49 = vsub.f32 %v10847_v25, %v1245_v42  ;;  %v1286_v51 = vsub.f32 %v7259_v62, %v1245_v42  ;;  %v1287_v58 = vsub.f32 %v10848_v34, %v1248_v22  ;;  %v1288_v10 = vsub.f32 %v7229_v6, %v1248_v22 }
 0x58c   : > { %5583 = vpow2.f32 %v1325_v11  ;;  %v10852_v11 = vld [vmem:[#allocation115_spill] sm:$0xff] }
 0x58d   : > { %v1329_v59 = vmul.f32 1.442695, %v1285_v49  ;;  %v1331_v57 = vmul.f32 1.442695, %v1286_v51  ;;  %v1333_v52 = vmul.f32 1.442695, %v1287_v58  ;;  %5585 = vpow2.f32 %v1327_v44 }
 0x58e   : > { %v1335_v4 = vmul.f32 1.442695, %v1288_v10  ;;  %v1251_v30 = vpop.xlane.xlu0 %1250  ;;  %v1254_v20 = vpop.xlane.xlu1 %1253  ;;  %v10853_v44 = vmov 0 }
 0x58f   : > { %5587 = vpow2.f32 %v1329_v59  ;;  %v1289_v61 = vsub.f32 %v10849_v7, %v1251_v30  ;;  %v1290_v40 = vsub.f32 %v7285_v32, %v1251_v30  ;;  %v1291_v62 = vsub.f32 %v10850_v53, %v1254_v20  ;;  %v7438_v27 = vpop.eup %5563 }
 0x590   : > { %5589 = vpow2.f32 %v1331_v57  ;;  %v1292_v6 = vsub.f32 %v7281_v18, %v1254_v20  ;;  %v7441_v50 = vpop.eup %5565  ;;  %v10851_v18 = vld [vmem:[#allocation116_spill] sm:$0xff]  ;;  %v10854_v44 = vsel %vm7450_vm6, 4294967295, %v10853_v44 }
 0x591   : > { %5591 = vpow2.f32 %v1333_v52  ;;  %v1337_v38 = vmul.f32 1.442695, %v1289_v61  ;;  %v1339_v1 = vmul.f32 1.442695, %v1290_v40  ;;  %v1341_v55 = vmul.f32 1.442695, %v1291_v62  ;;  %v5568_v8 = vpop.eup %5567 }
 0x592   : > { %5593 = vpow2.f32 %v1335_v4  ;;  %v1343_v28 = vmul.f32 1.442695, %v1292_v6  ;;  %v1257_v14 = vpop.xlane.xlu0 %1256  ;;  %v1260_v33 = vpop.xlane.xlu1 %1259  ;;  %10855 = vst [vmem:[#allocation75_spill] sm:$0xff] %v10854_v44  ;;  %v5014_v49 = vpack.c.bf16 %v5568_v8, %v7438_v27  ;;  %v10865_v61 = vmov 0 }
 0x593   : > { %v5570_v63 = vpop.eup %5569  ;;  %5595 = vpow2.f32 %v1337_v38  ;;  %v1293_v32 = vsub.f32 %v7249_v26, %v1257_v14  ;;  %v1294_v19 = vsub.f32 %v7319_v47, %v1257_v14  ;;  %v1295_v36 = vsub.f32 %v7139_v54, %v1260_v33  ;;  %v10856_v26 = vld [vmem:[#allocation103_spill] sm:$0xff]  ;;  %v10857_v47 = vld [vmem:[#allocation102_spill] sm:$0xff] }
 0x594   : > { %v7454_v42 = vpop.eup %5571  ;;  %5597 = vpow2.f32 %v1339_v1  ;;  %v1296_v22 = vsub.f32 %v7311_v15, %v1260_v33  ;;  %v5011_v25 = vpack.c.bf16 %v5570_v63, %v7441_v50  ;;  %vm10858_vm13 = vcmp.ne.f32.partialorder %v10857_v47, 0.0  ;;  %v10868_v1 = vld [vmem:[#allocation104_spill] sm:$0xff] }
 0x595   : > { %vm7462_vm15 = vmpackc.low %vm10858_vm13, %vm10499_vm4  ;;  %v10859_v54 = vmov 0  ;;  %v7467_v51 = vpop.eup %5573  ;;  %5599 = vpow2.f32 %v1341_v55  ;;  %v1345_v34 = vmul.f32 1.442695, %v1293_v32  ;;  %v1347_v58 = vmul.f32 1.442695, %v1294_v19 }
 0x596   : > { %v10860_v54 = vsel %vm7462_vm15, 4294967295, %v10859_v54  ;;  %v1349_v10 = vmul.f32 1.442695, %v1295_v36  ;;  %v5576_v59 = vpop.eup %5575  ;;  %5601 = vpow2.f32 %v1343_v28  ;;  %v1351_v15 = vmul.f32 1.442695, %v1296_v22  ;;  %5012 = vmatprep.mubr.msk.bf16.mxu1 %vm7450_vm6, %v5011_v25  ;;  %vm10862_vm14 = vmmov %vm10858_vm13  ;;  %v7475_v4 = vpop.xlane.xlu0 %1262  ;;  %v10871_v25 = vld [vmem:[#allocation105_spill] sm:$0xff] }
 0x597   : > { %10861 = vst [vmem:[#allocation70_spill] sm:$0xff] %v10860_v54  ;;  %v1371_v57 = vsel %vm10862_vm14, %v5568_v8, 0.0  ;;  %v1372_v52 = vsel %vm10498_vm1, %v5570_v63, 0.0  ;;  %v1266_v30 = vpop.xlane.xlu1 %1265  ;;  %v5578_v20 = vpop.eup %5577  ;;  %5603 = vpow2.f32 %v1345_v34  ;;  %5015 = vmatmul.mubr.msk.bf16.vlgmr.msra.gmra.mxu1 %vm7462_vm15, %v5014_v49  ;;  %vm7483_vm13 = vmpackc.low %vm10864_vm10, %vm10863_vm12  ;;  %vm10869_vm14 = vcmp.ne.f32.partialorder %v10868_v1, 0.0  ;;  %v10912_v54 = vld [vmem:[#allocation81_spill] sm:$0xff] }
 0x598   : > { %v1404_v7 = vadd.f32 %v1372_v52, %v1371_v57  ;;  %v10866_v61 = vsel %vm7483_vm13, 4294967295, %v10865_v61  ;;  %v7487_v40 = vpop.eup %5579  ;;  %5605 = vpow2.f32 %v1347_v58  ;;  %v1299_v53 = vsub.f32 %v7348_v46, %v1266_v30  ;;  %vm10870_vm12 = vmmov %vm10864_vm10 }
 0x599   : > { %10867 = vst [vmem:[#allocation83_spill] sm:$0xff] %v10866_v61  ;;  %v1300_v62 = vsub.f32 %v7350_v9, %v1266_v30  ;;  %v5017_v6 = vpack.c.bf16 %v5578_v20, %v7467_v51  ;;  %v5582_v38 = vpop.eup %5581  ;;  %5607 = vpow2.f32 %v1349_v10  ;;  %v1375_v55 = vsel %vm10869_vm14, %v5576_v59, 0.0 }
 0x59a   : > { %1405 = vadd.xlane.f32.xlu1 %v1404_v7  ;;  %v7494_v8 = vpop.eup %5583  ;;  %5609 = vpow2.f32 %v1351_v15  ;;  %v1357_v28 = vmul.f32 1.442695, %v1299_v53  ;;  %v1376_v46 = vsel %vm10870_vm12, %v5578_v20, 0.0  ;;  %v7500_v9 = vpop.xlane.xlu0 %1268  ;;  %vm10872_vm10 = vcmp.ne.f32.partialorder %v10871_v25, 0.0 }
 0x59b   : > { %v1359_v14 = vmul.f32 1.442695, %v1300_v62  ;;  %5018 = vmatprep.mubr.msk.bf16.mxu1 %vm7483_vm13, %v5017_v6  ;;  %v1272_v33 = vpop.xlane.xlu1 %1271  ;;  %v5586_v63 = vpop.eup %5585  ;;  %v1410_v32 = vadd.f32 %v1376_v46, %v1375_v55  ;;  %vm7510_vm1 = vmpackc.low %vm10869_vm14, %vm10872_vm10  ;;  %v10873_v49 = vmov 0  ;;  %v1369_v34 = vsel %vm10499_vm4, %v7438_v27, 0.0  ;;  %v10884_v62 = vld [vmem:[#allocation108_spill] sm:$0xff] }
 0x59c   : > { %v7502_v19 = vpop.eup %5587  ;;  %v1303_v36 = vsub.f32 %v7380_v17, %v1272_v33  ;;  %v1304_v22 = vsub.f32 %v7367_v13, %v1272_v33  ;;  %v10874_v49 = vsel %vm7510_vm1, 4294967295, %v10873_v49  ;;  %5611 = vpow2.f32 %v1357_v28  ;;  %v10876_v13 = vld [vmem:[#allocation106_spill] sm:$0xff] }
 0x59d   : > { %10875 = vst [vmem:[#allocation80_spill] sm:$0xff] %v10874_v49  ;;  %v7517_v58 = vpop.eup %5589  ;;  %v5020_v17 = vpack.c.bf16 %v5576_v59, %v7454_v42  ;;  %vm10877_vm12 = vcmp.ne.f32.partialorder %v10876_v13, 0.0  ;;  %v1370_v15 = vsel %vm10501_vm11, %v7441_v50, 0.0  ;;  %5613 = vpow2.f32 %v1359_v14 }
 0x59e   : > { %1411 = vadd.xlane.f32.xlu1 %v1410_v32  ;;  %v1379_v10 = vsel %vm10877_vm12, %v7494_v8, 0.0  ;;  %v7526_v57 = vpop.eup %5591  ;;  %v1365_v52 = vmul.f32 1.442695, %v1303_v36  ;;  %v1367_v30 = vmul.f32 1.442695, %v1304_v22  ;;  %vm10878_vm10 = vcmp.ne.f32.partialorder %v7126_v5, 0.0  ;;  %v1926_v20 = vpop.xlane.xlu0 %1925 }
 0x59f   : > { %v1380_v27 = vsel %vm10878_vm10, %v5586_v63, 0.0  ;;  %vm10879_vm14 = vcmp.ne.f32.partialorder %v7154_v60, 0.0  ;;  %vm10880_vm4 = vmmov %vm10878_vm10  ;;  %v10881_v59 = vmov 0  ;;  %v5594_v7 = vpop.eup %5593  ;;  %5021 = vmatmul.mubr.msk.bf16.gmra.mxu1 %vm7510_vm1, %v5020_v17  ;;  %v5023_v53 = vpack.c.bf16 %v5586_v63, %v5582_v38  ;;  %1992 = vxpose.xlu0.b32.cont [15/16] (narrow) %v1926_v20, 8  ;;  %v1929_v36 = vpop.xlane.xlu1 %1928  ;;  %v10889_v17 = vld [vmem:[#allocation107_spill] sm:$0xff] }
 0x5a0   : > { %vm7534_vm3 = vmpackc.low %vm10880_vm4, %vm10879_vm14  ;;  %v1416_v50 = vadd.f32 %v1380_v27, %v1379_v10  ;;  %vm10885_vm12 = vcmp.ne.f32.partialorder %v10884_v62, 0.0  ;;  %v7543_v55 = vpop.eup %5595  ;;  %vm10886_vm10 = vcmp.ne.f32.partialorder %v7157_v45, 0.0  ;;  %v1298_v46 = vsub.f32 %v7352_v48, %v7475_v4 }
 0x5a1   : > { %v10882_v59 = vsel %vm7534_vm3, 4294967295, %v10881_v59  ;;  %v1383_v6 = vsel %vm10885_vm12, %v7526_v57, 0.0  ;;  %v1384_v28 = vsel %vm10886_vm10, %v5594_v7, 0.0  ;;  %v7547_v14 = vpop.eup %5597  ;;  %5615 = vpow2.f32 %v1365_v52  ;;  %5024 = vmatprep.mubr.msk.bf16.mxu1 %vm7534_vm3, %v5023_v53  ;;  %v10899_v53 = vld [vmem:[#allocation109_spill] sm:$0xff] }
 0x5a2   : > { %10883 = vst [vmem:[#allocation65_spill] sm:$0xff] %v10882_v59  ;;  %1417 = vadd.xlane.f32.xlu1 %v1416_v50  ;;  %v1422_v33 = vadd.f32 %v1384_v28, %v1383_v6  ;;  %v7553_v63 = vadd.f32 %v1370_v15, %v1369_v34  ;;  %v7555_v32 = vpop.eup %5599  ;;  %5617 = vpow2.f32 %v1367_v30  ;;  %vm10887_vm4 = vcmp.ne.f32.partialorder %v10871_v25, 0.0  ;;  %v10891_v15 = vld [vmem:[#allocation77_spill] sm:$0xff] }
 0x5a3   : > { %v1373_v22 = vsel %vm10887_vm4, %v7454_v42, 0.0  ;;  %vm10888_vm14 = vcmp.ne.f32.partialorder %v7077_v0, 0.0  ;;  %vm10890_vm12 = vcmp.ne.f32.partialorder %v10889_v17, 0.0  ;;  %v5602_v52 = vpop.eup %5601  ;;  %1993 = vxpose.xlu0.b32.end [16/16] (narrow) %v1929_v36, 8  ;;  %v5026_v34 = vpack.c.bf16 %v7494_v8, %v7487_v40  ;;  %v10901_v36 = vld [vmem:[#allocation127_spill] sm:$0xff] }
 0x5a4   : > { %v1374_v48 = vsel %vm10888_vm14, %v7467_v51, 0.0  ;;  %v1377_v10 = vsel %vm10890_vm12, %v7487_v40, 0.0  ;;  %vm10892_vm10 = vcmp.ne.f32.partialorder %v10891_v15, 0.0  ;;  %vm10893_vm4 = vcmp.ne.f32.partialorder %v7154_v60, 0.0  ;;  %v7575_v20 = vpop.eup %5603  ;;  %vm10894_vm14 = vmmov %vm10890_vm12 }
 0x5a5   : > { %v1387_v30 = vsel %vm10892_vm10, %v7555_v32, 0.0  ;;  %v7571_v27 = vadd.f32 %v1374_v48, %v1373_v22  ;;  %v1378_v42 = vsel %vm10893_vm4, %v5582_v38, 0.0  ;;  %vm10895_vm12 = vcmp.ne.f32.partialorder %v10876_v13, 0.0  ;;  %v5606_v6 = vpop.eup %5605  ;;  %v10908_v48 = vld [vmem:[#allocation110_spill] sm:$0xff] }
 0x5a6   : > { %vm7581_vm11 = vmpackc.low %vm10895_vm12, %vm10894_vm14  ;;  %v10896_v51 = vmov 0  ;;  %v1388_v40 = vsel %vm10522_vm7, %v5602_v52, 0.0  ;;  %v5029_v8 = vpack.c.bf16 %v5594_v7, %v7517_v58  ;;  %v7588_v50 = vadd.f32 %v1378_v42, %v1377_v10  ;;  %1423 = vadd.xlane.f32.xlu1 %v1422_v33  ;;  %v10910_v42 = vld [vmem:[#allocation129_spill] sm:$0xff] }
 0x5a7   : > { %v10897_v51 = vsel %vm7581_vm11, 4294967295, %v10896_v51  ;;  %vm10900_vm10 = vcmp.ne.f32.partialorder %v10899_v53, 0.0  ;;  %v1428_v28 = vadd.f32 %v1388_v40, %v1387_v30  ;;  %vm10902_vm4 = vcmp.ne.f32.partialorder %v10901_v36, 0.0  ;;  %v5608_v30 = vpop.eup %5607  ;;  %5027 = vmatmul.mubr.msk.bf16.gmra.mxu1 %vm7581_vm11, %v5026_v34 }
 0x5a8   : > { %10898 = vst [vmem:[#allocation63_spill] sm:$0xff] %v10897_v51  ;;  %v1381_v38 = vsel %vm10900_vm10, %v7502_v19, 0.0  ;;  %vm10903_vm14 = vcmp.ne.f32.partialorder %v7157_v45, 0.0  ;;  %v10904_v22 = vmov 0  ;;  %vm10907_vm2 = vmmov %vm10902_vm4  ;;  %vm10909_vm5 = vcmp.ne.f32.partialorder %v10908_v48, 0.0  ;;  %v5610_v61 = vpop.eup %5609 }
 0x5a9   : > { %vm7597_vm12 = vmpackc.low %vm10903_vm14, %vm10902_vm4  ;;  %v1382_v7 = vsel %vm10907_vm2, %v7517_v58, 0.0  ;;  %v1385_v10 = vsel %vm10909_vm5, %v7543_v55, 0.0  ;;  %vm10911_vm10 = vcmp.ne.f32.partialorder %v10910_v42, 0.0  ;;  %v1389_v49 = vsel %vm10526_vm9, %v7575_v20, 0.0 }
 0x5aa   : > { %v10905_v22 = vsel %vm7597_vm12, 4294967295, %v10904_v22  ;;  %v1386_v33 = vsel %vm10911_vm10, %v7547_v14, 0.0  ;;  %v7610_v40 = vadd.f32 %v1382_v7, %v1381_v38  ;;  %v1390_v58 = vsel %vm10523_vm8, %v5606_v6, 0.0  ;;  %5030 = vmatprep.mubr.msk.bf16.mxu1 %vm7597_vm12, %v5029_v8  ;;  %v10914_v38 = vld [vmem:[#allocation130_spill] sm:$0xff]  ;;  %1429 = vadd.xlane.f32.xlu1 %v1428_v28 }
 0x5ab   : > { %10906 = vst [vmem:[#allocation69_spill] sm:$0xff] %v10905_v22  ;;  %v7612_v59 = vadd.f32 %v1386_v33, %v1385_v10  ;;  %vm10913_vm5 = vcmp.ne.f32.partialorder %v10912_v54, 0.0  ;;  %v7623_v36 = vadd.f32 %v1390_v58, %v1389_v49  ;;  %vm10915_vm2 = vcmp.ne.f32.partialorder %v10914_v38, 0.0  ;;  %v5612_v33 = vpop.eup %5611 }
 0x5ac   : > { %v1391_v44 = vsel %vm10913_vm5, %v5608_v30, 0.0  ;;  %v1392_v7 = vsel %vm10915_vm2, %v5610_v61, 0.0  ;;  %v1355_v45 = vmul.f32 1.442695, %v1298_v46  ;;  %v5614_v60 = vpop.eup %5613  ;;  %v1395_v51 = vsel %vm10521_vm0, %v5612_v33, 0.0 }
 0x5ad   : > { %v1434_v10 = vadd.f32 %v1392_v7, %v1391_v44  ;;  %vm10916_vm4 = vcmp.ne.f32.partialorder %v10899_v53, 0.0  ;;  %vm10917_vm14 = vcmp.ne.f32.partialorder %v10884_v62, 0.0  ;;  %v10918_v49 = vmov 0 }
 0x5ae   : > { %vm7635_vm10 = vmpackc.low %vm10917_vm14, %vm10916_vm4  ;;  %vm10921_vm5 = vcmp.ne.f32.partialorder %v7268_v16, 0.0  ;;  %v1297_v44 = vsub.f32 %v7357_v56, %v7475_v4  ;;  %v5032_v46 = vpack.c.bf16 %v7526_v57, %v7502_v19  ;;  %vm10922_vm2 = vcmp.ne.f32.partialorder %v10910_v42, 0.0  ;;  %v5616_v58 = vpop.eup %5615 }
 0x5af   : > { %v10919_v49 = vsel %vm7635_vm10, 4294967295, %v10918_v49  ;;  %v1396_v34 = vsel %vm10921_vm5, %v5614_v60, 0.0  ;;  %1435 = vadd.xlane.f32.xlu1 %v1434_v10  ;;  %vm7649_vm0 = vmpackc.low %vm10522_vm7, %vm10922_vm2  ;;  %v10923_v28 = vmov 0  ;;  %5619 = vpow2.f32 %v1355_v45  ;;  %v5618_v4 = vpop.eup %5617 }
 0x5b0   : > { %10920 = vst [vmem:[#allocation68_spill] sm:$0xff] %v10919_v49  ;;  %v1440_v8 = vadd.f32 %v1396_v34, %v1395_v51  ;;  %v10924_v28 = vsel %vm7649_vm0, 4294967295, %v10923_v28  ;;  %v1302_v7 = vsub.f32 %v7370_v24, %v7500_v9  ;;  %v5035_v56 = vpack.c.bf16 %v5602_v52, %v7547_v14  ;;  %5033 = vmatmul.mubr.msk.bf16.gmra.mxu1 %vm7635_vm10, %v5032_v46  ;;  %v11005_v49 = vld [vmem:[#allocation95_spill] sm:$0xff] }
 0x5b1   : > { %10925 = vst [vmem:[#allocation111_spill] sm:$0xff] %v10924_v28  ;;  %vm10926_vm4 = vcmp.ne.f32.partialorder %v7302_v2, 0.0  ;;  %vm10927_vm14 = vcmp.ne.f32.partialorder %v7314_v37, 0.0  ;;  %v1353_v51 = vmul.f32 1.442695, %v1297_v44  ;;  %vm10928_vm5 = vcmp.ne.f32.partialorder %v10908_v48, 0.0 }
 0x5b2   : > { %v1399_v19 = vsel %vm10926_vm4, %v5616_v58, 0.0  ;;  %5036 = vmatprep.mubr.msk.bf16.mxu1 %vm7649_vm0, %v5035_v56  ;;  %v1400_v57 = vsel %vm10927_vm14, %v5618_v4, 0.0  ;;  %v1363_v10 = vmul.f32 1.442695, %v1302_v7  ;;  %vm10929_vm2 = vcmp.ne.f32.partialorder %v10891_v15, 0.0 }
 0x5b3   : > { %1441 = vadd.xlane.f32.xlu1 %v1440_v8  ;;  %v1446_v45 = vadd.f32 %v1400_v57, %v1399_v19  ;;  %vm7668_vm7 = vmpackc.low %vm10929_vm2, %vm10928_vm5  ;;  %v10930_v24 = vmov 0  ;;  %5621 = vpow2.f32 %v1353_v51  ;;  %v1301_v14 = vsub.f32 %v7382_v23, %v7500_v9  ;;  %v10963_v51 = vld [vmem:[#allocation73_spill] sm:$0xff] }
 0x5b4   : > { %v10931_v24 = vsel %vm7668_vm7, 4294967295, %v10930_v24  ;;  %v5038_v52 = vpack.c.bf16 %v7555_v32, %v7543_v55  ;;  %vm10933_vm4 = vcmp.ne.f32.partialorder %v10914_v38, 0.0  ;;  %v10934_v34 = vmov 0 }
 0x5b5   : > { %10932 = vst [vmem:[#allocation113_spill] sm:$0xff] %v10931_v24  ;;  %vm7680_vm14 = vmpackc.low %vm10933_vm4, %vm10523_vm8  ;;  %5623 = vpow2.f32 %v1363_v10  ;;  %v5041_v44 = vpack.c.bf16 %v5610_v61, %v5606_v6  ;;  %v1361_v23 = vmul.f32 1.442695, %v1301_v14  ;;  %vm10937_vm5 = vcmp.ne.f32.partialorder %v10912_v54, 0.0  ;;  %v10965_v10 = vld [vmem:[#allocation84_spill] sm:$0xff] }
 0x5b6   : > { %v10935_v34 = vsel %vm7680_vm14, 4294967295, %v10934_v34  ;;  %vm7692_vm2 = vmpackc.low %vm10937_vm5, %vm10526_vm9  ;;  %v10938_v55 = vmov 0  ;;  %v5044_v32 = vpack.c.bf16 %v5608_v30, %v7575_v20  ;;  %vm10941_vm4 = vcmp.ne.f32.partialorder %v7276_v12, 0.0 }
 0x5b7   : > { %1447 = vadd.xlane.f32.xlu1 %v1446_v45  ;;  %10936 = vst [vmem:[#allocation112_spill] sm:$0xff] %v10935_v34  ;;  %v10939_v55 = vsel %vm7692_vm2, 4294967295, %v10938_v55  ;;  %5625 = vpow2.f32 %v1361_v23  ;;  %vm10942_vm8 = vcmp.ne.f32.partialorder %v7268_v16, 0.0  ;;  %v10943_v61 = vmov 0  ;;  %v5953_v34 = vld [vmem:[%s6924_s17 + $0x70] sm:$0xff] }
 0x5b8   : > { %5039 = vmatmul.mubr.msk.bf16.gmra.mxu1 %vm7668_vm7, %v5038_v52  ;;  %10940 = vst [vmem:[#allocation117_spill] sm:$0xff] %v10939_v55  ;;  %vm7701_vm7 = vmpackc.low %vm10942_vm8, %vm10941_vm4  ;;  %vm10946_vm5 = vcmp.ne.f32.partialorder %v7086_v31, 0.0  ;;  %vm10947_vm9 = vcmp.ne.f32.partialorder %v7062_v35, 0.0  ;;  %v10948_v20 = vmov 0  ;;  %vm10951_vm8 = vcmp.ne.f32.partialorder %v7324_v39, 0.0  ;;  %v10967_v52 = vld [vmem:[#allocation82_spill] sm:$0xff] }
 0x5b9   : > { %5042 = vmatprep.mubr.msk.bf16.mxu1 %vm7680_vm14, %v5041_v44  ;;  %v10944_v61 = vsel %vm7701_vm7, 4294967295, %v10943_v61  ;;  %vm7713_vm14 = vmpackc.low %vm10947_vm9, %vm10946_vm5  ;;  %vm10952_vm4 = vcmp.ne.f32.partialorder %v7314_v37, 0.0  ;;  %vm10956_vm9 = vcmp.ne.f32.partialorder %v7317_v43, 0.0  ;;  %vm10957_vm5 = vcmp.ne.f32.partialorder %v7302_v2, 0.0  ;;  %v5955_v2 = vld [vmem:[%s6924_s17 + $0x90] sm:$0xff]  ;;  %v5956_v37 = vld [vmem:[%s6924_s17 + $0x80] sm:$0xff] }
 0x5ba   : > { %10945 = vst [vmem:[#allocation114_spill] sm:$0xff] %v10944_v61  ;;  %v10949_v20 = vsel %vm7713_vm14, 4294967295, %v10948_v20  ;;  %vm7721_vm0 = vmpackc.low %vm10952_vm4, %vm10951_vm8  ;;  %vm10962_vm8 = vcmask 130048   ;;  %v5958_v35 = vld [vmem:[%s6924_s17 + $0xa0] sm:$0xff] }
 0x5bb   : > { %10950 = vst [vmem:[#allocation122_spill] sm:$0xff] %v10949_v20  ;;  %vm10964_vm4 = vmmov %vm10962_vm8 }
 0x5bc   : > { %v5620_v9 = vpop.eup %5619  ;;  %v1936_v45 = vsel %vm10964_vm4, %v10963_v51, 0.0 }
 0x5bd   : > { %v5047_v6 = vpack.c.bf16 %v5614_v60, %v5620_v9  ;;  %v10953_v60 = vmov 0 }
 0x5be   : > { %v10954_v60 = vsel %vm7721_vm0, 4294967295, %v10953_v60 }
 0x5bf   : > { %10955 = vst [vmem:[#allocation121_spill] sm:$0xff] %v10954_v60 }
 0x5c0   : > { %5045 = vmatmul.mubr.msk.bf16.gmra.mxu1 %vm7692_vm2, %v5044_v32  ;;  %v5622_v46 = vpop.eup %5621 }
 0x5c1   : > { %5048 = vmatprep.mubr.msk.bf16.mxu1 %vm7701_vm7, %v5047_v6  ;;  %v5050_v30 = vpack.c.bf16 %v5612_v33, %v5622_v46  ;;  %vm7733_vm7 = vmpackc.low %vm10957_vm5, %vm10956_vm9  ;;  %v10958_v33 = vmov 0  ;;  %vm10969_vm5 = vcmp.ne.f32.partialorder %v7086_v31, 0.0  ;;  %v10974_v6 = vld [vmem:[#allocation58_spill] sm:$0xff] }
 0x5c2   : > { %v5624_v8 = vpop.eup %5623  ;;  %v10959_v33 = vsel %vm7733_vm7, 4294967295, %v10958_v33 }
 0x5c3   : > { %v5053_v7 = vpack.c.bf16 %v5618_v4, %v5624_v8  ;;  %10960 = vst [vmem:[#allocation138_spill] sm:$0xff] %v10959_v33  ;;  %v10961_v4 = vld [vmem:[#allocation76_spill] sm:$0xff] }
 0x5c4   : > { %v5626_v56 = vpop.eup %5625  ;;  %v1930_v57 = vsel %vm10962_vm8, %v10961_v4, 0.0  ;;  %vm10971_vm8 = vcmp.ne.f32.partialorder %v7317_v43, 0.0 }
 0x5c5   : > { %v5056_v19 = vpack.c.bf16 %v5616_v58, %v5626_v56  ;;  %v1393_v58 = vsel %vm10969_vm5, %v5622_v46, 0.0 }
 0x5c8   : > { %5051 = vmatmul.mubr.msk.bf16.gmra.mxu1 %vm7713_vm14, %v5050_v30  ;;  %v10978_v30 = vld [vmem:[#allocation62_spill] sm:$0xff] }
 0x5c9   : > { %5054 = vmatprep.mubr.msk.bf16.mxu1 %vm7721_vm0, %v5053_v7  ;;  %vm10966_vm0 = vmmov %vm10964_vm4  ;;  %vm10972_vm4 = vcmp.ne.f32.partialorder %v7324_v39, 0.0 }
 0x5ca   : > { %v1942_v14 = vsel %vm10966_vm0, %v10965_v10, 0.0  ;;  %vm10968_vm9 = vmmov %vm10966_vm0  ;;  %vm10970_vm0 = vcmp.ne.f32.partialorder %v7276_v12, 0.0 }
 0x5cb   : > { %v1948_v44 = vsel %vm10968_vm9, %v10967_v52, 0.0  ;;  %v1394_v23 = vsel %vm10970_vm0, %v5620_v9, 0.0  ;;  %vm10975_vm5 = vmmov %vm10968_vm9  ;;  %v10976_v9 = vld [vmem:[#allocation64_spill] sm:$0xff] }
 0x5cc   : > { %v1437_v32 = vadd.f32 %v1394_v23, %v1393_v58  ;;  %v1960_v46 = vsel %vm10975_vm5, %v10974_v6, 0.0  ;;  %vm10977_vm0 = vmmov %vm10975_vm5 }
 0x5cd   : > { %vm10982_vm5 = vmmov %vm10977_vm0 }
 0x5d0   : > { %5057 = vmatmul.mubr.msk.bf16.gmra.mxu1 %vm7733_vm7, %v5056_v19  ;;  %1931 = vadd.xlane.f32.xlu0 %v1930_v57 }
 0x5d4   : > { %1937 = vadd.xlane.f32.xlu0 %v1936_v45 }
 0x5d8   : > { %1943 = vadd.xlane.f32.xlu0 %v1942_v14 }
 0x5dc   : > { %1949 = vadd.xlane.f32.xlu0 %v1948_v44 }
 0x5e0   : > { %1402 = vadd.xlane.f32.xlu0 %v7553_v63  ;;  %v1397_v63 = vsel %vm10971_vm8, %v5626_v56, 0.0  ;;  %vm10979_vm8 = vmmov %vm10977_vm0 }
 0x5e1   : > { %v1972_v7 = vsel %vm10979_vm8, %v10978_v30, 0.0  ;;  %vm10983_vm8 = vmmov %vm10977_vm0 }
 0x5e3   : > { %v7779_v58 = vpop.trf.xlu0 }
 0x5e4   : > { %1408 = vadd.xlane.f32.xlu0 %v7571_v27  ;;  %v1398_v27 = vsel %vm10972_vm4, %v5624_v8, 0.0  ;;  %v1935_v8 = vpop.xlane.xlu1 %1934  ;;  %vm10980_vm4 = vmmov %vm10977_vm0 }
 0x5e8   : > { %1414 = vadd.xlane.f32.xlu0 %v7588_v50  ;;  %v1443_v50 = vadd.f32 %v1398_v27, %v1397_v63  ;;  %v1941_v56 = vpop.xlane.xlu1 %1940 }
 0x5ec   : > { %1420 = vadd.xlane.f32.xlu0 %v7610_v40  ;;  %v10973_v40 = vld [vmem:[#allocation61_spill] sm:$0xff]  ;;  %v1947_v19 = vpop.xlane.xlu1 %1946 }
 0x5f0   : > { %1426 = vadd.xlane.f32.xlu0 %v7612_v59  ;;  %v1954_v59 = vsel %vm10968_vm9, %v10973_v40, 0.0  ;;  %v7769_v4 = vpop.xlane.xlu1 %1952  ;;  %vm10981_vm9 = vmmov %vm10977_vm0 }
 0x5f4   : > { %1432 = vadd.xlane.f32.xlu0 %v7623_v36  ;;  %v1966_v36 = vsel %vm10977_vm0, %v10976_v9, 0.0  ;;  %v7771_v57 = vpop.xlane.xlu1 %1958 }
 0x5f8   : > { %1438 = vadd.xlane.f32.xlu0 %v1437_v32  ;;  %v7773_v51 = vpop.xlane.xlu1 %1964 }
 0x5fc   : > { %1444 = vadd.xlane.f32.xlu0 %v1443_v50  ;;  %v7775_v45 = vpop.xlane.xlu1 %1970 }
 0x600   : > { %1955 = vadd.xlane.f32.xlu0 %v1954_v59  ;;  %v7777_v10 = vpop.xlane.xlu1 %1976 }
 0x604   : > { %1961 = vadd.xlane.f32.xlu0 %v1960_v46 }
 0x608   : > { %1967 = vadd.xlane.f32.xlu0 %v1966_v36 }
 0x60c   : > { %1973 = vadd.xlane.f32.xlu0 %v1972_v7 }
 0x623   : > { %v1406_v14 = vpop.xlane.xlu1 %1405 }
 0x624   : > { %v1579_v52 = vmax.f32 %v1406_v14, 1e-20 }
 0x626   : > { %5627 = vrcp.f32 %v1579_v52 }
 0x627   : > { %v1412_v44 = vpop.xlane.xlu1 %1411 }
 0x628   : > { %v1581_v23 = vmax.f32 %v1412_v44, 1e-20 }
 0x62a   : > { %5629 = vrcp.f32 %v1581_v23 }
 0x62b   : > { %v1418_v50 = vpop.xlane.xlu1 %1417 }
 0x62c   : > { %v1583_v46 = vmax.f32 %v1418_v50, 1e-20 }
 0x62e   : > { %5631 = vrcp.f32 %v1583_v46 }
 0x633   : > { %v5628_v36 = vpop.eup %5627 }
 0x657   : > { %v7781_v32 = vpop.f32.mrf.mxu1 }
 0x659   : > { %v7783_v63 = vpop.f32.mrf.mxu1  ;;  %v1932_v27 = vpop.xlane.xlu0 %1931 }
 0x65a   : > { %2010 = vxpose.xlu1.b32.start [1/16] (narrow) %v1932_v27, 8 }
 0x65b   : > { %v5252_v40 = vpop.f32.mrf.mxu1 }
 0x65d   : > { %v5253_v59 = vpop.f32.mrf.mxu1  ;;  %v1938_v6 = vpop.xlane.xlu0 %1937 }
 0x65e   : > { %v5254_v9 = vadd.f32 %v5253_v59, %v5252_v40  ;;  %2011 = vxpose.xlu1.b32.cont [2/16] (narrow) %v1935_v8, 8  ;;  %v1424_v8 = vpop.xlane.xlu1 %1423  ;;  %v5630_v59 = vpop.eup %5629 }
 0x65f   : > { %v7792_v30 = vpop.f32.mrf.mxu1  ;;  %v1585_v50 = vmax.f32 %v1424_v8, 1e-20 }
 0x660   : > { %v1611_v7 = vmul.f32 %v5628_v36, %v5254_v9 }
 0x661   : > { %v7794_v14 = vpop.f32.mrf.mxu1  ;;  %v1944_v52 = vpop.xlane.xlu0 %1943  ;;  %5633 = vrcp.f32 %v1585_v50 }
 0x662   : > { %1627 = vst.msk [vmem:[%s7790_s20 + $0x8] sm:$0xff] %vm10980_vm4, %v1611_v7  ;;  %2012 = vxpose.xlu1.b32.cont [3/16] (narrow) %v1938_v6, 8  ;;  %v1430_v36 = vpop.xlane.xlu1 %1429  ;;  %vm10984_vm4 = vmmov %vm10977_vm0 }
 0x663   : > { %v5258_v44 = vpop.f32.mrf.mxu1  ;;  %v1587_v55 = vmax.f32 %v1430_v36, 1e-20 }
 0x665   : > { %v5259_v23 = vpop.f32.mrf.mxu1  ;;  %v1950_v27 = vpop.xlane.xlu0 %1949 }
 0x666   : > { %v5260_v40 = vadd.f32 %v5259_v23, %v5258_v44  ;;  %2013 = vxpose.xlu1.b32.cont [4/16] (narrow) %v1941_v56, 8  ;;  %v5632_v56 = vpop.eup %5631 }
 0x667   : > { %v5261_v33 = vpop.f32.mrf.mxu1 }
 0x668   : > { %v1613_v60 = vmul.f32 %v5630_v59, %v5260_v40 }
 0x669   : > { %v5262_v20 = vpop.f32.mrf.mxu1  ;;  %v1403_v9 = vpop.xlane.xlu0 %1402 }
 0x66a   : > { %1629 = vst.msk [vmem:[%s7790_s20 + $0x18] sm:$0xff] %vm10981_vm9, %v1613_v60  ;;  %v1578_v46 = vmax.f32 %v1403_v9, 1e-20  ;;  %2014 = vxpose.xlu1.b32.cont [5/16] (narrow) %v1944_v52, 8  ;;  %v1436_v52 = vpop.xlane.xlu1 %1435  ;;  %vm10985_vm9 = vmmov %vm10977_vm0 }
 0x66b   : > { %v5264_v6 = vpop.f32.mrf.mxu1 }
 0x66c   : > { %5635 = vrcp.f32 %v1578_v46 }
 0x66d   : > { %v5265_v7 = vpop.f32.mrf.mxu1  ;;  %v1409_v61 = vpop.xlane.xlu0 %1408 }
 0x66e   : > { %v5266_v8 = vadd.f32 %v5265_v7, %v5264_v6  ;;  %v1580_v44 = vmax.f32 %v1409_v61, 1e-20  ;;  %2015 = vxpose.xlu1.b32.cont [6/16] (narrow) %v1947_v19, 8  ;;  %v1589_v6 = vmax.f32 %v1436_v52, 1e-20  ;;  %v5634_v7 = vpop.eup %5633  ;;  %v1442_v52 = vpop.xlane.xlu1 %1441 }
 0x670   : > { %v5267_v23 = vpop.f32.mrf.mxu1  ;;  %v1615_v40 = vmul.f32 %v5632_v56, %v5266_v8  ;;  %5637 = vrcp.f32 %v1580_v44 }
 0x671   : > { %v1415_v50 = vpop.xlane.xlu0 %1414  ;;  %5639 = vrcp.f32 %v1587_v55  ;;  %v5251_v55 = vadd.f32 %v7783_v63, %v7781_v32 }
 0x672   : > { %v5268_v59 = vpop.f32.mrf.mxu1  ;;  %1631 = vst.msk [vmem:[%s7790_s20 + $0x28] sm:$0xff] %vm10982_vm5, %v1615_v40  ;;  %v1582_v60 = vmax.f32 %v1415_v50, 1e-20  ;;  %2016 = vxpose.xlu1.b32.cont [7/16] (narrow) %v1950_v27, 8  ;;  %vm10986_vm5 = vmmov %vm10977_vm0 }
 0x674   : > { %v5270_v9 = vpop.f32.mrf.mxu1  ;;  %5641 = vrcp.f32 %v1582_v60 }
 0x675   : > { %v1421_v36 = vpop.xlane.xlu0 %1420 }
 0x676   : > { %v5271_v46 = vpop.f32.mrf.mxu1  ;;  %v1584_v19 = vmax.f32 %v1421_v36, 1e-20  ;;  %2017 = vxpose.xlu1.b32.cont [8/16] (narrow) %v7769_v4, 8  ;;  %v5257_v4 = vadd.f32 %v7794_v14, %v7792_v30  ;;  %v1591_v36 = vmax.f32 %v1442_v52, 1e-20  ;;  %v1448_v52 = vpop.xlane.xlu1 %1447 }
 0x677   : > { %v5272_v61 = vadd.f32 %v5271_v46, %v5270_v9 }
 0x678   : > { %v5273_v8 = vpop.f32.mrf.mxu1  ;;  %5643 = vrcp.f32 %v1584_v19 }
 0x679   : > { %v1617_v44 = vmul.f32 %v5634_v7, %v5272_v61  ;;  %v5636_v27 = vpop.eup %5635  ;;  %v1427_v40 = vpop.xlane.xlu0 %1426  ;;  %5645 = vrcp.f32 %v1589_v6 }
 0x67a   : > { %v5274_v56 = vpop.f32.mrf.mxu1  ;;  %v1586_v50 = vmax.f32 %v1427_v40, 1e-20  ;;  %v1610_v60 = vmul.f32 %v5636_v27, %v5251_v55  ;;  %v5263_v55 = vadd.f32 %v5262_v20, %v5261_v33 }
 0x67b   : > { %1633 = vst.msk [vmem:[%s7790_s20 + $0x38] sm:$0xff] %vm10977_vm0, %v1617_v44 }
 0x67c   : > { %v5276_v9 = vpop.f32.mrf.mxu1  ;;  %5647 = vrcp.f32 %v1586_v50  ;;  %1626 = vst.msk [vmem:[%s7790_s20] sm:$0xff] %vm10983_vm8, %v1610_v60  ;;  %vm10987_vm8 = vmmov %vm10977_vm0 }
 0x67d   : > { %v5638_v32 = vpop.eup %5637  ;;  %v1433_v46 = vpop.xlane.xlu0 %1432 }
 0x67e   : > { %v5277_v63 = vpop.f32.mrf.mxu1  ;;  %v1588_v6 = vmax.f32 %v1433_v46, 1e-20  ;;  %v1612_v19 = vmul.f32 %v5638_v32, %v5257_v4  ;;  %v5640_v7 = vpop.eup %5639  ;;  %v5269_v4 = vadd.f32 %v5268_v59, %v5267_v23 }
 0x67f   : > { %v5278_v61 = vadd.f32 %v5277_v63, %v5276_v9  ;;  %v1593_v63 = vmax.f32 %v1448_v52, 1e-20 }
 0x680   : > { %v5279_v44 = vpop.f32.mrf.mxu1  ;;  %5649 = vrcp.f32 %v1588_v6  ;;  %1628 = vst.msk [vmem:[%s7790_s20 + $0x10] sm:$0xff] %vm10984_vm4, %v1612_v19  ;;  %vm10988_vm4 = vmmov %vm10977_vm0 }
 0x681   : > { %v1619_v27 = vmul.f32 %v5640_v7, %v5278_v61  ;;  %v5642_v30 = vpop.eup %5641  ;;  %v1439_v40 = vpop.xlane.xlu0 %1438  ;;  %5651 = vrcp.f32 %v1591_v36  ;;  %v5275_v7 = vadd.f32 %v5274_v56, %v5273_v8 }
 0x682   : > { %v5280_v14 = vpop.f32.mrf.mxu1  ;;  %v1590_v50 = vmax.f32 %v1439_v40, 1e-20  ;;  %v1614_v60 = vmul.f32 %v5642_v30, %v5263_v55 }
 0x683   : > { %1635 = vst.msk [vmem:[%s7790_s20 + $0x48] sm:$0xff] %vm10985_vm9, %v1619_v27  ;;  %vm10989_vm9 = vmmov %vm10977_vm0 }
 0x684   : > { %v5282_v9 = vpop.f32.mrf.mxu1  ;;  %5653 = vrcp.f32 %v1590_v50  ;;  %1630 = vst.msk [vmem:[%s7790_s20 + $0x20] sm:$0xff] %vm10986_vm5, %v1614_v60  ;;  %v5281_v50 = vadd.f32 %v5280_v14, %v5279_v44  ;;  %vm10990_vm5 = vmmov %vm10977_vm0 }
 0x685   : > { %v5644_v20 = vpop.eup %5643  ;;  %v1445_v32 = vpop.xlane.xlu0 %1444 }
 0x686   : > { %v5283_v33 = vpop.f32.mrf.mxu1  ;;  %v1592_v61 = vmax.f32 %v1445_v32, 1e-20  ;;  %v1616_v6 = vmul.f32 %v5644_v20, %v5269_v4  ;;  %v5646_v36 = vpop.eup %5645 }
 0x687   : > { %v5284_v46 = vadd.f32 %v5283_v33, %v5282_v9 }
 0x688   : > { %v5285_v19 = vpop.f32.mrf.mxu1  ;;  %5655 = vrcp.f32 %v1592_v61  ;;  %1632 = vst.msk [vmem:[%s7790_s20 + $0x30] sm:$0xff] %vm10977_vm0, %v1616_v6 }
 0x689   : > { %v1621_v55 = vmul.f32 %v5646_v36, %v5284_v46  ;;  %v5648_v23 = vpop.eup %5647  ;;  %v1956_v27 = vpop.xlane.xlu0 %1955  ;;  %5657 = vrcp.f32 %v1593_v63 }
 0x68a   : > { %v5286_v59 = vpop.f32.mrf.mxu1  ;;  %2018 = vxpose.xlu1.b32.cont [9/16] (narrow) %v1956_v27, 8  ;;  %v1618_v30 = vmul.f32 %v5648_v23, %v5275_v7  ;;  %v10993_v27 = vld [vmem:[#allocation99_spill] sm:$0xff] }
 0x68b   : > { %1637 = vst.msk [vmem:[%s7790_s20 + $0x58] sm:$0xff] %vm10987_vm8, %v1621_v55  ;;  %v5287_v20 = vadd.f32 %v5286_v59, %v5285_v19  ;;  %vm10991_vm8 = vmmov %vm10977_vm0 }
 0x68c   : > { %v5288_v40 = vpop.f32.mrf.mxu1  ;;  %1634 = vst.msk [vmem:[%s7790_s20 + $0x40] sm:$0xff] %vm10988_vm4, %v1618_v30  ;;  %vm10992_vm4 = vmmov %vm10977_vm0  ;;  %v7839_v30 = vrot.slane %v7779_v58, %v10993_v27  ;;  %v10998_v58 = vld [vmem:[#allocation93_spill] sm:$0xff] }
 0x68d   : > { %v5650_v60 = vpop.eup %5649  ;;  %v1962_v63 = vpop.xlane.xlu0 %1961 }
 0x68e   : > { %v5289_v8 = vpop.f32.mrf.mxu1  ;;  %v1620_v56 = vmul.f32 %v5650_v60, %v5281_v50  ;;  %2019 = vxpose.xlu1.b32.cont [10/16] (narrow) %v7771_v57, 8  ;;  %v5652_v9 = vpop.eup %5651  ;;  %v10995_v50 = vld [vmem:[#allocation86_spill] sm:$0xff]  ;;  %v2072_v22 = vadd.f32 %v7839_v30, %v11005_v49 }
 0x68f   : > { %v5290_v52 = vadd.f32 %v5289_v8, %v5288_v40  ;;  %v2050_v60 = vadd.f32 %v7839_v30, %v10995_v50  ;;  %v5947_v8 = vld [vmem:[%s6924_s17 + $0x10] sm:$0xff] }
 0x690   : > { %v5291_v4 = vpop.f32.mrf.mxu1  ;;  %1636 = vst.msk [vmem:[%s7790_s20 + $0x50] sm:$0xff] %vm10989_vm9, %v1620_v56 }
 0x691   : > { %v1623_v33 = vmul.f32 %v5652_v9, %v5290_v52  ;;  %v5654_v32 = vpop.eup %5653  ;;  %v1968_v23 = vpop.xlane.xlu0 %1967  ;;  %v10996_v52 = vld [vmem:[#allocation87_spill] sm:$0xff]  ;;  %v10997_v9 = vld [vmem:[#allocation85_spill] sm:$0xff] }
 0x692   : > { %v5292_v44 = vpop.f32.mrf.mxu1  ;;  %v1622_v14 = vmul.f32 %v5654_v32, %v5287_v20  ;;  %2020 = vxpose.xlu1.b32.cont [11/16] (narrow) %v1962_v63, 8  ;;  %v10999_v32 = vld [vmem:[#allocation90_spill] sm:$0xff] }
 0x693   : > { %1639 = vst.msk [vmem:[%s7790_s20 + $0x68] sm:$0xff] %vm10990_vm5, %v1623_v33  ;;  %v5293_v61 = vadd.f32 %v5292_v44, %v5291_v4  ;;  %v2054_v4 = vadd.f32 %v7839_v30, %v10997_v9  ;;  %v2060_v33 = vadd.f32 %v7839_v30, %v10998_v58  ;;  %v2058_v63 = vadd.f32 %v7839_v30, %v10999_v32  ;;  %v11000_v44 = vld [vmem:[#allocation91_spill] sm:$0xff] }
 0x694   : > { %v5294_v46 = vpop.f32.mrf.mxu1  ;;  %1638 = vst.msk [vmem:[%s7790_s20 + $0x60] sm:$0xff] %vm10977_vm0, %v1622_v14  ;;  %v2064_v14 = vadd.f32 %v7839_v30, %v11000_v44 }
 0x695   : > { %v5656_v57 = vpop.eup %5655  ;;  %v1974_v59 = vpop.xlane.xlu0 %1973 }
 0x696   : > { %v5295_v6 = vpop.f32.mrf.mxu1  ;;  %v1624_v36 = vmul.f32 %v5656_v57, %v5293_v61  ;;  %2021 = vxpose.xlu1.b32.cont [12/16] (narrow) %v7773_v51, 8  ;;  %v5658_v19 = vpop.eup %5657  ;;  %v10994_v51 = vld [vmem:[#allocation89_spill] sm:$0xff]  ;;  %v5949_v61 = vld [vmem:[%s6924_s17 + $0x30] sm:$0xff]  ;;  %v2096_v24 = vmul.f32 %v5953_v34, %v2064_v14 }
 0x697   : > { %v5296_v7 = vadd.f32 %v5295_v6, %v5294_v46  ;;  %v2052_v40 = vadd.f32 %v7839_v30, %v10994_v51  ;;  %v11001_v6 = vld [vmem:[#allocation88_spill] sm:$0xff] }
 0x698   : > { %1640 = vst.msk [vmem:[%s7790_s20 + $0x70] sm:$0xff] %vm10991_vm8, %v1624_v36  ;;  %v2062_v36 = vadd.f32 %v7839_v30, %v11001_v6  ;;  %vm2128_vm0 = vcmp.gt.f32.partialorder %v2096_v24, 0.0 }
 0x699   : > { %v1625_v55 = vmul.f32 %v5658_v19, %v5296_v7  ;;  %v2084_v56 = vmul.f32 %v5947_v8, %v2052_v40  ;;  %v5950_v7 = vld [vmem:[%s6924_s17 + $0x20] sm:$0xff]  ;;  %v5951_v8 = vld [vmem:[%s6924_s17 + $0x50] sm:$0xff] }
 0x69a   : > { %2022 = vxpose.xlu1.b32.cont [13/16] (narrow) %v1968_v23, 8  ;;  %v2086_v19 = vmul.f32 %v5950_v7, %v2054_v4  ;;  %v5954_v4 = vld [vmem:[%s6924_s17 + $0x60] sm:$0xff] }
 0x69b   : > { %1641 = vst.msk [vmem:[%s7790_s20 + $0x78] sm:$0xff] %vm10992_vm4, %v1625_v55  ;;  %v2148_v46 = vmul.f32 0.2, %v2084_v56  ;;  %vm2116_vm9 = vcmp.gt.f32.partialorder %v2084_v56, 0.0  ;;  %v11002_v55 = vld [vmem:[#allocation98_spill] sm:$0xff]  ;;  %v2094_v7 = vmul.f32 %v5954_v4, %v2062_v36  ;;  %v11007_v36 = vld [vmem:[#allocation92_spill] sm:$0xff] }
 0x69c   : > { %v2068_v23 = vadd.f32 %v7839_v30, %v11002_v55  ;;  %vm11009_vm7 = vcmp.gt.f32.partialorder %v2086_v19, 0.0 }
 0x69d   : > { %v7868_v28 = vsel %vm2116_vm9, %v2084_v56, %v2148_v46  ;;  %vm11006_vm9 = vcmp.ne.f32.partialorder %v10857_v47, 0.0  ;;  %v2160_v46 = vmul.f32 0.2, %v2096_v24  ;;  %vm2126_vm4 = vcmp.gt.f32.partialorder %v2094_v7, 0.0 }
 0x69e   : > { %2023 = vxpose.xlu1.b32.cont [14/16] (narrow) %v7775_v45, 8  ;;  %v2056_v45 = vadd.f32 %v7839_v30, %v10996_v52  ;;  %11004 = vst [vmem:[#allocation76_spill] sm:$0xff] %v7868_v28  ;;  %v2100_v39 = vmul.f32 %v5955_v2, %v2068_v23  ;;  %v7881_v56 = vsel %vm11006_vm9, %v7868_v28, 0.0  ;;  %v2158_v2 = vmul.f32 0.2, %v2094_v7 }
 0x69f   : > { %v7897_v31 = vsel %vm2128_vm0, %v2096_v24, %v2160_v46 }
 0x6a0   : > { %v2088_v57 = vmul.f32 %v5949_v61, %v2056_v45  ;;  %v5952_v45 = vld [vmem:[%s6924_s17 + $0x40] sm:$0xff]  ;;  %vm2132_vm14 = vcmp.gt.f32.partialorder %v2100_v39, 0.0  ;;  %11013 = vst [vmem:[#allocation82_spill] sm:$0xff] %v7897_v31 }
 0x6a1   : > { %v2090_v61 = vmul.f32 %v5952_v45, %v2058_v63  ;;  %v2150_v63 = vmul.f32 0.2, %v2086_v19  ;;  %v2070_v45 = vadd.f32 %v7839_v30, %v11007_v36 }
 0x6a2   : > { %2024 = vxpose.xlu1.b32.cont [15/16] (narrow) %v1974_v59, 8  ;;  %v11003_v59 = vld [vmem:[#allocation94_spill] sm:$0xff]  ;;  %v2152_v43 = vmul.f32 0.2, %v2088_v57 }
 0x6a3   : > { %v2066_v40 = vadd.f32 %v7839_v30, %v11003_v59  ;;  %v2154_v14 = vmul.f32 0.2, %v2090_v61  ;;  %vm2122_vm8 = vcmp.gt.f32.partialorder %v2090_v61, 0.0  ;;  %v7890_v4 = vsel %vm11009_vm7, %v2086_v19, %v2150_v63 }
 0x6a4   : > { %vm11018_vm7 = vcmp.ne.f32.partialorder %v10868_v1, 0.0 }
 0x6a5   : > { %v7895_v28 = vsel %vm2122_vm8, %v2090_v61, %v2154_v14  ;;  %vm11021_vm8 = vcmp.ne.f32.partialorder %v10871_v25, 0.0 }
 0x6a6   : > { %2025 = vxpose.xlu1.b32.end [16/16] (narrow) %v7777_v10, 8  ;;  %v5948_v10 = vld [vmem:[%s6924_s17] sm:$0xff]  ;;  %11012 = vst [vmem:[#allocation84_spill] sm:$0xff] %v7895_v28 }
 0x6a7   : > { %v2082_v20 = vmul.f32 %v5948_v10, %v2050_v60  ;;  %v2092_v10 = vmul.f32 %v5951_v8, %v2060_v33  ;;  %v2098_v33 = vmul.f32 %v5956_v37, %v2066_v40  ;;  %v5957_v37 = vld [vmem:[%s6924_s17 + $0xb0] sm:$0xff]  ;;  %v2164_v40 = vmul.f32 0.2, %v2100_v39 }
 0x6a9   : > { %v2146_v60 = vmul.f32 0.2, %v2082_v20  ;;  %vm2114_vm5 = vcmp.gt.f32.partialorder %v2082_v20, 0.0  ;;  %v2156_v34 = vmul.f32 0.2, %v2092_v10  ;;  %vm11010_vm9 = vcmp.gt.f32.partialorder %v2092_v10, 0.0 }
 0x6aa   : > { %vm2130_vm2 = vcmp.gt.f32.partialorder %v2098_v33, 0.0  ;;  %v7918_v24 = vsel %vm2132_vm14, %v2100_v39, %v2164_v40  ;;  %vm11024_vm14 = vcmp.ne.f32.partialorder %v10884_v62, 0.0 }
 0x6ab   : > { %v7876_v8 = vsel %vm2114_vm5, %v2082_v20, %v2146_v60  ;;  %v2104_v20 = vmul.f32 %v5957_v37, %v2072_v22  ;;  %vm11008_vm5 = vcmp.gt.f32.partialorder %v2088_v57, 0.0  ;;  %v2162_v60 = vmul.f32 0.2, %v2098_v33  ;;  %11019 = vst [vmem:[#allocation58_spill] sm:$0xff] %v7918_v24 }
 0x6ac   : > { %v7887_v23 = vsel %vm11008_vm5, %v2088_v57, %v2152_v43  ;;  %v7893_v47 = vsel %vm11010_vm9, %v2092_v10, %v2156_v34  ;;  %v7900_v22 = vmul.f32 %v5958_v35, %v2070_v45  ;;  %v11014_v43 = vld [vmem:[#allocation101_spill] sm:$0xff]  ;;  %vm11015_vm5 = vcmp.ne.f32.partialorder %v10856_v26, 0.0  ;;  %v5964_v26 = vld [vmem:[%s6924_s17 + $0x28] sm:$0xff] }
 0x6ad   : > { %11011 = vst [vmem:[#allocation73_spill] sm:$0xff] %v7893_v47  ;;  %v2076_v57 = vadd.f32 %v7839_v30, %v11014_v43  ;;  %v7907_v19 = vsel %vm11015_vm5, %v7876_v8, 0.0  ;;  %v7909_v10 = vsel %vm2126_vm4, %v2094_v7, %v2158_v2  ;;  %v2168_v63 = vmul.f32 0.2, %v2104_v20  ;;  %v11017_v34 = vld [vmem:[#allocation97_spill] sm:$0xff] }
 0x6ae   : > { %11016 = vst [vmem:[#allocation61_spill] sm:$0xff] %v7909_v10  ;;  %v2074_v61 = vadd.f32 %v7839_v30, %v11017_v34  ;;  %v7916_v35 = vsel %vm11018_vm7, %v7887_v23, 0.0  ;;  %v7920_v14 = vsel %vm2130_vm2, %v2098_v33, %v2162_v60  ;;  %vm2136_vm0 = vcmp.gt.f32.partialorder %v2104_v20, 0.0  ;;  %v5959_v60 = vld [vmem:[%s6924_s17 + $0xd0] sm:$0xff] }
 0x6af   : > { %11020 = vst [vmem:[#allocation64_spill] sm:$0xff] %v7920_v14  ;;  %v7925_v7 = vsel %vm11021_vm8, %v7890_v4, 0.0  ;;  %vm11022_vm4 = vcmp.ne.f32.partialorder %v10876_v13, 0.0  ;;  %vm11023_vm9 = vcmp.ne.f32.partialorder %v10889_v17, 0.0  ;;  %v7940_v33 = vsel %vm11024_vm14, %v7897_v31, 0.0  ;;  %v5967_v31 = vld [vmem:[%s6924_s17 + $0x78] sm:$0xff] }
 0x6b0   : > { %v7930_v45 = vsel %vm11022_vm4, %v7893_v47, 0.0  ;;  %v7935_v39 = vsel %vm11023_vm9, %v7895_v28, 0.0  ;;  %vm11025_vm2 = vcmp.ne.f32.partialorder %v10899_v53, 0.0  ;;  %v7951_v40 = vmul.f32 0.2, %v7900_v22  ;;  %v5960_v53 = vld [vmem:[%s6924_s17 + $0xc0] sm:$0xff] }
 0x6b1   : > { %v7948_v37 = vsel %vm11025_vm2, %v7909_v10, 0.0  ;;  %v7954_v17 = vmul.f32 %v5959_v60, %v2076_v57  ;;  %vm11026_vm5 = vcmp.ne.f32.partialorder %v10891_v15, 0.0  ;;  %vm11027_vm7 = vcmp.ne.f32.partialorder %v10908_v48, 0.0  ;;  %v5968_v28 = vld [vmem:[%s6924_s17 + $0x68] sm:$0xff] }
 0x6b2   : > { %v7959_v62 = vsel %vm11026_vm5, %v7918_v24, 0.0  ;;  %v7969_v13 = vmul.f32 %v5960_v53, %v2074_v61  ;;  %v5962_v61 = vld [vmem:[%s6924_s17 + $0x8] sm:$0xff]  ;;  %vm11028_vm5 = vcmp.ne.f32.partialorder %v10852_v11, 0.0 }
 0x6b3   : > { %v5966_v24 = vld [vmem:[%s6924_s17 + $0x48] sm:$0xff] }
 0x6e6   : > { %v2026_v46 = vpop.trf.xlu1 }
 0x6e7   : > { %v7943_v2 = vrot.slane %v2026_v46, %v10993_v27  ;;  %v7964_v46 = vsel %vm11027_vm7, %v7920_v14, 0.0  ;;  %v7966_v27 = vsel %vm2136_vm0, %v2104_v20, %v2168_v63  ;;  %v5961_v63 = vld [vmem:[%s6924_s17 + $0x18] sm:$0xff]  ;;  %vm2134_vm0 = vcmp.gt.f32.partialorder %v7900_v22, 0.0 }
 0x6e8   : > { %vm11029_vm7 = vcmp.ne.f32.partialorder %v10851_v18, 0.0 }
 0x6e9   : > { %v2053_v57 = vadd.f32 %v7943_v2, %v10994_v51  ;;  %v2051_v60 = vadd.f32 %v7943_v2, %v10995_v50  ;;  %v2057_v15 = vadd.f32 %v7943_v2, %v10996_v52  ;;  %v2055_v48 = vadd.f32 %v7943_v2, %v10997_v9  ;;  %v5963_v9 = vld [vmem:[%s6924_s17 + $0x38] sm:$0xff] }
 0x6ea   : > { %v2061_v20 = vadd.f32 %v7943_v2, %v10998_v58  ;;  %v2059_v53 = vadd.f32 %v7943_v2, %v10999_v32  ;;  %v2065_v51 = vadd.f32 %v7943_v2, %v11000_v44  ;;  %v2063_v50 = vadd.f32 %v7943_v2, %v11001_v6  ;;  %v5965_v58 = vld [vmem:[%s6924_s17 + $0x58] sm:$0xff] }
 0x6eb   : > { %v2085_v52 = vmul.f32 %v5961_v63, %v2053_v57  ;;  %v2083_v25 = vmul.f32 %v5962_v61, %v2051_v60  ;;  %v2089_v1 = vmul.f32 %v5963_v9, %v2057_v15  ;;  %v2087_v14 = vmul.f32 %v5964_v26, %v2055_v48 }
 0x6ec   : > { %v2093_v32 = vmul.f32 %v5965_v58, %v2061_v20  ;;  %v2091_v10 = vmul.f32 %v5966_v24, %v2059_v53  ;;  %v2097_v44 = vmul.f32 %v5967_v31, %v2065_v51  ;;  %v2095_v47 = vmul.f32 %v5968_v28, %v2063_v50 }
 0x6ed   : > { %vm2117_vm8 = vcmp.gt.f32.partialorder %v2085_v52, 0.0  ;;  %v2149_v6 = vmul.f32 0.2, %v2085_v52  ;;  %vm2115_vm4 = vcmp.gt.f32.partialorder %v2083_v25, 0.0  ;;  %v2147_v57 = vmul.f32 0.2, %v2083_v25 }
 0x6ee   : > { %vm2121_vm9 = vcmp.gt.f32.partialorder %v2089_v1, 0.0  ;;  %v2153_v60 = vmul.f32 0.2, %v2089_v1  ;;  %vm2119_vm14 = vcmp.gt.f32.partialorder %v2087_v14, 0.0  ;;  %v2151_v15 = vmul.f32 0.2, %v2087_v14 }
 0x6ef   : > { %v7996_v63 = vsel %vm2117_vm8, %v2085_v52, %v2149_v6  ;;  %v7998_v26 = vsel %vm2115_vm4, %v2083_v25, %v2147_v57  ;;  %vm2125_vm2 = vcmp.gt.f32.partialorder %v2093_v32, 0.0  ;;  %v2157_v48 = vmul.f32 0.2, %v2093_v32 }
 0x6f0   : > { %v2213_v31 = vsel %vm11028_vm5, %v7996_v63, 0.0  ;;  %v2211_v28 = vsel %vm11029_vm7, %v7998_v26, 0.0  ;;  %v8006_v24 = vsel %vm2121_vm9, %v2089_v1, %v2153_v60  ;;  %v8008_v20 = vsel %vm2119_vm14, %v2087_v14, %v2151_v15  ;;  %v11034_v60 = vld [vmem:[#allocation125_spill] sm:$0xff] }
 0x6f1   : > { %v2245_v53 = vmax.f32 %v7881_v56, %v2213_v31  ;;  %v2242_v51 = vmax.f32 %v7907_v19, %v2211_v28  ;;  %vm11030_vm8 = vcmp.ne.f32.partialorder %v7069_v29, 0.0  ;;  %vm11031_vm4 = vcmp.ne.f32.partialorder %v7077_v0, 0.0 }
 0x6f2   : > { %v2217_v25 = vsel %vm11030_vm8, %v8006_v24, 0.0  ;;  %v2215_v50 = vsel %vm11031_vm4, %v8008_v20, 0.0  ;;  %v8019_v61 = vsel %vm2125_vm2, %v2093_v32, %v2157_v48  ;;  %vm2123_vm9 = vcmp.gt.f32.partialorder %v2091_v10, 0.0  ;;  %v5969_v48 = vld [vmem:[%s6924_s17 + $0x98] sm:$0xff] }
 0x6f3   : > { %v2251_v52 = vmax.f32 %v7916_v35, %v2217_v25  ;;  %vm11032_vm14 = vcmp.ne.f32.partialorder %v10912_v54, 0.0  ;;  %2246 = vmax.xlane.f32.xlu1 %v2245_v53  ;;  %2243 = vmax.xlane.f32.xlu0 %v2242_v51  ;;  %v2248_v56 = vmax.f32 %v7925_v7, %v2215_v50  ;;  %v2155_v19 = vmul.f32 0.2, %v2091_v10  ;;  %v5970_v53 = vld [vmem:[%s6924_s17 + $0x88] sm:$0xff] }
 0x6f4   : > { %v8024_v1 = vsel %vm11032_vm14, %v7966_v27, 0.0  ;;  %vm2129_vm5 = vcmp.gt.f32.partialorder %v2097_v44, 0.0  ;;  %v2161_v14 = vmul.f32 0.2, %v2097_v44  ;;  %vm11033_vm7 = vcmp.ne.f32.partialorder %v7126_v5, 0.0 }
 0x6f5   : > { %v2221_v35 = vsel %vm11033_vm7, %v8019_v61, 0.0  ;;  %vm2127_vm2 = vcmp.gt.f32.partialorder %v2095_v47, 0.0  ;;  %v2159_v9 = vmul.f32 0.2, %v2095_v47  ;;  %v2069_v58 = vadd.f32 %v7943_v2, %v11002_v55 }
 0x6f6   : > { %v8032_v32 = vsel %vm2123_vm9, %v2091_v10, %v2155_v19  ;;  %v8034_v6 = vsel %vm2129_vm5, %v2097_v44, %v2161_v14  ;;  %v2067_v7 = vadd.f32 %v7943_v2, %v11003_v59  ;;  %v2073_v57 = vadd.f32 %v7943_v2, %v11005_v49  ;;  %v11036_v59 = vld [vmem:[#allocation126_spill] sm:$0xff] }
 0x6f7   : > { %vm11035_vm8 = vcmp.ne.f32.partialorder %v11034_v60, 0.0  ;;  %v2101_v31 = vmul.f32 %v5969_v48, %v2069_v58  ;;  %v8048_v55 = vsel %vm2134_vm0, %v7900_v22, %v7951_v40  ;;  %v8051_v10 = vmul.f32 0.2, %v7954_v17  ;;  %2252 = vmax.xlane.f32.xlu1 %v2251_v52  ;;  %2249 = vmax.xlane.f32.xlu0 %v2248_v56  ;;  %v5971_v40 = vld [vmem:[%s6924_s17 + $0xb8] sm:$0xff]  ;;  %v11038_v56 = vld [vmem:[#allocation127_spill] sm:$0xff]  ;;  %v11040_v48 = vld [vmem:[#allocation100_spill] sm:$0xff] }
 0x6f8   : > { %v2219_v15 = vsel %vm11035_vm8, %v8032_v32, 0.0  ;;  %v2257_v49 = vmax.f32 %v7930_v45, %v2221_v35  ;;  %vm11037_vm4 = vcmp.ne.f32.partialorder %v11036_v59, 0.0  ;;  %v8058_v28 = vsel %vm2127_vm2, %v2095_v47, %v2159_v9  ;;  %v5972_v58 = vld [vmem:[%s6924_s17 + $0xa8] sm:$0xff] }
 0x6f9   : > { %v2225_v44 = vsel %vm11037_vm4, %v8034_v6, 0.0  ;;  %v2099_v51 = vmul.f32 %v5970_v53, %v2067_v7  ;;  %v2254_v25 = vmax.f32 %v7935_v39, %v2219_v15  ;;  %vm2133_vm0 = vcmp.gt.f32.partialorder %v2101_v31, 0.0  ;;  %v5973_v7 = vld [vmem:[%s6924_s17 + $0xd8] sm:$0xff]  ;;  %v11041_v53 = vld [vmem:[#allocation96_spill] sm:$0xff] }
 0x6fa   : > { %v2165_v22 = vmul.f32 0.2, %v2101_v31  ;;  %v2105_v50 = vmul.f32 %v5971_v40, %v2073_v57  ;;  %vm2140_vm9 = vcmp.gt.f32.partialorder %v7954_v17, 0.0  ;;  %v2071_v52 = vadd.f32 %v7943_v2, %v11007_v36 }
 0x6fb   : > { %vm2131_vm14 = vcmp.gt.f32.partialorder %v2099_v51, 0.0  ;;  %v2163_v45 = vmul.f32 0.2, %v2099_v51  ;;  %v2077_v47 = vadd.f32 %v7943_v2, %v11014_v43  ;;  %vm11039_vm5 = vcmp.ne.f32.partialorder %v11038_v56, 0.0  ;;  %2258 = vmax.xlane.f32.xlu1 %v2257_v49  ;;  %2255 = vmax.xlane.f32.xlu0 %v2254_v25  ;;  %v5974_v43 = vld [vmem:[%s6924_s17 + $0xc8] sm:$0xff] }
 0x6fc   : > { %v2223_v39 = vsel %vm11039_vm5, %v8058_v28, 0.0  ;;  %v8071_v19 = vsel %vm2133_vm0, %v2101_v31, %v2165_v22  ;;  %v2169_v14 = vmul.f32 0.2, %v2105_v50  ;;  %v2075_v35 = vadd.f32 %v7943_v2, %v11017_v34 }
 0x6fd   : > { %v8075_v9 = vsel %vm2131_vm14, %v2099_v51, %v2163_v45  ;;  %vm2137_vm7 = vcmp.gt.f32.partialorder %v2105_v50, 0.0  ;;  %v2103_v36 = vmul.f32 %v5972_v58, %v2071_v52  ;;  %v2109_v57 = vmul.f32 %v5973_v7, %v2077_v47  ;;  %v5976_v58 = vld [vmem:[%s6924_s17 + $0xf8] sm:$0xff]  ;;  %v5977_v7 = vld [vmem:[%s6924_s17 + $0xe0] sm:$0xff] }
 0x6fe   : > { %v2107_v15 = vmul.f32 %v5974_v43, %v2075_v35  ;;  %vm2138_vm2 = vcmp.gt.f32.partialorder %v7969_v13, 0.0  ;;  %v2080_v31 = vadd.f32 %v7839_v30, %v11040_v48  ;;  %v2078_v22 = vadd.f32 %v7839_v30, %v11041_v53 }
 0x6ff   : > { %v2263_v34 = vmax.f32 %v7940_v33, %v2225_v44  ;;  %v2260_v49 = vmax.f32 %v7948_v37, %v2223_v39  ;;  %vm2135_vm8 = vcmp.gt.f32.partialorder %v2103_v36, 0.0  ;;  %v2167_v51 = vmul.f32 0.2, %v2103_v36 }
 0x700   : > { %vm11042_vm4 = vcmp.ne.f32.partialorder %v7208_v21, 0.0  ;;  %vm11043_vm0 = vcmp.ne.f32.partialorder %v10910_v42, 0.0  ;;  %v8094_v45 = vsel %vm2137_vm7, %v2105_v50, %v2169_v14  ;;  %v2173_v30 = vmul.f32 0.2, %v2109_v57  ;;  %v5975_v50 = vld [vmem:[%s6924_s17 + $0xf0] sm:$0xff] }
 0x701   : > { %v2229_v25 = vsel %vm11042_vm4, %v8071_v19, 0.0  ;;  %v2227_v40 = vsel %vm11043_vm0, %v8075_v9, 0.0  ;;  %2264 = vmax.xlane.f32.xlu1 %v2263_v34  ;;  %2261 = vmax.xlane.f32.xlu0 %v2260_v49  ;;  %v8096_v33 = vsel %vm2135_vm8, %v2103_v36, %v2167_v51  ;;  %v2171_v37 = vmul.f32 0.2, %v2107_v15 }
 0x702   : > { %v2081_v44 = vadd.f32 %v7943_v2, %v11040_v48  ;;  %v2079_v52 = vadd.f32 %v7943_v2, %v11041_v53  ;;  %vm2141_vm14 = vcmp.gt.f32.partialorder %v2109_v57, 0.0  ;;  %vm2139_vm5 = vcmp.gt.f32.partialorder %v2107_v15, 0.0  ;;  %v5978_v53 = vld [vmem:[%s6924_s17 + $0xe8] sm:$0xff] }
 0x703   : > { %v2170_v47 = vmul.f32 0.2, %v7969_v13  ;;  %v2112_v39 = vmul.f32 %v5975_v50, %v2080_v31  ;;  %v2269_v14 = vmax.f32 %v7959_v62, %v2229_v25  ;;  %v2266_v35 = vmax.f32 %v7964_v46, %v2227_v40 }
 0x704   : > { %v2113_v36 = vmul.f32 %v5976_v58, %v2081_v44  ;;  %v2110_v43 = vmul.f32 %v5977_v7, %v2078_v22  ;;  %vm11044_vm7 = vcmp.ne.f32.partialorder %v10914_v38, 0.0  ;;  %vm11045_vm8 = vcmp.ne.f32.partialorder %v7026_v41, 0.0  ;;  %v11053_v7 = vld [vmem:[#allocation135_spill] sm:$0xff] }
 0x705   : > { %v2233_v48 = vsel %vm11044_vm7, %v8094_v45, 0.0  ;;  %v2230_v2 = vsel %vm11045_vm8, %v8048_v55, 0.0  ;;  %vm11046_vm4 = vcmp.ne.f32.partialorder %v7243_v3, 0.0  ;;  %v2111_v62 = vmul.f32 %v5978_v53, %v2079_v52  ;;  %2270 = vmax.xlane.f32.xlu1 %v2269_v14  ;;  %2267 = vmax.xlane.f32.xlu0 %v2266_v35  ;;  %v11051_v52 = vld [vmem:[#allocation123_spill] sm:$0xff] }
 0x706   : > { %v2231_v31 = vsel %vm11046_vm4, %v8096_v33, 0.0  ;;  %v8122_v46 = vsel %vm2140_vm9, %v7954_v17, %v8051_v10  ;;  %v8125_v22 = vsel %vm2141_vm14, %v2109_v57, %v2173_v30  ;;  %v8128_v34 = vsel %vm2139_vm5, %v2107_v15, %v2171_v37 }
 0x707   : > { %v2177_v49 = vmul.f32 0.2, %v2113_v36  ;;  %v8133_v51 = vsel %vm2138_vm2, %v7969_v13, %v2170_v47  ;;  %vm2145_vm0 = vcmp.gt.f32.partialorder %v2113_v36, 0.0  ;;  %vm2143_vm7 = vcmp.gt.f32.partialorder %v2111_v62, 0.0 }
 0x708   : > { %v2175_v25 = vmul.f32 0.2, %v2111_v62  ;;  %v2275_v40 = vmax.f32 %v8024_v1, %v2233_v48  ;;  %v2272_v44 = vmax.f32 %v2230_v2, %v2231_v31  ;;  %v2176_v17 = vmul.f32 0.2, %v2112_v39  ;;  %v11049_v1 = vld [vmem:[#allocation118_spill] sm:$0xff]  ;;  %v11055_v48 = vld [vmem:[#allocation137_spill] sm:$0xff] }
 0x709   : > { %v2174_v10 = vmul.f32 0.2, %v2110_v43  ;;  %vm11047_vm9 = vcmp.ne.f32.partialorder %v7268_v16, 0.0  ;;  %vm11048_vm14 = vcmp.ne.f32.partialorder %v7276_v12, 0.0  ;;  %vm2144_vm5 = vcmp.gt.f32.partialorder %v2112_v39, 0.0  ;;  %v11057_v31 = vld [vmem:[#allocation134_spill] sm:$0xff] }
 0x70a   : > { %v2237_v57 = vsel %vm11047_vm9, %v8125_v22, 0.0  ;;  %v2235_v15 = vsel %vm11048_vm14, %v8128_v34, 0.0  ;;  %vm2142_vm8 = vcmp.gt.f32.partialorder %v2110_v43, 0.0  ;;  %2276 = vmax.xlane.f32.xlu1 %v2275_v40  ;;  %2273 = vmax.xlane.f32.xlu0 %v2272_v44  ;;  %v8142_v13 = vsel %vm2145_vm0, %v2113_v36, %v2177_v49  ;;  %v11061_v44 = vld [vmem:[#allocation76_spill] sm:$0xff] }
 0x70b   : > { %v8144_v30 = vsel %vm2143_vm7, %v2111_v62, %v2175_v25  ;;  %vm11050_vm2 = vcmp.ne.f32.partialorder %v11049_v1, 0.0  ;;  %vm11052_vm4 = vcmp.ne.f32.partialorder %v11051_v52, 0.0  ;;  %v8152_v35 = vsel %vm2144_vm5, %v2112_v39, %v2176_v17  ;;  %v11059_v62 = vld [vmem:[#allocation136_spill] sm:$0xff] }
 0x70c   : > { %v2236_v37 = vsel %vm11050_vm2, %v8122_v46, 0.0  ;;  %v2234_v47 = vsel %vm11052_vm4, %v8133_v51, 0.0  ;;  %v8154_v58 = vsel %vm2142_vm8, %v2110_v43, %v2174_v10  ;;  %vm11054_vm0 = vcmp.ne.f32.partialorder %v11053_v7, 0.0 }
 0x70d   : > { %v2281_v50 = vmax.f32 %v2236_v37, %v2237_v57  ;;  %v2278_v14 = vmax.f32 %v2234_v47, %v2235_v15  ;;  %v2241_v36 = vsel %vm11054_vm0, %v8142_v13, 0.0  ;;  %vm11056_vm7 = vcmp.ne.f32.partialorder %v11055_v48, 0.0 }
 0x70e   : > { %v2239_v2 = vsel %vm11056_vm7, %v8144_v30, 0.0  ;;  %vm11058_vm9 = vcmp.ne.f32.partialorder %v11057_v31, 0.0  ;;  %vm11060_vm14 = vcmp.ne.f32.partialorder %v11059_v62, 0.0  ;;  %vm11070_vm8 = vcmp.ne.f32.partialorder %v10852_v11, 0.0 }
 0x70f   : > { %2282 = vmax.xlane.f32.xlu1 %v2281_v50  ;;  %2279 = vmax.xlane.f32.xlu0 %v2278_v14  ;;  %v2240_v53 = vsel %vm11058_vm9, %v8152_v35, 0.0  ;;  %v2238_v39 = vsel %vm11060_vm14, %v8154_v58, 0.0  ;;  %vm11074_vm4 = vcmp.ne.f32.partialorder %v10851_v18, 0.0  ;;  %vm11077_vm7 = vcmp.ne.f32.partialorder %v7069_v29, 0.0 }
 0x710   : > { %v2287_v43 = vmax.f32 %v2240_v53, %v2241_v36  ;;  %v2284_v49 = vmax.f32 %v2238_v39, %v2239_v2  ;;  %vm11080_vm14 = vcmp.ne.f32.partialorder %v7077_v0, 0.0 }
 0x713   : > { %2288 = vmax.xlane.f32.xlu1 %v2287_v43  ;;  %2285 = vmax.xlane.f32.xlu0 %v2284_v49 }
 0x77c   : > { %v2247_v25 = vpop.xlane.xlu1 %2246  ;;  %v2244_v40 = vpop.xlane.xlu0 %2243 }
 0x77d   : > { %v2292_v17 = vsub.f32 %v11061_v44, %v2247_v25  ;;  %v2293_v10 = vsub.f32 %v7996_v63, %v2247_v25  ;;  %v2290_v57 = vsub.f32 %v7876_v8, %v2244_v40  ;;  %v2291_v15 = vsub.f32 %v7998_v26, %v2244_v40  ;;  %v11062_v40 = vld [vmem:[#allocation73_spill] sm:$0xff] }
 0x77f   : > { %v2326_v37 = vmul.f32 1.442695, %v2292_v17  ;;  %v2328_v47 = vmul.f32 1.442695, %v2293_v10  ;;  %v2322_v50 = vmul.f32 1.442695, %v2290_v57 }
 0x780   : > { %v2324_v14 = vmul.f32 1.442695, %v2291_v15  ;;  %v2253_v48 = vpop.xlane.xlu1 %2252  ;;  %v2250_v62 = vpop.xlane.xlu0 %2249  ;;  %v11063_v17 = vld [vmem:[#allocation84_spill] sm:$0xff] }
 0x781   : > { %5659 = vpow2.f32 %v2326_v37  ;;  %v2296_v36 = vsub.f32 %v7887_v23, %v2253_v48  ;;  %v2297_v2 = vsub.f32 %v8006_v24, %v2253_v48  ;;  %v2294_v53 = vsub.f32 %v7890_v4, %v2250_v62  ;;  %v11064_v37 = vld [vmem:[#allocation82_spill] sm:$0xff] }
 0x782   : > { %5661 = vpow2.f32 %v2328_v47  ;;  %v2295_v63 = vsub.f32 %v8008_v20, %v2250_v62 }
 0x783   : > { %5663 = vpow2.f32 %v2322_v50  ;;  %v2334_v8 = vmul.f32 1.442695, %v2296_v36  ;;  %v2336_v39 = vmul.f32 1.442695, %v2297_v2  ;;  %v2330_v26 = vmul.f32 1.442695, %v2294_v53 }
 0x784   : > { %5665 = vpow2.f32 %v2324_v14  ;;  %v2332_v43 = vmul.f32 1.442695, %v2295_v63  ;;  %v2259_v49 = vpop.xlane.xlu1 %2258  ;;  %v2256_v25 = vpop.xlane.xlu0 %2255  ;;  %v11065_v14 = vld [vmem:[#allocation61_spill] sm:$0xff] }
 0x785   : > { %5667 = vpow2.f32 %v2334_v8  ;;  %v2300_v44 = vsub.f32 %v11062_v40, %v2259_v49  ;;  %v2301_v23 = vsub.f32 %v8019_v61, %v2259_v49  ;;  %v2298_v24 = vsub.f32 %v11063_v17, %v2256_v25 }
 0x786   : > { %5669 = vpow2.f32 %v2336_v39  ;;  %v2299_v4 = vsub.f32 %v8032_v32, %v2256_v25  ;;  %v11067_v25 = vld [vmem:[#allocation64_spill] sm:$0xff] }
 0x787   : > { %5671 = vpow2.f32 %v2330_v26  ;;  %v2342_v20 = vmul.f32 1.442695, %v2300_v44  ;;  %v2344_v48 = vmul.f32 1.442695, %v2301_v23  ;;  %v2338_v62 = vmul.f32 1.442695, %v2298_v24 }
 0x788   : > { %5673 = vpow2.f32 %v2332_v43  ;;  %v2340_v10 = vmul.f32 1.442695, %v2299_v4  ;;  %v11066_v26 = vld [vmem:[#allocation58_spill] sm:$0xff] }
 0x789   : > { %5675 = vpow2.f32 %v2342_v20 }
 0x78a   : > { %v2265_v57 = vpop.xlane.xlu1 %2264  ;;  %v2262_v15 = vpop.xlane.xlu0 %2261  ;;  %5677 = vpow2.f32 %v2344_v48 }
 0x78b   : > { %v2304_v47 = vsub.f32 %v11064_v37, %v2265_v57  ;;  %v2305_v50 = vsub.f32 %v8034_v6, %v2265_v57  ;;  %v2302_v61 = vsub.f32 %v11065_v14, %v2262_v15  ;;  %v2303_v36 = vsub.f32 %v8058_v28, %v2262_v15 }
 0x78c   : > { %5679 = vpow2.f32 %v2338_v62 }
 0x78d   : > { %v2350_v32 = vmul.f32 1.442695, %v2304_v47  ;;  %v2352_v2 = vmul.f32 1.442695, %v2305_v50  ;;  %v2346_v53 = vmul.f32 1.442695, %v2302_v61  ;;  %5681 = vpow2.f32 %v2340_v10 }
 0x78e   : > { %v2348_v63 = vmul.f32 1.442695, %v2303_v36  ;;  %v2271_v8 = vpop.xlane.xlu1 %2270  ;;  %v2268_v39 = vpop.xlane.xlu0 %2267 }
 0x78f   : > { %5683 = vpow2.f32 %v2350_v32  ;;  %v2308_v43 = vsub.f32 %v11066_v26, %v2271_v8  ;;  %v2309_v49 = vsub.f32 %v8071_v19, %v2271_v8  ;;  %v2306_v6 = vsub.f32 %v11067_v25, %v2268_v39  ;;  %v8187_v40 = vpop.eup %5659  ;;  %v11068_v19 = vld [vmem:[#allocation102_spill] sm:$0xff] }
 0x790   : > { %5685 = vpow2.f32 %v2352_v2  ;;  %v2307_v28 = vsub.f32 %v8075_v9, %v2268_v39  ;;  %v5662_v44 = vpop.eup %5661  ;;  %vm11069_vm5 = vcmp.ne.f32.partialorder %v11068_v19, 0.0 }
 0x791   : > { %5687 = vpow2.f32 %v2346_v53  ;;  %v2358_v23 = vmul.f32 1.442695, %v2308_v43  ;;  %v2360_v17 = vmul.f32 1.442695, %v2309_v49  ;;  %v2354_v24 = vmul.f32 1.442695, %v2306_v6  ;;  %v8190_v4 = vpop.eup %5663 }
 0x792   : > { %5689 = vpow2.f32 %v2348_v63  ;;  %v2356_v20 = vmul.f32 1.442695, %v2307_v28  ;;  %v2388_v10 = vsel %vm11069_vm5, %v8187_v40, 0.0  ;;  %v2389_v57 = vsel %vm11070_vm8, %v5662_v44, 0.0  ;;  %v5666_v15 = vpop.eup %5665 }
 0x793   : > { %v2277_v48 = vpop.xlane.xlu1 %2276  ;;  %v2274_v62 = vpop.xlane.xlu0 %2273  ;;  %5691 = vpow2.f32 %v2358_v23  ;;  %v5059_v61 = vpack.c.bf16 %v5662_v44, %v5666_v15  ;;  %v2421_v36 = vadd.f32 %v2389_v57, %v2388_v10  ;;  %v2387_v39 = vsel %vm11074_vm4, %v5666_v15, 0.0 }
 0x794   : > { %v2312_v9 = vsub.f32 %v7966_v27, %v2277_v48  ;;  %v2313_v37 = vsub.f32 %v8094_v45, %v2277_v48  ;;  %v2310_v47 = vsub.f32 %v8048_v55, %v2274_v62  ;;  %v8200_v50 = vpop.eup %5667  ;;  %5693 = vpow2.f32 %v2360_v17  ;;  %v11072_v55 = vld [vmem:[#allocation103_spill] sm:$0xff]  ;;  %v11143_v45 = vld [vmem:[#allocation66_spill] sm:$0xff] }
 0x795   : > { %v2311_v14 = vsub.f32 %v8096_v33, %v2274_v62  ;;  %v8203_v32 = vpop.eup %5669  ;;  %5695 = vpow2.f32 %v2354_v24  ;;  %5060 = vmatprep.mubr.msk.bf16.mxu0 %vm7450_vm6, %v5059_v61  ;;  %2422 = vadd.xlane.f32.xlu1 %v2421_v36  ;;  %vm11073_vm2 = vcmp.ne.f32.partialorder %v11072_v55, 0.0  ;;  %v11075_v24 = vld [vmem:[#allocation104_spill] sm:$0xff]  ;;  %vm11083_vm8 = vcmp.ne.f32.partialorder %v7126_v5, 0.0 }
 0x796   : > { %v2366_v2 = vmul.f32 1.442695, %v2312_v9  ;;  %v2368_v53 = vmul.f32 1.442695, %v2313_v37  ;;  %v2362_v63 = vmul.f32 1.442695, %v2310_v47  ;;  %v8205_v8 = vpop.eup %5671  ;;  %5697 = vpow2.f32 %v2356_v20 }
 0x797   : > { %v2364_v27 = vmul.f32 1.442695, %v2311_v14  ;;  %v2386_v33 = vsel %vm11073_vm2, %v8190_v4, 0.0  ;;  %v8214_v49 = vpop.eup %5673  ;;  %vm11076_vm0 = vcmp.ne.f32.partialorder %v11075_v24, 0.0  ;;  %v11078_v47 = vld [vmem:[#allocation105_spill] sm:$0xff]  ;;  %vm11086_vm4 = vcmp.ne.f32.partialorder %v11034_v60, 0.0 }
 0x798   : > { %v2283_v26 = vpop.xlane.xlu1 %2282  ;;  %v2280_v43 = vpop.xlane.xlu0 %2279  ;;  %5699 = vpow2.f32 %v2366_v2  ;;  %v2418_v25 = vadd.f32 %v2387_v39, %v2386_v33  ;;  %v2392_v20 = vsel %vm11076_vm0, %v8200_v50, 0.0  ;;  %vm11079_vm9 = vcmp.ne.f32.partialorder %v11078_v47, 0.0  ;;  %v11140_v60 = vld [vmem:[#allocation60_spill] sm:$0xff] }
 0x799   : > { %v2316_v6 = vsub.f32 %v8122_v46, %v2283_v26  ;;  %v2317_v28 = vsub.f32 %v8125_v22, %v2283_v26  ;;  %v8218_v44 = vpop.eup %5675  ;;  %5701 = vpow2.f32 %v2368_v53  ;;  %v2314_v23 = vsub.f32 %v8133_v51, %v2280_v43 }
 0x79a   : > { %v2315_v17 = vsub.f32 %v8128_v34, %v2280_v43  ;;  %v8225_v48 = vpop.eup %5677  ;;  %5703 = vpow2.f32 %v2362_v63  ;;  %2419 = vadd.xlane.f32.xlu0 %v2418_v25  ;;  %v2393_v46 = vsel %vm11077_vm7, %v8203_v32, 0.0  ;;  %v2390_v14 = vsel %vm11079_vm9, %v8205_v8, 0.0  ;;  %v11081_v43 = vld [vmem:[#allocation106_spill] sm:$0xff] }
 0x79b   : > { %v2374_v62 = vmul.f32 1.442695, %v2316_v6  ;;  %v2376_v10 = vmul.f32 1.442695, %v2317_v28  ;;  %v8230_v22 = vpop.eup %5679  ;;  %5705 = vpow2.f32 %v2364_v27  ;;  %v2370_v51 = vmul.f32 1.442695, %v2314_v23 }
 0x79c   : > { %v2372_v57 = vmul.f32 1.442695, %v2315_v17  ;;  %v2427_v34 = vadd.f32 %v2393_v46, %v2392_v20  ;;  %v2289_v15 = vpop.xlane.xlu1 %2288  ;;  %v2286_v9 = vpop.xlane.xlu0 %2285  ;;  %v2391_v61 = vsel %vm11080_vm14, %v8214_v49, 0.0  ;;  %vm11082_vm5 = vcmp.ne.f32.partialorder %v11081_v43, 0.0  ;;  %v11087_v46 = vld [vmem:[#allocation108_spill] sm:$0xff] }
 0x79d   : > { %v8232_v37 = vpop.eup %5681  ;;  %5707 = vpow2.f32 %v2374_v62  ;;  %v2320_v36 = vsub.f32 %v8152_v35, %v2289_v15  ;;  %v2424_v53 = vadd.f32 %v2391_v61, %v2390_v14  ;;  %v2321_v63 = vsub.f32 %v8142_v13, %v2289_v15  ;;  %v11090_v14 = vld [vmem:[#allocation109_spill] sm:$0xff] }
 0x79e   : > { %v8241_v2 = vpop.eup %5683  ;;  %5709 = vpow2.f32 %v2376_v10  ;;  %2428 = vadd.xlane.f32.xlu1 %v2427_v34  ;;  %v2318_v27 = vsub.f32 %v8154_v58, %v2286_v9  ;;  %v2319_v26 = vsub.f32 %v8144_v30, %v2286_v9  ;;  %v2396_v25 = vsel %vm11082_vm5, %v8218_v44, 0.0  ;;  %v11084_v30 = vld [vmem:[#allocation107_spill] sm:$0xff] }
 0x79f   : > { %v8245_v33 = vpop.eup %5685  ;;  %5711 = vpow2.f32 %v2370_v51  ;;  %v2382_v39 = vmul.f32 1.442695, %v2320_v36  ;;  %2425 = vadd.xlane.f32.xlu0 %v2424_v53  ;;  %v2384_v6 = vmul.f32 1.442695, %v2321_v63  ;;  %v2397_v13 = vsel %vm11083_vm8, %v8225_v48, 0.0  ;;  %v11093_v63 = vld [vmem:[#allocation77_spill] sm:$0xff] }
 0x7a0   : > { %v8251_v35 = vpop.eup %5687  ;;  %5713 = vpow2.f32 %v2372_v57  ;;  %v2378_v28 = vmul.f32 1.442695, %v2318_v27  ;;  %v2380_v23 = vmul.f32 1.442695, %v2319_v26  ;;  %v2433_v17 = vadd.f32 %v2397_v13, %v2396_v25 }
 0x7a1   : > { %v8256_v58 = vpop.eup %5689  ;;  %5715 = vpow2.f32 %v2382_v39  ;;  %vm11085_vm2 = vcmp.ne.f32.partialorder %v11084_v30, 0.0  ;;  %v2395_v10 = vsel %vm11086_vm4, %v8232_v37, 0.0  ;;  %vm11088_vm0 = vcmp.ne.f32.partialorder %v11087_v46, 0.0  ;;  %v11137_v46 = vld [vmem:[#allocation59_spill] sm:$0xff]  ;;  %v11139_v30 = vld [vmem:[#allocation56_spill] sm:$0xff] }
 0x7a2   : > { %v2394_v20 = vsel %vm11085_vm2, %v8230_v22, 0.0  ;;  %v8261_v62 = vpop.eup %5691  ;;  %5717 = vpow2.f32 %v2384_v6  ;;  %v2400_v51 = vsel %vm11088_vm0, %v8241_v2, 0.0  ;;  %vm11089_vm7 = vcmp.ne.f32.partialorder %v11036_v59, 0.0  ;;  %2434 = vadd.xlane.f32.xlu1 %v2433_v17  ;;  %v11096_v6 = vld [vmem:[#allocation110_spill] sm:$0xff]  ;;  %v11138_v59 = vld [vmem:[#allocation67_spill] sm:$0xff] }
 0x7a3   : > { %v2401_v57 = vsel %vm11089_vm7, %v8245_v33, 0.0  ;;  %v8272_v34 = vpop.eup %5693  ;;  %5719 = vpow2.f32 %v2378_v28  ;;  %v2430_v15 = vadd.f32 %v2395_v10, %v2394_v20  ;;  %vm11091_vm9 = vcmp.ne.f32.partialorder %v11090_v14, 0.0  ;;  %v11132_v14 = vld [vmem:[#allocation51_spill] sm:$0xff] }
 0x7a4   : > { %v2439_v9 = vadd.f32 %v2401_v57, %v2400_v51  ;;  %v2398_v61 = vsel %vm11091_vm9, %v8251_v35, 0.0  ;;  %v8277_v36 = vpop.eup %5695  ;;  %5721 = vpow2.f32 %v2380_v23  ;;  %vm11092_vm14 = vcmp.ne.f32.partialorder %v11038_v56, 0.0  ;;  %v11131_v56 = vld [vmem:[#allocation49_spill] sm:$0xff] }
 0x7a5   : > { %v2399_v53 = vsel %vm11092_vm14, %v8256_v58, 0.0  ;;  %vm11094_vm5 = vcmp.ne.f32.partialorder %v11093_v63, 0.0  ;;  %vm11095_vm8 = vcmp.ne.f32.partialorder %v7208_v21, 0.0  ;;  %v8288_v26 = vpop.eup %5697  ;;  %2431 = vadd.xlane.f32.xlu0 %v2430_v15  ;;  %vm11097_vm2 = vcmp.ne.f32.partialorder %v11096_v6, 0.0  ;;  %v11129_v63 = vld [vmem:[#allocation50_spill] sm:$0xff]  ;;  %v11130_v21 = vld [vmem:[#allocation52_spill] sm:$0xff] }
 0x7a6   : > { %v2404_v27 = vsel %vm11094_vm5, %v8261_v62, 0.0  ;;  %v2405_v39 = vsel %vm11095_vm8, %v8272_v34, 0.0  ;;  %v2436_v25 = vadd.f32 %v2399_v53, %v2398_v61  ;;  %v2402_v28 = vsel %vm11097_vm2, %v8277_v36, 0.0  ;;  %v8295_v23 = vpop.eup %5699  ;;  %2440 = vadd.xlane.f32.xlu1 %v2439_v9 }
 0x7a7   : > { %vm11098_vm4 = vcmp.ne.f32.partialorder %v10910_v42, 0.0  ;;  %v8306_v57 = vpop.eup %5701  ;;  %v2445_v15 = vadd.f32 %v2405_v39, %v2404_v27  ;;  %vm11099_vm0 = vcmp.ne.f32.partialorder %v10912_v54, 0.0  ;;  %vm11100_vm7 = vcmp.ne.f32.partialorder %v10914_v38, 0.0 }
 0x7a8   : > { %v2403_v17 = vsel %vm11098_vm4, %v8288_v26, 0.0  ;;  %v2408_v61 = vsel %vm11099_vm0, %v8295_v23, 0.0  ;;  %v8315_v13 = vpop.eup %5703  ;;  %v2409_v51 = vsel %vm11100_vm7, %v8306_v57, 0.0  ;;  %vm11101_vm9 = vcmp.ne.f32.partialorder %v7026_v41, 0.0 }
 0x7a9   : > { %v8326_v10 = vpop.eup %5705  ;;  %2437 = vadd.xlane.f32.xlu0 %v2436_v25  ;;  %v2442_v53 = vadd.f32 %v2403_v17, %v2402_v28  ;;  %v2406_v38 = vsel %vm11101_vm9, %v8315_v13, 0.0  ;;  %vm11102_vm14 = vcmp.ne.f32.partialorder %v7243_v3, 0.0  ;;  %v2451_v25 = vadd.f32 %v2409_v51, %v2408_v61  ;;  %v11116_v61 = vld [vmem:[#allocation35_spill] sm:$0xff] }
 0x7aa   : > { %v8330_v54 = vpop.eup %5707  ;;  %v2407_v27 = vsel %vm11102_vm14, %v8326_v10, 0.0  ;;  %2446 = vadd.xlane.f32.xlu1 %v2445_v15  ;;  %vm11103_vm5 = vcmp.ne.f32.partialorder %v11049_v1, 0.0  ;;  %vm11104_vm8 = vcmp.ne.f32.partialorder %v7268_v16, 0.0  ;;  %vm11105_vm2 = vcmp.ne.f32.partialorder %v11051_v52, 0.0 }
 0x7ab   : > { %v8340_v9 = vpop.eup %5709  ;;  %v2412_v17 = vsel %vm11103_vm5, %v8330_v54, 0.0  ;;  %v2448_v3 = vadd.f32 %v2407_v27, %v2406_v38  ;;  %vm11106_vm4 = vcmp.ne.f32.partialorder %v7276_v12, 0.0  ;;  %vm11107_vm0 = vcmp.ne.f32.partialorder %v11057_v31, 0.0  ;;  %v11117_v12 = vld [vmem:[#allocation31_spill] sm:$0xff] }
 0x7ac   : > { %v8342_v28 = vpop.eup %5711  ;;  %v2413_v20 = vsel %vm11104_vm8, %v8340_v9, 0.0  ;;  %vm11108_vm7 = vcmp.ne.f32.partialorder %v11053_v7, 0.0  ;;  %vm11152_vm5 = vcmask 130048  }
 0x7ad   : > { %v8350_v41 = vpop.eup %5713  ;;  %2443 = vadd.xlane.f32.xlu0 %v2442_v53  ;;  %v2410_v51 = vsel %vm11105_vm2, %v8342_v28, 0.0  ;;  %v2457_v38 = vadd.f32 %v2413_v20, %v2412_v17  ;;  %v11111_v17 = vld [vmem:[#allocation137_spill] sm:$0xff]  ;;  %vm11153_vm8 = vmmov %vm11152_vm5 }
 0x7ae   : > { %v8354_v42 = vpop.eup %5715  ;;  %v2411_v15 = vsel %vm11106_vm4, %v8350_v41, 0.0  ;;  %2452 = vadd.xlane.f32.xlu1 %v2451_v25  ;;  %v11109_v25 = vld [vmem:[#allocation136_spill] sm:$0xff]  ;;  %vm11112_vm14 = vcmp.ne.f32.partialorder %v11111_v17, 0.0  ;;  %vm11154_vm2 = vmmov %vm11152_vm5 }
 0x7af   : > { %v8364_v1 = vpop.eup %5717  ;;  %v2416_v27 = vsel %vm11107_vm0, %v8354_v42, 0.0  ;;  %v2454_v52 = vadd.f32 %v2411_v15, %v2410_v51  ;;  %vm11110_vm9 = vcmp.ne.f32.partialorder %v11109_v25, 0.0  ;;  %v11114_v51 = vld [vmem:[#allocation39_spill] sm:$0xff]  ;;  %v11115_v15 = vld [vmem:[#allocation44_spill] sm:$0xff]  ;;  %v11126_v25 = vld [vmem:[#allocation26_spill] sm:$0xff] }
 0x7b0   : > { %v8366_v53 = vpop.eup %5719  ;;  %v2417_v39 = vsel %vm11108_vm7, %v8364_v1, 0.0  ;;  %v11127_v17 = vld [vmem:[#allocation20_spill] sm:$0xff]  ;;  %vm11155_vm4 = vmmov %vm11154_vm2 }
 0x7b1   : > { %v8374_v16 = vpop.eup %5721  ;;  %2449 = vadd.xlane.f32.xlu0 %v2448_v3  ;;  %v2414_v20 = vsel %vm11110_vm9, %v8366_v53, 0.0  ;;  %v2463_v7 = vadd.f32 %v2417_v39, %v2416_v27  ;;  %v11113_v3 = vld [vmem:[#allocation42_spill] sm:$0xff]  ;;  %v11122_v39 = vld [vmem:[#allocation40_spill] sm:$0xff]  ;;  %v11124_v27 = vld [vmem:[#allocation37_spill] sm:$0xff] }
 0x7b2   : > { %v2415_v31 = vsel %vm11112_vm14, %v8374_v16, 0.0  ;;  %2458 = vadd.xlane.f32.xlu1 %v2457_v38  ;;  %v11123_v38 = vld [vmem:[#allocation38_spill] sm:$0xff]  ;;  %vm11156_vm0 = vmmov %vm11154_vm2 }
 0x7b3   : > { %v2460_v6 = vadd.f32 %v2415_v31, %v2414_v20  ;;  %v11120_v31 = vld [vmem:[#allocation22_spill] sm:$0xff]  ;;  %vm11157_vm7 = vmmov %vm11156_vm0 }
 0x7b4   : > { %v11125_v20 = vld [vmem:[#allocation30_spill] sm:$0xff]  ;;  %vm11158_vm9 = vmmov %vm11156_vm0 }
 0x7b5   : > { %2455 = vadd.xlane.f32.xlu0 %v2454_v52  ;;  %v11118_v52 = vld [vmem:[#allocation27_spill] sm:$0xff]  ;;  %vm11159_vm14 = vmmov %vm11156_vm0 }
 0x7b6   : > { %2464 = vadd.xlane.f32.xlu1 %v2463_v7  ;;  %v11119_v7 = vld [vmem:[#allocation24_spill] sm:$0xff] }
 0x7b9   : > { %2461 = vadd.xlane.f32.xlu0 %v2460_v6  ;;  %v11121_v6 = vld [vmem:[#allocation41_spill] sm:$0xff] }
 0x7c7   : > { %2500 = vrot.lane.b32.xlu1 %v11113_v3, %s6019_s11  ;;  %v11134_v3 = vld [vmem:[#allocation57_spill] sm:$0xff] }
 0x7cb   : > { %2502 = vrot.lane.b32.xlu1 %v11114_v51, %s6019_s11  ;;  %v11141_v51 = vld [vmem:[#allocation71_spill] sm:$0xff] }
 0x7cf   : > { %2498 = vrot.lane.b32.xlu0 %v11115_v15, %s6019_s11  ;;  %2504 = vrot.lane.b32.xlu1 %v11116_v61, %s6019_s11  ;;  %v11133_v15 = vld [vmem:[#allocation54_spill] sm:$0xff] }
 0x7d0   : > { %v11142_v61 = vld [vmem:[#allocation78_spill] sm:$0xff] }
 0x7d3   : > { %2506 = vrot.lane.b32.xlu0 %v11117_v12, %s6019_s11  ;;  %2508 = vrot.lane.b32.xlu1 %v11118_v52, %s6019_s11 }
 0x7d7   : > { %2510 = vrot.lane.b32.xlu0 %v11119_v7, %s6019_s11  ;;  %2512 = vrot.lane.b32.xlu1 %v11120_v31, %s6019_s11 }
 0x7db   : > { %2514 = vrot.lane.b32.xlu0 %v11121_v6, %s6019_s11  ;;  %2516 = vrot.lane.b32.xlu1 %v11122_v39, %s6019_s11  ;;  %v11128_v6 = vld [vmem:[#allocation12_spill] sm:$0xff]  ;;  %v11135_v39 = vld [vmem:[#allocation53_spill] sm:$0xff] }
 0x7df   : > { %2518 = vrot.lane.b32.xlu0 %v11123_v38, %s6019_s11  ;;  %2520 = vrot.lane.b32.xlu1 %v11124_v27, %s6019_s11  ;;  %v11136_v38 = vld [vmem:[#allocation55_spill] sm:$0xff]  ;;  %v11144_v27 = vld [vmem:[#allocation72_spill] sm:$0xff] }
 0x7e3   : > { %2522 = vrot.lane.b32.xlu0 %v11125_v20, %s6019_s11  ;;  %2524 = vrot.lane.b32.xlu1 %v11126_v25, %s6019_s11 }
 0x7e7   : > { %2526 = vrot.lane.b32.xlu0 %v11127_v17, %s6019_s11  ;;  %2528 = vrot.lane.b32.xlu1 %v11128_v6, %s6019_s11 }
 0x7eb   : > { %2772 = vrot.lane.b32.xlu0 %v11129_v63, %s6020_s23  ;;  %2774 = vrot.lane.b32.xlu1 %v11130_v21, %s6020_s23 }
 0x7ef   : > { %2776 = vrot.lane.b32.xlu0 %v11131_v56, %s6020_s23  ;;  %2778 = vrot.lane.b32.xlu1 %v11132_v14, %s6020_s23 }
 0x7f3   : > { %2780 = vrot.lane.b32.xlu0 %v11133_v15, %s6020_s23  ;;  %2782 = vrot.lane.b32.xlu1 %v11134_v3, %s6020_s23 }
 0x7f7   : > { %2784 = vrot.lane.b32.xlu0 %v11135_v39, %s6020_s23  ;;  %2786 = vrot.lane.b32.xlu1 %v11136_v38, %s6020_s23 }
 0x7fb   : > { %2788 = vrot.lane.b32.xlu0 %v11137_v46, %s6020_s23  ;;  %2790 = vrot.lane.b32.xlu1 %v11138_v59, %s6020_s23 }
 0x7ff   : > { %2792 = vrot.lane.b32.xlu0 %v11139_v30, %s6020_s23  ;;  %2794 = vrot.lane.b32.xlu1 %v11140_v60, %s6020_s23 }
 0x803   : > { %2796 = vrot.lane.b32.xlu0 %v11141_v51, %s6020_s23  ;;  %2798 = vrot.lane.b32.xlu1 %v11142_v61, %s6020_s23 }
 0x807   : > { %2800 = vrot.lane.b32.xlu0 %v11143_v45, %s6020_s23  ;;  %2802 = vrot.lane.b32.xlu1 %v11144_v27, %s6020_s23 }
 0x81e   : > { %v8450_v20 = vpop.xlane.xlu1 %2422 }
 0x823   : > { %v8452_v43 = vpop.xlane.xlu0 %2419 }
 0x827   : > { %v8454_v5 = vpop.xlane.xlu1 %2428 }
 0x828   : > { %v8456_v47 = vpop.xlane.xlu0 %2425 }
 0x82b   : > { %v8458_v0 = vpop.xlane.xlu1 %2434 }
 0x82e   : > { %v8460_v12 = vpop.xlane.xlu0 %2431 }
 0x82f   : > { %v8462_v52 = vpop.xlane.xlu1 %2440 }
 0x832   : > { %v8464_v25 = vpop.xlane.xlu0 %2437 }
 0x833   : > { %v8466_v17 = vpop.xlane.xlu1 %2446 }
 0x834   : > { %11145 = vst [vmem:[#allocation62_spill] sm:$0xff] %v8466_v17 }
 0x836   : > { %v8468_v24 = vpop.xlane.xlu0 %2443 }
 0x837   : > { %v8470_v29 = vpop.xlane.xlu1 %2452 }
 0x838   : > { %11146 = vst [vmem:[#allocation89_spill] sm:$0xff] %v8470_v29 }
 0x83a   : > { %v8472_v7 = vpop.xlane.xlu0 %2449 }
 0x83b   : > { %11147 = vst [vmem:[#allocation86_spill] sm:$0xff] %v8472_v7  ;;  %v8474_v31 = vpop.xlane.xlu1 %2458 }
 0x83c   : > { %11148 = vst [vmem:[#allocation87_spill] sm:$0xff] %v8474_v31 }
 0x83e   : > { %v8476_v6 = vpop.xlane.xlu0 %2455 }
 0x83f   : > { %11149 = vst [vmem:[#allocation85_spill] sm:$0xff] %v8476_v6  ;;  %v8478_v19 = vpop.xlane.xlu1 %2464 }
 0x840   : > { %11150 = vst [vmem:[#allocation93_spill] sm:$0xff] %v8478_v19 }
 0x842   : > { %v8480_v11 = vpop.xlane.xlu0 %2461 }
 0x843   : > { %11151 = vst [vmem:[#allocation90_spill] sm:$0xff] %v8480_v11  ;;  %v8482_v27 = vpop.permute.xlu1 %2500 }
 0x846   : > { %v8484_v61 = vpop.permute.xlu0 %2498 }
 0x847   : > { %v2503_v60 = vpop.permute.xlu1 %2502 }
 0x84a   : > { %v2507_v30 = vpop.permute.xlu0 %2506 }
 0x84b   : > { %v2505_v46 = vpop.permute.xlu1 %2504 }
 0x84e   : > { %v2511_v45 = vpop.permute.xlu0 %2510 }
 0x84f   : > { %v2509_v51 = vpop.permute.xlu1 %2508 }
 0x852   : > { %v2515_v59 = vpop.permute.xlu0 %2514 }
 0x853   : > { %v2513_v39 = vpop.permute.xlu1 %2512 }
 0x856   : > { %v2519_v38 = vpop.permute.xlu0 %2518 }
 0x857   : > { %v2517_v15 = vpop.permute.xlu1 %2516 }
 0x85a   : > { %v2523_v3 = vpop.permute.xlu0 %2522 }
 0x85b   : > { %v2521_v56 = vpop.permute.xlu1 %2520 }
 0x85e   : > { %v2527_v14 = vpop.permute.xlu0 %2526 }
 0x85f   : > { %v2525_v63 = vpop.permute.xlu1 %2524 }
 0x862   : > { %v2773_v21 = vpop.permute.xlu0 %2772 }
 0x863   : > { %v2820_v18 = vsel %vm11152_vm5, %v2773_v21, 0.0  ;;  %v2529_v55 = vpop.permute.xlu1 %2528  ;;  %vm11160_vm5 = vmmov %vm11156_vm0 }
 0x864   : > { %2821 = vadd.xlane.f32.xlu0 %v2820_v18  ;;  %5297 = vmatprep.subr.bf16.mxu0 %v2529_v55 }
 0x865   : > { %5298 = vmatpush3.bf16.msra.mxu0 %v2513_v39 }
 0x866   : > { %v2777_v19 = vpop.permute.xlu0 %2776  ;;  %5299 = vmatprep.subr.bf16.mxu0 %v2527_v14 }
 0x867   : > { %v2826_v11 = vsel %vm11153_vm8, %v2777_v19, 0.0  ;;  %v2775_v31 = vpop.permute.xlu1 %2774  ;;  %vm11161_vm8 = vmmov %vm11156_vm0 }
 0x868   : > { %2827 = vadd.xlane.f32.xlu0 %v2826_v11  ;;  %v2823_v6 = vsel %vm11154_vm2, %v2775_v31, 0.0  ;;  %vm11162_vm2 = vmmov %vm11156_vm0 }
 0x869   : > { %2824 = vadd.xlane.f32.xlu1 %v2823_v6  ;;  %5300 = vmatpush3.bf16.msra.mxu0 %v2511_v45 }
 0x86a   : > { %v2781_v29 = vpop.permute.xlu0 %2780  ;;  %5301 = vmatprep.subr.bf16.mxu0 %v2525_v63 }
 0x86b   : > { %v2779_v7 = vpop.permute.xlu1 %2778  ;;  %v2832_v11 = vsel %vm11157_vm7, %v2781_v29, 0.0  ;;  %vm11164_vm7 = vmmov %vm11156_vm0 }
 0x86c   : > { %v2829_v17 = vsel %vm11155_vm4, %v2779_v7, 0.0  ;;  %vm11163_vm4 = vmmov %vm11156_vm0 }
 0x86d   : > { %5302 = vmatpush3.bf16.msra.mxu0 %v2509_v51  ;;  %2830 = vadd.xlane.f32.xlu0 %v2829_v17 }
 0x86e   : > { %v2785_v21 = vpop.permute.xlu0 %2784  ;;  %5303 = vmatprep.subr.bf16.mxu0 %v2523_v3 }
 0x86f   : > { %v2783_v18 = vpop.permute.xlu1 %2782  ;;  %v2838_v63 = vsel %vm11159_vm14, %v2785_v21, 0.0  ;;  %vm11170_vm14 = vmmov %vm11156_vm0 }
 0x870   : > { %v2835_v55 = vsel %vm11156_vm0, %v2783_v18, 0.0 }
 0x871   : > { %2836 = vadd.xlane.f32.xlu1 %v2835_v55  ;;  %5304 = vmatpush3.bf16.msra.mxu0 %v2507_v30  ;;  %v11171_v55 = vpack.c.bf16 %v8200_v50, %v8205_v8  ;;  %v11179_v50 = vld [vmem:[#allocation46_spill] sm:$0xff] }
 0x872   : > { %v2789_v19 = vpop.permute.xlu0 %2788  ;;  %2833 = vadd.xlane.f32.xlu0 %v2832_v11  ;;  %5305 = vmatprep.subr.bf16.mxu0 %v2521_v56  ;;  %v11177_v11 = vpack.c.bf16 %v8245_v33, %v8256_v58  ;;  %v11180_v8 = vld [vmem:[#allocation2_spill] sm:$0xff]  ;;  %v11185_v33 = vld [vmem:[#allocation111_spill] sm:$0xff]  ;;  %v11187_v58 = vld [vmem:[#allocation4_spill] sm:$0xff] }
 0x873   : > { %v2787_v14 = vpop.permute.xlu1 %2786  ;;  %v2844_v30 = vsel %vm11161_vm8, %v2789_v19, 0.0 }
 0x874   : > { %v2841_v45 = vsel %vm11158_vm9, %v2787_v14, 0.0  ;;  %vm11167_vm9 = vmmov %vm11156_vm0 }
 0x875   : > { %2842 = vadd.xlane.f32.xlu1 %v2841_v45  ;;  %5306 = vmatpush3.bf16.msra.mxu0 %v2505_v46  ;;  %v11188_v45 = vld [vmem:[#allocation8_spill] sm:$0xff] }
 0x876   : > { %v2793_v51 = vpop.permute.xlu0 %2792  ;;  %2839 = vadd.xlane.f32.xlu0 %v2838_v63  ;;  %5307 = vmatprep.subr.bf16.mxu0 %v2519_v38  ;;  %v11165_v38 = vpack.c.bf16 %v8187_v40, %v8190_v4  ;;  %v11173_v40 = vpack.c.bf16 %v8225_v48, %v8232_v37  ;;  %v11181_v48 = vld [vmem:[#allocation43_spill] sm:$0xff]  ;;  %v11184_v37 = vpack.c.bf16 %v8272_v34, %v8288_v26  ;;  %v11189_v63 = vld [vmem:[#allocation13_spill] sm:$0xff]  ;;  %v11195_v26 = vld [vmem:[#allocation112_spill] sm:$0xff] }
 0x877   : > { %v2791_v17 = vpop.permute.xlu1 %2790  ;;  %v2850_v46 = vsel %vm11163_vm4, %v2793_v51, 0.0  ;;  %v11192_v51 = vld [vmem:[#allocation113_spill] sm:$0xff]  ;;  %v11194_v34 = vpack.c.bf16 %v8306_v57, %v8326_v10  ;;  %v11204_v10 = vpack.c.bf16 %v8340_v9, %v8350_v41  ;;  %v11205_v57 = vld [vmem:[#allocation114_spill] sm:$0xff]  ;;  %v11214_v41 = vpack.c.bf16 %v8364_v1, %v8374_v16 }
 0x878   : > { %v2847_v3 = vsel %vm11160_vm5, %v2791_v17, 0.0  ;;  %vm11186_vm5 = vnez %v11185_v33  ;;  %vm11193_vm8 = vnez %v11192_v51  ;;  %v11197_v17 = vld [vmem:[#allocation10_spill] sm:$0xff]  ;;  %v11215_v9 = vld [vmem:[#allocation121_spill] sm:$0xff]  ;;  %v2643_v16 = vmax.f32 %v8452_v43, 1e-20 }
 0x879   : > { %2848 = vadd.xlane.f32.xlu1 %v2847_v3  ;;  %5308 = vmatpush3.bf16.msra.mxu0 %v2503_v60  ;;  %v11198_v3 = vld [vmem:[#allocation15_spill] sm:$0xff]  ;;  %v2644_v1 = vmax.f32 %v8450_v20, 1e-20  ;;  %v2648_v43 = vmax.f32 %v8458_v0, 1e-20 }
 0x87a   : > { %2845 = vadd.xlane.f32.xlu0 %v2844_v30  ;;  %5309 = vmatprep.subr.bf16.mxu0 %v2517_v15  ;;  %v2797_v56 = vpop.permute.xlu0 %2796  ;;  %v11199_v30 = vld [vmem:[#allocation17_spill] sm:$0xff]  ;;  %5723 = vrcp.f32 %v2643_v16 }
 0x87b   : > { %v2795_v29 = vpop.permute.xlu1 %2794  ;;  %v2856_v60 = vsel %vm11164_vm7, %v2797_v56, 0.0  ;;  %v11207_v56 = vld [vmem:[#allocation16_spill] sm:$0xff]  ;;  %5725 = vrcp.f32 %v2644_v1 }
 0x87c   : > { %v2853_v7 = vsel %vm11162_vm2, %v2795_v29, 0.0  ;;  %vm11196_vm2 = vnez %v11195_v26  ;;  %v11202_v29 = vld [vmem:[#allocation117_spill] sm:$0xff] }
 0x87d   : > { %2854 = vadd.xlane.f32.xlu1 %v2853_v7  ;;  %5310 = vmatpush3.bf16.msra.mxu0 %v8482_v27  ;;  %vm11203_vm4 = vnez %v11202_v29  ;;  %v11208_v7 = vld [vmem:[#allocation19_spill] sm:$0xff]  ;;  %v11244_v29 = vld [vmem:[#allocation48_spill] sm:$0xff] }
 0x87e   : > { %2851 = vadd.xlane.f32.xlu0 %v2850_v46  ;;  %5311 = vmatprep.subr.bf16.mxu0 %v2515_v59  ;;  %v2801_v15 = vpop.permute.xlu0 %2800  ;;  %v11168_v59 = vpack.c.bf16 %v8203_v32, %v8214_v49  ;;  %v11175_v32 = vpack.c.bf16 %v8218_v44, %v8230_v22  ;;  %v11182_v44 = vpack.c.bf16 %v8241_v2, %v8251_v35  ;;  %v11190_v2 = vld [vmem:[#allocation6_spill] sm:$0xff]  ;;  %v11209_v46 = vld [vmem:[#allocation23_spill] sm:$0xff] }
 0x87f   : > { %v2799_v31 = vpop.permute.xlu1 %2798  ;;  %v11191_v35 = vpack.c.bf16 %v8261_v62, %v8277_v36  ;;  %v11200_v62 = vld [vmem:[#allocation14_spill] sm:$0xff]  ;;  %v11201_v36 = vpack.c.bf16 %v8295_v23, %v8315_v13  ;;  %v11211_v23 = vpack.c.bf16 %v8330_v54, %v8342_v28  ;;  %v11220_v54 = vpack.c.bf16 %v8354_v42, %v8366_v53  ;;  %v11247_v22 = vld [vmem:[#allocation11_spill] sm:$0xff] }
 0x880   : > { %v2859_v6 = vsel %vm11156_vm0, %v2799_v31, 0.0  ;;  %vm11206_vm0 = vnez %v11205_v57  ;;  %v11210_v13 = vld [vmem:[#allocation18_spill] sm:$0xff] }
 0x881   : > { %2860 = vadd.xlane.f32.xlu1 %v2859_v6  ;;  %5312 = vmatpush3.bf16.msra.mxu0 %v8484_v61  ;;  %v2862_v61 = vsel %vm11170_vm14, %v2801_v15, 0.0  ;;  %v11212_v31 = vld [vmem:[#allocation122_spill] sm:$0xff]  ;;  %v11217_v6 = vld [vmem:[#allocation21_spill] sm:$0xff]  ;;  %v11219_v15 = vld [vmem:[#allocation32_spill] sm:$0xff] }
 0x882   : > { %2857 = vadd.xlane.f32.xlu0 %v2856_v60  ;;  %vm11213_vm7 = vnez %v11212_v31  ;;  %v11218_v60 = vld [vmem:[#allocation28_spill] sm:$0xff]  ;;  %v11221_v28 = vld [vmem:[#allocation138_spill] sm:$0xff] }
 0x883   : > { %v2803_v39 = vpop.permute.xlu1 %2802  ;;  %vm11222_vm14 = vnez %v11221_v28  ;;  %v11238_v28 = vld [vmem:[#allocation93_spill] sm:$0xff] }
 0x884   : > { %5063 = vmatmul.mubr.msk.bf16.vlgmr.msra.gmra.mxu0 %vm7462_vm15, %v11165_v38  ;;  %v2865_v27 = vsel %vm11167_vm9, %v2803_v39, 0.0  ;;  %vm11216_vm9 = vnez %v11215_v9  ;;  %v2645_v39 = vmax.f32 %v8456_v47, 1e-20  ;;  %v2646_v38 = vmax.f32 %v8454_v5, 1e-20 }
 0x885   : > { %2866 = vadd.xlane.f32.xlu1 %v2865_v27  ;;  %5066 = vmatprep.mubr.msk.bf16.mxu0 %vm7483_vm13, %v11168_v59 }
 0x886   : > { %2863 = vadd.xlane.f32.xlu0 %v2862_v61  ;;  %5727 = vrcp.f32 %v2645_v39  ;;  %v2647_v61 = vmax.f32 %v8460_v12, 1e-20 }
 0x887   : > { %5729 = vrcp.f32 %v2646_v38  ;;  %v5724_v53 = vpop.eup %5723  ;;  %v2651_v38 = vmax.f32 %v8468_v24, 1e-20 }
 0x888   : > { %5731 = vrcp.f32 %v2647_v61  ;;  %v5726_v47 = vpop.eup %5725 }
 0x889   : > { %5733 = vrcp.f32 %v2648_v43 }
 0x88c   : > { %5069 = vmatmul.mubr.msk.bf16.gmra.mxu0 %vm7510_vm1, %v11171_v55 }
 0x88d   : > { %5072 = vmatprep.mubr.msk.bf16.mxu0 %vm7534_vm3, %v11173_v40 }
 0x894   : > { %5075 = vmatmul.mubr.msk.bf16.gmra.mxu0 %vm7581_vm11, %v11175_v32 }
 0x895   : > { %5078 = vmatprep.mubr.msk.bf16.mxu0 %vm7597_vm12, %v11177_v11 }
 0x896   : > { %2870 = vrot.lane.b32.xlu1 %v11179_v50, %s6020_s23 }
 0x89a   : > { %2872 = vrot.lane.b32.xlu1 %v11180_v8, %s6020_s23 }
 0x89c   : > { %2868 = vrot.lane.b32.xlu0 %v11181_v48, %s6020_s23  ;;  %5081 = vmatmul.mubr.msk.bf16.gmra.mxu0 %vm7635_vm10, %v11182_v44 }
 0x89d   : > { %5084 = vmatprep.mubr.msk.bf16.mxu0 %vm11186_vm5, %v11184_v37  ;;  %v2649_v37 = vmax.f32 %v8464_v25, 1e-20 }
 0x89e   : > { %2874 = vrot.lane.b32.xlu1 %v11187_v58, %s6020_s23 }
 0x89f   : > { %5735 = vrcp.f32 %v2649_v37 }
 0x8a0   : > { %2876 = vrot.lane.b32.xlu0 %v11188_v45, %s6020_s23 }
 0x8a2   : > { %2878 = vrot.lane.b32.xlu1 %v11189_v63, %s6020_s23 }
 0x8a4   : > { %2880 = vrot.lane.b32.xlu0 %v11190_v2, %s6020_s23  ;;  %5087 = vmatmul.mubr.msk.bf16.gmra.mxu0 %vm11193_vm8, %v11191_v35  ;;  %v11223_v35 = vld [vmem:[#allocation25_spill] sm:$0xff] }
 0x8a5   : > { %5090 = vmatprep.mubr.msk.bf16.mxu0 %vm11196_vm2, %v11194_v34  ;;  %v5728_v34 = vpop.eup %5727 }
 0x8a6   : > { %2882 = vrot.lane.b32.xlu1 %v11197_v17, %s6020_s23  ;;  %v5730_v25 = vpop.eup %5729 }
 0x8a8   : > { %2884 = vrot.lane.b32.xlu0 %v11198_v3, %s6020_s23 }
 0x8aa   : > { %2886 = vrot.lane.b32.xlu1 %v11199_v30, %s6020_s23 }
 0x8ac   : > { %2888 = vrot.lane.b32.xlu0 %v11200_v62, %s6020_s23  ;;  %5093 = vmatmul.mubr.msk.bf16.gmra.mxu0 %vm11203_vm4, %v11201_v36 }
 0x8ad   : > { %5096 = vmatprep.mubr.msk.bf16.mxu0 %vm11206_vm0, %v11204_v10 }
 0x8ae   : > { %2890 = vrot.lane.b32.xlu1 %v11207_v56, %s6020_s23 }
 0x8b0   : > { %2892 = vrot.lane.b32.xlu0 %v11208_v7, %s6020_s23 }
 0x8b2   : > { %2894 = vrot.lane.b32.xlu1 %v11209_v46, %s6020_s23 }
 0x8b4   : > { %2896 = vrot.lane.b32.xlu0 %v11210_v13, %s6020_s23  ;;  %5099 = vmatmul.mubr.msk.bf16.gmra.mxu0 %vm11213_vm7, %v11211_v23  ;;  %v2650_v23 = vmax.f32 %v8462_v52, 1e-20  ;;  %v5732_v52 = vpop.eup %5731 }
 0x8b5   : > { %5102 = vmatprep.mubr.msk.bf16.mxu0 %vm11216_vm9, %v11214_v41  ;;  %v5734_v24 = vpop.eup %5733 }
 0x8b6   : > { %2898 = vrot.lane.b32.xlu1 %v11217_v6, %s6020_s23  ;;  %5737 = vrcp.f32 %v2650_v23 }
 0x8b7   : > { %5739 = vrcp.f32 %v2651_v38 }
 0x8b8   : > { %2900 = vrot.lane.b32.xlu0 %v11218_v60, %s6020_s23 }
 0x8ba   : > { %2902 = vrot.lane.b32.xlu1 %v11219_v15, %s6020_s23 }
 0x8bc   : > { %5105 = vmatmul.mubr.msk.bf16.gmra.mxu0 %vm11222_vm14, %v11220_v54  ;;  %v11224_v54 = vld [vmem:[#allocation29_spill] sm:$0xff]  ;;  %vm11248_vm14 = vcmask 130048  }
 0x8bd   : > { %vm11249_vm9 = vmmov %vm11248_vm14 }
 0x8be   : > { %vm11250_vm7 = vmmov %vm11249_vm9 }
 0x8bf   : > { %vm11251_vm0 = vmmov %vm11250_vm7 }
 0x8c0   : > { %vm11252_vm4 = vmmov %vm11251_vm0 }
 0x8c1   : > { %vm11253_vm2 = vmmov %vm11251_vm0 }
 0x8c2   : > { %vm11328_vm8 = vmmov %vm11251_vm0 }
 0x944   : > { %v5313_v27 = vpop.f32.mrf.mxu0 }
 0x946   : > { %v5314_v59 = vpop.f32.mrf.mxu0 }
 0x947   : > { %v5315_v42 = vadd.f32 %v5314_v59, %v5313_v27  ;;  %v11225_v59 = vld [vmem:[#allocation34_spill] sm:$0xff] }
 0x948   : > { %v5316_v55 = vpop.f32.mrf.mxu0 }
 0x949   : > { %v2675_v40 = vmul.f32 %v5724_v53, %v5315_v42 }
 0x94a   : > { %v5317_v32 = vpop.f32.mrf.mxu0 }
 0x94b   : > { %v5318_v20 = vadd.f32 %v5317_v32, %v5316_v55  ;;  %2707 = vrot.lane.b32.xlu0 %v2675_v40, %s6021_s24  ;;  %v11226_v55 = vld [vmem:[#allocation62_spill] sm:$0xff]  ;;  %v8635_v32 = vpop.xlane.xlu0 %2821 }
 0x94c   : > { %v5319_v5 = vpop.f32.mrf.mxu0  ;;  %v2652_v40 = vmax.f32 %v11226_v55, 1e-20 }
 0x94d   : > { %v2676_v11 = vmul.f32 %v5726_v47, %v5318_v20  ;;  %v11227_v20 = vld [vmem:[#allocation79_spill] sm:$0xff] }
 0x94e   : > { %v5320_v44 = vpop.f32.mrf.mxu0  ;;  %5741 = vrcp.f32 %v2652_v40  ;;  %v11232_v40 = vld [vmem:[#allocation85_spill] sm:$0xff] }
 0x94f   : > { %v5321_v12 = vadd.f32 %v5320_v44, %v5319_v5  ;;  %2709 = vrot.lane.b32.xlu1 %v2676_v11, %s6021_s24  ;;  %2904 = vrot.lane.b32.xlu0 %v11223_v35, %s6020_s23  ;;  %v11228_v44 = vld [vmem:[#allocation86_spill] sm:$0xff]  ;;  %v8646_v23 = vpop.xlane.xlu0 %2827 }
 0x950   : > { %v5322_v0 = vpop.f32.mrf.mxu0  ;;  %v2653_v37 = vmax.f32 %v11228_v44, 1e-20 }
 0x951   : > { %v2677_v36 = vmul.f32 %v5728_v34, %v5321_v12  ;;  %v8641_v12 = vpop.xlane.xlu1 %2824 }
 0x952   : > { %v5323_v10 = vpop.f32.mrf.mxu0  ;;  %5743 = vrcp.f32 %v2653_v37 }
 0x953   : > { %v5324_v41 = vadd.f32 %v5323_v10, %v5322_v0  ;;  %2906 = vrot.lane.b32.xlu1 %v11224_v54, %s6020_s23  ;;  %2711 = vrot.lane.b32.xlu0 %v2677_v36, %s6021_s24  ;;  %v11229_v0 = vld [vmem:[#allocation33_spill] sm:$0xff]  ;;  %v5736_v36 = vpop.eup %5735 }
 0x954   : > { %v5325_v16 = vpop.f32.mrf.mxu0 }
 0x955   : > { %v2678_v1 = vmul.f32 %v5730_v25, %v5324_v41 }
 0x956   : > { %v5326_v39 = vpop.f32.mrf.mxu0 }
 0x957   : > { %v5327_v27 = vadd.f32 %v5326_v39, %v5325_v16  ;;  %2713 = vrot.lane.b32.xlu1 %v2678_v1, %s6021_s24  ;;  %2908 = vrot.lane.b32.xlu0 %v11225_v59, %s6020_s23  ;;  %v11230_v16 = vld [vmem:[#allocation89_spill] sm:$0xff]  ;;  %v8649_v39 = vpop.xlane.xlu1 %2836 }
 0x958   : > { %v5328_v61 = vpop.f32.mrf.mxu0  ;;  %v2654_v1 = vmax.f32 %v11230_v16, 1e-20  ;;  %v11235_v16 = vld [vmem:[#allocation47_spill] sm:$0xff] }
 0x959   : > { %v2679_v42 = vmul.f32 %v5732_v52, %v5327_v27  ;;  %v11231_v27 = vld [vmem:[#allocation36_spill] sm:$0xff]  ;;  %v5738_v52 = vpop.eup %5737 }
 0x95a   : > { %v5329_v53 = vpop.f32.mrf.mxu0  ;;  %5745 = vrcp.f32 %v2654_v1 }
 0x95b   : > { %v5330_v43 = vadd.f32 %v5329_v53, %v5328_v61  ;;  %2910 = vrot.lane.b32.xlu1 %v11227_v20, %s6020_s23  ;;  %2715 = vrot.lane.b32.xlu0 %v2679_v42, %s6021_s24  ;;  %v8654_v42 = vpop.xlane.xlu0 %2830  ;;  %v8660_v44 = vpop.xlane.xlu1 %2842 }
 0x95c   : > { %v5331_v47 = vpop.f32.mrf.mxu0 }
 0x95d   : > { %v2680_v5 = vmul.f32 %v5734_v24, %v5330_v43  ;;  %v2655_v43 = vmax.f32 %v11232_v40, 1e-20 }
 0x95e   : > { %v5332_v11 = vpop.f32.mrf.mxu0 }
 0x95f   : > { %v5333_v34 = vadd.f32 %v5332_v11, %v5331_v47  ;;  %2717 = vrot.lane.b32.xlu1 %v2680_v5, %s6021_s24  ;;  %2912 = vrot.lane.b32.xlu0 %v11229_v0, %s6020_s23  ;;  %v11233_v47 = vld [vmem:[#allocation45_spill] sm:$0xff]  ;;  %v5740_v5 = vpop.eup %5739  ;;  %5747 = vrcp.f32 %v2655_v43  ;;  %v8669_v40 = vpop.xlane.xlu1 %2848  ;;  %v11237_v43 = vld [vmem:[#allocation3_spill] sm:$0xff] }
 0x960   : > { %v5334_v10 = vpop.f32.mrf.mxu0  ;;  %v5742_v1 = vpop.eup %5741 }
 0x961   : > { %v2681_v41 = vmul.f32 %v5736_v36, %v5333_v34  ;;  %v11234_v36 = vld [vmem:[#allocation87_spill] sm:$0xff] }
 0x962   : > { %v5335_v25 = vpop.f32.mrf.mxu0 }
 0x963   : > { %v5336_v38 = vadd.f32 %v5335_v25, %v5334_v10  ;;  %2914 = vrot.lane.b32.xlu1 %v11231_v27, %s6020_s23  ;;  %2719 = vrot.lane.b32.xlu0 %v2681_v41, %s6021_s24  ;;  %v2656_v10 = vmax.f32 %v11234_v36, 1e-20  ;;  %v8663_v41 = vpop.xlane.xlu0 %2833 }
 0x964   : > { %v5337_v61 = vpop.f32.mrf.mxu0 }
 0x965   : > { %v2682_v53 = vmul.f32 %v5738_v52, %v5336_v38  ;;  %5749 = vrcp.f32 %v2656_v10 }
 0x966   : > { %v5338_v55 = vpop.f32.mrf.mxu0 }
 0x967   : > { %v5339_v24 = vadd.f32 %v5338_v55, %v5337_v61  ;;  %2721 = vrot.lane.b32.xlu1 %v2682_v53, %s6021_s24  ;;  %2916 = vrot.lane.b32.xlu0 %v11233_v47, %s6020_s23  ;;  %v11236_v53 = vld [vmem:[#allocation90_spill] sm:$0xff] }
 0x968   : > { %v5340_v11 = vpop.f32.mrf.mxu0  ;;  %v2657_v55 = vmax.f32 %v11236_v53, 1e-20 }
 0x969   : > { %v2683_v37 = vmul.f32 %v5740_v5, %v5339_v24  ;;  %v5744_v5 = vpop.eup %5743 }
 0x96a   : > { %v5341_v34 = vpop.f32.mrf.mxu0  ;;  %5751 = vrcp.f32 %v2657_v55 }
 0x96b   : > { %v5342_v25 = vadd.f32 %v5341_v34, %v5340_v11  ;;  %2918 = vrot.lane.b32.xlu1 %v11235_v16, %s6020_s23  ;;  %2723 = vrot.lane.b32.xlu0 %v2683_v37, %s6021_s24  ;;  %v8674_v34 = vpop.xlane.xlu0 %2839 }
 0x96c   : > { %v5343_v38 = vpop.f32.mrf.mxu0 }
 0x96d   : > { %v2684_v52 = vmul.f32 %v5742_v1, %v5342_v25  ;;  %v2658_v25 = vmax.f32 %v11238_v28, 1e-20  ;;  %v11239_v1 = vld [vmem:[#allocation5_spill] sm:$0xff] }
 0x96e   : > { %v5344_v61 = vpop.f32.mrf.mxu0  ;;  %v11242_v28 = vld [vmem:[#allocation9_spill] sm:$0xff] }
 0x96f   : > { %v5345_v24 = vadd.f32 %v5344_v61, %v5343_v38  ;;  %2725 = vrot.lane.b32.xlu1 %v2684_v52, %s6021_s24  ;;  %2920 = vrot.lane.b32.xlu0 %v11237_v43, %s6020_s23  ;;  %v5746_v38 = vpop.eup %5745  ;;  %v8680_v61 = vpop.xlane.xlu1 %2854  ;;  %5753 = vrcp.f32 %v2658_v25 }
 0x970   : > { %v5346_v11 = vpop.f32.mrf.mxu0  ;;  %11240 = vst [vmem:[#allocation91_spill] sm:$0xff] %v8680_v61  ;;  %v8682_v31 = vpop.xlane.xlu0 %2845 }
 0x971   : > { %v2685_v37 = vmul.f32 %v5744_v5, %v5345_v24  ;;  %11241 = vst [vmem:[#allocation88_spill] sm:$0xff] %v8682_v31  ;;  %v5748_v55 = vpop.eup %5747 }
 0x972   : > { %v5347_v36 = vpop.f32.mrf.mxu0  ;;  %v5750_v25 = vpop.eup %5749 }
 0x973   : > { %v5348_v10 = vadd.f32 %v5347_v36, %v5346_v11  ;;  %2922 = vrot.lane.b32.xlu1 %v11239_v1, %s6020_s23  ;;  %2727 = vrot.lane.b32.xlu0 %v2685_v37, %s6021_s24  ;;  %v8687_v37 = vpop.xlane.xlu1 %2860 }
 0x974   : > { %v5349_v52 = vpop.f32.mrf.mxu0  ;;  %11243 = vst [vmem:[#allocation98_spill] sm:$0xff] %v8687_v37 }
 0x975   : > { %v2686_v53 = vmul.f32 %v5746_v38, %v5348_v10 }
 0x976   : > { %v5350_v9 = vpop.f32.mrf.mxu0 }
 0x977   : > { %v5351_v24 = vadd.f32 %v5350_v9, %v5349_v52  ;;  %2729 = vrot.lane.b32.xlu1 %v2686_v53, %s6021_s24  ;;  %2924 = vrot.lane.b32.xlu0 %v11242_v28, %s6020_s23  ;;  %v8692_v9 = vpop.xlane.xlu0 %2851 }
 0x978   : > { %v5352_v5 = vpop.f32.mrf.mxu0 }
 0x979   : > { %v2687_v11 = vmul.f32 %v5748_v55, %v5351_v24  ;;  %v11245_v24 = vld [vmem:[#allocation7_spill] sm:$0xff]  ;;  %v5752_v55 = vpop.eup %5751 }
 0x97a   : > { %v5353_v36 = vpop.f32.mrf.mxu0 }
 0x97b   : > { %v5354_v57 = vadd.f32 %v5353_v36, %v5352_v5  ;;  %2926 = vrot.lane.b32.xlu1 %v11244_v29, %s6020_s23  ;;  %2731 = vrot.lane.b32.xlu0 %v2687_v11, %s6021_s24  ;;  %v8697_v5 = vpop.xlane.xlu1 %2866  ;;  %v8699_v33 = vpop.xlane.xlu0 %2857 }
 0x97c   : > { %v5355_v10 = vpop.f32.mrf.mxu0  ;;  %11246 = vst [vmem:[#allocation94_spill] sm:$0xff] %v8697_v5 }
 0x97d   : > { %v2688_v38 = vmul.f32 %v5750_v25, %v5354_v57  ;;  %v5754_v57 = vpop.eup %5753 }
 0x97e   : > { %v5356_v52 = vpop.f32.mrf.mxu0 }
 0x97f   : > { %v5357_v53 = vadd.f32 %v5356_v52, %v5355_v10  ;;  %2733 = vrot.lane.b32.xlu1 %v2688_v38, %s6021_s24  ;;  %2928 = vrot.lane.b32.xlu0 %v11245_v24, %s6020_s23  ;;  %v2871_v10 = vpop.permute.xlu1 %2870  ;;  %v8705_v38 = vpop.xlane.xlu0 %2863 }
 0x980   : > { %v5358_v26 = vpop.f32.mrf.mxu0 }
 0x981   : > { %v2689_v36 = vmul.f32 %v5752_v55, %v5357_v53 }
 0x982   : > { %v5359_v51 = vpop.f32.mrf.mxu0 }
 0x983   : > { %v5360_v11 = vadd.f32 %v5359_v51, %v5358_v26  ;;  %2930 = vrot.lane.b32.xlu1 %v11247_v22, %s6020_s23  ;;  %2735 = vrot.lane.b32.xlu0 %v2689_v36, %s6021_s24  ;;  %v2873_v52 = vpop.permute.xlu1 %2872  ;;  %v2869_v14 = vpop.permute.xlu0 %2868 }
 0x984   : > { %v2964_v26 = vsel %vm11248_vm14, %v2869_v14, 0.0  ;;  %v2970_v36 = vsel %vm11249_vm9, %v2873_v52, 0.0  ;;  %vm11254_vm14 = vmmov %vm11251_vm0 }
 0x985   : > { %v2690_v25 = vmul.f32 %v5754_v57, %v5360_v11  ;;  %vm11255_vm9 = vmmov %vm11251_vm0 }
 0x987   : > { %2737 = vrot.lane.b32.xlu1 %v2690_v25, %s6021_s24  ;;  %v2875_v49 = vpop.permute.xlu1 %2874  ;;  %v2877_v53 = vpop.permute.xlu0 %2876  ;;  %v2967_v25 = vsel %vm11251_vm0, %v2871_v10, 0.0 }
 0x988   : > { %v2973_v57 = vsel %vm11250_vm7, %v2875_v49, 0.0  ;;  %v2976_v37 = vsel %vm11252_vm4, %v2877_v53, 0.0  ;;  %vm11256_vm7 = vmmov %vm11251_vm0 }
 0x989   : > { %vm11258_vm4 = vmmov %vm11251_vm0 }
 0x98b   : > { %v2879_v55 = vpop.permute.xlu1 %2878  ;;  %v2881_v4 = vpop.permute.xlu0 %2880 }
 0x98c   : > { %v2979_v61 = vsel %vm11253_vm2, %v2879_v55, 0.0  ;;  %vm11257_vm2 = vmmov %vm11251_vm0 }
 0x98f   : > { %v2883_v19 = vpop.permute.xlu1 %2882  ;;  %v2885_v51 = vpop.permute.xlu0 %2884 }
 0x990   : > { %v2985_v52 = vsel %vm11255_vm9, %v2883_v19, 0.0  ;;  %v2988_v49 = vsel %vm11256_vm7, %v2885_v51, 0.0  ;;  %vm11259_vm9 = vmmov %vm11251_vm0 }
 0x991   : > { %vm11260_vm7 = vmmov %vm11251_vm0 }
 0x993   : > { %v2887_v18 = vpop.permute.xlu1 %2886  ;;  %v2889_v11 = vpop.permute.xlu0 %2888 }
 0x994   : > { %v2991_v10 = vsel %vm11251_vm0, %v2887_v18, 0.0 }
 0x997   : > { %v2891_v21 = vpop.permute.xlu1 %2890  ;;  %v2893_v5 = vpop.permute.xlu0 %2892 }
 0x998   : > { %v3000_v55 = vsel %vm11259_vm9, %v2893_v5, 0.0  ;;  %vm11263_vm9 = vmmov %vm11251_vm0 }
 0x99b   : > { %v2895_v14 = vpop.permute.xlu1 %2894 }
 0x99c   : > { %v3003_v18 = vsel %vm11260_vm7, %v2895_v14, 0.0  ;;  %vm11264_vm7 = vmmov %vm11251_vm0 }
 0x9a2   : > { %2965 = vadd.xlane.f32.xlu0 %v2964_v26  ;;  %v2982_v26 = vsel %vm11254_vm14, %v2881_v4, 0.0  ;;  %v2997_v4 = vsel %vm11258_vm4, %v2891_v21, 0.0  ;;  %vm2755_vm14 = vcmask 261248   ;;  %vm11262_vm4 = vmmov %vm11251_vm0 }
 0x9a6   : > { %2971 = vadd.xlane.f32.xlu0 %v2970_v36  ;;  %v2897_v36 = vpop.permute.xlu0 %2896 }
 0x9aa   : > { %2974 = vadd.xlane.f32.xlu0 %v2973_v57  ;;  %v2899_v57 = vpop.permute.xlu1 %2898 }
 0x9ab   : > { %2968 = vadd.xlane.f32.xlu1 %v2967_v25 }
 0x9ae   : > { %2977 = vadd.xlane.f32.xlu0 %v2976_v37  ;;  %v8717_v37 = vpop.permute.xlu0 %2900  ;;  %v2903_v19 = vpop.permute.xlu1 %2902 }
 0x9af   : > { %2980 = vadd.xlane.f32.xlu1 %v2979_v61  ;;  %v2994_v61 = vsel %vm11257_vm2, %v2889_v11, 0.0  ;;  %v3006_v11 = vsel %vm11251_vm0, %v2897_v36, 0.0  ;;  %vm11261_vm2 = vmmov %vm11251_vm0  ;;  %v3015_v14 = vsel %vm11262_vm4, %v2903_v19, 0.0 }
 0x9b0   : > { %v3009_v21 = vsel %vm11261_vm2, %v2899_v57, 0.0  ;;  %vm11265_vm2 = vmmov %vm11251_vm0 }
 0x9b1   : > { %vm11266_vm4 = vmmov %vm11251_vm0 }
 0x9b2   : > { %2983 = vadd.xlane.f32.xlu0 %v2982_v26 }
 0x9b3   : > { %2986 = vadd.xlane.f32.xlu1 %v2985_v52 }
 0x9b6   : > { %2989 = vadd.xlane.f32.xlu0 %v2988_v49 }
 0x9b7   : > { %2992 = vadd.xlane.f32.xlu1 %v2991_v10 }
 0x9ba   : > { %2995 = vadd.xlane.f32.xlu0 %v2994_v61 }
 0x9bb   : > { %2998 = vadd.xlane.f32.xlu1 %v2997_v4 }
 0x9bd   : > { %v2708_v53 = vpop.permute.xlu0 %2707 }
 0x9be   : > { %2756 = vst.msk [vmem:[%s7790_s20] sm:$0xff] %vm2755_vm14, %v2708_v53  ;;  %3001 = vadd.xlane.f32.xlu0 %v3000_v55 }
 0x9bf   : > { %3004 = vadd.xlane.f32.xlu1 %v3003_v18 }
 0x9c1   : > { %v2710_v51 = vpop.permute.xlu1 %2709  ;;  %v8725_v25 = vpop.permute.xlu0 %2904 }
 0x9c2   : > { %2757 = vst.msk [vmem:[%s7790_s20 + $0x8] sm:$0xff] %vm2755_vm14, %v2710_v51  ;;  %3007 = vadd.xlane.f32.xlu0 %v3006_v11 }
 0x9c3   : > { %3010 = vadd.xlane.f32.xlu1 %v3009_v21 }
 0x9c5   : > { %v2907_v5 = vpop.permute.xlu1 %2906  ;;  %v2712_v26 = vpop.permute.xlu0 %2711 }
 0x9c6   : > { %2758 = vst.msk [vmem:[%s7790_s20 + $0x10] sm:$0xff] %vm2755_vm14, %v2712_v26  ;;  %v3021_v36 = vsel %vm11263_vm9, %v2907_v5, 0.0  ;;  %vm11267_vm9 = vmmov %vm11251_vm0 }
 0x9c7   : > { %3016 = vadd.xlane.f32.xlu1 %v3015_v14 }
 0x9c9   : > { %v2714_v52 = vpop.permute.xlu1 %2713  ;;  %v8734_v49 = vpop.permute.xlu0 %2908 }
 0x9ca   : > { %2759 = vst.msk [vmem:[%s7790_s20 + $0x18] sm:$0xff] %vm2755_vm14, %v2714_v52 }
 0x9cb   : > { %3022 = vadd.xlane.f32.xlu1 %v3021_v36 }
 0x9cd   : > { %v2911_v10 = vpop.permute.xlu1 %2910  ;;  %v2716_v57 = vpop.permute.xlu0 %2715 }
 0x9ce   : > { %2760 = vst.msk [vmem:[%s7790_s20 + $0x20] sm:$0xff] %vm2755_vm14, %v2716_v57  ;;  %v3027_v61 = vsel %vm11264_vm7, %v2911_v10, 0.0  ;;  %vm11268_vm7 = vmmov %vm11251_vm0 }
 0x9cf   : > { %3028 = vadd.xlane.f32.xlu1 %v3027_v61 }
 0x9d1   : > { %v2718_v4 = vpop.permute.xlu1 %2717  ;;  %v8742_v19 = vpop.permute.xlu0 %2912 }
 0x9d2   : > { %2761 = vst.msk [vmem:[%s7790_s20 + $0x28] sm:$0xff] %vm2755_vm14, %v2718_v4 }
 0x9d5   : > { %v2915_v53 = vpop.permute.xlu1 %2914  ;;  %v2720_v55 = vpop.permute.xlu0 %2719 }
 0x9d6   : > { %2762 = vst.msk [vmem:[%s7790_s20 + $0x30] sm:$0xff] %vm2755_vm14, %v2720_v55  ;;  %v3033_v18 = vsel %vm11251_vm0, %v2915_v53, 0.0 }
 0x9d7   : > { %3034 = vadd.xlane.f32.xlu1 %v3033_v18 }
 0x9d9   : > { %v2722_v51 = vpop.permute.xlu1 %2721  ;;  %v8749_v11 = vpop.permute.xlu0 %2916 }
 0x9da   : > { %2763 = vst.msk [vmem:[%s7790_s20 + $0x38] sm:$0xff] %vm2755_vm14, %v2722_v51 }
 0x9dd   : > { %v2919_v21 = vpop.permute.xlu1 %2918  ;;  %v2724_v5 = vpop.permute.xlu0 %2723 }
 0x9de   : > { %2764 = vst.msk [vmem:[%s7790_s20 + $0x40] sm:$0xff] %vm2755_vm14, %v2724_v5  ;;  %v3039_v26 = vsel %vm11265_vm2, %v2919_v21, 0.0  ;;  %vm11270_vm2 = vmmov %vm11251_vm0 }
 0x9df   : > { %3040 = vadd.xlane.f32.xlu1 %v3039_v26 }
 0x9e1   : > { %v2726_v14 = vpop.permute.xlu1 %2725  ;;  %v8756_v52 = vpop.permute.xlu0 %2920 }
 0x9e2   : > { %2765 = vst.msk [vmem:[%s7790_s20 + $0x48] sm:$0xff] %vm2755_vm14, %v2726_v14 }
 0x9e5   : > { %v2923_v36 = vpop.permute.xlu1 %2922  ;;  %v2728_v10 = vpop.permute.xlu0 %2727 }
 0x9e6   : > { %2766 = vst.msk [vmem:[%s7790_s20 + $0x50] sm:$0xff] %vm2755_vm14, %v2728_v10  ;;  %v3045_v57 = vsel %vm11266_vm4, %v2923_v36, 0.0  ;;  %vm11271_vm4 = vmmov %vm11251_vm0 }
 0x9e7   : > { %3046 = vadd.xlane.f32.xlu1 %v3045_v57 }
 0x9e9   : > { %v2730_v61 = vpop.permute.xlu1 %2729  ;;  %v2925_v4 = vpop.permute.xlu0 %2924 }
 0x9ea   : > { %2767 = vst.msk [vmem:[%s7790_s20 + $0x58] sm:$0xff] %vm2755_vm14, %v2730_v61 }
 0x9ed   : > { %v2927_v53 = vpop.permute.xlu1 %2926  ;;  %v2732_v55 = vpop.permute.xlu0 %2731 }
 0x9ee   : > { %2768 = vst.msk [vmem:[%s7790_s20 + $0x60] sm:$0xff] %vm2755_vm14, %v2732_v55  ;;  %v3051_v18 = vsel %vm11267_vm9, %v2927_v53, 0.0  ;;  %vm11272_vm9 = vmmov %vm11251_vm0 }
 0x9ef   : > { %3052 = vadd.xlane.f32.xlu1 %v3051_v18 }
 0x9f1   : > { %v2734_v51 = vpop.permute.xlu1 %2733  ;;  %v2929_v21 = vpop.permute.xlu0 %2928 }
 0x9f2   : > { %2769 = vst.msk [vmem:[%s7790_s20 + $0x68] sm:$0xff] %vm2755_vm14, %v2734_v51 }
 0x9f5   : > { %v2931_v5 = vpop.permute.xlu1 %2930  ;;  %v2736_v26 = vpop.permute.xlu0 %2735 }
 0x9f6   : > { %2770 = vst.msk [vmem:[%s7790_s20 + $0x70] sm:$0xff] %vm2755_vm14, %v2736_v26  ;;  %v3057_v14 = vsel %vm11268_vm7, %v2931_v5, 0.0  ;;  %vm11273_vm7 = vmmov %vm11251_vm0 }
 0x9f7   : > { %3058 = vadd.xlane.f32.xlu1 %v3057_v14 }
 0x9f9   : > { %v2738_v36 = vpop.permute.xlu1 %2737 }
 0x9fa   : > { %2771 = vst.msk [vmem:[%s7790_s20 + $0x78] sm:$0xff] %vm2755_vm14, %v2738_v36  ;;  %vm11269_vm14 = vmmov %vm11251_vm0 }
 0xa2b   : > { %v2966_v10 = vpop.xlane.xlu0 %2965 }
 0xa2c   : > { %3060 = vxpose.xlu0.b32.start [1/16] (narrow) %v2966_v10, 8 }
 0xa2f   : > { %v2972_v57 = vpop.xlane.xlu0 %2971 }
 0xa33   : > { %v2975_v53 = vpop.xlane.xlu0 %2974 }
 0xa34   : > { %v2969_v61 = vpop.xlane.xlu1 %2968 }
 0xa35   : > { %3061 = vxpose.xlu0.b32.cont [2/16] (narrow) %v2969_v61, 8 }
 0xa37   : > { %v2978_v55 = vpop.xlane.xlu0 %2977 }
 0xa38   : > { %v2981_v18 = vpop.xlane.xlu1 %2980 }
 0xa39   : > { %3062 = vxpose.xlu0.b32.cont [3/16] (narrow) %v2972_v57, 8 }
 0xa3b   : > { %v2984_v51 = vpop.xlane.xlu0 %2983 }
 0xa3c   : > { %v2987_v26 = vpop.xlane.xlu1 %2986 }
 0xa3d   : > { %3063 = vxpose.xlu0.b32.cont [4/16] (narrow) %v2975_v53, 8 }
 0xa3f   : > { %v2990_v5 = vpop.xlane.xlu0 %2989 }
 0xa40   : > { %v2993_v14 = vpop.xlane.xlu1 %2992 }
 0xa41   : > { %3064 = vxpose.xlu0.b32.cont [5/16] (narrow) %v2978_v55, 8 }
 0xa43   : > { %v2996_v36 = vpop.xlane.xlu0 %2995 }
 0xa44   : > { %v2999_v10 = vpop.xlane.xlu1 %2998 }
 0xa45   : > { %3065 = vxpose.xlu0.b32.cont [6/16] (narrow) %v2981_v18, 8  ;;  %v3012_v18 = vsel %vm11269_vm14, %v8717_v37, 0.0  ;;  %v3042_v37 = vsel %vm11273_vm7, %v8756_v52, 0.0  ;;  %vm11274_vm14 = vmmov %vm11251_vm0 }
 0xa47   : > { %v3002_v61 = vpop.xlane.xlu0 %3001 }
 0xa48   : > { %v3005_v57 = vpop.xlane.xlu1 %3004 }
 0xa49   : > { %3066 = vxpose.xlu0.b32.cont [7/16] (narrow) %v2984_v51, 8  ;;  %v3018_v51 = vsel %vm11251_vm0, %v8725_v25, 0.0  ;;  %v3054_v25 = vsel %vm11251_vm0, %v2929_v21, 0.0 }
 0xa4b   : > { %v3008_v53 = vpop.xlane.xlu0 %3007 }
 0xa4c   : > { %v3011_v55 = vpop.xlane.xlu1 %3010 }
 0xa4d   : > { %3067 = vxpose.xlu0.b32.cont [8/16] (narrow) %v2987_v26, 8  ;;  %v3024_v26 = vsel %vm11270_vm2, %v8734_v49, 0.0 }
 0xa51   : > { %3068 = vxpose.xlu0.b32.cont [9/16] (narrow) %v2990_v5, 8  ;;  %v3030_v5 = vsel %vm11271_vm4, %v8742_v19, 0.0 }
 0xa55   : > { %3069 = vxpose.xlu0.b32.cont [10/16] (narrow) %v2993_v14, 8  ;;  %v3036_v14 = vsel %vm11272_vm9, %v8749_v11, 0.0 }
 0xa59   : > { %3070 = vxpose.xlu0.b32.cont [11/16] (narrow) %v2996_v36, 8  ;;  %v3048_v36 = vsel %vm11274_vm14, %v2925_v4, 0.0  ;;  %vm11280_vm14 = vmmov %vm11251_vm0 }
 0xa5d   : > { %3071 = vxpose.xlu0.b32.cont [12/16] (narrow) %v2999_v10, 8 }
 0xa61   : > { %3072 = vxpose.xlu0.b32.cont [13/16] (narrow) %v3002_v61, 8  ;;  %v3017_v61 = vpop.xlane.xlu1 %3016 }
 0xa65   : > { %3073 = vxpose.xlu0.b32.cont [14/16] (narrow) %v3005_v57, 8  ;;  %v3023_v57 = vpop.xlane.xlu1 %3022 }
 0xa69   : > { %3074 = vxpose.xlu0.b32.cont [15/16] (narrow) %v3008_v53, 8  ;;  %v3029_v53 = vpop.xlane.xlu1 %3028 }
 0xa6d   : > { %3075 = vxpose.xlu0.b32.end [16/16] (narrow) %v3011_v55, 8  ;;  %v3035_v4 = vpop.xlane.xlu1 %3034 }
 0xa71   : > { %v3041_v21 = vpop.xlane.xlu1 %3040 }
 0xa9a   : > { %3013 = vadd.xlane.f32.xlu0 %v3012_v18 }
 0xa9e   : > { %3019 = vadd.xlane.f32.xlu0 %v3018_v51  ;;  %v3047_v51 = vpop.xlane.xlu1 %3046 }
 0xaa2   : > { %3025 = vadd.xlane.f32.xlu0 %v3024_v26 }
 0xaa6   : > { %3031 = vadd.xlane.f32.xlu0 %v3030_v5  ;;  %v3053_v5 = vpop.xlane.xlu1 %3052 }
 0xaaa   : > { %3037 = vadd.xlane.f32.xlu0 %v3036_v14 }
 0xaad   : > { %v3076_v49 = vpop.trf.xlu0 }
 0xaae   : > { %3043 = vadd.xlane.f32.xlu0 %v3042_v37  ;;  %v3059_v37 = vpop.xlane.xlu1 %3058 }
 0xab2   : > { %3049 = vadd.xlane.f32.xlu0 %v3048_v36 }
 0xab6   : > { %3055 = vadd.xlane.f32.xlu0 %v3054_v25  ;;  %v8824_v25 = vld [vmem:[%s6924_s17 + $0x8] sm:$0xff] }
 0xb23   : > { %v3014_v10 = vpop.xlane.xlu0 %3013 }
 0xb24   : > { %3092 = vxpose.xlu1.b32.start [1/16] (narrow) %v3014_v10, 8 }
 0xb27   : > { %v3020_v19 = vpop.xlane.xlu0 %3019 }
 0xb28   : > { %3093 = vxpose.xlu1.b32.cont [2/16] (narrow) %v3017_v61, 8 }
 0xb2b   : > { %v3026_v11 = vpop.xlane.xlu0 %3025 }
 0xb2c   : > { %3094 = vxpose.xlu1.b32.cont [3/16] (narrow) %v3020_v19, 8  ;;  %v11278_v19 = vld [vmem:[#allocation116_spill] sm:$0xff] }
 0xb2d   : > { %vm11279_vm7 = vcmp.ne.f32.partialorder %v11278_v19, 0.0 }
 0xb2f   : > { %v3032_v52 = vpop.xlane.xlu0 %3031 }
 0xb30   : > { %3095 = vxpose.xlu1.b32.cont [4/16] (narrow) %v3023_v57, 8 }
 0xb33   : > { %v3038_v55 = vpop.xlane.xlu0 %3037 }
 0xb34   : > { %3096 = vxpose.xlu1.b32.cont [5/16] (narrow) %v3026_v11, 8 }
 0xb37   : > { %v3044_v18 = vpop.xlane.xlu0 %3043 }
 0xb38   : > { %3097 = vxpose.xlu1.b32.cont [6/16] (narrow) %v3029_v53, 8 }
 0xb3b   : > { %v3050_v26 = vpop.xlane.xlu0 %3049 }
 0xb3c   : > { %3098 = vxpose.xlu1.b32.cont [7/16] (narrow) %v3032_v52, 8 }
 0xb3f   : > { %v3056_v14 = vpop.xlane.xlu0 %3055 }
 0xb40   : > { %3099 = vxpose.xlu1.b32.cont [8/16] (narrow) %v3035_v4, 8 }
 0xb44   : > { %3100 = vxpose.xlu1.b32.cont [9/16] (narrow) %v3038_v55, 8 }
 0xb48   : > { %3101 = vxpose.xlu1.b32.cont [10/16] (narrow) %v3041_v21, 8  ;;  %v11291_v21 = vld [vmem:[#allocation51_spill] sm:$0xff] }
 0xb4c   : > { %3102 = vxpose.xlu1.b32.cont [11/16] (narrow) %v3044_v18, 8 }
 0xb50   : > { %3103 = vxpose.xlu1.b32.cont [12/16] (narrow) %v3047_v51, 8 }
 0xb54   : > { %3104 = vxpose.xlu1.b32.cont [13/16] (narrow) %v3050_v26, 8 }
 0xb58   : > { %3105 = vxpose.xlu1.b32.cont [14/16] (narrow) %v3053_v5, 8 }
 0xb5c   : > { %3106 = vxpose.xlu1.b32.cont [15/16] (narrow) %v3056_v14, 8 }
 0xb60   : > { %3107 = vxpose.xlu1.b32.end [16/16] (narrow) %v3059_v37, 8 }
 0xb7e   : > { %3934 = vrot.lane.b32.xlu1 %v11181_v48, %s6022_s25  ;;  %v11275_v48 = vld [vmem:[#allocation99_spill] sm:$0xff] }
 0xb7f   : > { %v8804_v36 = vrot.slane %v3076_v49, %v11275_v48 }
 0xb82   : > { %3966 = vrot.lane.b32.xlu1 %v11218_v60, %s6022_s25  ;;  %v8813_v60 = vld [vmem:[%s6924_s17] sm:$0xff] }
 0xb86   : > { %3936 = vrot.lane.b32.xlu1 %v11179_v50, %s6022_s25  ;;  %v3132_v50 = vadd.f32 %v8804_v36, %v8635_v32 }
 0xb8a   : > { %3968 = vrot.lane.b32.xlu1 %v11219_v15, %s6022_s25  ;;  %v3164_v15 = vmul.f32 %v8813_v60, %v3132_v50 }
 0xb8c   : > { %vm3196_vm2 = vcmp.gt.f32.partialorder %v3164_v15, 0.0 }
 0xb8e   : > { %3970 = vrot.lane.b32.xlu1 %v11223_v35, %s6022_s25 }
 0xb92   : > { %3940 = vrot.lane.b32.xlu1 %v11187_v58, %s6022_s25 }
 0xb96   : > { %3972 = vrot.lane.b32.xlu1 %v11224_v54, %s6022_s25  ;;  %v3228_v54 = vmul.f32 0.2, %v3164_v15 }
 0xb98   : > { %v8829_v10 = vsel %vm3196_vm2, %v3164_v15, %v3228_v54  ;;  %vm11281_vm2 = vmmov %vm11251_vm0  ;;  %v11294_v15 = vld [vmem:[#allocation49_spill] sm:$0xff] }
 0xb9a   : > { %3942 = vrot.lane.b32.xlu1 %v11188_v45, %s6022_s25 }
 0xb9e   : > { %3974 = vrot.lane.b32.xlu1 %v11225_v59, %s6022_s25 }
 0xba0   : > { %v3108_v58 = vpop.trf.xlu1 }
 0xba1   : > { %v8817_v35 = vrot.slane %v3108_v58, %v11275_v48 }
 0xba2   : > { %3976 = vrot.lane.b32.xlu1 %v11227_v20, %s6022_s25 }
 0xba3   : > { %v3133_v45 = vadd.f32 %v8817_v35, %v8635_v32  ;;  %v11276_v32 = vld [vmem:[#allocation103_spill] sm:$0xff] }
 0xba4   : > { %vm11277_vm9 = vcmp.ne.f32.partialorder %v11276_v32, 0.0 }
 0xba5   : > { %v3165_v59 = vmul.f32 %v8824_v25, %v3133_v45  ;;  %v3292_v20 = vsel %vm11277_vm9, %v8829_v10, 0.0  ;;  %vm11283_vm9 = vmmov %vm11251_vm0 }
 0xba6   : > { %3978 = vrot.lane.b32.xlu1 %v11229_v0, %s6022_s25 }
 0xba7   : > { %vm3197_vm4 = vcmp.gt.f32.partialorder %v3165_v59, 0.0  ;;  %v3229_v49 = vmul.f32 0.2, %v3165_v59 }
 0xba9   : > { %v8831_v61 = vsel %vm3197_vm4, %v3165_v59, %v3229_v49  ;;  %vm11282_vm4 = vmmov %vm11251_vm0 }
 0xbaa   : > { %3980 = vrot.lane.b32.xlu1 %v11231_v27, %s6022_s25  ;;  %v3293_v57 = vsel %vm11279_vm7, %v8831_v61, 0.0  ;;  %vm11285_vm7 = vmmov %vm11251_vm0 }
 0xbab   : > { %v3324_v11 = vmax.f32 %v3292_v20, %v3293_v57 }
 0xbad   : > { %3325 = vmax.xlane.f32.xlu0 %v3324_v11 }
 0xbae   : > { %3982 = vrot.lane.b32.xlu1 %v11233_v47, %s6022_s25 }
 0xbb2   : > { %3984 = vrot.lane.b32.xlu1 %v11235_v16, %s6022_s25 }
 0xbb6   : > { %3986 = vrot.lane.b32.xlu1 %v11237_v43, %s6022_s25  ;;  %v11286_v43 = vld [vmem:[#allocation50_spill] sm:$0xff] }
 0xbba   : > { %3988 = vrot.lane.b32.xlu1 %v11239_v1, %s6022_s25 }
 0xbbe   : > { %3990 = vrot.lane.b32.xlu1 %v11242_v28, %s6022_s25 }
 0xbc2   : > { %3992 = vrot.lane.b32.xlu1 %v11244_v29, %s6022_s25 }
 0xbc3   : > { %3938 = vrot.lane.b32.xlu0 %v11180_v8, %s6022_s25 }
 0xbc6   : > { %3994 = vrot.lane.b32.xlu1 %v11245_v24, %s6022_s25 }
 0xbc7   : > { %3944 = vrot.lane.b32.xlu0 %v11189_v63, %s6022_s25 }
 0xbca   : > { %3996 = vrot.lane.b32.xlu1 %v11247_v22, %s6022_s25 }
 0xbcb   : > { %3946 = vrot.lane.b32.xlu0 %v11190_v2, %s6022_s25 }
 0xbcf   : > { %3948 = vrot.lane.b32.xlu0 %v11197_v17, %s6022_s25 }
 0xbd3   : > { %3950 = vrot.lane.b32.xlu0 %v11198_v3, %s6022_s25 }
 0xbd7   : > { %3952 = vrot.lane.b32.xlu0 %v11199_v30, %s6022_s25 }
 0xbdb   : > { %3954 = vrot.lane.b32.xlu0 %v11200_v62, %s6022_s25 }
 0xbdf   : > { %3956 = vrot.lane.b32.xlu0 %v11207_v56, %s6022_s25 }
 0xbe3   : > { %3958 = vrot.lane.b32.xlu0 %v11208_v7, %s6022_s25  ;;  %v11284_v7 = vld [vmem:[#allocation52_spill] sm:$0xff] }
 0xbe7   : > { %3960 = vrot.lane.b32.xlu0 %v11209_v46, %s6022_s25 }
 0xbeb   : > { %3962 = vrot.lane.b32.xlu0 %v11210_v13, %s6022_s25 }
 0xbef   : > { %3964 = vrot.lane.b32.xlu0 %v11217_v6, %s6022_s25 }
 0xbf0   : > { %v3935_v8 = vpop.permute.xlu1 %3934 }
 0xbf1   : > { %v4030_v17 = vsel %vm11251_vm0, %v3935_v8, 0.0 }
 0xbf4   : > { %v3967_v22 = vpop.permute.xlu1 %3966 }
 0xbf5   : > { %v4078_v63 = vsel %vm11280_vm14, %v3967_v22, 0.0  ;;  %vm11287_vm14 = vmmov %vm11251_vm0  ;;  %v11300_v22 = vld [vmem:[#allocation57_spill] sm:$0xff] }
 0xbf6   : > { %4079 = vadd.xlane.f32.xlu1 %v4078_v63 }
 0xbf8   : > { %v3937_v2 = vpop.permute.xlu1 %3936 }
 0xbf9   : > { %v4033_v30 = vsel %vm11281_vm2, %v3937_v2, 0.0  ;;  %vm11288_vm2 = vmmov %vm11251_vm0 }
 0xbfc   : > { %v3969_v3 = vpop.permute.xlu1 %3968 }
 0xbfd   : > { %v4081_v62 = vsel %vm11282_vm4, %v3969_v3, 0.0  ;;  %vm11289_vm4 = vmmov %vm11251_vm0 }
 0xc00   : > { %v3971_v29 = vpop.permute.xlu1 %3970 }
 0xc01   : > { %v4084_v56 = vsel %vm11283_vm9, %v3971_v29, 0.0  ;;  %vm11290_vm9 = vmmov %vm11251_vm0 }
 0xc04   : > { %v3941_v13 = vpop.permute.xlu1 %3940 }
 0xc05   : > { %v4039_v55 = vsel %vm11290_vm9, %v3941_v13, 0.0  ;;  %vm11297_vm9 = vmmov %vm11251_vm0 }
 0xc08   : > { %v3973_v27 = vpop.permute.xlu1 %3972 }
 0xc09   : > { %v4087_v1 = vsel %vm11287_vm14, %v3973_v27, 0.0  ;;  %vm11293_vm14 = vmmov %vm11251_vm0 }
 0xc0c   : > { %v3943_v47 = vpop.permute.xlu1 %3942 }
 0xc0e   : > { %4031 = vadd.xlane.f32.xlu0 %v4030_v17 }
 0xc10   : > { %v3975_v16 = vpop.permute.xlu1 %3974 }
 0xc11   : > { %v4090_v24 = vsel %vm11251_vm0, %v3975_v16, 0.0 }
 0xc12   : > { %4034 = vadd.xlane.f32.xlu0 %v4033_v30 }
 0xc14   : > { %v3977_v28 = vpop.permute.xlu1 %3976 }
 0xc15   : > { %v4093_v53 = vsel %vm11288_vm2, %v3977_v28, 0.0  ;;  %vm11295_vm2 = vmmov %vm11251_vm0  ;;  %v11308_v28 = vld [vmem:[#allocation55_spill] sm:$0xff] }
 0xc16   : > { %4082 = vadd.xlane.f32.xlu0 %v4081_v62 }
 0xc18   : > { %v3979_v52 = vpop.permute.xlu1 %3978 }
 0xc19   : > { %v4096_v4 = vsel %vm11289_vm4, %v3979_v52, 0.0  ;;  %vm11296_vm4 = vmmov %vm11251_vm0 }
 0xc1a   : > { %4085 = vadd.xlane.f32.xlu0 %v4084_v56  ;;  %v11303_v56 = vld [vmem:[#allocation54_spill] sm:$0xff] }
 0xc1c   : > { %v3981_v37 = vpop.permute.xlu1 %3980 }
 0xc1d   : > { %v4099_v58 = vsel %vm11295_vm2, %v3981_v37, 0.0  ;;  %vm11301_vm2 = vmmov %vm11251_vm0 }
 0xc20   : > { %v3983_v50 = vpop.permute.xlu1 %3982 }
 0xc21   : > { %v4102_v54 = vsel %vm11296_vm4, %v3983_v50, 0.0  ;;  %vm11302_vm4 = vmmov %vm11251_vm0 }
 0xc24   : > { %v3985_v45 = vpop.permute.xlu1 %3984 }
 0xc25   : > { %v4105_v59 = vsel %vm11297_vm9, %v3985_v45, 0.0  ;;  %vm11304_vm9 = vmmov %vm11251_vm0 }
 0xc28   : > { %v3987_v49 = vpop.permute.xlu1 %3986 }
 0xc2c   : > { %v3989_v62 = vpop.permute.xlu1 %3988 }
 0xc30   : > { %3840 = vrot.lane.b32.xlu0 %v11284_v7, %s6022_s25  ;;  %v3991_v29 = vpop.permute.xlu1 %3990  ;;  %v4111_v7 = vsel %vm11304_vm9, %v3989_v62, 0.0  ;;  %vm11310_vm9 = vmmov %vm11251_vm0 }
 0xc34   : > { %v3993_v13 = vpop.permute.xlu1 %3992 }
 0xc36   : > { %v8888_v46 = vpop.xlane.xlu0 %3325 }
 0xc38   : > { %v3995_v27 = vpop.permute.xlu1 %3994 }
 0xc3a   : > { %v3939_v6 = vpop.permute.xlu0 %3938 }
 0xc3b   : > { %v4036_v0 = vsel %vm11285_vm7, %v3939_v6, 0.0  ;;  %vm11292_vm7 = vmmov %vm11251_vm0 }
 0xc3c   : > { %4037 = vadd.xlane.f32.xlu1 %v4036_v0  ;;  %v4042_v51 = vsel %vm11292_vm7, %v3943_v47, 0.0  ;;  %vm11298_vm7 = vmmov %vm11251_vm0  ;;  %v4120_v47 = vsel %vm11251_vm0, %v3995_v27, 0.0 }
 0xc3d   : > { %v4108_v20 = vsel %vm11298_vm7, %v3987_v49, 0.0  ;;  %vm11305_vm7 = vmmov %vm11251_vm0 }
 0xc3e   : > { %v3945_v18 = vpop.permute.xlu0 %3944  ;;  %v4114_v6 = vsel %vm11305_vm7, %v3991_v29, 0.0  ;;  %vm11311_vm7 = vmmov %vm11251_vm0 }
 0xc3f   : > { %v4045_v26 = vsel %vm11293_vm14, %v3945_v18, 0.0  ;;  %vm11299_vm14 = vmmov %vm11251_vm0  ;;  %v3997_v18 = vpop.permute.xlu1 %3996 }
 0xc42   : > { %v3947_v5 = vpop.permute.xlu0 %3946 }
 0xc43   : > { %v4048_v14 = vsel %vm11251_vm0, %v3947_v5, 0.0 }
 0xc46   : > { %v3949_v57 = vpop.permute.xlu0 %3948 }
 0xc47   : > { %v4051_v8 = vsel %vm11299_vm14, %v3949_v57, 0.0  ;;  %vm11306_vm14 = vmmov %vm11251_vm0 }
 0xc48   : > { %v4117_v0 = vsel %vm11306_vm14, %v3993_v13, 0.0  ;;  %vm11313_vm14 = vmmov %vm11251_vm0 }
 0xc49   : > { %v4123_v5 = vsel %vm11313_vm14, %v3997_v18, 0.0  ;;  %vm11326_vm14 = vmmov %vm11251_vm0 }
 0xc4a   : > { %v3951_v11 = vpop.permute.xlu0 %3950 }
 0xc4b   : > { %v4054_v2 = vsel %vm11251_vm0, %v3951_v11, 0.0 }
 0xc4d   : > { %3838 = vrot.lane.b32.xlu1 %v11286_v43, %s6022_s25 }
 0xc4e   : > { %v3953_v63 = vpop.permute.xlu0 %3952 }
 0xc4f   : > { %4088 = vadd.xlane.f32.xlu0 %v4087_v1  ;;  %v4057_v17 = vsel %vm11301_vm2, %v3953_v63, 0.0  ;;  %vm11307_vm2 = vmmov %vm11251_vm0 }
 0xc52   : > { %v3955_v3 = vpop.permute.xlu0 %3954 }
 0xc53   : > { %4091 = vadd.xlane.f32.xlu0 %v4090_v24  ;;  %v4060_v30 = vsel %vm11302_vm4, %v3955_v3, 0.0  ;;  %vm11309_vm4 = vmmov %vm11251_vm0 }
 0xc56   : > { %v3957_v16 = vpop.permute.xlu0 %3956 }
 0xc57   : > { %4094 = vadd.xlane.f32.xlu0 %v4093_v53  ;;  %v4063_v1 = vsel %vm11307_vm2, %v3957_v16, 0.0  ;;  %vm11321_vm2 = vmmov %vm11251_vm0 }
 0xc5a   : > { %v3959_v43 = vpop.permute.xlu0 %3958 }
 0xc5b   : > { %4097 = vadd.xlane.f32.xlu0 %v4096_v4  ;;  %v4066_v53 = vsel %vm11309_vm4, %v3959_v43, 0.0  ;;  %vm11323_vm4 = vmmov %vm11251_vm0 }
 0xc5e   : > { %v3961_v24 = vpop.permute.xlu0 %3960 }
 0xc5f   : > { %v4069_v52 = vsel %vm11310_vm9, %v3961_v24, 0.0  ;;  %vm11324_vm9 = vmmov %vm11251_vm0 }
 0xc62   : > { %v3963_v4 = vpop.permute.xlu0 %3962 }
 0xc71   : > { %4040 = vadd.xlane.f32.xlu1 %v4039_v55  ;;  %3844 = vrot.lane.b32.xlu0 %v11291_v21, %s6022_s25  ;;  %v4072_v55 = vsel %vm11311_vm7, %v3963_v4, 0.0  ;;  %v3965_v21 = vpop.permute.xlu0 %3964  ;;  %vm11325_vm7 = vmmov %vm11251_vm0 }
 0xc75   : > { %4043 = vadd.xlane.f32.xlu1 %v4042_v51 }
 0xc79   : > { %4046 = vadd.xlane.f32.xlu1 %v4045_v26  ;;  %v11312_v26 = vld [vmem:[#allocation53_spill] sm:$0xff] }
 0xc7d   : > { %4049 = vadd.xlane.f32.xlu1 %v4048_v14 }
 0xc7f   : > { %v4080_v49 = vpop.xlane.xlu1 %4079 }
 0xc8e   : > { %3842 = vrot.lane.b32.xlu1 %v11294_v15, %s6022_s25 }
 0xc90   : > { %4100 = vadd.xlane.f32.xlu0 %v4099_v58 }
 0xc94   : > { %4103 = vadd.xlane.f32.xlu0 %v4102_v54  ;;  %v4075_v54 = vsel %vm11251_vm0, %v3965_v21, 0.0 }
 0xc97   : > { %v4032_v51 = vpop.xlane.xlu0 %4031 }
 0xc98   : > { %4106 = vadd.xlane.f32.xlu0 %v4105_v59 }
 0xc9b   : > { %v4035_v14 = vpop.xlane.xlu0 %4034 }
 0xc9c   : > { %4109 = vadd.xlane.f32.xlu0 %v4108_v20 }
 0xc9f   : > { %v4083_v37 = vpop.xlane.xlu0 %4082 }
 0xca3   : > { %v4086_v50 = vpop.xlane.xlu0 %4085 }
 0xca7   : > { %v8930_v15 = vpop.permute.xlu0 %3840 }
 0xcb2   : > { %4052 = vadd.xlane.f32.xlu1 %v4051_v8  ;;  %3848 = vrot.lane.b32.xlu0 %v11300_v22, %s6022_s25 }
 0xcb6   : > { %4055 = vadd.xlane.f32.xlu1 %v4054_v2 }
 0xcba   : > { %4058 = vadd.xlane.f32.xlu1 %v4057_v17 }
 0xcbe   : > { %4061 = vadd.xlane.f32.xlu1 %v4060_v30 }
 0xcc5   : > { %v4038_v8 = vpop.xlane.xlu1 %4037 }
 0xcc9   : > { %v3839_v63 = vpop.permute.xlu1 %3838 }
 0xccf   : > { %3846 = vrot.lane.b32.xlu1 %v11303_v56, %s6022_s25 }
 0xcd1   : > { %4112 = vadd.xlane.f32.xlu0 %v4111_v7 }
 0xcd5   : > { %4115 = vadd.xlane.f32.xlu0 %v4114_v6 }
 0xcd8   : > { %v4089_v58 = vpop.xlane.xlu0 %4088 }
 0xcd9   : > { %4118 = vadd.xlane.f32.xlu0 %v4117_v0 }
 0xcdc   : > { %v4092_v45 = vpop.xlane.xlu0 %4091 }
 0xcdd   : > { %4121 = vadd.xlane.f32.xlu0 %v4120_v47 }
 0xce0   : > { %v4095_v59 = vpop.xlane.xlu0 %4094 }
 0xce4   : > { %v4098_v20 = vpop.xlane.xlu0 %4097 }
 0xce8   : > { %v8933_v57 = vpop.permute.xlu0 %3844 }
 0xcf3   : > { %4064 = vadd.xlane.f32.xlu1 %v4063_v1  ;;  %3852 = vrot.lane.b32.xlu0 %v11308_v28, %s6022_s25 }
 0xcf7   : > { %4067 = vadd.xlane.f32.xlu1 %v4066_v53 }
 0xcfa   : > { %v4041_v2 = vpop.xlane.xlu1 %4040 }
 0xcfb   : > { %4070 = vadd.xlane.f32.xlu1 %v4069_v52 }
 0xcfe   : > { %v4044_v3 = vpop.xlane.xlu1 %4043 }
 0xcff   : > { %4073 = vadd.xlane.f32.xlu1 %v4072_v55 }
 0xd02   : > { %v4047_v62 = vpop.xlane.xlu1 %4046 }
 0xd06   : > { %v4050_v7 = vpop.xlane.xlu1 %4049 }
 0xd0a   : > { %v3843_v6 = vpop.permute.xlu1 %3842 }
 0xd10   : > { %3850 = vrot.lane.b32.xlu1 %v11312_v26, %s6022_s25  ;;  %v11314_v26 = vld [vmem:[#allocation67_spill] sm:$0xff] }
 0xd12   : > { %4124 = vadd.xlane.f32.xlu0 %v4123_v5  ;;  %v11315_v5 = vld [vmem:[#allocation71_spill] sm:$0xff] }
 0xd19   : > { %v4101_v11 = vpop.xlane.xlu0 %4100 }
 0xd1d   : > { %v4104_v22 = vpop.xlane.xlu0 %4103 }
 0xd21   : > { %v4107_v17 = vpop.xlane.xlu0 %4106 }
 0xd25   : > { %v4110_v30 = vpop.xlane.xlu0 %4109 }
 0xd29   : > { %v3849_v29 = vpop.permute.xlu0 %3848 }
 0xd34   : > { %4076 = vadd.xlane.f32.xlu1 %v4075_v54  ;;  %v3886_v54 = vsel %vm11321_vm2, %v3839_v63, 0.0  ;;  %vm11327_vm2 = vmmov %vm11251_vm0 }
 0xd3b   : > { %v4053_v0 = vpop.xlane.xlu1 %4052 }
 0xd3f   : > { %4158 = vxpose.xlu0.b32.start [1/16] (narrow) %v4080_v49, 8  ;;  %v4056_v47 = vpop.xlane.xlu1 %4055  ;;  %v3892_v49 = vsel %vm11323_vm4, %v3843_v6, 0.0  ;;  %vm11329_vm4 = vmmov %vm11251_vm0  ;;  %v8969_v6 = vld [vmem:[%s6924_s17 + $0x18] sm:$0xff] }
 0xd43   : > { %4159 = vxpose.xlu0.b32.cont [2/16] (narrow) %v4083_v37, 8  ;;  %v4059_v43 = vpop.xlane.xlu1 %4058  ;;  %v11317_v37 = vld [vmem:[#allocation59_spill] sm:$0xff] }
 0xd47   : > { %4160 = vxpose.xlu0.b32.cont [3/16] (narrow) %v4086_v50, 8  ;;  %v4062_v1 = vpop.xlane.xlu1 %4061  ;;  %v11318_v50 = vld [vmem:[#allocation56_spill] sm:$0xff] }
 0xd4b   : > { %4161 = vxpose.xlu0.b32.cont [4/16] (narrow) %v4089_v58, 8  ;;  %v3847_v28 = vpop.permute.xlu1 %3846  ;;  %v11319_v58 = vld [vmem:[#allocation60_spill] sm:$0xff] }
 0xd4c   : > { %v3898_v63 = vsel %vm11327_vm2, %v3847_v28, 0.0  ;;  %vm11333_vm2 = vmmov %vm11251_vm0 }
 0xd4f   : > { %4162 = vxpose.xlu0.b32.cont [5/16] (narrow) %v4092_v45, 8  ;;  %v11320_v45 = vld [vmem:[#allocation78_spill] sm:$0xff] }
 0xd53   : > { %4163 = vxpose.xlu0.b32.cont [6/16] (narrow) %v4095_v59, 8  ;;  %v11322_v59 = vld [vmem:[#allocation72_spill] sm:$0xff] }
 0xd57   : > { %4164 = vxpose.xlu0.b32.cont [7/16] (narrow) %v4098_v20, 8  ;;  %v3895_v20 = vsel %vm11324_vm9, %v8933_v57, 0.0  ;;  %vm11330_vm9 = vmmov %vm11251_vm0 }
 0xd5a   : > { %v4113_v56 = vpop.xlane.xlu0 %4112 }
 0xd5b   : > { %4165 = vxpose.xlu0.b32.cont [8/16] (narrow) %v4101_v11, 8  ;;  %v3901_v11 = vsel %vm11325_vm7, %v3849_v29, 0.0  ;;  %vm11332_vm7 = vmmov %vm11251_vm0 }
 0xd5e   : > { %v4116_v13 = vpop.xlane.xlu0 %4115 }
 0xd5f   : > { %4166 = vxpose.xlu0.b32.cont [9/16] (narrow) %v4104_v22, 8  ;;  %v3889_v22 = vsel %vm11251_vm0, %v8930_v15, 0.0  ;;  %v3135_v15 = vadd.f32 %v8817_v35, %v8641_v12 }
 0xd62   : > { %v4119_v27 = vpop.xlane.xlu0 %4118 }
 0xd63   : > { %4167 = vxpose.xlu0.b32.cont [10/16] (narrow) %v4107_v17, 8 }
 0xd66   : > { %v4122_v16 = vpop.xlane.xlu0 %4121 }
 0xd67   : > { %4126 = vxpose.xlu1.b32.start [1/16] (narrow) %v4032_v51, 8  ;;  %4168 = vxpose.xlu0.b32.cont [11/16] (narrow) %v4110_v30, 8 }
 0xd6a   : > { %v3853_v52 = vpop.permute.xlu0 %3852 }
 0xd6b   : > { %4127 = vxpose.xlu1.b32.cont [2/16] (narrow) %v4035_v14, 8  ;;  %4169 = vxpose.xlu0.b32.cont [12/16] (narrow) %v4113_v56, 8  ;;  %v11316_v14 = vld [vmem:[#allocation66_spill] sm:$0xff] }
 0xd6f   : > { %4170 = vxpose.xlu0.b32.cont [13/16] (narrow) %v4116_v13, 8  ;;  %4128 = vxpose.xlu1.b32.cont [3/16] (narrow) %v4038_v8, 8  ;;  %v3907_v8 = vsel %vm11326_vm14, %v3853_v52, 0.0 }
 0xd73   : > { %4171 = vxpose.xlu0.b32.cont [14/16] (narrow) %v4119_v27, 8  ;;  %4129 = vxpose.xlu1.b32.cont [4/16] (narrow) %v4041_v2, 8 }
 0xd77   : > { %4172 = vxpose.xlu0.b32.cont [15/16] (narrow) %v4122_v16, 8  ;;  %4130 = vxpose.xlu1.b32.cont [5/16] (narrow) %v4044_v3, 8  ;;  %v5982_v16 = vld [vmem:[%s6924_s17 + $0x10] sm:$0xff] }
 0xd7b   : > { %4131 = vxpose.xlu1.b32.cont [6/16] (narrow) %v4047_v62, 8 }
 0xd7c   : > { %v4065_v24 = vpop.xlane.xlu1 %4064 }
 0xd7f   : > { %4132 = vxpose.xlu1.b32.cont [7/16] (narrow) %v4050_v7, 8  ;;  %v3134_v7 = vadd.f32 %v8804_v36, %v8641_v12 }
 0xd80   : > { %v4068_v53 = vpop.xlane.xlu1 %4067 }
 0xd83   : > { %4133 = vxpose.xlu1.b32.cont [8/16] (narrow) %v4053_v0, 8  ;;  %v3167_v0 = vmul.f32 %v8969_v6, %v3135_v15  ;;  %v9023_v15 = vld [vmem:[%s6924_s17 + $0x38] sm:$0xff] }
 0xd84   : > { %v4071_v4 = vpop.xlane.xlu1 %4070 }
 0xd85   : > { %v3231_v28 = vmul.f32 0.2, %v3167_v0  ;;  %vm3199_vm14 = vcmp.gt.f32.partialorder %v3167_v0, 0.0 }
 0xd87   : > { %4134 = vxpose.xlu1.b32.cont [9/16] (narrow) %v4056_v47, 8 }
 0xd88   : > { %v4074_v21 = vpop.xlane.xlu1 %4073 }
 0xd8b   : > { %4135 = vxpose.xlu1.b32.cont [10/16] (narrow) %v4059_v43, 8  ;;  %v3166_v43 = vmul.f32 %v5982_v16, %v3134_v7  ;;  %v9027_v7 = vld [vmem:[%s6924_s17 + $0x30] sm:$0xff] }
 0xd8c   : > { %v3851_v18 = vpop.permute.xlu1 %3850 }
 0xd8d   : > { %v3904_v2 = vsel %vm11328_vm8, %v3851_v18, 0.0  ;;  %vm11331_vm8 = vmmov %vm11251_vm0 }
 0xd8f   : > { %4136 = vxpose.xlu1.b32.cont [11/16] (narrow) %v4062_v1, 8 }
 0xd93   : > { %4137 = vxpose.xlu1.b32.cont [12/16] (narrow) %v4065_v24, 8 }
 0xd97   : > { %4138 = vxpose.xlu1.b32.cont [13/16] (narrow) %v4068_v53, 8  ;;  %v3230_v53 = vmul.f32 0.2, %v3166_v43 }
 0xd9b   : > { %v4125_v55 = vpop.xlane.xlu0 %4124  ;;  %4139 = vxpose.xlu1.b32.cont [14/16] (narrow) %v4071_v4, 8 }
 0xd9c   : > { %4173 = vxpose.xlu0.b32.end [16/16] (narrow) %v4125_v55, 8  ;;  %v8976_v55 = vsel %vm3199_vm14, %v3167_v0, %v3231_v28 }
 0xd9f   : > { %4140 = vxpose.xlu1.b32.cont [15/16] (narrow) %v4074_v21, 8 }
 0xdbd   : > { %v4077_v51 = vpop.xlane.xlu1 %4076 }
 0xdbe   : > { %4141 = vxpose.xlu1.b32.end [16/16] (narrow) %v4077_v51, 8 }
 0xdc5   : > { %3856 = vrot.lane.b32.xlu0 %v11314_v26, %s6022_s25 }
 0xdc9   : > { %3862 = vrot.lane.b32.xlu0 %v11315_v5, %s6022_s25  ;;  %v11337_v5 = vld [vmem:[#allocation115_spill] sm:$0xff] }
 0xdcd   : > { %3866 = vrot.lane.b32.xlu0 %v11316_v14, %s6022_s25 }
 0xddc   : > { %3854 = vrot.lane.b32.xlu1 %v11317_v37, %s6022_s25  ;;  %v4174_v17 = vpop.trf.xlu0  ;;  %v11339_v37 = vld [vmem:[#allocation102_spill] sm:$0xff] }
 0xde0   : > { %3858 = vrot.lane.b32.xlu1 %v11318_v50, %s6022_s25 }
 0xde4   : > { %3860 = vrot.lane.b32.xlu1 %v11319_v58, %s6022_s25 }
 0xde8   : > { %3864 = vrot.lane.b32.xlu1 %v11320_v45, %s6022_s25  ;;  %v8989_v45 = vrot.slane %v4174_v17, %v11275_v48 }
 0xdec   : > { %3887 = vadd.xlane.f32.xlu0 %v3886_v54  ;;  %3868 = vrot.lane.b32.xlu1 %v11322_v59, %s6022_s25 }
 0xdf0   : > { %3893 = vadd.xlane.f32.xlu0 %v3892_v49 }
 0xdf4   : > { %3896 = vadd.xlane.f32.xlu0 %v3895_v20 }
 0xdf8   : > { %3902 = vadd.xlane.f32.xlu0 %v3901_v11  ;;  %v11341_v11 = vld [vmem:[#allocation12_spill] sm:$0xff] }
 0xdfc   : > { %3908 = vadd.xlane.f32.xlu0 %v3907_v8 }
 0xdfe   : > { %v4142_v30 = vpop.trf.xlu1 }
 0xdff   : > { %v8992_v54 = vrot.slane %v4142_v30, %v11275_v48  ;;  %v11345_v30 = vld [vmem:[#allocation24_spill] sm:$0xff] }
 0xe10   : > { %3890 = vadd.xlane.f32.xlu1 %v3889_v22 }
 0xe14   : > { %3899 = vadd.xlane.f32.xlu1 %v3898_v63 }
 0xe18   : > { %3905 = vadd.xlane.f32.xlu1 %v3904_v2 }
 0xe37   : > { %v3857_v57 = vpop.permute.xlu0 %3856 }
 0xe38   : > { %v3913_v3 = vsel %vm11329_vm4, %v3857_v57, 0.0  ;;  %vm3198_vm4 = vcmp.gt.f32.partialorder %v3166_v43, 0.0 }
 0xe39   : > { %3914 = vadd.xlane.f32.xlu0 %v3913_v3  ;;  %v8978_v18 = vsel %vm3198_vm4, %v3166_v43, %v3230_v53  ;;  %vm11342_vm4 = vcmp.ne.f32.partialorder %v11276_v32, 0.0 }
 0xe3a   : > { %11334 = vst [vmem:[#allocation95_spill] sm:$0xff] %v8978_v18 }
 0xe3b   : > { %v3863_v27 = vpop.permute.xlu0 %3862 }
 0xe3c   : > { %v3922_v12 = vsel %vm11251_vm0, %v3863_v27, 0.0 }
 0xe3f   : > { %v3867_v4 = vpop.permute.xlu0 %3866 }
 0xe4e   : > { %v3855_v62 = vpop.permute.xlu1 %3854 }
 0xe4f   : > { %v3910_v29 = vsel %vm11330_vm9, %v3855_v62, 0.0  ;;  %vm11335_vm9 = vmmov %vm11251_vm0  ;;  %v3139_v62 = vadd.f32 %v8817_v35, %v8654_v42 }
 0xe50   : > { %3911 = vadd.xlane.f32.xlu1 %v3910_v29  ;;  %v3928_v51 = vsel %vm11335_vm9, %v3867_v4, 0.0  ;;  %vm11343_vm9 = vcmp.ne.f32.partialorder %v11278_v19, 0.0  ;;  %v3138_v29 = vadd.f32 %v8804_v36, %v8654_v42 }
 0xe52   : > { %v3859_v56 = vpop.permute.xlu1 %3858 }
 0xe53   : > { %v3916_v13 = vsel %vm11331_vm8, %v3859_v56, 0.0  ;;  %vm11336_vm8 = vmmov %vm11251_vm0  ;;  %vm11340_vm0 = vcmp.ne.f32.partialorder %v11339_v37, 0.0  ;;  %v3171_v56 = vmul.f32 %v9023_v15, %v3139_v62 }
 0xe54   : > { %3917 = vadd.xlane.f32.xlu0 %v3916_v13  ;;  %v3294_v50 = vsel %vm11340_vm0, %v8978_v18, 0.0  ;;  %v3170_v13 = vmul.f32 %v9027_v7, %v3138_v29 }
 0xe55   : > { %v3235_v27 = vmul.f32 0.2, %v3171_v56 }
 0xe56   : > { %v3861_v47 = vpop.permute.xlu1 %3860 }
 0xe57   : > { %v3919_v1 = vsel %vm11332_vm7, %v3861_v47, 0.0  ;;  %vm11338_vm7 = vcmp.ne.f32.partialorder %v11337_v5, 0.0 }
 0xe58   : > { %3920 = vadd.xlane.f32.xlu1 %v3919_v1  ;;  %v3295_v14 = vsel %vm11338_vm7, %v8976_v55, 0.0  ;;  %v3234_v1 = vmul.f32 0.2, %v3170_v13  ;;  %vm3202_vm7 = vcmp.gt.f32.partialorder %v3170_v13, 0.0 }
 0xe59   : > { %v3327_v58 = vmax.f32 %v3294_v50, %v3295_v14  ;;  %v11350_v14 = vld [vmem:[#allocation104_spill] sm:$0xff] }
 0xe5a   : > { %v3865_v24 = vpop.permute.xlu1 %3864 }
 0xe5b   : > { %v3925_v52 = vsel %vm11333_vm2, %v3865_v24, 0.0 }
 0xe5c   : > { %3923 = vadd.xlane.f32.xlu1 %v3922_v12  ;;  %3926 = vadd.xlane.f32.xlu0 %v3925_v52  ;;  %v9035_v52 = vsel %vm3202_vm7, %v3170_v13, %v3234_v1 }
 0xe5e   : > { %v3869_v21 = vpop.permute.xlu1 %3868 }
 0xe5f   : > { %v3931_v26 = vsel %vm11336_vm8, %v3869_v21, 0.0  ;;  %vm3203_vm8 = vcmp.gt.f32.partialorder %v3171_v56, 0.0 }
 0xe60   : > { %3929 = vadd.xlane.f32.xlu1 %v3928_v51  ;;  %3932 = vadd.xlane.f32.xlu0 %v3931_v26  ;;  %v9033_v42 = vsel %vm3203_vm8, %v3171_v56, %v3235_v27  ;;  %v11346_v51 = vld [vmem:[#allocation119_spill] sm:$0xff]  ;;  %vm11351_vm8 = vcmp.ne.f32.partialorder %v11350_v14, 0.0  ;;  %v5986_v56 = vld [vmem:[%s6924_s17 + $0x20] sm:$0xff]  ;;  %v3143_v27 = vadd.f32 %v8817_v35, %v8649_v39 }
 0xe61   : > { %v3298_v50 = vsel %vm11351_vm8, %v9035_v52, 0.0 }
 0xe64   : > { %3328 = vmax.xlane.f32.xlu1 %v3327_v58 }
 0xe75   : > { %v3888_v59 = vpop.xlane.xlu0 %3887 }
 0xe76   : > { %v4198_v49 = vadd.f32 %v8992_v54, %v3888_v59  ;;  %v4199_v20 = vadd.f32 %v8989_v45, %v3888_v59  ;;  %3594 = vrot.lane.b32.xlu0 %v11341_v11, %s6020_s23 }
 0xe78   : > { %v4230_v8 = vmul.f32 %v8813_v60, %v4198_v49  ;;  %v4231_v22 = vmul.f32 %v8824_v25, %v4199_v20  ;;  %v11344_v25 = vld [vmem:[#allocation22_spill] sm:$0xff]  ;;  %v11352_v49 = vld [vmem:[#allocation20_spill] sm:$0xff] }
 0xe79   : > { %v11353_v20 = vld [vmem:[#allocation26_spill] sm:$0xff] }
 0xe7a   : > { %v4294_v63 = vmul.f32 0.2, %v4230_v8  ;;  %v4295_v2 = vmul.f32 0.2, %v4231_v22  ;;  %4660 = vrot.lane.b32.xlu0 %v11341_v11, %s6022_s25  ;;  %vm4262_vm14 = vcmp.gt.f32.partialorder %v4230_v8, 0.0  ;;  %vm4263_vm2 = vcmp.gt.f32.partialorder %v4231_v22, 0.0 }
 0xe7b   : > { %v11354_v11 = vld [vmem:[#allocation27_spill] sm:$0xff] }
 0xe7c   : > { %v9002_v48 = vsel %vm4262_vm14, %v4230_v8, %v4294_v63  ;;  %v9004_v17 = vsel %vm4263_vm2, %v4231_v22, %v4295_v2  ;;  %vm11347_vm2 = vcmp.ne.f32.partialorder %v11346_v51, 0.0  ;;  %v3894_v8 = vpop.xlane.xlu0 %3893  ;;  %v11355_v22 = vld [vmem:[#allocation31_spill] sm:$0xff]  ;;  %v3137_v2 = vadd.f32 %v8817_v35, %v8646_v23 }
 0xe7d   : > { %v4358_v57 = vsel %vm11342_vm4, %v9002_v48, 0.0  ;;  %v4359_v60 = vsel %vm11343_vm9, %v9004_v17, 0.0  ;;  %v3299_v26 = vsel %vm11347_vm2, %v9033_v42, 0.0  ;;  %vm11348_vm4 = vcmp.ne.f32.partialorder %v11339_v37, 0.0 }
 0xe7e   : > { %4644 = vrot.lane.b32.xlu0 %v11344_v25, %s6022_s25  ;;  %v4390_v3 = vmax.f32 %v4358_v57, %v4359_v60  ;;  %vm11349_vm9 = vcmp.ne.f32.partialorder %v11337_v5, 0.0  ;;  %v3333_v59 = vmax.f32 %v3298_v50, %v3299_v26  ;;  %v3136_v57 = vadd.f32 %v8804_v36, %v8646_v23  ;;  %v5985_v60 = vld [vmem:[%s6924_s17 + $0x28] sm:$0xff] }
 0xe80   : > { %4391 = vmax.xlane.f32.xlu1 %v4390_v3  ;;  %v3897_v63 = vpop.xlane.xlu0 %3896  ;;  %v4202_v3 = vadd.f32 %v8992_v54, %v3894_v8  ;;  %v3168_v13 = vmul.f32 %v5986_v56, %v3136_v57 }
 0xe81   : > { %v4205_v1 = vadd.f32 %v8989_v45, %v3897_v63 }
 0xe82   : > { %3576 = vrot.lane.b32.xlu0 %v11345_v30, %s6020_s23 }
 0xe84   : > { %v9076_v62 = vpop.xlane.xlu0 %3902 }
 0xe86   : > { %4642 = vrot.lane.b32.xlu0 %v11345_v30, %s6022_s25  ;;  %v4203_v30 = vadd.f32 %v8989_v45, %v3894_v8 }
 0xe88   : > { %v4235_v23 = vmul.f32 %v5985_v60, %v4203_v30  ;;  %v11359_v30 = vld [vmem:[#allocation105_spill] sm:$0xff] }
 0xe8a   : > { %vm4267_vm2 = vcmp.gt.f32.partialorder %v4235_v23, 0.0 }
 0xe99   : > { %v3891_v0 = vpop.xlane.xlu1 %3890 }
 0xe9a   : > { %v4200_v47 = vadd.f32 %v8992_v54, %v3891_v0  ;;  %v4201_v43 = vadd.f32 %v8989_v45, %v3891_v0 }
 0xe9c   : > { %v4232_v28 = vmul.f32 %v5982_v16, %v4200_v47  ;;  %v4233_v24 = vmul.f32 %v8969_v6, %v4201_v43  ;;  %v4234_v47 = vmul.f32 %v5986_v56, %v4202_v3  ;;  %v4204_v43 = vadd.f32 %v8992_v54, %v3897_v63 }
 0xe9d   : > { %v9078_v29 = vpop.xlane.xlu1 %3899 }
 0xe9e   : > { %v4296_v53 = vmul.f32 0.2, %v4232_v28  ;;  %v4297_v12 = vmul.f32 0.2, %v4233_v24  ;;  %vm4264_vm0 = vcmp.gt.f32.partialorder %v4232_v28, 0.0  ;;  %vm4265_vm14 = vcmp.gt.f32.partialorder %v4233_v24, 0.0 }
 0xe9f   : > { %v4298_v50 = vmul.f32 0.2, %v4234_v47 }
 0xea0   : > { %v9037_v4 = vsel %vm4264_vm0, %v4232_v28, %v4296_v53  ;;  %v9039_v21 = vsel %vm4265_vm14, %v4233_v24, %v4297_v12  ;;  %v3232_v28 = vmul.f32 0.2, %v3168_v13  ;;  %v3142_v24 = vadd.f32 %v8804_v36, %v8649_v39  ;;  %v9087_v53 = vpop.xlane.xlu0 %3908 }
 0xea1   : > { %v4360_v6 = vsel %vm11348_vm4, %v9037_v4, 0.0  ;;  %v4361_v16 = vsel %vm11349_vm9, %v9039_v21, 0.0  ;;  %v9089_v12 = vpop.xlane.xlu1 %3905  ;;  %vm3200_vm0 = vcmp.gt.f32.partialorder %v3168_v13, 0.0  ;;  %vm4266_vm14 = vcmp.gt.f32.partialorder %v4234_v47, 0.0 }
 0xea2   : > { %v4393_v58 = vmax.f32 %v4360_v6, %v4361_v16  ;;  %v9094_v6 = vld [vmem:[%s6924_s17 + $0x58] sm:$0xff]  ;;  %v9099_v39 = vsel %vm3200_vm0, %v3168_v13, %v3232_v28  ;;  %vm11360_vm9 = vcmp.ne.f32.partialorder %v11359_v30, 0.0 }
 0xea3   : > { %v3175_v16 = vmul.f32 %v9094_v6, %v3143_v27  ;;  %v3296_v56 = vsel %vm11360_vm9, %v9099_v39, 0.0 }
 0xea4   : > { %4394 = vmax.xlane.f32.xlu1 %v4393_v58  ;;  %v4299_v58 = vmul.f32 0.2, %v4235_v23 }
 0xea5   : > { %3334 = vmax.xlane.f32.xlu0 %v3333_v59  ;;  %v4236_v59 = vmul.f32 %v9027_v7, %v4204_v43  ;;  %vm3207_vm0 = vcmp.gt.f32.partialorder %v3175_v16, 0.0 }
 0xea6   : > { %v9114_v3 = vsel %vm4267_vm2, %v4235_v23, %v4299_v58 }
 0xea7   : > { %v4300_v7 = vmul.f32 0.2, %v4236_v59  ;;  %vm4268_vm8 = vcmp.gt.f32.partialorder %v4236_v59, 0.0 }
 0xeb5   : > { %3578 = vrot.lane.b32.xlu1 %v11344_v25, %s6020_s23  ;;  %v3169_v25 = vmul.f32 %v5985_v60, %v3137_v2  ;;  %v11357_v2 = vld [vmem:[#allocation120_spill] sm:$0xff]  ;;  %v3239_v60 = vmul.f32 0.2, %v3175_v16 }
 0xeb6   : > { %vm11358_vm4 = vcmp.ne.f32.partialorder %v11357_v2, 0.0 }
 0xeb7   : > { %vm3201_vm7 = vcmp.gt.f32.partialorder %v3169_v25, 0.0  ;;  %v3233_v0 = vmul.f32 0.2, %v3169_v25 }
 0xeb9   : > { %3592 = vrot.lane.b32.xlu1 %v11352_v49, %s6020_s23  ;;  %v9091_v26 = vsel %vm3201_vm7, %v3169_v25, %v3233_v0 }
 0xeba   : > { %v3297_v57 = vsel %vm11358_vm4, %v9091_v26, 0.0  ;;  %vm11362_vm4 = vmmov %vm11360_vm9  ;;  %vm11367_vm9 = vcmp.ne.f32.partialorder %v11350_v14, 0.0 }
 0xebb   : > { %3590 = vrot.lane.b32.xlu0 %v11353_v20, %s6020_s23  ;;  %v3330_v13 = vmax.f32 %v3296_v56, %v3297_v57 }
 0xebd   : > { %4658 = vrot.lane.b32.xlu1 %v11352_v49, %s6022_s25  ;;  %v4237_v49 = vmul.f32 %v9023_v15, %v4205_v1  ;;  %v9112_v15 = vsel %vm4266_vm14, %v4234_v47, %v4298_v50  ;;  %vm11363_vm14 = vcmp.ne.f32.partialorder %v11357_v2, 0.0  ;;  %v9129_v1 = vsel %vm4268_vm8, %v4236_v59, %v4300_v7 }
 0xebe   : > { %v4362_v47 = vsel %vm11362_vm4, %v9112_v15, 0.0  ;;  %v4363_v23 = vsel %vm11363_vm14, %v9114_v3, 0.0  ;;  %v4364_v18 = vsel %vm11367_vm9, %v9129_v1, 0.0  ;;  %vm11368_vm4 = vcmp.ne.f32.partialorder %v11346_v51, 0.0 }
 0xebf   : > { %4656 = vrot.lane.b32.xlu0 %v11353_v20, %s6022_s25  ;;  %v9102_v20 = vld [vmem:[%s6924_s17 + $0x50] sm:$0xff]  ;;  %v4301_v25 = vmul.f32 0.2, %v4237_v49  ;;  %vm4269_vm7 = vcmp.gt.f32.partialorder %v4237_v49, 0.0  ;;  %v4396_v50 = vmax.f32 %v4362_v47, %v4363_v23  ;;  %v3373_v47 = vsub.f32 %v8831_v61, %v8888_v46 }
 0xec0   : > { %v3174_v8 = vmul.f32 %v9102_v20, %v3142_v24  ;;  %v9133_v24 = vsel %vm3207_vm0, %v3175_v16, %v3239_v60  ;;  %vm11382_vm14 = vcmp.ne.f32.partialorder %v11276_v32, 0.0  ;;  %vm11384_vm9 = vcmp.ne.f32.partialorder %v11278_v19, 0.0  ;;  %v11391_v19 = vld [vmem:[#allocation107_spill] sm:$0xff] }
 0xec1   : > { %v9131_v28 = vsel %vm4269_vm7, %v4237_v49, %v4301_v25  ;;  %11364 = vst [vmem:[#allocation97_spill] sm:$0xff] %v9133_v24  ;;  %v11369_v49 = vld [vmem:[#allocation124_spill] sm:$0xff] }
 0xec2   : > { %v3238_v0 = vmul.f32 0.2, %v3174_v8  ;;  %vm3206_vm2 = vcmp.gt.f32.partialorder %v3174_v8, 0.0  ;;  %v4365_v59 = vsel %vm11368_vm4, %v9131_v28, 0.0  ;;  %vm11370_vm8 = vcmp.ne.f32.partialorder %v11369_v49, 0.0 }
 0xec3   : > { %4640 = vrot.lane.b32.xlu0 %v11354_v11, %s6022_s25  ;;  %v3303_v16 = vsel %vm11370_vm8, %v9133_v24, 0.0  ;;  %v4399_v7 = vmax.f32 %v4364_v18, %v4365_v59  ;;  %v3406_v24 = vmul.f32 1.442695, %v3373_v47 }
 0xec4   : > { %v9135_v58 = vsel %vm3206_vm2, %v3174_v8, %v3238_v0  ;;  %v11371_v8 = vld [vmem:[#allocation106_spill] sm:$0xff] }
 0xec5   : > { %11365 = vst [vmem:[#allocation100_spill] sm:$0xff] %v9135_v58  ;;  %vm11372_vm7 = vcmp.ne.f32.partialorder %v11371_v8, 0.0  ;;  %5755 = vpow2.f32 %v3406_v24 }
 0xec6   : > { %v3302_v60 = vsel %vm11372_vm7, %v9135_v58, 0.0 }
 0xec7   : > { %3572 = vrot.lane.b32.xlu0 %v11355_v22, %s6020_s23  ;;  %v3339_v25 = vmax.f32 %v3302_v60, %v3303_v16  ;;  %v11375_v16 = vld [vmem:[#allocation30_spill] sm:$0xff] }
 0xecb   : > { %4638 = vrot.lane.b32.xlu0 %v11355_v22, %s6022_s25  ;;  %v9105_v22 = vpop.xlane.xlu0 %3914 }
 0xecc   : > { %11356 = vst [vmem:[#allocation92_spill] sm:$0xff] %v9105_v22 }
 0xed2   : > { %v9165_v61 = vpop.eup %5755 }
 0xed9   : > { %v9107_v63 = vpop.xlane.xlu1 %3911 }
 0xedd   : > { %v9119_v27 = vpop.xlane.xlu0 %3917 }
 0xee1   : > { %v9121_v43 = vpop.xlane.xlu1 %3920  ;;  %3331 = vmax.xlane.f32.xlu1 %v3330_v13 }
 0xee2   : > { %11361 = vst [vmem:[#allocation101_spill] sm:$0xff] %v9121_v43 }
 0xee5   : > { %v9137_v57 = vpop.xlane.xlu0 %3926  ;;  %v9139_v56 = vpop.xlane.xlu1 %3923  ;;  %4397 = vmax.xlane.f32.xlu1 %v4396_v50 }
 0xee6   : > { %11366 = vst [vmem:[#allocation96_spill] sm:$0xff] %v9137_v57 }
 0xee9   : > { %v9153_v13 = vpop.xlane.xlu0 %3932  ;;  %v9155_v0 = vpop.xlane.xlu1 %3929  ;;  %4400 = vmax.xlane.f32.xlu1 %v4399_v7 }
 0xeea   : > { %11373 = vst [vmem:[#allocation76_spill] sm:$0xff] %v9153_v13  ;;  %3340 = vmax.xlane.f32.xlu0 %v3339_v25 }
 0xeed   : > { %v3595_v23 = vpop.permute.xlu0 %3594  ;;  %v9159_v57 = vpop.xlane.xlu1 %3328 }
 0xeee   : > { %11374 = vst [vmem:[#allocation73_spill] sm:$0xff] %v9159_v57  ;;  %v3375_v50 = vsub.f32 %v8976_v55, %v9159_v57  ;;  %5361 = vmatprep.subr.bf16.mxu1 %v3595_v23  ;;  %v11377_v55 = vld [vmem:[#allocation37_spill] sm:$0xff]  ;;  %v11380_v23 = vld [vmem:[#allocation39_spill] sm:$0xff] }
 0xef0   : > { %v3410_v58 = vmul.f32 1.442695, %v3375_v50 }
 0xef1   : > { %v4661_v18 = vpop.permute.xlu0 %4660 }
 0xef2   : > { %5425 = vmatprep.subr.bf16.mxu0 %v4661_v18  ;;  %5757 = vpow2.f32 %v3410_v58  ;;  %v3144_v58 = vadd.f32 %v8804_v36, %v8674_v34 }
 0xef5   : > { %v4645_v59 = vpop.permute.xlu0 %4644 }
 0xef6   : > { %5426 = vmatpush3.bf16.msra.mxu0 %v4645_v59  ;;  %v3141_v59 = vadd.f32 %v8817_v35, %v8663_v41 }
 0xefa   : > { %3574 = vrot.lane.b32.xlu1 %v11354_v11, %s6020_s23  ;;  %v11379_v11 = vld [vmem:[#allocation35_spill] sm:$0xff] }
 0xefe   : > { %3588 = vrot.lane.b32.xlu1 %v11375_v16, %s6020_s23 }
 0xeff   : > { %v9169_v60 = vpop.eup %5757 }
 0xf00   : > { %11376 = vst [vmem:[#allocation84_spill] sm:$0xff] %v9169_v60  ;;  %3586 = vrot.lane.b32.xlu0 %v11377_v55, %s6020_s23  ;;  %v5107_v24 = vpack.c.bf16 %v9169_v60, %v9165_v61 }
 0xf02   : > { %4654 = vrot.lane.b32.xlu1 %v11375_v16, %s6022_s25  ;;  %5108 = vmatprep.mubr.msk.bf16.mxu1 %vm7450_vm6, %v5107_v24  ;;  %v3140_v16 = vadd.f32 %v8804_v36, %v8663_v41  ;;  %v4207_v24 = vadd.f32 %v8989_v45, %v9078_v29 }
 0xf04   : > { %4652 = vrot.lane.b32.xlu0 %v11377_v55, %s6022_s25  ;;  %v5989_v55 = vld [vmem:[%s6924_s17 + $0x48] sm:$0xff] }
 0xf05   : > { %v4239_v60 = vmul.f32 %v5989_v55, %v4207_v24 }
 0xf07   : > { %v4303_v43 = vmul.f32 0.2, %v4239_v60  ;;  %vm4271_vm8 = vcmp.gt.f32.partialorder %v4239_v60, 0.0 }
 0xf08   : > { %4636 = vrot.lane.b32.xlu0 %v11379_v11, %s6022_s25 }
 0xf09   : > { %v4392_v7 = vpop.xlane.xlu1 %4391 }
 0xf0a   : > { %v4438_v25 = vsub.f32 %v9002_v48, %v4392_v7  ;;  %v4439_v47 = vsub.f32 %v9004_v17, %v4392_v7  ;;  %v3173_v48 = vmul.f32 %v5989_v55, %v3141_v59  ;;  %v4206_v17 = vadd.f32 %v8992_v54, %v9078_v29  ;;  %v5990_v7 = vld [vmem:[%s6924_s17 + $0x40] sm:$0xff] }
 0xf0b   : > { %v3147_v59 = vadd.f32 %v8817_v35, %v8660_v44 }
 0xf0c   : > { %3568 = vrot.lane.b32.xlu0 %v11380_v23, %s6020_s23  ;;  %v4470_v50 = vmul.f32 1.442695, %v4438_v25  ;;  %v4472_v18 = vmul.f32 1.442695, %v4439_v47  ;;  %v3172_v25 = vmul.f32 %v5990_v7, %v3140_v16  ;;  %v4208_v47 = vadd.f32 %v8992_v54, %v9076_v62 }
 0xf0d   : > { %vm3205_vm0 = vcmp.gt.f32.partialorder %v3173_v48, 0.0  ;;  %v3146_v16 = vadd.f32 %v8804_v36, %v8660_v44  ;;  %v9224_v44 = vld [vmem:[%s6924_s17 + $0x78] sm:$0xff] }
 0xf0e   : > { %5759 = vpow2.f32 %v4470_v50  ;;  %v4209_v50 = vadd.f32 %v8989_v45, %v9076_v62  ;;  %v3236_v29 = vmul.f32 0.2, %v3172_v25  ;;  %v4240_v55 = vmul.f32 %v9102_v20, %v4208_v47 }
 0xf0f   : > { %5761 = vpow2.f32 %v4472_v18  ;;  %v4238_v18 = vmul.f32 %v5990_v7, %v4206_v17  ;;  %vm3204_vm2 = vcmp.gt.f32.partialorder %v3172_v25, 0.0 }
 0xf10   : > { %4634 = vrot.lane.b32.xlu0 %v11380_v23, %s6022_s25  ;;  %v3237_v23 = vmul.f32 0.2, %v3173_v48  ;;  %v4241_v7 = vmul.f32 %v9094_v6, %v4209_v50  ;;  %v9227_v20 = vsel %vm3204_vm2, %v3172_v25, %v3236_v29  ;;  %v4304_v50 = vmul.f32 0.2, %v4240_v55 }
 0xf11   : > { %v4302_v57 = vmul.f32 0.2, %v4238_v18  ;;  %vm4270_vm4 = vcmp.gt.f32.partialorder %v4238_v18, 0.0  ;;  %11386 = vst [vmem:[#allocation64_spill] sm:$0xff] %v9227_v20 }
 0xf12   : > { %v9215_v17 = vsel %vm3205_vm0, %v3173_v48, %v3237_v23  ;;  %v11387_v48 = vld [vmem:[#allocation125_spill] sm:$0xff]  ;;  %v9233_v23 = vld [vmem:[%s6924_s17 + $0x70] sm:$0xff]  ;;  %v4305_v31 = vmul.f32 0.2, %v4241_v7  ;;  %vm11392_vm0 = vcmp.ne.f32.partialorder %v11391_v19, 0.0  ;;  %vm4273_vm2 = vcmp.gt.f32.partialorder %v4241_v7, 0.0 }
 0xf13   : > { %11383 = vst [vmem:[#allocation61_spill] sm:$0xff] %v9215_v17  ;;  %vm11388_vm7 = vcmp.ne.f32.partialorder %v11387_v48, 0.0  ;;  %v3178_v6 = vmul.f32 %v9233_v23, %v3146_v16  ;;  %v3300_v25 = vsel %vm11392_vm0, %v9227_v20, 0.0 }
 0xf14   : > { %v3301_v47 = vsel %vm11388_vm7, %v9215_v17, 0.0  ;;  %vm11393_vm7 = vmmov %vm11392_vm0  ;;  %vm11398_vm0 = vcmp.ne.f32.partialorder %v11371_v8, 0.0 }
 0xf15   : > { %v3336_v29 = vmax.f32 %v3300_v25, %v3301_v47 }
 0xf1b   : > { %v9203_v41 = vpop.eup %5759 }
 0xf1c   : > { %11381 = vst [vmem:[#allocation82_spill] sm:$0xff] %v9203_v41  ;;  %v9207_v13 = vpop.eup %5761  ;;  %v4534_v62 = vsel %vm11382_vm14, %v9203_v41, 0.0  ;;  %v3179_v41 = vmul.f32 %v9224_v44, %v3147_v59  ;;  %vm4272_vm14 = vcmp.gt.f32.partialorder %v4240_v55, 0.0 }
 0xf1d   : > { %v4535_v24 = vsel %vm11384_vm9, %v9207_v13, 0.0 }
 0xf1e   : > { %v9221_v22 = vadd.f32 %v4535_v24, %v4534_v62  ;;  %v9236_v62 = vsel %vm4270_vm4, %v4238_v18, %v4302_v57  ;;  %v9238_v24 = vsel %vm4271_vm8, %v4239_v60, %v4303_v43  ;;  %v3243_v59 = vmul.f32 0.2, %v3179_v41 }
 0xf1f   : > { %11389 = vst [vmem:[#allocation46_spill] sm:$0xff] %v9236_v62  ;;  %11390 = vst [vmem:[#allocation2_spill] sm:$0xff] %v9238_v24  ;;  %vm3211_vm9 = vcmp.gt.f32.partialorder %v3179_v41, 0.0  ;;  %v4366_v16 = vsel %vm11393_vm7, %v9236_v62, 0.0  ;;  %vm11394_vm4 = vcmp.ne.f32.partialorder %v11387_v48, 0.0  ;;  %v9249_v60 = vsel %vm4272_vm14, %v4240_v55, %v4304_v50  ;;  %v11401_v55 = vld [vmem:[#allocation126_spill] sm:$0xff] }
 0xf20   : > { %11385 = vst [vmem:[#allocation58_spill] sm:$0xff] %v9221_v22  ;;  %v3577_v22 = vpop.permute.xlu0 %3576  ;;  %v4367_v57 = vsel %vm11394_vm4, %v9238_v24, 0.0  ;;  %v3242_v43 = vmul.f32 0.2, %v3178_v6  ;;  %11395 = vst [vmem:[#allocation43_spill] sm:$0xff] %v9249_v60  ;;  %v9251_v18 = vsel %vm4273_vm2, %v4241_v7, %v4305_v31  ;;  %vm3210_vm8 = vcmp.gt.f32.partialorder %v3178_v6, 0.0 }
 0xf21   : > { %11396 = vst [vmem:[#allocation4_spill] sm:$0xff] %v9251_v18  ;;  %v9253_v17 = vsel %vm3211_vm9, %v3179_v41, %v3243_v59  ;;  %v4402_v20 = vmax.f32 %v4366_v16, %v4367_v57  ;;  %v4368_v25 = vsel %vm11398_vm0, %v9249_v60, 0.0  ;;  %vm11399_vm7 = vcmp.ne.f32.partialorder %v11369_v49, 0.0  ;;  %v11403_v41 = vld [vmem:[#allocation108_spill] sm:$0xff]  ;;  %v9370_v60 = vld [vmem:[%s6924_s17 + $0x88] sm:$0xff] }
 0xf22   : > { %11397 = vst [vmem:[#allocation8_spill] sm:$0xff] %v9253_v17  ;;  %v4369_v48 = vsel %vm11399_vm7, %v9251_v18, 0.0  ;;  %v9261_v19 = vsel %vm3210_vm8, %v3178_v6, %v3242_v43  ;;  %vm11402_vm14 = vcmp.ne.f32.partialorder %v11401_v55, 0.0  ;;  %vm11404_vm2 = vcmp.ne.f32.partialorder %v11403_v41, 0.0 }
 0xf23   : > { %11400 = vst [vmem:[#allocation13_spill] sm:$0xff] %v9261_v19  ;;  %v3307_v31 = vsel %vm11402_vm14, %v9253_v17, 0.0  ;;  %v4405_v7 = vmax.f32 %v4368_v25, %v4369_v48  ;;  %v3306_v50 = vsel %vm11404_vm2, %v9261_v19, 0.0  ;;  %vm11406_vm9 = vcmp.ne.f32.partialorder %v11339_v37, 0.0 }
 0xf24   : > { %v4643_v47 = vpop.permute.xlu0 %4642  ;;  %v3345_v16 = vmax.f32 %v3306_v50, %v3307_v31  ;;  %vm11407_vm4 = vcmp.ne.f32.partialorder %v11337_v5, 0.0  ;;  %v3145_v50 = vadd.f32 %v8817_v35, %v8674_v34  ;;  %v4212_v34 = vadd.f32 %v8992_v54, %v9087_v53 }
 0xf25   : > { %v3157_v62 = vadd.f32 %v8817_v35, %v8699_v33 }
 0xf26   : > { %3337 = vmax.xlane.f32.xlu1 %v3336_v29 }
 0xf2a   : > { %4403 = vmax.xlane.f32.xlu1 %v4402_v20 }
 0xf2d   : > { %v4395_v59 = vpop.xlane.xlu1 %4394 }
 0xf2e   : > { %v9269_v29 = vpop.xlane.xlu0 %3334  ;;  %v4440_v57 = vsub.f32 %v9037_v4, %v4395_v59  ;;  %v4441_v49 = vsub.f32 %v9039_v21, %v4395_v59  ;;  %4406 = vmax.xlane.f32.xlu1 %v4405_v7  ;;  %v11412_v7 = vld [vmem:[#allocation44_spill] sm:$0xff]  ;;  %v5993_v59 = vld [vmem:[%s6924_s17 + $0x60] sm:$0xff] }
 0xf2f   : > { %3346 = vmax.xlane.f32.xlu0 %v3345_v16  ;;  %v3176_v16 = vmul.f32 %v5993_v59, %v3144_v58  ;;  %v9329_v58 = vadd.f32 %v8804_v36, %v8699_v33  ;;  %v3378_v5 = vsub.f32 %v9035_v52, %v9269_v29 }
 0xf30   : > { %v4474_v20 = vmul.f32 1.442695, %v4440_v57  ;;  %v4476_v6 = vmul.f32 1.442695, %v4441_v49  ;;  %v5994_v57 = vld [vmem:[%s6924_s17 + $0x68] sm:$0xff] }
 0xf31   : > { %v3579_v43 = vpop.permute.xlu1 %3578 }
 0xf32   : > { %5763 = vpow2.f32 %v4474_v20  ;;  %v3591_v8 = vpop.permute.xlu0 %3590  ;;  %5362 = vmatpush3.bf16.msra.mxu1 %v3579_v43  ;;  %v3177_v20 = vmul.f32 %v5994_v57, %v3145_v50  ;;  %v4210_v43 = vadd.f32 %v8992_v54, %v9089_v12  ;;  %v9335_v50 = vld [vmem:[%s6924_s17 + $0x98] sm:$0xff] }
 0xf33   : > { %5765 = vpow2.f32 %v4476_v6  ;;  %v3150_v6 = vadd.f32 %v8804_v36, %v8669_v40  ;;  %11415 = vst [vmem:[#allocation14_spill] sm:$0xff] %v9335_v50 }
 0xf34   : > { %vm3209_vm8 = vcmp.gt.f32.partialorder %v3177_v20, 0.0 }
 0xf35   : > { %v3593_v48 = vpop.permute.xlu1 %3592 }
 0xf36   : > { %5363 = vmatprep.subr.bf16.mxu1 %v3593_v48  ;;  %v4657_v25 = vpop.permute.xlu0 %4656  ;;  %v4211_v48 = vadd.f32 %v8989_v45, %v9089_v12  ;;  %v3152_v12 = vadd.f32 %v8804_v36, %v8692_v9 }
 0xf37   : > { %5364 = vmatpush3.bf16.msra.mxu1 %v3577_v22 }
 0xf38   : > { %5365 = vmatprep.subr.bf16.mxu1 %v3591_v8 }
 0xf39   : > { %v4659_v17 = vpop.permute.xlu1 %4658 }
 0xf3a   : > { %5427 = vmatprep.subr.bf16.mxu0 %v4659_v17  ;;  %v4641_v4 = vpop.permute.xlu0 %4640 }
 0xf3b   : > { %5428 = vmatpush3.bf16.msra.mxu0 %v4643_v47  ;;  %v11410_v47 = vld [vmem:[#allocation40_spill] sm:$0xff] }
 0xf3c   : > { %5429 = vmatprep.subr.bf16.mxu0 %v4657_v25  ;;  %v3240_v25 = vmul.f32 0.2, %v3176_v16 }
 0xf3f   : > { %v9273_v21 = vpop.eup %5763  ;;  %3570 = vrot.lane.b32.xlu1 %v11379_v11, %s6020_s23  ;;  %5430 = vmatpush3.bf16.msra.mxu0 %v4641_v4  ;;  %v11409_v11 = vld [vmem:[#allocation38_spill] sm:$0xff]  ;;  %v3241_v4 = vmul.f32 0.2, %v3177_v20 }
 0xf40   : > { %11405 = vst [vmem:[#allocation6_spill] sm:$0xff] %v9273_v21  ;;  %v5766_v49 = vpop.eup %5765  ;;  %v4536_v31 = vsel %vm11406_vm9, %v9273_v21, 0.0 }
 0xf41   : > { %v5155_v22 = vpack.c.bf16 %v5766_v49, %v9207_v13  ;;  %v4537_v8 = vsel %vm11407_vm4, %v5766_v49, 0.0  ;;  %v11411_v13 = vld [vmem:[#allocation42_spill] sm:$0xff]  ;;  %v3151_v49 = vadd.f32 %v8817_v35, %v8669_v40  ;;  %v4244_v40 = vmul.f32 %v9233_v23, %v4212_v34 }
 0xf42   : > { %v9283_v17 = vadd.f32 %v4537_v8, %v4536_v31  ;;  %v4213_v31 = vadd.f32 %v8989_v45, %v9087_v53  ;;  %v9332_v53 = vsel %vm3209_vm8, %v3177_v20, %v3241_v4 }
 0xf43   : > { %5156 = vmatprep.mubr.msk.bf16.mxu0 %vm7450_vm6, %v5155_v22  ;;  %3584 = vrot.lane.b32.xlu1 %v11409_v11, %s6020_s23  ;;  %vm3208_vm6 = vcmp.gt.f32.partialorder %v3176_v16, 0.0  ;;  %v9320_v22 = vld [vmem:[%s6924_s17 + $0x90] sm:$0xff]  ;;  %11414 = vst [vmem:[#allocation17_spill] sm:$0xff] %v9332_v53 }
 0xf44   : > { %11408 = vst [vmem:[#allocation10_spill] sm:$0xff] %v9283_v17  ;;  %v3182_v8 = vmul.f32 %v9320_v22, %v3150_v6  ;;  %v3183_v17 = vmul.f32 %v9335_v50, %v3151_v49  ;;  %v3153_v6 = vadd.f32 %v8817_v35, %v8692_v9  ;;  %v4215_v9 = vadd.f32 %v8989_v45, %v9107_v63  ;;  %v9378_v50 = vpop.permute.xlu0 %3572 }
 0xf45   : > { %3582 = vrot.lane.b32.xlu0 %v11410_v47, %s6020_s23  ;;  %v4308_v49 = vmul.f32 0.2, %v4244_v40 }
 0xf46   : > { %vm3214_vm7 = vcmp.gt.f32.partialorder %v3182_v8, 0.0  ;;  %v3246_v34 = vmul.f32 0.2, %v3182_v8  ;;  %vm3215_vm4 = vcmp.gt.f32.partialorder %v3183_v17, 0.0 }
 0xf47   : > { %4650 = vrot.lane.b32.xlu1 %v11409_v11, %s6022_s25  ;;  %v4242_v11 = vmul.f32 %v5993_v59, %v4210_v43  ;;  %v4245_v59 = vmul.f32 %v9224_v44, %v4213_v31  ;;  %v5997_v43 = vld [vmem:[%s6924_s17 + $0xa0] sm:$0xff]  ;;  %v11418_v44 = vld [vmem:[#allocation127_spill] sm:$0xff]  ;;  %v3247_v31 = vmul.f32 0.2, %v3183_v17 }
 0xf48   : > { %vm11419_vm14 = vcmp.ne.f32.partialorder %v11418_v44, 0.0  ;;  %v9374_v52 = vsel %vm3214_vm7, %v3182_v8, %v3246_v34  ;;  %vm11422_vm7 = vcmp.ne.f32.partialorder %v11418_v44, 0.0 }
 0xf49   : > { %4648 = vrot.lane.b32.xlu0 %v11410_v47, %s6022_s25  ;;  %v4243_v47 = vmul.f32 %v5994_v57, %v4211_v48  ;;  %v9345_v48 = vmul.f32 %v5997_v43, %v3152_v12  ;;  %v4306_v23 = vmul.f32 0.2, %v4242_v11  ;;  %v3305_v4 = vsel %vm11419_vm14, %v9332_v53, 0.0  ;;  %v5998_v12 = vld [vmem:[%s6924_s17 + $0xa8] sm:$0xff] }
 0xf4a   : > { %vm4274_vm2 = vcmp.gt.f32.partialorder %v4242_v11, 0.0  ;;  %v9355_v21 = vmul.f32 %v5998_v12, %v3153_v6  ;;  %vm4277_vm8 = vcmp.gt.f32.partialorder %v4245_v59, 0.0  ;;  %v3379_v53 = vsub.f32 %v9033_v42, %v9269_v29 }
 0xf4b   : > { %v4307_v20 = vmul.f32 0.2, %v4243_v47  ;;  %vm4275_vm9 = vcmp.gt.f32.partialorder %v4243_v47, 0.0  ;;  %v9365_v19 = vsel %vm4274_vm2, %v4242_v11, %v4306_v23  ;;  %v4247_v6 = vmul.f32 %v9370_v60, %v4215_v9 }
 0xf4c   : > { %v9383_v42 = vsel %vm3215_vm4, %v3183_v17, %v3247_v31  ;;  %v3249_v29 = vmul.f32 0.2, %v9355_v21  ;;  %v3416_v11 = vmul.f32 1.442695, %v3378_v5  ;;  %v4218_v17 = vadd.f32 %v8992_v54, %v9119_v27  ;;  %v9412_v31 = vpop.permute.xlu0 %4638 }
 0xf4d   : > { %4632 = vrot.lane.b32.xlu0 %v11411_v13, %s6022_s25  ;;  %v9367_v18 = vsel %vm4275_vm9, %v4243_v47, %v4307_v20  ;;  %11420 = vst [vmem:[#allocation16_spill] sm:$0xff] %v9383_v42  ;;  %v3418_v23 = vmul.f32 1.442695, %v3379_v53  ;;  %v4311_v20 = vmul.f32 0.2, %v4247_v6  ;;  %vm3216_vm9 = vcmp.gt.f32.partialorder %v9345_v48, 0.0 }
 0xf4e   : > { %v4371_v33 = vsel %vm11422_vm7, %v9367_v18, 0.0  ;;  %vm11424_vm4 = vcmp.ne.f32.partialorder %v11403_v41, 0.0  ;;  %5767 = vpow2.f32 %v3416_v11  ;;  %v11428_v11 = vld [vmem:[#allocation77_spill] sm:$0xff] }
 0xf4f   : > { %5769 = vpow2.f32 %v3418_v23  ;;  %vm11429_vm7 = vcmp.ne.f32.partialorder %v11428_v11, 0.0 }
 0xf51   : > { %3564 = vrot.lane.b32.xlu0 %v11412_v7, %s6020_s23 }
 0xf55   : > { %4630 = vrot.lane.b32.xlu0 %v11412_v7, %s6022_s25  ;;  %v9325_v7 = vsel %vm3208_vm6, %v3176_v16, %v3240_v25  ;;  %v11416_v16 = vld [vmem:[#allocation109_spill] sm:$0xff]  ;;  %v4214_v25 = vadd.f32 %v8992_v54, %v9107_v63  ;;  %vm4276_vm6 = vcmp.gt.f32.partialorder %v4244_v40, 0.0  ;;  %v9360_v63 = vld [vmem:[%s6924_s17 + $0x80] sm:$0xff] }
 0xf56   : > { %11413 = vst [vmem:[#allocation15_spill] sm:$0xff] %v9325_v7  ;;  %vm11417_vm0 = vcmp.ne.f32.partialorder %v11416_v16, 0.0  ;;  %vm11421_vm14 = vcmp.ne.f32.partialorder %v11416_v16, 0.0 }
 0xf57   : > { %v3304_v57 = vsel %vm11417_vm0, %v9325_v7, 0.0  ;;  %v4309_v7 = vmul.f32 0.2, %v4245_v59  ;;  %v4246_v37 = vmul.f32 %v9360_v63, %v4214_v25  ;;  %v9380_v25 = vsel %vm4276_vm6, %v4244_v40, %v4308_v49 }
 0xf58   : > { %v3342_v24 = vmax.f32 %v3304_v57, %v3305_v4  ;;  %vm3217_vm0 = vcmp.gt.f32.partialorder %v9355_v21, 0.0  ;;  %v4370_v8 = vsel %vm11421_vm14, %v9365_v19, 0.0  ;;  %v4219_v57 = vadd.f32 %v8989_v45, %v9119_v27  ;;  %v11426_v27 = vld [vmem:[#allocation128_spill] sm:$0xff] }
 0xf59   : > { %v9394_v47 = vsel %vm4277_vm8, %v4245_v59, %v4309_v7  ;;  %v4310_v40 = vmul.f32 0.2, %v4246_v37  ;;  %vm4278_vm2 = vcmp.gt.f32.partialorder %v4246_v37, 0.0  ;;  %v4372_v7 = vsel %vm11424_vm4, %v9380_v25, 0.0 }
 0xf5a   : > { %11423 = vst [vmem:[#allocation19_spill] sm:$0xff] %v9394_v47  ;;  %vm11425_vm6 = vcmp.ne.f32.partialorder %v11401_v55, 0.0  ;;  %vm11427_vm8 = vcmp.ne.f32.partialorder %v11426_v27, 0.0  ;;  %vm4279_vm14 = vcmp.gt.f32.partialorder %v4247_v6, 0.0  ;;  %v4250_v4 = vmul.f32 %v5997_v43, %v4218_v17 }
 0xf5b   : > { %v4373_v59 = vsel %vm11425_vm6, %v9394_v47, 0.0  ;;  %v3311_v53 = vsel %vm11427_vm8, %v9383_v42, 0.0  ;;  %v4251_v49 = vmul.f32 %v5998_v12, %v4219_v57  ;;  %v9414_v44 = vsel %vm4278_vm2, %v4246_v37, %v4310_v40 }
 0xf5c   : > { %v9418_v42 = vsel %vm4279_vm14, %v4247_v6, %v4311_v20  ;;  %v3310_v43 = vsel %vm11429_vm7, %v9374_v52, 0.0  ;;  %v3248_v12 = vmul.f32 0.2, %v9345_v48  ;;  %v4411_v17 = vmax.f32 %v4372_v7, %v4373_v59  ;;  %v11430_v20 = vld [vmem:[#allocation110_spill] sm:$0xff] }
 0xf5d   : > { %v3351_v23 = vmax.f32 %v3310_v43, %v3311_v53  ;;  %vm11431_vm2 = vcmp.ne.f32.partialorder %v11430_v20, 0.0  ;;  %v4223_v7 = vadd.f32 %v8989_v45, %v9139_v56  ;;  %vm4283_vm6 = vcmp.gt.f32.partialorder %v4251_v49, 0.0 }
 0xf5e   : > { %v3372_v43 = vsub.f32 %v8829_v10, %v8888_v46  ;;  %v3160_v46 = vadd.f32 %v8804_v36, %v8705_v38 }
 0xf6a   : > { %v3332_v5 = vpop.xlane.xlu1 %3331 }
 0xf6b   : > { %v3376_v34 = vsub.f32 %v9099_v39, %v3332_v5  ;;  %v3377_v9 = vsub.f32 %v9091_v26, %v3332_v5  ;;  %3343 = vmax.xlane.f32.xlu1 %v3342_v24  ;;  %v4408_v24 = vmax.f32 %v4370_v8, %v4371_v33  ;;  %v6001_v8 = vld [vmem:[%s6924_s17 + $0xc8] sm:$0xff] }
 0xf6c   : > { %v9425_v33 = vmul.f32 %v6001_v8, %v3157_v62  ;;  %v11432_v62 = vld [vmem:[#allocation129_spill] sm:$0xff] }
 0xf6d   : > { %v3412_v39 = vmul.f32 1.442695, %v3376_v34  ;;  %v3414_v26 = vmul.f32 1.442695, %v3377_v9  ;;  %v4374_v34 = vsel %vm11431_vm2, %v9414_v44, 0.0  ;;  %vm11433_vm4 = vcmp.ne.f32.partialorder %v11432_v62, 0.0 }
 0xf6e   : > { %v4398_v5 = vpop.xlane.xlu1 %4397  ;;  %vm3221_vm14 = vcmp.gt.f32.partialorder %v9425_v33, 0.0 }
 0xf6f   : > { %5771 = vpow2.f32 %v3412_v39  ;;  %v4442_v16 = vsub.f32 %v9112_v15, %v4398_v5  ;;  %v4443_v47 = vsub.f32 %v9114_v3, %v4398_v5  ;;  %4409 = vmax.xlane.f32.xlu1 %v4408_v24  ;;  %v9430_v15 = vsel %vm3217_vm0, %v9355_v21, %v3249_v29  ;;  %v6002_v39 = vld [vmem:[%s6924_s17 + $0xc0] sm:$0xff] }
 0xf70   : > { %5773 = vpow2.f32 %v3414_v26  ;;  %v4314_v3 = vmul.f32 0.2, %v4250_v4  ;;  %v4222_v29 = vadd.f32 %v8992_v54, %v9139_v56  ;;  %vm4282_vm0 = vcmp.gt.f32.partialorder %v4250_v4, 0.0 }
 0xf71   : > { %v4478_v37 = vmul.f32 1.442695, %v4442_v16  ;;  %v4480_v40 = vmul.f32 1.442695, %v4443_v47  ;;  %v4375_v16 = vsel %vm11433_vm4, %v9418_v42, 0.0  ;;  %v3188_v26 = vmul.f32 %v6002_v39, %v9329_v58 }
 0xf72   : > { %v4401_v6 = vpop.xlane.xlu1 %4400  ;;  %v4315_v47 = vmul.f32 0.2, %v4251_v49  ;;  %v3253_v5 = vmul.f32 0.2, %v9425_v33  ;;  %v3161_v56 = vadd.f32 %v8817_v35, %v8705_v38 }
 0xf73   : > { %v9432_v57 = vpop.xlane.xlu0 %3340  ;;  %5775 = vpow2.f32 %v4478_v37  ;;  %v4444_v9 = vsub.f32 %v9129_v1, %v4401_v6  ;;  %v4445_v21 = vsub.f32 %v9131_v28, %v4401_v6  ;;  %4412 = vmax.xlane.f32.xlu1 %v4411_v17  ;;  %v4414_v1 = vmax.f32 %v4374_v34, %v4375_v16  ;;  %v11434_v37 = vld [vmem:[#allocation131_spill] sm:$0xff]  ;;  %v9472_v34 = vpop.eup %5767 }
 0xf74   : > { %5777 = vpow2.f32 %v4480_v40  ;;  %3352 = vmax.xlane.f32.xlu0 %v3351_v23  ;;  %v9451_v28 = vsel %vm3216_vm9, %v9345_v48, %v3248_v12  ;;  %vm11435_vm8 = vcmp.ne.f32.partialorder %v11434_v37, 0.0  ;;  %v9461_v40 = vsel %vm4282_vm0, %v4250_v4, %v4314_v3  ;;  %v11437_v23 = vld [vmem:[#allocation74_spill] sm:$0xff]  ;;  %v6003_v16 = vld [vmem:[%s6924_s17 + $0xe8] sm:$0xff] }
 0xf75   : > { %v4482_v59 = vmul.f32 1.442695, %v4444_v9  ;;  %v4484_v53 = vmul.f32 1.442695, %v4445_v21  ;;  %v3313_v58 = vsel %vm11435_vm8, %v9430_v15, 0.0  ;;  %v4254_v17 = vmul.f32 %v6002_v39, %v4222_v29  ;;  %v9475_v21 = vpop.eup %5769  ;;  %vm11440_vm4 = vmmov %vm11435_vm8 }
 0xf76   : > { %v3575_v24 = vpop.permute.xlu1 %3574  ;;  %v4255_v48 = vmul.f32 %v6001_v8, %v4223_v7  ;;  %v9464_v6 = vsel %vm4283_vm6, %v4251_v49, %v4315_v47  ;;  %vm11438_vm9 = vcmp.ne.f32.partialorder %v11437_v23, 0.0  ;;  %vm3220_vm7 = vcmp.gt.f32.partialorder %v3188_v26, 0.0 }
 0xf77   : > { %5779 = vpow2.f32 %v4482_v59  ;;  %5366 = vmatpush3.bf16.msra.mxu1 %v3575_v24  ;;  %v3587_v12 = vpop.permute.xlu0 %3586  ;;  %11436 = vst [vmem:[#allocation23_spill] sm:$0xff] %v9464_v6  ;;  %v3312_v10 = vsel %vm11438_vm9, %v9451_v28, 0.0  ;;  %v3252_v8 = vmul.f32 0.2, %v3188_v26  ;;  %v3193_v9 = vmul.f32 %v6003_v16, %v3161_v56  ;;  %vm11439_vm2 = vmmov %vm11438_vm9 }
 0xf78   : > { %5781 = vpow2.f32 %v4484_v53  ;;  %4415 = vmax.xlane.f32.xlu0 %v4414_v1  ;;  %v3354_v3 = vmax.f32 %v3312_v10, %v3313_v58  ;;  %v3404_v49 = vmul.f32 1.442695, %v3372_v43  ;;  %v4226_v47 = vadd.f32 %v8992_v54, %v9155_v0 }
 0xf79   : > { %v4378_v29 = vsel %vm11439_vm2, %v9461_v40, 0.0  ;;  %v4379_v38 = vsel %vm11440_vm4, %v9464_v6, 0.0  ;;  %v4318_v59 = vmul.f32 0.2, %v4254_v17  ;;  %v4319_v53 = vmul.f32 0.2, %v4255_v48 }
 0xf7a   : > { %v3589_v4 = vpop.permute.xlu1 %3588  ;;  %v4227_v39 = vadd.f32 %v8989_v45, %v9155_v0  ;;  %v9493_v24 = vsel %vm3221_vm14, %v9425_v33, %v3253_v5  ;;  %vm4286_vm0 = vcmp.gt.f32.partialorder %v4254_v17, 0.0  ;;  %vm4287_vm6 = vcmp.gt.f32.partialorder %v4255_v48, 0.0  ;;  %v11495_v6 = vld [vmem:[#allocation61_spill] sm:$0xff] }
 0xf7b   : > { %5367 = vmatprep.subr.bf16.mxu1 %v3589_v4  ;;  %11441 = vst [vmem:[#allocation18_spill] sm:$0xff] %v9493_v24  ;;  %v4653_v43 = vpop.permute.xlu0 %4652  ;;  %v4420_v10 = vmax.f32 %v4378_v29, %v4379_v38  ;;  %v9500_v0 = vsel %vm3220_vm7, %v3188_v26, %v3252_v8  ;;  %5783 = vpow2.f32 %v3404_v49  ;;  %v9512_v26 = vsel %vm4286_vm0, %v4254_v17, %v4318_v59 }
 0xf7c   : > { %v9485_v7 = vpop.eup %5771  ;;  %3355 = vmax.xlane.f32.xlu0 %v3354_v3  ;;  %5368 = vmatpush3.bf16.msra.mxu1 %v9378_v50  ;;  %11442 = vst [vmem:[#allocation21_spill] sm:$0xff] %v9500_v0  ;;  %v6004_v50 = vld [vmem:[%s6924_s17 + $0xe0] sm:$0xff]  ;;  %v4259_v56 = vmul.f32 %v6003_v16, %v4227_v39  ;;  %11445 = vst [vmem:[#allocation28_spill] sm:$0xff] %v9512_v26  ;;  %v3257_v8 = vmul.f32 0.2, %v3193_v9  ;;  %vm3225_vm14 = vcmp.gt.f32.partialorder %v3193_v9, 0.0 }
 0xf7d   : > { %v9495_v1 = vpop.eup %5773  ;;  %5369 = vmatprep.subr.bf16.mxu1 %v3587_v12  ;;  %v3192_v4 = vmul.f32 %v6004_v50, %v3160_v46  ;;  %v4258_v5 = vmul.f32 %v6004_v50, %v4226_v47  ;;  %v11443_v12 = vld [vmem:[#allocation133_spill] sm:$0xff]  ;;  %v9515_v46 = vsel %vm4287_vm6, %v4255_v48, %v4319_v53  ;;  %v11447_v47 = vld [vmem:[#allocation123_spill] sm:$0xff]  ;;  %vm11449_vm7 = vcmp.ne.f32.partialorder %v11359_v30, 0.0 }
 0xf7e   : > { %v4655_v58 = vpop.permute.xlu1 %4654  ;;  %vm11444_vm8 = vcmp.ne.f32.partialorder %v11443_v12, 0.0  ;;  %11446 = vst [vmem:[#allocation32_spill] sm:$0xff] %v9515_v46  ;;  %vm11448_vm9 = vcmp.ne.f32.partialorder %v11447_v47, 0.0  ;;  %vm11450_vm2 = vcmp.ne.f32.partialorder %v11357_v2, 0.0  ;;  %v9540_v50 = vsel %vm3225_vm14, %v3193_v9, %v3257_v8  ;;  %v6006_v12 = vld [vmem:[%s6924_s17 + $0xb8] sm:$0xff] }
 0xf7f   : > { %5431 = vmatprep.subr.bf16.mxu0 %v4655_v58  ;;  %v3317_v3 = vsel %vm11444_vm8, %v9493_v24, 0.0  ;;  %v3316_v29 = vsel %vm11448_vm9, %v9500_v0, 0.0  ;;  %v3256_v38 = vmul.f32 0.2, %v3192_v4  ;;  %vm11451_vm4 = vmmov %vm11448_vm9  ;;  %vm3224_vm6 = vcmp.gt.f32.partialorder %v3192_v4, 0.0  ;;  %11454 = vst [vmem:[#allocation29_spill] sm:$0xff] %v9540_v50 }
 0xf80   : > { %v9508_v37 = vpop.eup %5775  ;;  %4421 = vmax.xlane.f32.xlu0 %v4420_v10  ;;  %5432 = vmatpush3.bf16.msra.mxu0 %v9412_v31  ;;  %v3360_v31 = vmax.f32 %v3316_v29, %v3317_v3  ;;  %v4382_v48 = vsel %vm11451_vm4, %v9512_v26, 0.0  ;;  %vm11452_vm0 = vmmov %vm11444_vm8  ;;  %v4323_v58 = vmul.f32 0.2, %v4259_v56  ;;  %v4637_v10 = vpop.permute.xlu0 %4636  ;;  %vm4290_vm8 = vcmp.gt.f32.partialorder %v4258_v5, 0.0 }
 0xf81   : > { %v9517_v49 = vpop.eup %5777  ;;  %5433 = vmatprep.subr.bf16.mxu0 %v4653_v43  ;;  %v4538_v16 = vsel %vm11449_vm7, %v9508_v37, 0.0  ;;  %v4383_v59 = vsel %vm11452_vm0, %v9515_v46, 0.0  ;;  %v4322_v43 = vmul.f32 0.2, %v4258_v5  ;;  %vm4291_vm9 = vcmp.gt.f32.partialorder %v4259_v56, 0.0 }
 0xf82   : > { %v4539_v17 = vsel %vm11450_vm2, %v9517_v49, 0.0  ;;  %vm11455_vm7 = vcmp.ne.f32.partialorder %v11350_v14, 0.0  ;;  %vm11457_vm2 = vcmp.ne.f32.partialorder %v11346_v51, 0.0 }
 0xf83   : > { %v9534_v53 = vadd.f32 %v4539_v17, %v4538_v16  ;;  %v4426_v16 = vmax.f32 %v4382_v48, %v4383_v59  ;;  %v9547_v17 = vsel %vm3224_vm6, %v3192_v4, %v3256_v38  ;;  %v11464_v4 = vld [vmem:[#allocation136_spill] sm:$0xff] }
 0xf84   : > { %v9536_v39 = vpop.eup %5779  ;;  %3566 = vrot.lane.b32.xlu1 %v11411_v13, %s6020_s23  ;;  %3361 = vmax.xlane.f32.xlu0 %v3360_v31  ;;  %11456 = vst [vmem:[#allocation34_spill] sm:$0xff] %v9547_v17  ;;  %v11458_v13 = vld [vmem:[#allocation137_spill] sm:$0xff]  ;;  %vm11465_vm4 = vcmp.ne.f32.partialorder %v11464_v4, 0.0 }
 0xf85   : > { %11453 = vst [vmem:[#allocation25_spill] sm:$0xff] %v9534_v53  ;;  %v9542_v3 = vpop.eup %5781  ;;  %5434 = vmatpush3.bf16.msra.mxu0 %v4637_v10  ;;  %v4540_v29 = vsel %vm11455_vm7, %v9536_v39, 0.0  ;;  %vm11459_vm14 = vcmp.ne.f32.partialorder %v11458_v13, 0.0  ;;  %v11461_v31 = vld [vmem:[#allocation41_spill] sm:$0xff]  ;;  %v9559_v10 = vsel %vm4290_vm8, %v4258_v5, %v4322_v43  ;;  %v9561_v53 = vsel %vm4291_vm9, %v4259_v56, %v4323_v58  ;;  %vm11466_vm0 = vmmov %vm11465_vm4  ;;  %v11469_v43 = vld [vmem:[#allocation116_spill] sm:$0xff] }
 0xf86   : > { %v4541_v33 = vsel %vm11457_vm2, %v9542_v3, 0.0  ;;  %v3321_v9 = vsel %vm11459_vm14, %v9540_v50, 0.0  ;;  %11462 = vst [vmem:[#allocation79_spill] sm:$0xff] %v9559_v10  ;;  %11463 = vst [vmem:[#allocation86_spill] sm:$0xff] %v9561_v53  ;;  %v3320_v38 = vsel %vm11465_vm4, %v9547_v17, 0.0  ;;  %v4386_v59 = vsel %vm11466_vm0, %v9559_v10, 0.0 }
 0xf87   : > { %v9555_v8 = vadd.f32 %v4541_v33, %v4540_v29  ;;  %v3366_v48 = vmax.f32 %v3320_v38, %v3321_v9  ;;  %vm11467_vm6 = vmmov %vm11459_vm14  ;;  %vm11468_vm8 = vcmp.ne.f32.partialorder %v11276_v32, 0.0  ;;  %vm11470_vm9 = vcmp.ne.f32.partialorder %v11469_v43, 0.0  ;;  %v11473_v32 = vld [vmem:[#allocation88_spill] sm:$0xff]  ;;  %v11477_v13 = vld [vmem:[#allocation98_spill] sm:$0xff] }
 0xf88   : > { %3580 = vrot.lane.b32.xlu1 %v11461_v31, %s6020_s23  ;;  %4427 = vmax.xlane.f32.xlu0 %v4426_v16  ;;  %v4387_v33 = vsel %vm11467_vm6, %v9561_v53, 0.0  ;;  %v9572_v29 = vpop.eup %5783  ;;  %v3469_v58 = vsel %vm11470_vm9, %v9165_v61, 0.0  ;;  %vm11471_vm7 = vcmp.ne.f32.partialorder %v11359_v30, 0.0  ;;  %vm11472_vm2 = vcmp.ne.f32.partialorder %v11357_v2, 0.0  ;;  %v11496_v50 = vld [vmem:[#allocation130_spill] sm:$0xff] }
 0xf89   : > { %11460 = vst [vmem:[#allocation62_spill] sm:$0xff] %v9555_v8  ;;  %v4432_v56 = vmax.f32 %v4386_v59, %v4387_v33  ;;  %v3468_v5 = vsel %vm11468_vm8, %v9572_v29, 0.0  ;;  %v3472_v9 = vsel %vm11471_vm7, %v9485_v7, 0.0  ;;  %v3148_v61 = vadd.f32 %v8804_v36, %v11473_v32  ;;  %v11474_v59 = vld [vmem:[#allocation91_spill] sm:$0xff] }
 0xf8a   : > { %v3500_v16 = vadd.f32 %v3469_v58, %v3468_v5  ;;  %v3154_v33 = vadd.f32 %v8804_v36, %v11474_v59  ;;  %v3155_v58 = vadd.f32 %v8817_v35, %v11474_v59  ;;  %v3158_v4 = vadd.f32 %v8804_v36, %v11477_v13 }
 0xf8b   : > { %v3180_v43 = vmul.f32 %v9360_v63, %v3148_v61  ;;  %v11478_v63 = vld [vmem:[#allocation101_spill] sm:$0xff]  ;;  %v3159_v10 = vadd.f32 %v8817_v35, %v11477_v13  ;;  %vm11483_vm9 = vcmp.ne.f32.partialorder %v11432_v62, 0.0 }
 0xf8c   : > { %4646 = vrot.lane.b32.xlu1 %v11461_v31, %s6022_s25  ;;  %3367 = vmax.xlane.f32.xlu0 %v3366_v48  ;;  %v3473_v31 = vsel %vm11472_vm2, %v9495_v1, 0.0  ;;  %v3149_v48 = vadd.f32 %v8817_v35, %v11473_v32  ;;  %v4220_v61 = vadd.f32 %v8992_v54, %v11478_v63  ;;  %vm11488_vm2 = vcmp.ne.f32.partialorder %v11430_v20, 0.0 }
 0xf8d   : > { %v3506_v38 = vadd.f32 %v3473_v31, %v3472_v9  ;;  %vm3212_vm4 = vcmp.gt.f32.partialorder %v3180_v43, 0.0 }
 0xf8e   : > { %v3181_v5 = vmul.f32 %v9370_v60, %v3149_v48  ;;  %v3187_v60 = vmul.f32 %v6006_v12, %v3155_v58 }
 0xf90   : > { %4433 = vmax.xlane.f32.xlu0 %v4432_v56  ;;  %v11475_v56 = vld [vmem:[#allocation92_spill] sm:$0xff]  ;;  %v3245_v8 = vmul.f32 0.2, %v3181_v5  ;;  %vm3213_vm14 = vcmp.gt.f32.partialorder %v3181_v5, 0.0  ;;  %v3251_v58 = vmul.f32 0.2, %v3187_v60 }
 0xf91   : > { %v4216_v30 = vadd.f32 %v8992_v54, %v11475_v56  ;;  %v4217_v2 = vadd.f32 %v8989_v45, %v11475_v56  ;;  %v3244_v56 = vmul.f32 0.2, %v3180_v43  ;;  %vm3219_vm7 = vcmp.gt.f32.partialorder %v3187_v60, 0.0 }
 0xf93   : > { %v4248_v31 = vmul.f32 %v9320_v22, %v4216_v30  ;;  %v9610_v22 = vsel %vm3213_vm14, %v3181_v5, %v3245_v8  ;;  %v4221_v30 = vadd.f32 %v8989_v45, %v11478_v63  ;;  %v9617_v47 = vsel %vm3212_vm4, %v3180_v43, %v3244_v56  ;;  %v11482_v8 = vld [vmem:[#allocation100_spill] sm:$0xff] }
 0xf94   : > { %3501 = vadd.xlane.f32.xlu0 %v3500_v16  ;;  %v6005_v16 = vld [vmem:[%s6924_s17 + $0xb0] sm:$0xff]  ;;  %11479 = vst [vmem:[#allocation33_spill] sm:$0xff] %v9610_v22  ;;  %11480 = vst [vmem:[#allocation89_spill] sm:$0xff] %v9617_v47  ;;  %v3382_v5 = vsub.f32 %v11482_v8, %v9432_v57  ;;  %v3309_v63 = vsel %vm11483_vm9, %v9610_v22, 0.0  ;;  %v11489_v8 = vld [vmem:[#allocation81_spill] sm:$0xff]  ;;  %vm11492_vm4 = vcmp.ne.f32.partialorder %v11428_v11, 0.0 }
 0xf95   : > { %v3186_v9 = vmul.f32 %v6005_v16, %v3154_v33  ;;  %v4312_v59 = vmul.f32 0.2, %v4248_v31  ;;  %vm4280_vm6 = vcmp.gt.f32.partialorder %v4248_v31, 0.0  ;;  %v4252_v23 = vmul.f32 %v6005_v16, %v4220_v61 }
 0xf96   : > { %v4253_v16 = vmul.f32 %v6006_v12, %v4221_v30  ;;  %v3308_v61 = vsel %vm11488_vm2, %v9617_v47, 0.0  ;;  %vm11490_vm14 = vcmp.ne.f32.partialorder %v11489_v8, 0.0  ;;  %v3424_v30 = vmul.f32 1.442695, %v3382_v5  ;;  %v11494_v5 = vld [vmem:[#allocation64_spill] sm:$0xff] }
 0xf97   : > { %v3250_v48 = vmul.f32 0.2, %v3186_v9  ;;  %vm3218_vm0 = vcmp.gt.f32.partialorder %v3186_v9, 0.0  ;;  %v9630_v56 = vsel %vm4280_vm6, %v4248_v31, %v4312_v59  ;;  %v9649_v59 = vsel %vm3219_vm7, %v3187_v60, %v3251_v58 }
 0xf98   : > { %3507 = vadd.xlane.f32.xlu0 %v3506_v38  ;;  %v11476_v38 = vld [vmem:[#allocation14_spill] sm:$0xff]  ;;  %11485 = vst [vmem:[#allocation85_spill] sm:$0xff] %v9630_v56  ;;  %v4316_v12 = vmul.f32 0.2, %v4252_v23  ;;  %v4376_v20 = vsel %vm11492_vm4, %v9630_v56, 0.0  ;;  %vm4284_vm6 = vcmp.gt.f32.partialorder %v4252_v23, 0.0  ;;  %5785 = vpow2.f32 %v3424_v30 }
 0xf99   : > { %v4249_v32 = vmul.f32 %v11476_v38, %v4217_v2  ;;  %v6007_v2 = vld [vmem:[%s6924_s17 + $0xd0] sm:$0xff]  ;;  %v9619_v53 = vsel %vm3218_vm0, %v3186_v9, %v3250_v48  ;;  %v11487_v48 = vld [vmem:[#allocation94_spill] sm:$0xff]  ;;  %vm11493_vm0 = vcmp.ne.f32.partialorder %v11426_v27, 0.0  ;;  %v4317_v58 = vmul.f32 0.2, %v4253_v16 }
 0xf9a   : > { %v9615_v38 = vmul.f32 %v6007_v2, %v3158_v4  ;;  %11481 = vst [vmem:[#allocation36_spill] sm:$0xff] %v9619_v53  ;;  %v11484_v4 = vld [vmem:[#allocation97_spill] sm:$0xff]  ;;  %v9636_v13 = vadd.f32 %v8804_v36, %v11487_v48  ;;  %v3314_v62 = vsel %vm11490_vm14, %v9619_v53, 0.0  ;;  %vm11497_vm9 = vcmp.ne.f32.partialorder %v11496_v50, 0.0 }
 0xf9b   : > { %v4313_v33 = vmul.f32 0.2, %v4249_v32  ;;  %vm4281_vm8 = vcmp.gt.f32.partialorder %v4249_v32, 0.0  ;;  %v3383_v43 = vsub.f32 %v11484_v4, %v9432_v57  ;;  %v11491_v57 = vld [vmem:[#allocation96_spill] sm:$0xff]  ;;  %v6008_v36 = vld [vmem:[%s6924_s17 + $0xd8] sm:$0xff]  ;;  %v9652_v4 = vpop.permute.xlu0 %3568  ;;  %vm4285_vm7 = vcmp.gt.f32.partialorder %v4253_v16, 0.0  ;;  %vm11503_vm4 = vmmov %vm11497_vm9 }
 0xf9c   : > { %v9645_v46 = vmul.f32 0.2, %v9615_v38  ;;  %v4224_v31 = vadd.f32 %v8992_v54, %v11491_v57  ;;  %v4225_v26 = vadd.f32 %v8989_v45, %v11491_v57  ;;  %v9670_v24 = vsel %vm4284_vm6, %v4252_v23, %v4316_v12 }
 0xf9d   : > { %v9632_v9 = vsel %vm4281_vm8, %v4249_v32, %v4313_v33  ;;  %v3348_v32 = vmax.f32 %v3308_v61, %v3309_v63  ;;  %v3191_v33 = vmul.f32 %v6008_v36, %v3159_v10  ;;  %v3426_v63 = vmul.f32 1.442695, %v3383_v43 }
 0xf9e   : > { %11486 = vst [vmem:[#allocation45_spill] sm:$0xff] %v9632_v9  ;;  %v4377_v53 = vsel %vm11493_vm0, %v9632_v9, 0.0  ;;  %vm3222_vm8 = vcmp.gt.f32.partialorder %v9615_v38, 0.0  ;;  %v3163_v10 = vadd.f32 %v8817_v35, %v11487_v48  ;;  %v3315_v9 = vsel %vm11497_vm9, %v9649_v59, 0.0  ;;  %v11498_v48 = vld [vmem:[#allocation73_spill] sm:$0xff] }
 0xf9f   : > { %v4256_v17 = vmul.f32 %v6007_v2, %v4224_v31  ;;  %v4417_v57 = vmax.f32 %v4376_v20, %v4377_v53  ;;  %v3255_v43 = vmul.f32 0.2, %v3191_v33  ;;  %v4257_v35 = vmul.f32 %v6008_v36, %v4225_v26  ;;  %v11500_v2 = vld [vmem:[#allocation46_spill] sm:$0xff]  ;;  %v6009_v36 = vld [vmem:[%s6924_s17 + $0xf8] sm:$0xff] }
 0xfa0   : > { %5787 = vpow2.f32 %v3426_v63  ;;  %vm3223_vm2 = vcmp.gt.f32.partialorder %v3191_v33, 0.0  ;;  %v11501_v53 = vld [vmem:[#allocation2_spill] sm:$0xff]  ;;  %v3357_v23 = vmax.f32 %v3314_v62, %v3315_v9  ;;  %v4380_v26 = vsel %vm11490_vm14, %v9670_v24, 0.0  ;;  %v11504_v9 = vld [vmem:[#allocation43_spill] sm:$0xff] }
 0xfa1   : > { %v3195_v12 = vmul.f32 %v6009_v36, %v3163_v10  ;;  %v4320_v30 = vmul.f32 0.2, %v4256_v17  ;;  %vm4288_vm0 = vcmp.gt.f32.partialorder %v4256_v17, 0.0  ;;  %vm4289_vm6 = vcmp.gt.f32.partialorder %v4257_v35, 0.0 }
 0xfaf   : > { %v3338_v60 = vpop.xlane.xlu1 %3337 }
 0xfb0   : > { %v3380_v61 = vsub.f32 %v11494_v5, %v3338_v60  ;;  %v3381_v56 = vsub.f32 %v11495_v6, %v3338_v60  ;;  %3349 = vmax.xlane.f32.xlu1 %v3348_v32  ;;  %v11499_v5 = vld [vmem:[#allocation95_spill] sm:$0xff]  ;;  %v9674_v32 = vpop.permute.xlu0 %4634 }
 0xfb1   : > { %v3374_v0 = vsub.f32 %v11499_v5, %v11498_v48  ;;  %v11502_v48 = vld [vmem:[#allocation76_spill] sm:$0xff] }
 0xfb2   : > { %v3420_v22 = vmul.f32 1.442695, %v3380_v61  ;;  %v3422_v47 = vmul.f32 1.442695, %v3381_v56  ;;  %v9679_v56 = vsel %vm4285_vm7, %v4253_v16, %v4317_v58  ;;  %v4321_v61 = vmul.f32 0.2, %v4257_v35 }
 0xfb3   : > { %v4404_v6 = vpop.xlane.xlu1 %4403  ;;  %v3408_v16 = vmul.f32 1.442695, %v3374_v0  ;;  %v4381_v62 = vsel %vm11503_vm4, %v9679_v56, 0.0  ;;  %v11505_v5 = vld [vmem:[#allocation4_spill] sm:$0xff]  ;;  %vm3227_vm7 = vcmp.gt.f32.partialorder %v3195_v12, 0.0 }
 0xfb4   : > { %5789 = vpow2.f32 %v3420_v22  ;;  %v4446_v20 = vsub.f32 %v11500_v2, %v4404_v6  ;;  %v4447_v31 = vsub.f32 %v11501_v53, %v4404_v6  ;;  %4418 = vmax.xlane.f32.xlu1 %v4417_v57  ;;  %v9685_v22 = vsel %vm3223_vm2, %v3191_v33, %v3255_v43 }
 0xfb5   : > { %5791 = vpow2.f32 %v3422_v47  ;;  %v4228_v57 = vadd.f32 %v8992_v54, %v11502_v48  ;;  %v4229_v47 = vadd.f32 %v8989_v45, %v11502_v48  ;;  %v6010_v54 = vld [vmem:[%s6924_s17 + $0xf0] sm:$0xff]  ;;  %v9702_v45 = vsel %vm3222_vm8, %v9615_v38, %v9645_v46  ;;  %v11508_v46 = vld [vmem:[#allocation118_spill] sm:$0xff] }
 0xfb6   : > { %v4486_v63 = vmul.f32 1.442695, %v4446_v20  ;;  %v4488_v60 = vmul.f32 1.442695, %v4447_v31  ;;  %v3194_v0 = vmul.f32 %v6010_v54, %v9636_v13  ;;  %v4423_v20 = vmax.f32 %v4380_v26, %v4381_v62 }
 0xfb7   : > { %v4407_v58 = vpop.xlane.xlu1 %4406  ;;  %v4260_v53 = vmul.f32 %v6010_v54, %v4228_v57  ;;  %v4261_v48 = vmul.f32 %v6009_v36, %v4229_v47  ;;  %v9708_v26 = vsel %vm4288_vm0, %v4256_v17, %v4320_v30  ;;  %vm11509_vm8 = vcmp.ne.f32.partialorder %v11508_v46, 0.0  ;;  %v9717_v47 = vpop.eup %5785 }
 0xfb8   : > { %5793 = vpow2.f32 %v4486_v63  ;;  %v4448_v10 = vsub.f32 %v11504_v9, %v4407_v58  ;;  %v4449_v6 = vsub.f32 %v11505_v5, %v4407_v58  ;;  %v3347_v33 = vpop.xlane.xlu0 %3346  ;;  %3358 = vmax.xlane.f32.xlu1 %v3357_v23  ;;  %v11506_v23 = vld [vmem:[#allocation132_spill] sm:$0xff]  ;;  %v9711_v58 = vsel %vm4289_vm6, %v4257_v35, %v4321_v61  ;;  %vm11512_vm14 = vmmov %vm11509_vm8  ;;  %v9726_v61 = vpop.eup %5787 }
 0xfb9   : > { %5795 = vpow2.f32 %v4488_v60  ;;  %vm11507_vm9 = vcmp.ne.f32.partialorder %v11506_v23, 0.0  ;;  %v3259_v60 = vmul.f32 0.2, %v3195_v12  ;;  %v3318_v38 = vsel %vm11509_vm8, %v9702_v45, 0.0  ;;  %v11511_v9 = vld [vmem:[#allocation8_spill] sm:$0xff] }
 0xfba   : > { %v4490_v43 = vmul.f32 1.442695, %v4448_v10  ;;  %v4492_v2 = vmul.f32 1.442695, %v4449_v6  ;;  %5797 = vpow2.f32 %v3408_v16  ;;  %v3319_v63 = vsel %vm11507_vm9, %v9685_v22, 0.0  ;;  %v11510_v16 = vld [vmem:[#allocation13_spill] sm:$0xff]  ;;  %vm11513_vm4 = vmmov %vm11507_vm9 }
 0xfbb   : > { %v3571_v31 = vpop.permute.xlu1 %3570  ;;  %v3258_v57 = vmul.f32 0.2, %v3194_v0  ;;  %v3386_v62 = vsub.f32 %v11510_v16, %v3347_v33  ;;  %v3363_v36 = vmax.f32 %v3318_v38, %v3319_v63  ;;  %vm3226_vm2 = vcmp.gt.f32.partialorder %v3194_v0, 0.0  ;;  %v11514_v38 = vld [vmem:[#allocation107_spill] sm:$0xff] }
 0xfbc   : > { %5799 = vpow2.f32 %v4490_v43  ;;  %v3583_v13 = vpop.permute.xlu0 %3582  ;;  %4424 = vmax.xlane.f32.xlu1 %v4423_v20  ;;  %5370 = vmatpush3.bf16.msra.mxu1 %v3571_v31  ;;  %v3387_v10 = vsub.f32 %v11511_v9, %v3347_v33  ;;  %v4384_v35 = vsel %vm11512_vm14, %v9708_v26, 0.0  ;;  %v4385_v30 = vsel %vm11513_vm4, %v9711_v58, 0.0 }
 0xfbd   : > { %5801 = vpow2.f32 %v4492_v2  ;;  %v4324_v5 = vmul.f32 0.2, %v4260_v53  ;;  %v4325_v6 = vmul.f32 0.2, %v4261_v48  ;;  %v9728_v54 = vsel %vm3227_vm7, %v3195_v12, %v3259_v60 }
 0xfbe   : > { %v9733_v33 = vsel %vm3226_vm2, %v3194_v0, %v3258_v57  ;;  %vm4292_vm0 = vcmp.gt.f32.partialorder %v4260_v53, 0.0  ;;  %vm4293_vm6 = vcmp.gt.f32.partialorder %v4261_v48, 0.0  ;;  %v3432_v20 = vmul.f32 1.442695, %v3386_v62  ;;  %v11518_v57 = vld [vmem:[#allocation135_spill] sm:$0xff] }
 0xfbf   : > { %v3585_v17 = vpop.permute.xlu1 %3584  ;;  %v4429_v63 = vmax.f32 %v4384_v35, %v4385_v30  ;;  %vm11515_vm9 = vcmp.ne.f32.partialorder %v11514_v38, 0.0  ;;  %v3434_v60 = vmul.f32 1.442695, %v3387_v10  ;;  %vm11519_vm7 = vcmp.ne.f32.partialorder %v11518_v57, 0.0  ;;  %v11521_v30 = vld [vmem:[#allocation134_spill] sm:$0xff] }
 0xfc0   : > { %3364 = vmax.xlane.f32.xlu1 %v3363_v36  ;;  %5371 = vmatprep.subr.bf16.mxu1 %v3585_v17  ;;  %v4649_v31 = vpop.permute.xlu0 %4648  ;;  %v3323_v62 = vsel %vm11519_vm7, %v9728_v54, 0.0  ;;  %v9751_v17 = vsel %vm4292_vm0, %v4260_v53, %v4324_v5  ;;  %v9754_v10 = vsel %vm4293_vm6, %v4261_v48, %v4325_v6  ;;  %vm11522_vm2 = vcmp.ne.f32.partialorder %v11521_v30, 0.0  ;;  %vm11523_vm14 = vmmov %vm11515_vm9 }
 0xfc1   : > { %v9730_v43 = vpop.eup %5789  ;;  %5372 = vmatpush3.bf16.msra.mxu1 %v9652_v4  ;;  %v11516_v4 = vld [vmem:[#allocation125_spill] sm:$0xff]  ;;  %11520 = vst [vmem:[#allocation87_spill] sm:$0xff] %v9754_v10  ;;  %v3322_v12 = vsel %vm11522_vm2, %v9733_v33, 0.0  ;;  %5803 = vpow2.f32 %v3432_v20  ;;  %vm11524_vm4 = vmmov %vm11522_vm2 }
 0xfc2   : > { %v9735_v2 = vpop.eup %5791  ;;  %5373 = vmatprep.subr.bf16.mxu1 %v3583_v13  ;;  %v3476_v16 = vsel %vm11515_vm9, %v9730_v43, 0.0  ;;  %vm11517_vm8 = vcmp.ne.f32.partialorder %v11516_v4, 0.0  ;;  %5805 = vpow2.f32 %v3434_v60  ;;  %v4388_v48 = vsel %vm11524_vm4, %v9751_v17, 0.0  ;;  %vm11525_vm0 = vmmov %vm11519_vm7  ;;  %v11528_v60 = vld [vmem:[#allocation106_spill] sm:$0xff] }
 0xfc3   : > { %v4651_v36 = vpop.permute.xlu1 %4650  ;;  %v3477_v0 = vsel %vm11517_vm8, %v9735_v2, 0.0  ;;  %vm11526_vm6 = vmmov %vm11517_vm8  ;;  %vm11529_vm9 = vcmp.ne.f32.partialorder %v11528_v60, 0.0  ;;  %vm11539_vm4 = vcmp.ne.f32.partialorder %v11346_v51, 0.0 }
 0xfc4   : > { %4430 = vmax.xlane.f32.xlu1 %v4429_v63  ;;  %5435 = vmatprep.subr.bf16.mxu0 %v4651_v36  ;;  %v3512_v9 = vadd.f32 %v3477_v0, %v3476_v16  ;;  %v3369_v63 = vmax.f32 %v3322_v12, %v3323_v62  ;;  %v4633_v20 = vpop.permute.xlu0 %4632  ;;  %v11530_v0 = vld [vmem:[#allocation102_spill] sm:$0xff]  ;;  %v11532_v62 = vld [vmem:[#allocation84_spill] sm:$0xff] }
 0xfc5   : > { %v9756_v35 = vpop.eup %5793  ;;  %5436 = vmatpush3.bf16.msra.mxu0 %v9674_v32  ;;  %v4389_v32 = vsel %vm11525_vm0, %v9754_v10, 0.0  ;;  %vm11531_vm8 = vcmp.ne.f32.partialorder %v11530_v0, 0.0  ;;  %v3475_v0 = vsel %vm11539_vm4, %v9475_v21, 0.0  ;;  %vm11540_vm0 = vmmov %vm11529_vm9 }
 0xfc6   : > { %v9762_v23 = vpop.eup %5795  ;;  %3513 = vadd.xlane.f32.xlu0 %v3512_v9  ;;  %5437 = vmatprep.subr.bf16.mxu0 %v4649_v31  ;;  %v4542_v53 = vsel %vm11523_vm14, %v9756_v35, 0.0  ;;  %v4435_v12 = vmax.f32 %v4388_v48, %v4389_v32  ;;  %v11533_v9 = vld [vmem:[#allocation115_spill] sm:$0xff]  ;;  %vm11538_vm14 = vcmp.ne.f32.partialorder %v11350_v14, 0.0 }
 0xfc7   : > { %v4543_v5 = vsel %vm11526_vm6, %v9762_v23, 0.0  ;;  %v9776_v6 = vpop.eup %5797  ;;  %vm11534_vm7 = vcmp.ne.f32.partialorder %v11533_v9, 0.0  ;;  %v3474_v32 = vsel %vm11538_vm14, %v9472_v34, 0.0 }
 0xfc8   : > { %3370 = vmax.xlane.f32.xlu1 %v3369_v63  ;;  %v9778_v31 = vadd.f32 %v4543_v5, %v4542_v53  ;;  %v3470_v4 = vsel %vm11531_vm8, %v9776_v6, 0.0  ;;  %v3471_v63 = vsel %vm11534_vm7, %v11532_v62, 0.0  ;;  %v11535_v53 = vld [vmem:[#allocation124_spill] sm:$0xff]  ;;  %v3509_v13 = vadd.f32 %v3475_v0, %v3474_v32  ;;  %v3565_v60 = vpop.permute.xlu0 %3564  ;;  %v11545_v32 = vld [vmem:[#allocation17_spill] sm:$0xff] }
 0xfc9   : > { %v9780_v38 = vpop.eup %5799  ;;  %5438 = vmatpush3.bf16.msra.mxu0 %v4633_v20  ;;  %vm11536_vm2 = vcmp.ne.f32.partialorder %v11535_v53, 0.0  ;;  %v3503_v48 = vadd.f32 %v3471_v63, %v3470_v4  ;;  %v3478_v62 = vsel %vm11540_vm0, %v9717_v47, 0.0  ;;  %vm11543_vm8 = vcmp.ne.f32.partialorder %v11401_v55, 0.0 }
 0xfca   : > { %11527 = vst [vmem:[#allocation47_spill] sm:$0xff] %v9778_v31  ;;  %v9782_v16 = vpop.eup %5801  ;;  %v4544_v36 = vsel %vm11529_vm9, %v9780_v38, 0.0  ;;  %vm11541_vm6 = vmmov %vm11536_vm2  ;;  %vm11542_vm9 = vcmp.ne.f32.partialorder %v11403_v41, 0.0  ;;  %v11564_v41 = vpack.c.bf16 %v9726_v61, %v9735_v2  ;;  %v11567_v2 = vpack.c.bf16 %v9717_v47, %v9730_v43 }
 0xfcb   : > { %v4545_v5 = vsel %vm11536_vm2, %v9782_v16, 0.0  ;;  %vm11559_vm0 = vmmov %vm11542_vm9 }
 0xfcc   : > { %4436 = vmax.xlane.f32.xlu1 %v4435_v12  ;;  %v9796_v20 = vadd.f32 %v4545_v5, %v4544_v36  ;;  %v3479_v12 = vsel %vm11541_vm6, %v9726_v61, 0.0  ;;  %vm11560_vm6 = vmmov %vm11543_vm8 }
 0xfcd   : > { %v3515_v14 = vadd.f32 %v3479_v12, %v3478_v62  ;;  %v4631_v12 = vpop.permute.xlu0 %4630 }
 0xfce   : > { %11537 = vst [vmem:[#allocation90_spill] sm:$0xff] %v9796_v20  ;;  %v9804_v9 = vpop.eup %5803 }
 0xfcf   : > { %v9812_v36 = vpop.eup %5805  ;;  %v3482_v51 = vsel %vm11542_vm9, %v9804_v9, 0.0 }
 0xfd0   : > { %3504 = vadd.xlane.f32.xlu1 %v3503_v48  ;;  %v3483_v4 = vsel %vm11543_vm8, %v9812_v36, 0.0  ;;  %v11544_v48 = vld [vmem:[#allocation15_spill] sm:$0xff] }
 0xfd1   : > { %v3521_v63 = vadd.f32 %v3483_v4, %v3482_v51 }
 0xfd4   : > { %3510 = vadd.xlane.f32.xlu1 %v3509_v13 }
 0xfd8   : > { %3516 = vadd.xlane.f32.xlu1 %v3515_v14 }
 0xfdc   : > { %3522 = vadd.xlane.f32.xlu1 %v3521_v63  ;;  %v11546_v63 = vld [vmem:[#allocation19_spill] sm:$0xff] }
 0xff4   : > { %v3344_v5 = vpop.xlane.xlu1 %3343 }
 0xff5   : > { %v3384_v53 = vsub.f32 %v11544_v48, %v3344_v5  ;;  %v3385_v0 = vsub.f32 %v11545_v32, %v3344_v5 }
 0xff7   : > { %v3428_v20 = vmul.f32 1.442695, %v3384_v53  ;;  %v3430_v13 = vmul.f32 1.442695, %v3385_v0  ;;  %v11547_v53 = vld [vmem:[#allocation16_spill] sm:$0xff] }
 0xff8   : > { %v4410_v62 = vpop.xlane.xlu1 %4409 }
 0xff9   : > { %5807 = vpow2.f32 %v3428_v20  ;;  %v4450_v31 = vsub.f32 %v9365_v19, %v4410_v62  ;;  %v4451_v57 = vsub.f32 %v9367_v18, %v4410_v62  ;;  %v11550_v62 = vld [vmem:[#allocation127_spill] sm:$0xff] }
 0xffa   : > { %5809 = vpow2.f32 %v3430_v13  ;;  %vm11551_vm2 = vcmp.ne.f32.partialorder %v11550_v62, 0.0 }
 0xffb   : > { %v4494_v30 = vmul.f32 1.442695, %v4450_v31  ;;  %v4496_v14 = vmul.f32 1.442695, %v4451_v57  ;;  %v11548_v31 = vld [vmem:[#allocation109_spill] sm:$0xff]  ;;  %vm11558_vm4 = vmmov %vm11551_vm2 }
 0xffc   : > { %v4413_v51 = vpop.xlane.xlu1 %4412  ;;  %vm11549_vm7 = vcmp.ne.f32.partialorder %v11548_v31, 0.0 }
 0xffd   : > { %5811 = vpow2.f32 %v4494_v30  ;;  %v4452_v4 = vsub.f32 %v9380_v25, %v4413_v51  ;;  %v4453_v48 = vsub.f32 %v11546_v63, %v4413_v51  ;;  %v3353_v46 = vpop.xlane.xlu0 %3352  ;;  %vm11557_vm14 = vmmov %vm11549_vm7 }
 0xffe   : > { %5813 = vpow2.f32 %v4496_v14  ;;  %v3390_v5 = vsub.f32 %v9374_v52, %v3353_v46  ;;  %v3391_v32 = vsub.f32 %v11547_v53, %v3353_v46  ;;  %v5110_v52 = vpack.c.bf16 %v9776_v6, %v9572_v29  ;;  %v11555_v6 = vld [vmem:[#allocation82_spill] sm:$0xff] }
 0xfff   : > { %v4498_v20 = vmul.f32 1.442695, %v4452_v4  ;;  %v4500_v0 = vmul.f32 1.442695, %v4453_v48  ;;  %v11556_v48 = vld [vmem:[#allocation6_spill] sm:$0xff] }
0x1000   : > { %v3440_v19 = vmul.f32 1.442695, %v3390_v5  ;;  %v3442_v10 = vmul.f32 1.442695, %v3391_v32  ;;  %v3567_v18 = vpop.permute.xlu1 %3566  ;;  %v5158_v5 = vpack.c.bf16 %v11556_v48, %v11555_v6  ;;  %v5161_v32 = vpack.c.bf16 %v9542_v3, %v9517_v49  ;;  %v11571_v48 = vld [vmem:[#allocation21_spill] sm:$0xff] }
0x1001   : > { %5815 = vpow2.f32 %v4498_v20  ;;  %5374 = vmatpush3.bf16.msra.mxu1 %v3567_v18  ;;  %v11561_v18 = vpack.c.bf16 %v9472_v34, %v9485_v7  ;;  %v5164_v7 = vpack.c.bf16 %v9536_v39, %v9508_v37  ;;  %v4416_v37 = vpop.xlane.xlu0 %4415  ;;  %v5170_v39 = vpack.c.bf16 %v9780_v38, %v9756_v35 }
0x1002   : > { %5817 = vpow2.f32 %v4500_v0  ;;  %v4454_v35 = vsub.f32 %v9414_v44, %v4416_v37  ;;  %v4455_v38 = vsub.f32 %v9418_v42, %v4416_v37  ;;  %v11572_v44 = vld [vmem:[#allocation18_spill] sm:$0xff] }
0x1003   : > { %5819 = vpow2.f32 %v3440_v19 }
0x1004   : > { %5821 = vpow2.f32 %v3442_v10  ;;  %v3581_v57 = vpop.permute.xlu1 %3580 }
0x1005   : > { %5375 = vmatprep.subr.bf16.mxu1 %v3581_v57  ;;  %v3356_v47 = vpop.xlane.xlu0 %3355 }
0x1006   : > { %v5808_v25 = vpop.eup %5807  ;;  %5376 = vmatpush3.bf16.msra.mxu1 %v3565_v60  ;;  %v11553_v60 = vpack.c.bf16 %v9475_v21, %v9495_v1 }
0x1007   : > { %v5810_v30 = vpop.eup %5809  ;;  %v3480_v46 = vsel %vm11549_vm7, %v5808_v25, 0.0  ;;  %vm11600_vm7 = vcmp.ne.f32.partialorder %v11489_v8, 0.0 }
0x1008   : > { %v4647_v13 = vpop.permute.xlu1 %4646  ;;  %v3481_v14 = vsel %vm11551_vm2, %v5810_v30, 0.0  ;;  %v5125_v61 = vpack.c.bf16 %v9812_v36, %v5810_v30 }
0x1009   : > { %5111 = vmatmul.mubr.msk.bf16.vlgmr.msra.gmra.mxu1 %vm7462_vm15, %v5110_v52  ;;  %5439 = vmatprep.subr.bf16.mxu0 %v4647_v13  ;;  %v3518_v10 = vadd.f32 %v3481_v14, %v3480_v46  ;;  %v5167_v13 = vpack.c.bf16 %v9782_v16, %v9762_v23  ;;  %v5128_v16 = vpack.c.bf16 %v9804_v9, %v5808_v25  ;;  %v4422_v30 = vpop.xlane.xlu0 %4421  ;;  %v4502_v9 = vmul.f32 1.442695, %v4454_v35 }
0x100a   : > { %v5812_v4 = vpop.eup %5811  ;;  %5114 = vmatprep.mubr.msk.bf16.mxu1 %vm7483_vm13, %v11553_v60  ;;  %5440 = vmatpush3.bf16.msra.mxu0 %v4631_v12  ;;  %v3393_v60 = vsub.f32 %v9430_v15, %v3356_v47  ;;  %v4504_v25 = vmul.f32 1.442695, %v4455_v38 }
0x100b   : > { %v5814_v29 = vpop.eup %5813  ;;  %3519 = vadd.xlane.f32.xlu0 %v3518_v10  ;;  %v4546_v53 = vsel %vm11557_vm14, %v5812_v4, 0.0  ;;  %v3392_v10 = vsub.f32 %v9451_v28, %v3356_v47  ;;  %5823 = vpow2.f32 %v4502_v9  ;;  %v11573_v28 = vld [vmem:[#allocation89_spill] sm:$0xff] }
0x100c   : > { %v4547_v20 = vsel %vm11558_vm4, %v5814_v29, 0.0  ;;  %v3446_v6 = vmul.f32 1.442695, %v3393_v60  ;;  %5825 = vpow2.f32 %v4504_v25 }
0x100d   : > { %5159 = vmatmul.mubr.msk.bf16.vlgmr.msra.gmra.mxu0 %vm7462_vm15, %v5158_v5  ;;  %v9851_v21 = vadd.f32 %v4547_v20, %v4546_v53  ;;  %vm11563_vm15 = vcmp.ne.f32.partialorder %v11428_v11, 0.0  ;;  %v3362_v51 = vpop.xlane.xlu0 %3361 }
0x100e   : > { %v5816_v1 = vpop.eup %5815  ;;  %5162 = vmatprep.mubr.msk.bf16.mxu0 %vm7483_vm13, %v5161_v32  ;;  %vm11566_vm13 = vcmp.ne.f32.partialorder %v11426_v27, 0.0  ;;  %v3396_v5 = vsub.f32 %v11571_v48, %v3362_v51  ;;  %v3397_v32 = vsub.f32 %v11572_v44, %v3362_v51 }
0x100f   : > { %v5818_v12 = vpop.eup %5817  ;;  %v4548_v0 = vsel %vm11559_vm0, %v5816_v1, 0.0  ;;  %v5176_v36 = vpack.c.bf16 %v5816_v1, %v5812_v4  ;;  %v3444_v4 = vmul.f32 1.442695, %v3392_v10  ;;  %v11574_v1 = vld [vmem:[#allocation33_spill] sm:$0xff] }
0x1010   : > { %v9857_v19 = vpop.eup %5819  ;;  %v4549_v49 = vsel %vm11560_vm6, %v5818_v12, 0.0  ;;  %v5173_v23 = vpack.c.bf16 %v5818_v12, %v5814_v29  ;;  %v4458_v29 = vsub.f32 %v9461_v40, %v4422_v30 }
0x1011   : > { %v9861_v3 = vpop.eup %5821  ;;  %5117 = vmatmul.mubr.msk.bf16.gmra.mxu1 %vm7510_vm1, %v11561_v18  ;;  %v3486_v52 = vsel %vm11563_vm15, %v9857_v19, 0.0  ;;  %v9871_v31 = vadd.f32 %v4549_v49, %v4548_v0  ;;  %v9912_v63 = vpop.xlane.xlu0 %4427  ;;  %5827 = vpow2.f32 %v3444_v4  ;;  %v3452_v0 = vmul.f32 1.442695, %v3396_v5  ;;  %v11575_v49 = vld [vmem:[#allocation34_spill] sm:$0xff] }
0x1012   : > { %5120 = vmatprep.mubr.msk.bf16.mxu1 %vm7534_vm3, %v11564_v41  ;;  %v3487_v55 = vsel %vm11566_vm13, %v9861_v3, 0.0  ;;  %v4510_v53 = vmul.f32 1.442695, %v4458_v29  ;;  %5829 = vpow2.f32 %v3446_v6  ;;  %v11576_v41 = vld [vmem:[#allocation29_spill] sm:$0xff] }
0x1013   : > { %v3527_v34 = vadd.f32 %v3487_v55, %v3486_v52  ;;  %v3454_v52 = vmul.f32 1.442695, %v3397_v32 }
0x1014   : > { %5831 = vpow2.f32 %v4510_v53 }
0x1015   : > { %3528 = vadd.xlane.f32.xlu1 %v3527_v34  ;;  %5165 = vmatmul.mubr.msk.bf16.gmra.mxu0 %vm7510_vm1, %v5164_v7  ;;  %v3368_v42 = vpop.xlane.xlu0 %3367  ;;  %v11577_v34 = vld [vmem:[#allocation85_spill] sm:$0xff] }
0x1016   : > { %5168 = vmatprep.mubr.msk.bf16.mxu0 %vm7534_vm3, %v5167_v13  ;;  %v3400_v40 = vsub.f32 %v11575_v49, %v3368_v42  ;;  %v3401_v46 = vsub.f32 %v11576_v41, %v3368_v42  ;;  %v11578_v13 = vld [vmem:[#allocation45_spill] sm:$0xff] }
0x1018   : > { %v3460_v14 = vmul.f32 1.442695, %v3400_v40  ;;  %v3462_v47 = vmul.f32 1.442695, %v3401_v46  ;;  %v9928_v60 = vpop.eup %5823  ;;  %v11583_v40 = vld [vmem:[#allocation110_spill] sm:$0xff] }
0x1019   : > { %5123 = vmatmul.mubr.msk.bf16.gmra.mxu1 %vm7581_vm11, %v11567_v2  ;;  %v11579_v2 = vld [vmem:[#allocation23_spill] sm:$0xff]  ;;  %v9930_v29 = vpop.eup %5825  ;;  %vm11584_vm1 = vcmp.ne.f32.partialorder %v11583_v40, 0.0  ;;  %v11587_v46 = vld [vmem:[#allocation74_spill] sm:$0xff] }
0x101a   : > { %5126 = vmatprep.mubr.msk.bf16.mxu1 %vm7597_vm12, %v5125_v61  ;;  %v4459_v62 = vsub.f32 %v11579_v2, %v4422_v30  ;;  %vm11588_vm3 = vcmp.ne.f32.partialorder %v11587_v46, 0.0 }
0x101c   : > { %v4512_v38 = vmul.f32 1.442695, %v4459_v62  ;;  %v11591_v62 = vld [vmem:[#allocation79_spill] sm:$0xff] }
0x101d   : > { %5171 = vmatmul.mubr.msk.bf16.gmra.mxu0 %vm7581_vm11, %v5170_v39 }
0x101e   : > { %5174 = vmatprep.mubr.msk.bf16.mxu0 %vm7597_vm12, %v5173_v23  ;;  %v11580_v23 = vld [vmem:[#allocation28_spill] sm:$0xff]  ;;  %v9934_v48 = vpop.eup %5827 }
0x101f   : > { %v9938_v53 = vpop.eup %5829 }
0x1021   : > { %5129 = vmatmul.mubr.msk.bf16.gmra.mxu1 %vm7635_vm10, %v5128_v16  ;;  %v4462_v16 = vsub.f32 %v11580_v23, %v9912_v63  ;;  %v11593_v23 = vld [vmem:[#allocation86_spill] sm:$0xff] }
0x1023   : > { %v4518_v9 = vmul.f32 1.442695, %v4462_v16 }
0x1025   : > { %5177 = vmatmul.mubr.msk.bf16.gmra.mxu0 %vm7635_vm10, %v5176_v36  ;;  %v11581_v36 = vld [vmem:[#allocation36_spill] sm:$0xff] }
0x1039   : > { %v3350_v20 = vpop.xlane.xlu1 %3349 }
0x103a   : > { %v3388_v15 = vsub.f32 %v11573_v28, %v3350_v20  ;;  %v3389_v12 = vsub.f32 %v11574_v1, %v3350_v20  ;;  %v9940_v20 = vpop.eup %5831 }
0x103c   : > { %v3436_v18 = vmul.f32 1.442695, %v3388_v15  ;;  %v3438_v57 = vmul.f32 1.442695, %v3389_v12 }
0x103d   : > { %v4419_v55 = vpop.xlane.xlu1 %4418 }
0x103e   : > { %5833 = vpow2.f32 %v3436_v18  ;;  %v4456_v7 = vsub.f32 %v11577_v34, %v4419_v55  ;;  %v4457_v61 = vsub.f32 %v11578_v13, %v4419_v55  ;;  %v3488_v55 = vsel %vm11588_vm3, %v9934_v48, 0.0  ;;  %v11589_v34 = vld [vmem:[#allocation131_spill] sm:$0xff] }
0x103f   : > { %5835 = vpow2.f32 %v3438_v57  ;;  %vm11590_vm12 = vcmp.ne.f32.partialorder %v11589_v34, 0.0 }
0x1040   : > { %5837 = vpow2.f32 %v3452_v0  ;;  %v4506_v37 = vmul.f32 1.442695, %v4456_v7  ;;  %v4508_v39 = vmul.f32 1.442695, %v4457_v61  ;;  %v3489_v7 = vsel %vm11590_vm12, %v9938_v53, 0.0 }
0x1041   : > { %5839 = vpow2.f32 %v3454_v52  ;;  %v3359_v43 = vpop.xlane.xlu1 %3358 }
0x1042   : > { %5841 = vpow2.f32 %v4506_v37  ;;  %v3394_v51 = vsub.f32 %v11581_v36, %v3359_v43  ;;  %v3395_v35 = vsub.f32 %v9649_v59, %v3359_v43  ;;  %v11582_v59 = vld [vmem:[#allocation32_spill] sm:$0xff]  ;;  %v11594_v36 = vld [vmem:[#allocation113_spill] sm:$0xff] }
0x1043   : > { %5843 = vpow2.f32 %v4508_v39  ;;  %v4463_v5 = vsub.f32 %v11582_v59, %v9912_v63  ;;  %v4434_v63 = vpop.xlane.xlu0 %4433  ;;  %vm11595_vm10 = vnez %v11594_v36  ;;  %v11611_v36 = vld [vmem:[#allocation118_spill] sm:$0xff] }
0x1044   : > { %5845 = vpow2.f32 %v3460_v14  ;;  %v3448_v30 = vmul.f32 1.442695, %v3394_v51  ;;  %v3450_v10 = vmul.f32 1.442695, %v3395_v35  ;;  %v4466_v14 = vsub.f32 %v11591_v62, %v4434_v63  ;;  %v11609_v62 = vld [vmem:[#allocation117_spill] sm:$0xff] }
0x1045   : > { %5847 = vpow2.f32 %v3462_v47  ;;  %v4425_v25 = vpop.xlane.xlu1 %4424  ;;  %v4520_v15 = vmul.f32 1.442695, %v4463_v5  ;;  %v4467_v16 = vsub.f32 %v11593_v23, %v4434_v63  ;;  %vm11610_vm0 = vnez %v11609_v62 }
0x1046   : > { %5849 = vpow2.f32 %v3448_v30  ;;  %v4460_v4 = vsub.f32 %v9670_v24, %v4425_v25  ;;  %v4461_v6 = vsub.f32 %v9679_v56, %v4425_v25  ;;  %v11596_v30 = vld [vmem:[#allocation123_spill] sm:$0xff]  ;;  %vm11612_vm6 = vcmp.ne.f32.partialorder %v11611_v36, 0.0 }
0x1047   : > { %5851 = vpow2.f32 %v3450_v10  ;;  %vm11597_vm9 = vcmp.ne.f32.partialorder %v11596_v30, 0.0 }
0x1048   : > { %5853 = vpow2.f32 %v4512_v38  ;;  %v4514_v44 = vmul.f32 1.442695, %v4460_v4  ;;  %v4516_v32 = vmul.f32 1.442695, %v4461_v6  ;;  %v3530_v38 = vadd.f32 %v3489_v7, %v3488_v55  ;;  %v11598_v6 = vld [vmem:[#allocation133_spill] sm:$0xff] }
0x1049   : > { %5855 = vpow2.f32 %v4518_v9  ;;  %v3365_v42 = vpop.xlane.xlu1 %3364  ;;  %vm11599_vm8 = vcmp.ne.f32.partialorder %v11598_v6, 0.0  ;;  %v11607_v7 = vld [vmem:[#allocation137_spill] sm:$0xff] }
0x104a   : > { %5857 = vpow2.f32 %v4514_v44  ;;  %v3398_v24 = vsub.f32 %v9702_v45, %v3365_v42  ;;  %v3399_v56 = vsub.f32 %v9685_v22, %v3365_v42  ;;  %v11585_v45 = vld [vmem:[#allocation129_spill] sm:$0xff]  ;;  %v4526_v44 = vmul.f32 1.442695, %v4466_v14 }
0x104b   : > { %v5834_v28 = vpop.eup %5833  ;;  %5859 = vpow2.f32 %v4516_v32  ;;  %vm11586_vm11 = vcmp.ne.f32.partialorder %v11585_v45, 0.0  ;;  %v4528_v42 = vmul.f32 1.442695, %v4467_v16  ;;  %vm11608_vm4 = vcmp.ne.f32.partialorder %v11607_v7, 0.0 }
0x104c   : > { %v5836_v1 = vpop.eup %5835  ;;  %v3456_v12 = vmul.f32 1.442695, %v3398_v24  ;;  %v3458_v0 = vmul.f32 1.442695, %v3399_v56  ;;  %v5134_v49 = vpack.c.bf16 %v9857_v19, %v5834_v28  ;;  %v3484_v18 = vsel %vm11584_vm1, %v5834_v28, 0.0 }
0x104d   : > { %v9947_v57 = vpop.eup %5837  ;;  %v4431_v52 = vpop.xlane.xlu1 %4430  ;;  %v5131_v41 = vpack.c.bf16 %v9861_v3, %v5836_v1  ;;  %v3485_v22 = vsel %vm11586_vm11, %v5836_v1, 0.0 }
0x104e   : > { %v9958_v19 = vpop.eup %5839  ;;  %5861 = vpow2.f32 %v3456_v12  ;;  %v4464_v13 = vsub.f32 %v9708_v26, %v4431_v52  ;;  %v4465_v61 = vsub.f32 %v9711_v58, %v4431_v52  ;;  %v3524_v2 = vadd.f32 %v3485_v22, %v3484_v18  ;;  %v11602_v18 = vld [vmem:[#allocation87_spill] sm:$0xff]  ;;  %v11603_v22 = vld [vmem:[#allocation112_spill] sm:$0xff] }
0x104f   : > { %v9962_v3 = vpop.eup %5841  ;;  %5863 = vpow2.f32 %v3458_v0  ;;  %5132 = vmatprep.mubr.msk.bf16.mxu1 %vm11186_vm5, %v5131_v41  ;;  %v3492_v10 = vsel %vm11597_vm9, %v9947_v57, 0.0  ;;  %v3493_v59 = vsel %vm11599_vm8, %v9958_v19, 0.0  ;;  %vm11604_vm2 = vnez %v11603_v22  ;;  %v11625_v22 = vld [vmem:[#allocation121_spill] sm:$0xff] }
0x1050   : > { %v9967_v39 = vpop.eup %5843  ;;  %v4522_v47 = vmul.f32 1.442695, %v4464_v13  ;;  %v4524_v43 = vmul.f32 1.442695, %v4465_v61  ;;  %5135 = vmatmul.mubr.msk.bf16.gmra.mxu1 %vm11595_vm10, %v5134_v49  ;;  %3525 = vadd.xlane.f32.xlu0 %v3524_v2  ;;  %v5182_v26 = vpack.c.bf16 %v9962_v3, %v9928_v60  ;;  %5865 = vpow2.f32 %v4520_v15 }
0x1051   : > { %v9974_v58 = vpop.eup %5845  ;;  %v3371_v51 = vpop.xlane.xlu1 %3370  ;;  %v5179_v35 = vpack.c.bf16 %v9967_v39, %v9930_v29  ;;  %v3536_v1 = vadd.f32 %v3493_v59, %v3492_v10  ;;  %v11615_v59 = vld [vmem:[#allocation114_spill] sm:$0xff]  ;;  %vm11626_vm12 = vnez %v11625_v22  ;;  %vm11630_vm9 = vcmp.ne.f32.partialorder %v11583_v40, 0.0 }
0x1052   : > { %v9981_v9 = vpop.eup %5847  ;;  %5867 = vpow2.f32 %v4522_v47  ;;  %v3402_v25 = vsub.f32 %v9733_v33, %v3371_v51  ;;  %v3403_v4 = vsub.f32 %v9728_v54, %v3371_v51  ;;  %vm11616_vm13 = vnez %v11615_v59  ;;  %v11635_v40 = vld [vmem:[#allocation62_spill] sm:$0xff] }
0x1053   : > { %v5850_v5 = vpop.eup %5849  ;;  %5869 = vpow2.f32 %v4524_v43  ;;  %5180 = vmatprep.mubr.msk.bf16.mxu0 %vm11186_vm5, %v5179_v35  ;;  %vm11601_vm5 = vcmp.ne.f32.partialorder %v11496_v50, 0.0  ;;  %v3497_v13 = vsel %vm11608_vm4, %v9981_v9, 0.0  ;;  %v11613_v35 = vld [vmem:[#allocation132_spill] sm:$0xff]  ;;  %vm11631_vm8 = vcmp.ne.f32.partialorder %v11585_v45, 0.0 }
0x1054   : > { %v5852_v32 = vpop.eup %5851  ;;  %v3464_v24 = vmul.f32 1.442695, %v3402_v25  ;;  %v3466_v56 = vmul.f32 1.442695, %v3403_v4  ;;  %3531 = vadd.xlane.f32.xlu0 %v3530_v38  ;;  %5183 = vmatmul.mubr.msk.bf16.gmra.mxu0 %vm11595_vm10, %v5182_v26  ;;  %v5140_v54 = vpack.c.bf16 %v5850_v5, %v9934_v48  ;;  %v3490_v63 = vsel %vm11600_vm7, %v5850_v5, 0.0 }
0x1055   : > { %v9993_v33 = vpop.eup %5853  ;;  %v4437_v28 = vpop.xlane.xlu1 %4436  ;;  %v5137_v15 = vpack.c.bf16 %v5852_v32, %v9938_v53  ;;  %v3491_v12 = vsel %vm11601_vm5, %v5852_v32, 0.0  ;;  %v11605_v53 = vld [vmem:[#allocation136_spill] sm:$0xff]  ;;  %vm11614_vm15 = vcmp.ne.f32.partialorder %v11613_v35, 0.0  ;;  %v11618_v32 = vld [vmem:[#allocation122_spill] sm:$0xff]  ;;  %v4551_v62 = vsel %vm11631_vm8, %v9930_v29, 0.0 }
0x1056   : > { %v10000_v0 = vpop.eup %5855  ;;  %5871 = vpow2.f32 %v3464_v24  ;;  %v4468_v49 = vsub.f32 %v9751_v17, %v4437_v28  ;;  %v4469_v52 = vsub.f32 %v11602_v18, %v4437_v28  ;;  %v3533_v48 = vadd.f32 %v3491_v12, %v3490_v63  ;;  %v11621_v28 = vld [vmem:[#allocation134_spill] sm:$0xff]  ;;  %v11623_v12 = vld [vmem:[#allocation135_spill] sm:$0xff] }
0x1057   : > { %v10004_v41 = vpop.eup %5857  ;;  %5873 = vpow2.f32 %v3466_v56  ;;  %5138 = vmatprep.mubr.msk.bf16.mxu1 %vm11604_vm2, %v5137_v15  ;;  %vm11606_vm14 = vcmp.ne.f32.partialorder %v11605_v53, 0.0  ;;  %vm11619_vm1 = vnez %v11618_v32  ;;  %v11620_v56 = vld [vmem:[#allocation25_spill] sm:$0xff]  ;;  %vm11622_vm11 = vcmp.ne.f32.partialorder %v11621_v28, 0.0 }
0x1058   : > { %v3496_v55 = vsel %vm11606_vm14, %v9974_v58, 0.0  ;;  %v10014_v61 = vpop.eup %5859  ;;  %5875 = vpow2.f32 %v4526_v44  ;;  %v4530_v17 = vmul.f32 1.442695, %v4468_v49  ;;  %v4532_v2 = vmul.f32 1.442695, %v4469_v52  ;;  %3537 = vadd.xlane.f32.xlu0 %v3536_v1  ;;  %5141 = vmatmul.mubr.msk.bf16.gmra.mxu1 %vm11610_vm0, %v5140_v54  ;;  %v11617_v44 = vld [vmem:[#allocation58_spill] sm:$0xff] }
0x1059   : > { %v5188_v14 = vpack.c.bf16 %v10004_v41, %v9940_v20  ;;  %5877 = vpow2.f32 %v4528_v42  ;;  %3534 = vadd.xlane.f32.xlu1 %v3533_v48  ;;  %v5185_v37 = vpack.c.bf16 %v10014_v61, %v9993_v33  ;;  %v3542_v23 = vadd.f32 %v3497_v13, %v3496_v55  ;;  %v11627_v13 = vld [vmem:[#allocation47_spill] sm:$0xff] }
0x105a   : > { %5879 = vpow2.f32 %v4530_v17  ;;  %vm11624_vm3 = vcmp.ne.f32.partialorder %v11623_v12, 0.0  ;;  %v11628_v17 = vld [vmem:[#allocation138_spill] sm:$0xff]  ;;  %vm11633_vm7 = vcmp.ne.f32.partialorder %v11587_v46, 0.0  ;;  %vm11634_vm5 = vcmp.ne.f32.partialorder %v11589_v34, 0.0 }
0x105b   : > { %v5862_v16 = vpop.eup %5861  ;;  %5881 = vpow2.f32 %v4532_v2  ;;  %5186 = vmatprep.mubr.msk.bf16.mxu0 %vm11604_vm2, %v5185_v37  ;;  %vm11629_vm10 = vnez %v11628_v17  ;;  %vm11636_vm2 = vcmp.ne.f32.partialorder %v11596_v30, 0.0  ;;  %vm11637_vm14 = vcmp.ne.f32.partialorder %v11598_v6, 0.0 }
0x105c   : > { %v5864_v47 = vpop.eup %5863  ;;  %3543 = vadd.xlane.f32.xlu0 %v3542_v23  ;;  %5189 = vmatmul.mubr.msk.bf16.gmra.mxu0 %vm11610_vm0, %v5188_v14  ;;  %v5146_v43 = vpack.c.bf16 %v5862_v16, %v9947_v57  ;;  %v3494_v26 = vsel %vm11612_vm6, %v5862_v16, 0.0  ;;  %v11632_v14 = vld [vmem:[#allocation10_spill] sm:$0xff]  ;;  %v4554_v23 = vsel %vm11633_vm7, %v9940_v20, 0.0  ;;  %vm11639_vm4 = vcmp.ne.f32.partialorder %v11605_v53, 0.0 }
0x105d   : > { %v5143_v51 = vpack.c.bf16 %v5864_v47, %v9958_v19  ;;  %v3495_v38 = vsel %vm11614_vm15, %v5864_v47, 0.0  ;;  %v5866_v10 = vpop.eup %5865  ;;  %v11638_v16 = vld [vmem:[#allocation90_spill] sm:$0xff]  ;;  %vm11640_vm0 = vcmp.ne.f32.partialorder %v11607_v7, 0.0  ;;  %vm11641_vm6 = vcmp.ne.f32.partialorder %v11428_v11, 0.0  ;;  %v3505_v47 = vpop.xlane.xlu1 %3504 }
0x105e   : > { %v3539_v25 = vadd.f32 %v3495_v38, %v3494_v26  ;;  %v4559_v45 = vsel %vm11637_vm14, %v5866_v10, 0.0  ;;  %vm11642_vm15 = vcmp.ne.f32.partialorder %v11426_v27, 0.0  ;;  %vm4887_vm8 = vcmask 523648  }
0x105f   : > { %v5868_v4 = vpop.eup %5867  ;;  %5144 = vmatprep.mubr.msk.bf16.mxu1 %vm11616_vm13, %v5143_v51  ;;  %v4553_v30 = vsel %vm11642_vm15, %v9967_v39, 0.0 }
0x1060   : > { %v5870_v5 = vpop.eup %5869  ;;  %4567 = vadd.xlane.f32.xlu0 %v11617_v44  ;;  %5147 = vmatmul.mubr.msk.bf16.gmra.mxu1 %vm11619_vm1, %v5146_v43  ;;  %v5194_v57 = vpack.c.bf16 %v5868_v4, %v10000_v0  ;;  %v3710_v43 = vmax.f32 %v3505_v47, 1e-20 }
0x1061   : > { %3540 = vadd.xlane.f32.xlu1 %v3539_v25  ;;  %v5191_v42 = vpack.c.bf16 %v5870_v5, %v5866_v10  ;;  %v3511_v51 = vpop.xlane.xlu1 %3510 }
0x1063   : > { %v5872_v19 = vpop.eup %5871  ;;  %5192 = vmatprep.mubr.msk.bf16.mxu0 %vm11616_vm13, %v5191_v42  ;;  %vm11643_vm13 = vcmp.ne.f32.partialorder %v11489_v8, 0.0 }
0x1064   : > { %v5874_v24 = vpop.eup %5873  ;;  %4573 = vadd.xlane.f32.xlu0 %v11620_v56  ;;  %5195 = vmatmul.mubr.msk.bf16.gmra.mxu0 %vm11619_vm1, %v5194_v57  ;;  %v5152_v54 = vpack.c.bf16 %v5872_v19, %v9974_v58  ;;  %v3498_v15 = vsel %vm11622_vm11, %v5872_v19, 0.0  ;;  %v4556_v53 = vsel %vm11643_vm13, %v10004_v41, 0.0  ;;  %vm11644_vm1 = vcmp.ne.f32.partialorder %v11496_v50, 0.0  ;;  %v3502_v50 = vpop.xlane.xlu0 %3501 }
0x1065   : > { %v5876_v1 = vpop.eup %5875  ;;  %v5149_v63 = vpack.c.bf16 %v5874_v24, %v9981_v9  ;;  %v3499_v49 = vsel %vm11624_vm3, %v5874_v24, 0.0  ;;  %v4550_v9 = vsel %vm11630_vm9, %v9928_v60, 0.0  ;;  %v4555_v60 = vsel %vm11634_vm5, %v9993_v33, 0.0  ;;  %v3517_v44 = vpop.xlane.xlu1 %3516 }
0x1066   : > { %v5878_v18 = vpop.eup %5877  ;;  %v3545_v52 = vadd.f32 %v3499_v49, %v3498_v15  ;;  %v4590_v37 = vadd.f32 %v4551_v62, %v4550_v9  ;;  %v4596_v29 = vadd.f32 %v4555_v60, %v4554_v23  ;;  %v4562_v20 = vsel %vm11639_vm4, %v5876_v1, 0.0 }
0x1067   : > { %v5880_v48 = vpop.eup %5879  ;;  %5150 = vmatprep.mubr.msk.bf16.mxu1 %vm11626_vm12, %v5149_v63  ;;  %v4563_v34 = vsel %vm11640_vm0, %v5878_v18, 0.0  ;;  %v4552_v33 = vsel %vm11641_vm6, %v9962_v3, 0.0  ;;  %v4557_v7 = vsel %vm11644_vm1, %v10014_v61, 0.0  ;;  %vm11645_vm11 = vcmp.ne.f32.partialorder %v11611_v36, 0.0 }
0x1068   : > { %v5882_v55 = vpop.eup %5881  ;;  %4579 = vadd.xlane.f32.xlu0 %v11627_v13  ;;  %5153 = vmatmul.mubr.msk.bf16.gmra.mxu1 %vm11629_vm10, %v5152_v54  ;;  %v5200_v58 = vpack.c.bf16 %v5880_v48, %v5876_v1  ;;  %v4608_v6 = vadd.f32 %v4563_v34, %v4562_v20  ;;  %v4599_v11 = vadd.f32 %v4557_v7, %v4556_v53  ;;  %v4560_v3 = vsel %vm11645_vm11, %v5868_v4, 0.0  ;;  %v3508_v36 = vpop.xlane.xlu0 %3507 }
0x1069   : > { %3546 = vadd.xlane.f32.xlu1 %v3545_v52  ;;  %v5197_v2 = vpack.c.bf16 %v5882_v55, %v5878_v18  ;;  %vm11646_vm3 = vcmp.ne.f32.partialorder %v11613_v35, 0.0  ;;  %v3709_v61 = vmax.f32 %v3502_v50, 1e-20  ;;  %v3711_v26 = vmax.f32 %v3508_v36, 1e-20  ;;  %v3523_v18 = vpop.xlane.xlu1 %3522 }
0x106a   : > { %v4561_v27 = vsel %vm11646_vm3, %v5870_v5, 0.0  ;;  %v3712_v35 = vmax.f32 %v3511_v51, 1e-20  ;;  %v3714_v19 = vmax.f32 %v3517_v44, 1e-20  ;;  %vm3821_vm9 = vcmask 392448  }
0x106b   : > { %5198 = vmatprep.mubr.msk.bf16.mxu0 %vm11626_vm12, %v5197_v2  ;;  %vm11647_vm12 = vcmp.ne.f32.partialorder %v11621_v28, 0.0  ;;  %5883 = vrcp.f32 %v3709_v61  ;;  %v3716_v13 = vmax.f32 %v3523_v18, 1e-20 }
0x106c   : > { %4585 = vadd.xlane.f32.xlu0 %v9851_v21  ;;  %5201 = vmatmul.mubr.msk.bf16.gmra.mxu0 %vm11629_vm10, %v5200_v58  ;;  %v4558_v21 = vsel %vm11636_vm2, %v10000_v0, 0.0  ;;  %v4593_v0 = vadd.f32 %v4553_v30, %v4552_v33  ;;  %v4564_v39 = vsel %vm11647_vm12, %v5880_v48, 0.0  ;;  %vm11648_vm10 = vcmp.ne.f32.partialorder %v11623_v12, 0.0  ;;  %v3514_v38 = vpop.xlane.xlu0 %3513 }
0x106d   : > { %4570 = vadd.xlane.f32.xlu1 %v11632_v14  ;;  %v4602_v46 = vadd.f32 %v4559_v45, %v4558_v21  ;;  %v4565_v8 = vsel %vm11648_vm10, %v5882_v55, 0.0  ;;  %5885 = vrcp.f32 %v3710_v43  ;;  %v3713_v4 = vmax.f32 %v3514_v38, 1e-20 }
0x106e   : > { %v4611_v41 = vadd.f32 %v4565_v8, %v4564_v39  ;;  %5887 = vrcp.f32 %v3711_v26 }
0x106f   : > { %5889 = vrcp.f32 %v3712_v35 }
0x1070   : > { %4591 = vadd.xlane.f32.xlu0 %v4590_v37  ;;  %5891 = vrcp.f32 %v3713_v4 }
0x1071   : > { %4576 = vadd.xlane.f32.xlu1 %v11635_v40  ;;  %5893 = vrcp.f32 %v3714_v19 }
0x1074   : > { %4597 = vadd.xlane.f32.xlu0 %v4596_v29 }
0x1075   : > { %4582 = vadd.xlane.f32.xlu1 %v11638_v16 }
0x1078   : > { %4603 = vadd.xlane.f32.xlu0 %v4602_v46  ;;  %v5884_v5 = vpop.eup %5883 }
0x1079   : > { %4588 = vadd.xlane.f32.xlu1 %v9871_v31  ;;  %v4605_v31 = vadd.f32 %v4561_v27, %v4560_v3 }
0x107a   : > { %v5886_v56 = vpop.eup %5885 }
0x107b   : > { %v5888_v49 = vpop.eup %5887 }
0x107c   : > { %4609 = vadd.xlane.f32.xlu0 %v4608_v6  ;;  %v5890_v58 = vpop.eup %5889 }
0x107d   : > { %4594 = vadd.xlane.f32.xlu1 %v4593_v0  ;;  %v5892_v23 = vpop.eup %5891 }
0x107e   : > { %v5894_v16 = vpop.eup %5893 }
0x1081   : > { %4600 = vadd.xlane.f32.xlu1 %v4599_v11 }
0x1085   : > { %4606 = vadd.xlane.f32.xlu1 %v4605_v31 }
0x1089   : > { %4612 = vadd.xlane.f32.xlu1 %v4611_v41 }
0x1094   : > { %v3520_v54 = vpop.xlane.xlu0 %3519 }
0x1095   : > { %v3715_v63 = vmax.f32 %v3520_v54, 1e-20 }
0x1097   : > { %5895 = vrcp.f32 %v3715_v63 }
0x1098   : > { %5897 = vrcp.f32 %v3716_v13 }
0x109e   : > { %v3529_v26 = vpop.xlane.xlu1 %3528 }
0x109f   : > { %v3718_v4 = vmax.f32 %v3529_v26, 1e-20 }
0x10a4   : > { %v5896_v6 = vpop.eup %5895 }
0x10a5   : > { %v5898_v27 = vpop.eup %5897 }
0x10c9   : > { %v5377_v10 = vpop.f32.mrf.mxu1 }
0x10cb   : > { %v5378_v25 = vpop.f32.mrf.mxu1 }
0x10cc   : > { %v5379_v59 = vadd.f32 %v5378_v25, %v5377_v10 }
0x10cd   : > { %v5380_v32 = vpop.f32.mrf.mxu1  ;;  %v10106_v48 = vpop.f32.mrf.mxu0 }
0x10ce   : > { %v3741_v57 = vmul.f32 %v5884_v5, %v5379_v59 }
0x10cf   : > { %v5381_v42 = vpop.f32.mrf.mxu1  ;;  %v10109_v9 = vpop.f32.mrf.mxu0 }
0x10d0   : > { %v5382_v24 = vadd.f32 %v5381_v42, %v5380_v32  ;;  %3773 = vrot.lane.b32.xlu0 %v3741_v57, %s6023_s26 }
0x10d1   : > { %v5383_v28 = vpop.f32.mrf.mxu1  ;;  %v10112_v40 = vpop.f32.mrf.mxu0 }
0x10d2   : > { %v3742_v15 = vmul.f32 %v5886_v56, %v5382_v24 }
0x10d3   : > { %v5384_v1 = vpop.f32.mrf.mxu1  ;;  %v10115_v20 = vpop.f32.mrf.mxu0 }
0x10d4   : > { %v5385_v12 = vadd.f32 %v5384_v1, %v5383_v28  ;;  %3775 = vrot.lane.b32.xlu1 %v3742_v15, %s6023_s26 }
0x10d5   : > { %v5386_v52 = vpop.f32.mrf.mxu1  ;;  %v10118_v53 = vpop.f32.mrf.mxu0 }
0x10d6   : > { %v3743_v22 = vmul.f32 %v5888_v49, %v5385_v12 }
0x10d7   : > { %v5387_v55 = vpop.f32.mrf.mxu1  ;;  %v10121_v31 = vpop.f32.mrf.mxu0 }
0x10d8   : > { %v5388_v17 = vadd.f32 %v5387_v55, %v5386_v52  ;;  %3777 = vrot.lane.b32.xlu1 %v3743_v22, %s6023_s26 }
0x10d9   : > { %v5389_v2 = vpop.f32.mrf.mxu1  ;;  %v10124_v8 = vpop.f32.mrf.mxu0 }
0x10da   : > { %v3744_v62 = vmul.f32 %v5890_v58, %v5388_v17  ;;  %v3526_v50 = vpop.xlane.xlu0 %3525 }
0x10db   : > { %v5390_v14 = vpop.f32.mrf.mxu1  ;;  %v10126_v41 = vpop.f32.mrf.mxu0  ;;  %v3717_v38 = vmax.f32 %v3526_v50, 1e-20 }
0x10dc   : > { %v5391_v37 = vadd.f32 %v5390_v14, %v5389_v2  ;;  %3779 = vrot.lane.b32.xlu0 %v3744_v62, %s6023_s26 }
0x10dd   : > { %v5392_v60 = vpop.f32.mrf.mxu1  ;;  %v10128_v61 = vpop.f32.mrf.mxu0  ;;  %5899 = vrcp.f32 %v3717_v38 }
0x10de   : > { %v3745_v29 = vmul.f32 %v5892_v23, %v5391_v37  ;;  %v3532_v43 = vpop.xlane.xlu0 %3531  ;;  %5901 = vrcp.f32 %v3718_v4 }
0x10df   : > { %v5393_v21 = vpop.f32.mrf.mxu1  ;;  %v10130_v47 = vpop.f32.mrf.mxu0  ;;  %v3719_v32 = vmax.f32 %v3532_v43, 1e-20 }
0x10e0   : > { %v5394_v45 = vadd.f32 %v5393_v21, %v5392_v60  ;;  %3781 = vrot.lane.b32.xlu1 %v3745_v29, %s6023_s26 }
0x10e1   : > { %v5395_v46 = vpop.f32.mrf.mxu1  ;;  %v10132_v36 = vpop.f32.mrf.mxu0  ;;  %5903 = vrcp.f32 %v3719_v32 }
0x10e2   : > { %v3746_v34 = vmul.f32 %v5894_v16, %v5394_v45  ;;  %v3538_v51 = vpop.xlane.xlu0 %3537  ;;  %v3535_v10 = vpop.xlane.xlu1 %3534 }
0x10e3   : > { %v5396_v33 = vpop.f32.mrf.mxu1  ;;  %v10134_v35 = vpop.f32.mrf.mxu0  ;;  %v3720_v24 = vmax.f32 %v3535_v10, 1e-20  ;;  %v3721_v1 = vmax.f32 %v3538_v51, 1e-20 }
0x10e4   : > { %v5397_v30 = vadd.f32 %v5396_v33, %v5395_v46  ;;  %3783 = vrot.lane.b32.xlu0 %v3746_v34, %s6023_s26 }
0x10e5   : > { %v5398_v0 = vpop.f32.mrf.mxu1  ;;  %v10136_v25 = vpop.f32.mrf.mxu0  ;;  %5905 = vrcp.f32 %v3720_v24 }
0x10e6   : > { %v3747_v7 = vmul.f32 %v5896_v6, %v5397_v30  ;;  %v3544_v59 = vpop.xlane.xlu0 %3543  ;;  %5907 = vrcp.f32 %v3721_v1 }
0x10e7   : > { %v5399_v11 = vpop.f32.mrf.mxu1  ;;  %v10138_v44 = vpop.f32.mrf.mxu0  ;;  %v3723_v45 = vmax.f32 %v3544_v59, 1e-20 }
0x10e8   : > { %v5400_v3 = vadd.f32 %v5399_v11, %v5398_v0  ;;  %3785 = vrot.lane.b32.xlu1 %v3747_v7, %s6023_s26 }
0x10e9   : > { %v10140_v19 = vpop.f32.mrf.mxu0 }
0x10ea   : > { %v3748_v39 = vmul.f32 %v5898_v27, %v5400_v3  ;;  %v3541_v5 = vpop.xlane.xlu1 %3540  ;;  %v4568_v42 = vpop.xlane.xlu0 %4567 }
0x10eb   : > { %v10142_v28 = vpop.f32.mrf.mxu0  ;;  %v5900_v49 = vpop.eup %5899  ;;  %v3722_v17 = vmax.f32 %v3541_v5, 1e-20  ;;  %v4775_v33 = vmax.f32 %v4568_v42, 1e-20 }
0x10ec   : > { %3787 = vrot.lane.b32.xlu0 %v3748_v39, %s6023_s26  ;;  %v5902_v62 = vpop.eup %5901 }
0x10ed   : > { %5909 = vrcp.f32 %v3722_v17 }
0x10ee   : > { %v4574_v63 = vpop.xlane.xlu0 %4573  ;;  %v5904_v46 = vpop.eup %5903  ;;  %5911 = vrcp.f32 %v3723_v45 }
0x10ef   : > { %v4777_v50 = vmax.f32 %v4574_v63, 1e-20  ;;  %5913 = vrcp.f32 %v4775_v33 }
0x10f2   : > { %v3547_v57 = vpop.xlane.xlu1 %3546  ;;  %v4580_v23 = vpop.xlane.xlu0 %4579 }
0x10f3   : > { %v3724_v11 = vmax.f32 %v3547_v57, 1e-20  ;;  %v5906_v39 = vpop.eup %5905  ;;  %v4779_v32 = vmax.f32 %v4580_v23, 1e-20 }
0x10f4   : > { %v5908_v5 = vpop.eup %5907 }
0x10f5   : > { %5915 = vrcp.f32 %v3724_v11 }
0x10f6   : > { %v4571_v54 = vpop.xlane.xlu1 %4570  ;;  %v4586_v3 = vpop.xlane.xlu0 %4585  ;;  %5917 = vrcp.f32 %v4777_v50 }
0x10f7   : > { %v4776_v26 = vmax.f32 %v4571_v54, 1e-20 }
0x10f9   : > { %5919 = vrcp.f32 %v4776_v26 }
0x10fa   : > { %v4577_v58 = vpop.xlane.xlu1 %4576  ;;  %v4592_v42 = vpop.xlane.xlu0 %4591  ;;  %5921 = vrcp.f32 %v4779_v32 }
0x10fb   : > { %v4778_v24 = vmax.f32 %v4577_v58, 1e-20  ;;  %v5910_v63 = vpop.eup %5909  ;;  %v4783_v33 = vmax.f32 %v4592_v42, 1e-20 }
0x10fd   : > { %5923 = vrcp.f32 %v4778_v24 }
0x10fe   : > { %v4583_v30 = vpop.xlane.xlu1 %4582 }
0x1102   : > { %v4589_v4 = vpop.xlane.xlu1 %4588 }
0x1110   : > { %v5401_v56 = vpop.f32.mrf.mxu1 }
0x1112   : > { %v5402_v15 = vpop.f32.mrf.mxu1 }
0x1113   : > { %v5403_v12 = vadd.f32 %v5402_v15, %v5401_v56 }
0x1114   : > { %v5404_v18 = vpop.f32.mrf.mxu1  ;;  %v10144_v52 = vpop.f32.mrf.mxu0 }
0x1115   : > { %v3749_v22 = vmul.f32 %v5900_v49, %v5403_v12  ;;  %v4781_v12 = vmax.f32 %v4586_v3, 1e-20 }
0x1116   : > { %v5405_v55 = vpop.f32.mrf.mxu1  ;;  %v10146_v13 = vpop.f32.mrf.mxu0 }
0x1117   : > { %v5406_v2 = vadd.f32 %v5405_v55, %v5404_v18  ;;  %3789 = vrot.lane.b32.xlu1 %v3749_v22, %s6023_s26  ;;  %v4780_v18 = vmax.f32 %v4583_v30, 1e-20  ;;  %v4595_v22 = vpop.xlane.xlu1 %4594  ;;  %5925 = vrcp.f32 %v4781_v12 }
0x1118   : > { %v5407_v14 = vpop.f32.mrf.mxu1  ;;  %v10149_v37 = vpop.f32.mrf.mxu0 }
0x1119   : > { %v3750_v60 = vmul.f32 %v5902_v62, %v5406_v2  ;;  %v4598_v62 = vpop.xlane.xlu0 %4597  ;;  %5927 = vrcp.f32 %v4780_v18 }
0x111a   : > { %v5408_v29 = vpop.f32.mrf.mxu1  ;;  %v10151_v21 = vpop.f32.mrf.mxu0 }
0x111b   : > { %v5409_v16 = vadd.f32 %v5408_v29, %v5407_v14  ;;  %3791 = vrot.lane.b32.xlu0 %v3750_v60, %s6023_s26  ;;  %v5912_v14 = vpop.eup %5911  ;;  %v4782_v60 = vmax.f32 %v4589_v4, 1e-20 }
0x111c   : > { %v5410_v34 = vpop.f32.mrf.mxu1  ;;  %v10154_v0 = vpop.f32.mrf.mxu0 }
0x111d   : > { %v3751_v6 = vmul.f32 %v5904_v46, %v5409_v16  ;;  %v5914_v45 = vpop.eup %5913  ;;  %v4604_v3 = vpop.xlane.xlu0 %4603  ;;  %5929 = vrcp.f32 %v4782_v60 }
0x111e   : > { %v5411_v7 = vpop.f32.mrf.mxu1  ;;  %v10157_v38 = vpop.f32.mrf.mxu0  ;;  %5931 = vrcp.f32 %v4783_v33  ;;  %v4787_v32 = vmax.f32 %v4604_v3, 1e-20 }
0x111f   : > { %v5412_v27 = vadd.f32 %v5411_v7, %v5410_v34  ;;  %3793 = vrot.lane.b32.xlu1 %v3751_v6, %s6023_s26  ;;  %v5443_v34 = vadd.f32 %v10109_v9, %v10106_v48  ;;  %v5916_v6 = vpop.eup %5915  ;;  %v4601_v7 = vpop.xlane.xlu1 %4600  ;;  %v5449_v48 = vadd.f32 %v10121_v31, %v10118_v53  ;;  %v4784_v9 = vmax.f32 %v4595_v22, 1e-20 }
0x1120   : > { %v5413_v43 = vpop.f32.mrf.mxu1  ;;  %v10160_v15 = vpop.f32.mrf.mxu0  ;;  %v4786_v31 = vmax.f32 %v4601_v7, 1e-20 }
0x1121   : > { %v3752_v51 = vmul.f32 %v5906_v39, %v5412_v27  ;;  %v5918_v11 = vpop.eup %5917  ;;  %v4807_v39 = vmul.f32 %v5914_v45, %v5443_v34  ;;  %v4610_v53 = vpop.xlane.xlu0 %4609 }
0x1122   : > { %v5414_v10 = vpop.f32.mrf.mxu1  ;;  %v10163_v17 = vpop.f32.mrf.mxu0  ;;  %v4809_v4 = vmul.f32 %v5918_v11, %v5449_v48 }
0x1123   : > { %v5415_v59 = vadd.f32 %v5414_v10, %v5413_v43  ;;  %3795 = vrot.lane.b32.xlu0 %v3752_v51, %s6023_s26  ;;  %v5920_v50 = vpop.eup %5919  ;;  %v4785_v43 = vmax.f32 %v4598_v62, 1e-20  ;;  %v5446_v51 = vadd.f32 %v10115_v20, %v10112_v40  ;;  %v5452_v40 = vadd.f32 %v10126_v41, %v10124_v8 }
0x1124   : > { %v5416_v57 = vpop.f32.mrf.mxu1  ;;  %v10166_v16 = vpop.f32.mrf.mxu0  ;;  %v5455_v20 = vadd.f32 %v10130_v47, %v10128_v61  ;;  %v5458_v8 = vadd.f32 %v10134_v35, %v10132_v36  ;;  %v5461_v41 = vadd.f32 %v10138_v44, %v10136_v25  ;;  %v5464_v36 = vadd.f32 %v10142_v28, %v10140_v19 }
0x1125   : > { %v3753_v56 = vmul.f32 %v5908_v5, %v5415_v59  ;;  %v5922_v10 = vpop.eup %5921  ;;  %v4808_v59 = vmul.f32 %v5920_v50, %v5446_v51  ;;  %5933 = vrcp.f32 %v4785_v43 }
0x1126   : > { %v5417_v54 = vpop.f32.mrf.mxu1  ;;  %v10171_v26 = vpop.f32.mrf.mxu0  ;;  %5935 = vrcp.f32 %v4784_v9 }
0x1127   : > { %v5418_v1 = vadd.f32 %v5417_v54, %v5416_v57  ;;  %3797 = vrot.lane.b32.xlu1 %v3753_v56, %s6023_s26  ;;  %v5924_v5 = vpop.eup %5923  ;;  %v4607_v57 = vpop.xlane.xlu1 %4606  ;;  %v4811_v56 = vmul.f32 %v5922_v10, %v5455_v20  ;;  %5937 = vrcp.f32 %v4787_v32 }
0x1128   : > { %v5419_v49 = vpop.f32.mrf.mxu1  ;;  %v5480_v42 = vpop.f32.mrf.mxu0  ;;  %v4810_v54 = vmul.f32 %v5924_v5, %v5452_v40  ;;  %5939 = vrcp.f32 %v4786_v31  ;;  %v4788_v61 = vmax.f32 %v4607_v57, 1e-20 }
0x1129   : > { %v3754_v55 = vmul.f32 %v5910_v63, %v5418_v1  ;;  %v5926_v24 = vpop.eup %5925  ;;  %v4789_v63 = vmax.f32 %v4610_v53, 1e-20 }
0x112a   : > { %v5420_v2 = vpop.f32.mrf.mxu1  ;;  %v5928_v1 = vpop.eup %5927  ;;  %v4813_v18 = vmul.f32 %v5926_v24, %v5461_v41 }
0x112b   : > { %v5421_v58 = vadd.f32 %v5420_v2, %v5419_v49  ;;  %3799 = vrot.lane.b32.xlu0 %v3754_v55, %s6023_s26  ;;  %v5481_v12 = vpop.f32.mrf.mxu0  ;;  %v4613_v47 = vpop.xlane.xlu1 %4612  ;;  %v5467_v49 = vadd.f32 %v10146_v13, %v10144_v52  ;;  %v4812_v22 = vmul.f32 %v5928_v1, %v5458_v8  ;;  %5941 = vrcp.f32 %v4789_v63 }
0x112c   : > { %v5422_v23 = vpop.f32.mrf.mxu1  ;;  %v5930_v55 = vpop.eup %5929  ;;  %5943 = vrcp.f32 %v4788_v61  ;;  %v4790_v35 = vmax.f32 %v4613_v47, 1e-20  ;;  %v5470_v52 = vadd.f32 %v10151_v21, %v10149_v37  ;;  %v5473_v13 = vadd.f32 %v10157_v38, %v10154_v0 }
0x112d   : > { %v3755_v29 = vmul.f32 %v5912_v14, %v5421_v58  ;;  %v5483_v2 = vpop.f32.mrf.mxu0  ;;  %v5932_v25 = vpop.eup %5931  ;;  %v4814_v62 = vmul.f32 %v5930_v55, %v5464_v36  ;;  %v5476_v37 = vadd.f32 %v10163_v17, %v10160_v15  ;;  %v5479_v21 = vadd.f32 %v10171_v26, %v10166_v16 }
0x112e   : > { %v5423_v46 = vpop.f32.mrf.mxu1  ;;  %v4815_v44 = vmul.f32 %v5932_v25, %v5467_v49  ;;  %5945 = vrcp.f32 %v4790_v35  ;;  %v5482_v33 = vadd.f32 %v5481_v12, %v5480_v42 }
0x112f   : > { %v5424_v30 = vadd.f32 %v5423_v46, %v5422_v23  ;;  %3801 = vrot.lane.b32.xlu1 %v3755_v29, %s6023_s26  ;;  %v5484_v58 = vpop.f32.mrf.mxu0 }
0x1131   : > { %v3756_v27 = vmul.f32 %v5916_v6, %v5424_v30  ;;  %v5486_v0 = vpop.f32.mrf.mxu0  ;;  %v5485_v30 = vadd.f32 %v5484_v58, %v5483_v2 }
0x1132   : > { %v5934_v19 = vpop.eup %5933 }
0x1133   : > { %4839 = vrot.lane.b32.xlu1 %v4807_v39, %s6024_s27  ;;  %3803 = vrot.lane.b32.xlu0 %v3756_v27, %s6023_s26  ;;  %v5936_v28 = vpop.eup %5935  ;;  %v4817_v60 = vmul.f32 %v5934_v19, %v5473_v13  ;;  %v5487_v15 = vpop.f32.mrf.mxu0 }
0x1134   : > { %v4816_v23 = vmul.f32 %v5936_v28, %v5470_v52  ;;  %v5938_v29 = vpop.eup %5937  ;;  %v5488_v3 = vadd.f32 %v5487_v15, %v5486_v0 }
0x1135   : > { %v5940_v45 = vpop.eup %5939  ;;  %v4819_v34 = vmul.f32 %v5938_v29, %v5479_v21 }
0x1136   : > { %v4818_v46 = vmul.f32 %v5940_v45, %v5476_v37 }
0x1137   : > { %4843 = vrot.lane.b32.xlu1 %v4809_v4, %s6024_s27  ;;  %4841 = vrot.lane.b32.xlu0 %v4808_v59, %s6024_s27 }
0x1138   : > { %v5942_v6 = vpop.eup %5941 }
0x1139   : > { %v5944_v16 = vpop.eup %5943  ;;  %v4821_v11 = vmul.f32 %v5942_v6, %v5485_v30 }
0x113a   : > { %v4820_v7 = vmul.f32 %v5944_v16, %v5482_v33 }
0x113b   : > { %4847 = vrot.lane.b32.xlu1 %v4811_v56, %s6024_s27  ;;  %4845 = vrot.lane.b32.xlu0 %v4810_v54, %s6024_s27  ;;  %v5946_v39 = vpop.eup %5945 }
0x113c   : > { %v4822_v50 = vmul.f32 %v5946_v39, %v5488_v3 }
0x113f   : > { %4851 = vrot.lane.b32.xlu1 %v4813_v18, %s6024_s27  ;;  %4849 = vrot.lane.b32.xlu0 %v4812_v22, %s6024_s27 }
0x1142   : > { %v3774_v14 = vpop.permute.xlu0 %3773 }
0x1143   : > { %3822 = vst.msk [vmem:[%s7790_s20] sm:$0xff] %vm3821_vm9, %v3774_v14  ;;  %4855 = vrot.lane.b32.xlu1 %v4815_v44, %s6024_s27  ;;  %4853 = vrot.lane.b32.xlu0 %v4814_v62, %s6024_s27 }
0x1146   : > { %v3776_v38 = vpop.permute.xlu1 %3775 }
0x1147   : > { %4859 = vrot.lane.b32.xlu1 %v4817_v60, %s6024_s27  ;;  %4857 = vrot.lane.b32.xlu0 %v4816_v23, %s6024_s27  ;;  %3823 = vst.msk [vmem:[%s7790_s20 + $0x8] sm:$0xff] %vm3821_vm9, %v3776_v38 }
0x114a   : > { %v3778_v17 = vpop.permute.xlu1 %3777 }
0x114b   : > { %4863 = vrot.lane.b32.xlu1 %v4819_v34, %s6024_s27  ;;  %4861 = vrot.lane.b32.xlu0 %v4818_v46, %s6024_s27  ;;  %3824 = vst.msk [vmem:[%s7790_s20 + $0x10] sm:$0xff] %vm3821_vm9, %v3778_v17 }
0x114e   : > { %v3780_v27 = vpop.permute.xlu0 %3779 }
0x114f   : > { %4867 = vrot.lane.b32.xlu1 %v4821_v11, %s6024_s27  ;;  %3825 = vst.msk [vmem:[%s7790_s20 + $0x18] sm:$0xff] %vm3821_vm9, %v3780_v27  ;;  %4865 = vrot.lane.b32.xlu0 %v4820_v7, %s6024_s27 }
0x1152   : > { %v3782_v43 = vpop.permute.xlu1 %3781 }
0x1153   : > { %4869 = vrot.lane.b32.xlu0 %v4822_v50, %s6024_s27  ;;  %3826 = vst.msk [vmem:[%s7790_s20 + $0x20] sm:$0xff] %vm3821_vm9, %v3782_v43 }
0x1156   : > { %v3784_v26 = vpop.permute.xlu0 %3783 }
0x1157   : > { %3827 = vst.msk [vmem:[%s7790_s20 + $0x28] sm:$0xff] %vm3821_vm9, %v3784_v26 }
0x115a   : > { %v3786_v51 = vpop.permute.xlu1 %3785 }
0x115b   : > { %3828 = vst.msk [vmem:[%s7790_s20 + $0x30] sm:$0xff] %vm3821_vm9, %v3786_v51 }
0x115e   : > { %v3788_v48 = vpop.permute.xlu0 %3787 }
0x115f   : > { %3829 = vst.msk [vmem:[%s7790_s20 + $0x38] sm:$0xff] %vm3821_vm9, %v3788_v48 }
0x1189   : > { %v3790_v9 = vpop.permute.xlu1 %3789 }
0x118a   : > { %3830 = vst.msk [vmem:[%s7790_s20 + $0x40] sm:$0xff] %vm3821_vm9, %v3790_v9 }
0x118d   : > { %v3792_v10 = vpop.permute.xlu0 %3791 }
0x118e   : > { %3831 = vst.msk [vmem:[%s7790_s20 + $0x48] sm:$0xff] %vm3821_vm9, %v3792_v10 }
0x1191   : > { %v3794_v4 = vpop.permute.xlu1 %3793 }
0x1192   : > { %3832 = vst.msk [vmem:[%s7790_s20 + $0x50] sm:$0xff] %vm3821_vm9, %v3794_v4 }
0x1195   : > { %v3796_v59 = vpop.permute.xlu0 %3795 }
0x1196   : > { %3833 = vst.msk [vmem:[%s7790_s20 + $0x58] sm:$0xff] %vm3821_vm9, %v3796_v59 }
0x1199   : > { %v3798_v5 = vpop.permute.xlu1 %3797 }
0x119a   : > { %3834 = vst.msk [vmem:[%s7790_s20 + $0x60] sm:$0xff] %vm3821_vm9, %v3798_v5 }
0x119d   : > { %v3800_v32 = vpop.permute.xlu0 %3799 }
0x119e   : > { %3835 = vst.msk [vmem:[%s7790_s20 + $0x68] sm:$0xff] %vm3821_vm9, %v3800_v32 }
0x11a1   : > { %v3802_v57 = vpop.permute.xlu1 %3801 }
0x11a2   : > { %3836 = vst.msk [vmem:[%s7790_s20 + $0x70] sm:$0xff] %vm3821_vm9, %v3802_v57 }
0x11a5   : > { %v3804_v42 = vpop.permute.xlu0 %3803  ;;  %v4840_v40 = vpop.permute.xlu1 %4839 }
0x11a6   : > { %3837 = vst.msk [vmem:[%s7790_s20 + $0x78] sm:$0xff] %vm3821_vm9, %v3804_v42 }
0x11a7   : > { %4888 = vst.msk [vmem:[%s7790_s20] sm:$0xff] %vm4887_vm8, %v4840_v40 }
0x11a9   : > { %v4842_v20 = vpop.permute.xlu0 %4841  ;;  %v4844_v53 = vpop.permute.xlu1 %4843 }
0x11aa   : > { %4889 = vst.msk [vmem:[%s7790_s20 + $0x8] sm:$0xff] %vm4887_vm8, %v4842_v20  ;;  %4890 = vst.msk [vmem:[%s7790_s20 + $0x10] sm:$0xff] %vm4887_vm8, %v4844_v53 }
0x11ad   : > { %v4846_v31 = vpop.permute.xlu0 %4845  ;;  %v4848_v24 = vpop.permute.xlu1 %4847 }
0x11ae   : > { %4891 = vst.msk [vmem:[%s7790_s20 + $0x18] sm:$0xff] %vm4887_vm8, %v4846_v31  ;;  %4892 = vst.msk [vmem:[%s7790_s20 + $0x20] sm:$0xff] %vm4887_vm8, %v4848_v24 }
0x11b1   : > { %v4850_v56 = vpop.permute.xlu0 %4849  ;;  %v4852_v54 = vpop.permute.xlu1 %4851 }
0x11b2   : > { %4893 = vst.msk [vmem:[%s7790_s20 + $0x28] sm:$0xff] %vm4887_vm8, %v4850_v56  ;;  %4894 = vst.msk [vmem:[%s7790_s20 + $0x30] sm:$0xff] %vm4887_vm8, %v4852_v54 }
0x11b5   : > { %v4854_v1 = vpop.permute.xlu0 %4853  ;;  %v4856_v63 = vpop.permute.xlu1 %4855 }
0x11b6   : > { %4895 = vst.msk [vmem:[%s7790_s20 + $0x38] sm:$0xff] %vm4887_vm8, %v4854_v1  ;;  %4896 = vst.msk [vmem:[%s7790_s20 + $0x40] sm:$0xff] %vm4887_vm8, %v4856_v63 }
0x11b9   : > { %v4858_v12 = vpop.permute.xlu0 %4857  ;;  %v4860_v8 = vpop.permute.xlu1 %4859 }
0x11ba   : > { %4897 = vst.msk [vmem:[%s7790_s20 + $0x48] sm:$0xff] %vm4887_vm8, %v4858_v12  ;;  %4898 = vst.msk [vmem:[%s7790_s20 + $0x50] sm:$0xff] %vm4887_vm8, %v4860_v8 }
0x11bd   : > { %v4862_v41 = vpop.permute.xlu0 %4861  ;;  %v4864_v61 = vpop.permute.xlu1 %4863 }
0x11be   : > { %4899 = vst.msk [vmem:[%s7790_s20 + $0x58] sm:$0xff] %vm4887_vm8, %v4862_v41  ;;  %4900 = vst.msk [vmem:[%s7790_s20 + $0x60] sm:$0xff] %vm4887_vm8, %v4864_v61 }
0x11c1   : > { %v4866_v47 = vpop.permute.xlu0 %4865  ;;  %v4868_v49 = vpop.permute.xlu1 %4867 }
0x11c2   : > { %4901 = vst.msk [vmem:[%s7790_s20 + $0x68] sm:$0xff] %vm4887_vm8, %v4866_v47  ;;  %4902 = vst.msk [vmem:[%s7790_s20 + $0x70] sm:$0xff] %vm4887_vm8, %v4868_v49 }
0x11c5   : > { %v4870_v18 = vpop.permute.xlu0 %4869 }
0x11c6   : > { %4903 = vst.msk [vmem:[%s7790_s20 + $0x78] sm:$0xff] %vm4887_vm8, %v4870_v18 }
0x11c7 PF: > { %s16_s21 = sadd.s32 1, %s6017_s21  }
0x11c8   : > { %p13_p4 = scmp.ge.s32.totalorder %s16_s21, 4  }
0x11ca   :  { %15 = sbr.rel (!%p13_p4) target bundleno = 1 (0x1), region = 77 }

</bundles_post_ra>
